<compile_context>
chip_gen: v5e
topology: v5e:2x2
jax: 0.10.0
libtpu: 0.0.40
codegen_flags: <defaults>
</compile_context>

<pallas_src>
import functools

import numpy as np
import jax
import jax.numpy as jnp
from jax import lax
from jax.experimental import pallas as pl
from jax.experimental.pallas import tpu as pltpu


def _relative_position_index(window_size):
    """Exact replica of the PyTorch buffer computation (host-side numpy)."""
    wd, wh, ww = window_size
    coords = np.stack(np.meshgrid(np.arange(wd), np.arange(wh), np.arange(ww),
                                  indexing="ij"))                       # (3, wd, wh, ww)
    coords_flat = coords.reshape(3, -1)                                 # (3, N)
    rel = coords_flat[:, :, None] - coords_flat[:, None, :]             # (3, N, N)
    rel = rel.transpose(1, 2, 0).astype(np.int64)                       # (N, N, 3)
    rel[:, :, 0] += wd - 1
    rel[:, :, 1] += wh - 1
    rel[:, :, 2] += ww - 1
    rel[:, :, 0] *= (2 * wh - 1) * (2 * ww - 1)
    rel[:, :, 1] *= (2 * ww - 1)
    return rel.sum(-1)                                                  # (N, N)


def _swa3d_kernel(x_ref, wqkv_ref, bqkv_ref, bias_ref, wproj_ref, bproj_ref,
                  o_ref, *, BW, N, C, num_heads, head_dim, nW):
    """One grid step = BW windows (BW*N token rows).

    x_ref    : (BW*N, C)        VMEM bf16  input tokens of these windows
    wqkv_ref : (C, 3C)          VMEM bf16  packed QKV weight (q-scale folded in)
    bqkv_ref : (1, 3C)          VMEM f32   packed QKV bias  (q-scale folded in)
    bias_ref : (nW*nH, N, N)    VMEM f32   relative-position bias (+ window mask),
                                           constant-index -> resident across grid
    wproj_ref: (C, C)           VMEM bf16  output projection weight
    bproj_ref: (1, C)           VMEM f32   output projection bias
    o_ref    : (BW*N, C)        VMEM f32   output tokens
    """
    x = x_ref[...]                                                   # (BW*N, C) bf16

    # Packed QKV matmul: M = BW*N, K = C (lane-dense), f32 accumulation.
    qkv = jnp.dot(x, wqkv_ref[...], preferred_element_type=jnp.float32)
    qkv = qkv + bqkv_ref[...]                                        # (BW*N, 3C) f32

    base = pl.program_id(0) * BW                                     # first global window
    win_ctx = []
    for w in range(BW):
        rows = qkv[w * N:(w + 1) * N]                                # (N, 3C) static slice
        widx = ((base + w) % nW) if nW > 1 else 0                    # mask/bias slab index
        head_ctx = []
        for h in range(num_heads):
            lo = h * head_dim
            q = rows[:, lo:lo + head_dim].astype(jnp.bfloat16)       # scale pre-folded
            k = rows[:, C + lo:C + lo + head_dim].astype(jnp.bfloat16)
            v = rows[:, 2 * C + lo:2 * C + lo + head_dim].astype(jnp.bfloat16)

            # q @ k^T without materializing a transpose (contract head dims).
            s = lax.dot_general(q, k, (((1,), (1,)), ((), ())),
                                preferred_element_type=jnp.float32)  # (N, N) f32
            s = s + bias_ref[widx * num_heads + h]                   # bias (+mask), f32

            # Numerically stable softmax with deferred normalization.
            s = s - jnp.max(s, axis=-1, keepdims=True)
            p = jnp.exp(s)                                           # unnormalized, f32
            denom = jnp.sum(p, axis=-1, keepdims=True)               # >= 1 after -max
            ctx = jnp.dot(p.astype(jnp.bfloat16), v,
                          preferred_element_type=jnp.float32)        # (N, hd) f32
            head_ctx.append(ctx * pl.reciprocal(denom, approx=True))
        win_ctx.append(jnp.concatenate(head_ctx, axis=-1))           # (N, C)

    ctx_all = jnp.concatenate(win_ctx, axis=0)                       # (BW*N, C) f32
    out = jnp.dot(ctx_all.astype(jnp.bfloat16), wproj_ref[...],
                  preferred_element_type=jnp.float32) + bproj_ref[...]
    o_ref[...] = out.astype(o_ref.dtype)


def _pick_bw(B_, max_bw=8):
    """Largest divisor of B_ that is <= max_bw (windows per grid step)."""
    for bw in range(min(max_bw, B_), 0, -1):
        if B_ % bw == 0:
            return bw
    return 1


def self_window_attention_3d(x, qkv_w, qkv_b, proj_w, proj_b, rel_table, *,
                             window_size, num_heads, qk_scale=None, mask=None,
                             windows_per_step=8):
    """x: (B_, N, C) with N = prod(window_size).  Returns (B_, N, C) float32.

    qkv_w : (3C, C)   PyTorch nn.Linear weight layout (out, in)
    qkv_b : (3C,) or None
    proj_w: (C, C), proj_b: (C,)
    rel_table: ((2Wd-1)(2Wh-1)(2Ww-1), num_heads)
    mask  : optional (nW, N, N) additive window mask (B_ % nW == 0)
    """
    B_, N, C = x.shape
    head_dim = C // num_heads
    scale = qk_scale if qk_scale is not None else head_dim ** (-0.5)
    assert N == window_size[0] * window_size[1] * window_size[2]
    assert C == num_heads * head_dim

    # ---- parameter packing (plain-JAX glue, once per call) ----
    wqkv = jnp.transpose(qkv_w).astype(jnp.float32)                       # (C, 3C)
    bqkv = (qkv_b if qkv_b is not None
            else jnp.zeros((3 * C,), jnp.float32)).astype(jnp.float32)
    # Fold the q scale into the q-columns of the packed weight/bias (f32),
    # then cast MXU operands to bf16.
    scale_vec = jnp.concatenate(
        [jnp.full((C,), scale, jnp.float32), jnp.ones((2 * C,), jnp.float32)])
    wqkv = (wqkv * scale_vec[None, :]).astype(jnp.bfloat16)               # bf16 (C, 3C)
    bqkv = (bqkv * scale_vec).reshape(1, 3 * C)                           # f32  (1, 3C)
    wproj = jnp.transpose(proj_w).astype(jnp.bfloat16)                    # bf16 (C, C)
    bproj = proj_b.reshape(1, C).astype(jnp.float32)                      # f32  (1, C)

    # Relative position bias: static index build + table gather (host/XLA side).
    idx = _relative_position_index(window_size)                           # (N, N)
    rel_bias = rel_table[idx.reshape(-1)].reshape(N, N, num_heads)
    rel_bias = jnp.transpose(rel_bias, (2, 0, 1)).astype(jnp.float32)     # (nH, N, N)

    if mask is None:
        nW = 1
        bias_arr = rel_bias                                               # (nH, N, N)
    else:
        nW = mask.shape[0]
        assert B_ % nW == 0
        bias_arr = rel_bias[None] + mask[:, None].astype(jnp.float32)     # (nW, nH, N, N)
        bias_arr = bias_arr.reshape(nW * num_heads, N, N)

    BW = _pick_bw(B_, windows_per_step)
    grid = (B_ // BW,)

    x2d = x.reshape(B_ * N, C).astype(jnp.bfloat16)                       # free reshape

    kernel = functools.partial(_swa3d_kernel, BW=BW, N=N, C=C,
                               num_heads=num_heads, head_dim=head_dim, nW=nW)

    out2d = pl.pallas_call(
        kernel,
        out_shape=jax.ShapeDtypeStruct((B_ * N, C), jnp.float32),
        grid=grid,
        in_specs=[
            pl.BlockSpec((BW * N, C), lambda b: (b, 0)),                  # x (bf16)
            pl.BlockSpec((C, 3 * C), lambda b: (0, 0)),                   # wqkv (bf16)
            pl.BlockSpec((1, 3 * C), lambda b: (0, 0)),                   # bqkv (f32)
            pl.BlockSpec((nW * num_heads, N, N), lambda b: (0, 0, 0)),    # bias (+mask), resident
            pl.BlockSpec((C, C), lambda b: (0, 0)),                       # wproj (bf16)
            pl.BlockSpec((1, C), lambda b: (0, 0)),                       # bproj (f32)
        ],
        out_specs=pl.BlockSpec((BW * N, C), lambda b: (b, 0)),
        compiler_params=pltpu.CompilerParams(
            dimension_semantics=("parallel",)),
    )(x2d, wqkv, bqkv, bias_arr, wproj, bproj)

    return out2d.reshape(B_, N, C)


def reference(x, qkv_w, qkv_b, proj_w, proj_b, rel_table, window_size,
              num_heads, qk_scale=None, mask=None):
    """Pure-JAX f32 reference mirroring the PyTorch forward."""
    B_, N, C = x.shape
    hd = C // num_heads
    scale = qk_scale if qk_scale is not None else hd ** (-0.5)
    qkv = x @ qkv_w.T + (qkv_b if qkv_b is not None else 0.0)
    qkv = qkv.reshape(B_, N, 3, num_heads, hd).transpose(2, 0, 3, 1, 4)
    q, k, v = qkv[0], qkv[1], qkv[2]
    q = q * scale
    attn = jnp.einsum("bhnd,bhmd->bhnm", q, k)
    idx = _relative_position_index(window_size)
    bias = rel_table[idx.reshape(-1)].reshape(N, N, num_heads).transpose(2, 0, 1)
    attn = attn + bias[None]
    if mask is not None:
        nW = mask.shape[0]
        attn = attn.reshape(B_ // nW, nW, num_heads, N, N) + mask[None, :, None]
        attn = attn.reshape(-1, num_heads, N, N)
    attn = jax.nn.softmax(attn, axis=-1)
    out = jnp.einsum("bhnm,bhmd->bhnd", attn, v)
    out = out.transpose(0, 2, 1, 3).reshape(B_, N, C)
    return out @ proj_w.T + proj_b


if __name__ == "__main__":
    window_size = (2, 4, 4)
    N = window_size[0] * window_size[1] * window_size[2]          # 32
    dim = 128
    num_heads = 4
    nW = 4
    B_ = 16                                                       # batch 4 x 4 windows

    key = jax.random.PRNGKey(0)
    ks = jax.random.split(key, 7)
    x = jax.random.normal(ks[0], (B_, N, dim), jnp.float32)
    qkv_w = 0.05 * jax.random.normal(ks[1], (3 * dim, dim), jnp.float32)
    qkv_b = 0.05 * jax.random.normal(ks[2], (3 * dim,), jnp.float32)
    proj_w = 0.05 * jax.random.normal(ks[3], (dim, dim), jnp.float32)
    proj_b = 0.05 * jax.random.normal(ks[4], (dim,), jnp.float32)
    tbl_sz = ((2 * window_size[0] - 1) * (2 * window_size[1] - 1)
              * (2 * window_size[2] - 1))
    rel_table = 0.02 * jax.random.normal(ks[5], (tbl_sz, num_heads), jnp.float32)
    # Swin-style additive window mask: 0 / -100.
    mask = jnp.where(jax.random.uniform(ks[6], (nW, N, N)) < 0.15,
                     -100.0, 0.0).astype(jnp.float32)

    # --- no-mask path ---
    out = self_window_attention_3d(x, qkv_w, qkv_b, proj_w, proj_b, rel_table,
                                   window_size=window_size, num_heads=num_heads)
    out = jax.block_until_ready(out)
    ref = reference(x, qkv_w, qkv_b, proj_w, proj_b, rel_table,
                    window_size, num_heads)
    assert out.shape == ref.shape == (B_, N, dim)
    err = float(jnp.max(jnp.abs(out - ref)))
    assert err < 2e-2, f"no-mask max abs err {err}"

    # --- masked path ---
    out_m = self_window_attention_3d(x, qkv_w, qkv_b, proj_w, proj_b, rel_table,
                                     window_size=window_size,
                                     num_heads=num_heads, mask=mask)
    out_m = jax.block_until_ready(out_m)
    ref_m = reference(x, qkv_w, qkv_b, proj_w, proj_b, rel_table,
                      window_size, num_heads, mask=mask)
    err_m = float(jnp.max(jnp.abs(out_m - ref_m)))
    assert err_m < 2e-2, f"masked max abs err {err_m}"

    print("KERNEL_OK")
</pallas_src>

<mosaic_0001>
module attributes {stable_mosaic.version = 11 : i64} {
  func.func @_swa3d_kernel(%arg0: i32, %arg1: memref<256x128xbf16, #tpu.memory_space<vmem>>, %arg2: memref<128x384xbf16, #tpu.memory_space<vmem>>, %arg3: memref<1x384xf32, #tpu.memory_space<vmem>>, %arg4: memref<4x32x32xf32, #tpu.memory_space<vmem>>, %arg5: memref<128x128xbf16, #tpu.memory_space<vmem>>, %arg6: memref<1x128xf32, #tpu.memory_space<vmem>>, %arg7: memref<256x128xf32, #tpu.memory_space<vmem>>) attributes {dimension_semantics = [#tpu.dimension_semantics<parallel>], iteration_bounds = array<i64: 2>, scalar_prefetch = 0 : i64, scratch_operands = 0 : i64, tpu.core_type = #tpu.core_type<tc>, window_params = [{transform_indices = @transform_0, window_bounds = array<i64: 256, 128>}, {pipeline_mode = #tpu.pipeline_mode<synchronous>, transform_indices = @transform_1, window_bounds = array<i64: 128, 384>}, {pipeline_mode = #tpu.pipeline_mode<synchronous>, transform_indices = @transform_2, window_bounds = array<i64: 1, 384>}, {pipeline_mode = #tpu.pipeline_mode<synchronous>, transform_indices = @transform_3, window_bounds = array<i64: 4, 32, 32>}, {pipeline_mode = #tpu.pipeline_mode<synchronous>, transform_indices = @transform_4, window_bounds = array<i64: 128, 128>}, {pipeline_mode = #tpu.pipeline_mode<synchronous>, transform_indices = @transform_5, window_bounds = array<i64: 1, 128>}, {transform_indices = @transform_6, window_bounds = array<i64: 256, 128>}]} {
    %c0 = arith.constant 0 : index
    %c0_0 = arith.constant 0 : index
    %0 = vector.load %arg1[%c0, %c0_0] : memref<256x128xbf16, #tpu.memory_space<vmem>>, vector<256x128xbf16>
    %c0_1 = arith.constant 0 : index
    %c0_2 = arith.constant 0 : index
    %1 = vector.load %arg2[%c0_1, %c0_2] : memref<128x384xbf16, #tpu.memory_space<vmem>>, vector<128x384xbf16>
    %cst = arith.constant dense<0.000000e+00> : vector<256x384xf32>
    %2 = tpu.matmul %0, %1, %cst {dimension_numbers = #tpu.dot_dimension_numbers<[1], [0], [0], [1], [0, 0, 1, 1], [], []>} : vector<256x128xbf16>, vector<128x384xbf16>, vector<256x384xf32> -> vector<256x384xf32>
    %c0_3 = arith.constant 0 : index
    %c0_4 = arith.constant 0 : index
    %3 = vector.load %arg3[%c0_3, %c0_4] : memref<1x384xf32, #tpu.memory_space<vmem>>, vector<1x384xf32>
    %4 = vector.broadcast %3 : vector<1x384xf32> to vector<256x384xf32>
    %5 = arith.addf %2, %4 : vector<256x384xf32>
    %6 = vector.extract_strided_slice %5 {offsets = [0, 0], sizes = [32, 384], strides = [1, 1]} : vector<256x384xf32> to vector<32x384xf32>
    %7 = vector.extract_strided_slice %6 {offsets = [0, 0], sizes = [32, 32], strides = [1, 1]} : vector<32x384xf32> to vector<32x32xf32>
    %8 = arith.truncf %7 : vector<32x32xf32> to vector<32x32xbf16>
    %9 = vector.extract_strided_slice %6 {offsets = [0, 128], sizes = [32, 32], strides = [1, 1]} : vector<32x384xf32> to vector<32x32xf32>
    %10 = arith.truncf %9 : vector<32x32xf32> to vector<32x32xbf16>
    %11 = vector.extract_strided_slice %6 {offsets = [0, 256], sizes = [32, 32], strides = [1, 1]} : vector<32x384xf32> to vector<32x32xf32>
    %12 = arith.truncf %11 : vector<32x32xf32> to vector<32x32xbf16>
    %cst_5 = arith.constant dense<0.000000e+00> : vector<32x32xf32>
    %13 = tpu.matmul %8, %10, %cst_5 {dimension_numbers = #tpu.dot_dimension_numbers<[1], [1], [0], [0], [0, 0, 1, 0], [], []>} : vector<32x32xbf16>, vector<32x32xbf16>, vector<32x32xf32> -> vector<32x32xf32>
    %c0_6 = arith.constant 0 : index
    %c0_7 = arith.constant 0 : index
    %c0_8 = arith.constant 0 : index
    %14 = vector.load %arg4[%c0_6, %c0_7, %c0_8] : memref<4x32x32xf32, #tpu.memory_space<vmem>>, vector<1x32x32xf32>
    %15 = vector.shape_cast %14 : vector<1x32x32xf32> to vector<32x32xf32>
    %16 = arith.addf %13, %15 : vector<32x32xf32>
    %cst_9 = arith.constant dense<0xFF800000> : vector<32xf32>
    %17 = vector.multi_reduction <maximumf>, %16, %cst_9 [1] : vector<32x32xf32> to vector<32xf32>
    %18 = vector.shape_cast %17 : vector<32xf32> to vector<32x1xf32>
    %19 = vector.broadcast %18 : vector<32x1xf32> to vector<32x32xf32>
    %20 = arith.subf %16, %19 : vector<32x32xf32>
    %21 = math.exp %20 : vector<32x32xf32>
    %cst_10 = arith.constant dense<0.000000e+00> : vector<32xf32>
    %22 = vector.multi_reduction <add>, %21, %cst_10 [1] : vector<32x32xf32> to vector<32xf32>
    %23 = vector.shape_cast %22 : vector<32xf32> to vector<32x1xf32>
    %24 = arith.truncf %21 : vector<32x32xf32> to vector<32x32xbf16>
    %cst_11 = arith.constant dense<0.000000e+00> : vector<32x32xf32>
    %25 = tpu.matmul %24, %12, %cst_11 {dimension_numbers = #tpu.dot_dimension_numbers<[1], [0], [0], [1], [0, 0, 1, 1], [], []>} : vector<32x32xbf16>, vector<32x32xbf16>, vector<32x32xf32> -> vector<32x32xf32>
    %26 = tpu.reciprocal %23 {approx = true} : vector<32x1xf32> -> vector<32x1xf32>
    %27 = vector.broadcast %26 : vector<32x1xf32> to vector<32x32xf32>
    %28 = arith.mulf %25, %27 : vector<32x32xf32>
    %29 = vector.extract_strided_slice %6 {offsets = [0, 32], sizes = [32, 32], strides = [1, 1]} : vector<32x384xf32> to vector<32x32xf32>
    %30 = arith.truncf %29 : vector<32x32xf32> to vector<32x32xbf16>
    %31 = vector.extract_strided_slice %6 {offsets = [0, 160], sizes = [32, 32], strides = [1, 1]} : vector<32x384xf32> to vector<32x32xf32>
    %32 = arith.truncf %31 : vector<32x32xf32> to vector<32x32xbf16>
    %33 = vector.extract_strided_slice %6 {offsets = [0, 288], sizes = [32, 32], strides = [1, 1]} : vector<32x384xf32> to vector<32x32xf32>
    %34 = arith.truncf %33 : vector<32x32xf32> to vector<32x32xbf16>
    %cst_12 = arith.constant dense<0.000000e+00> : vector<32x32xf32>
    %35 = tpu.matmul %30, %32, %cst_12 {dimension_numbers = #tpu.dot_dimension_numbers<[1], [1], [0], [0], [0, 0, 1, 0], [], []>} : vector<32x32xbf16>, vector<32x32xbf16>, vector<32x32xf32> -> vector<32x32xf32>
    %c1 = arith.constant 1 : index
    %c0_13 = arith.constant 0 : index
    %c0_14 = arith.constant 0 : index
    %36 = vector.load %arg4[%c1, %c0_13, %c0_14] : memref<4x32x32xf32, #tpu.memory_space<vmem>>, vector<1x32x32xf32>
    %37 = vector.shape_cast %36 : vector<1x32x32xf32> to vector<32x32xf32>
    %38 = arith.addf %35, %37 : vector<32x32xf32>
    %cst_15 = arith.constant dense<0xFF800000> : vector<32xf32>
    %39 = vector.multi_reduction <maximumf>, %38, %cst_15 [1] : vector<32x32xf32> to vector<32xf32>
    %40 = vector.shape_cast %39 : vector<32xf32> to vector<32x1xf32>
    %41 = vector.broadcast %40 : vector<32x1xf32> to vector<32x32xf32>
    %42 = arith.subf %38, %41 : vector<32x32xf32>
    %43 = math.exp %42 : vector<32x32xf32>
    %cst_16 = arith.constant dense<0.000000e+00> : vector<32xf32>
    %44 = vector.multi_reduction <add>, %43, %cst_16 [1] : vector<32x32xf32> to vector<32xf32>
    %45 = vector.shape_cast %44 : vector<32xf32> to vector<32x1xf32>
    %46 = arith.truncf %43 : vector<32x32xf32> to vector<32x32xbf16>
    %cst_17 = arith.constant dense<0.000000e+00> : vector<32x32xf32>
    %47 = tpu.matmul %46, %34, %cst_17 {dimension_numbers = #tpu.dot_dimension_numbers<[1], [0], [0], [1], [0, 0, 1, 1], [], []>} : vector<32x32xbf16>, vector<32x32xbf16>, vector<32x32xf32> -> vector<32x32xf32>
    %48 = tpu.reciprocal %45 {approx = true} : vector<32x1xf32> -> vector<32x1xf32>
    %49 = vector.broadcast %48 : vector<32x1xf32> to vector<32x32xf32>
    %50 = arith.mulf %47, %49 : vector<32x32xf32>
    %51 = vector.extract_strided_slice %6 {offsets = [0, 64], sizes = [32, 32], strides = [1, 1]} : vector<32x384xf32> to vector<32x32xf32>
    %52 = arith.truncf %51 : vector<32x32xf32> to vector<32x32xbf16>
    %53 = vector.extract_strided_slice %6 {offsets = [0, 192], sizes = [32, 32], strides = [1, 1]} : vector<32x384xf32> to vector<32x32xf32>
    %54 = arith.truncf %53 : vector<32x32xf32> to vector<32x32xbf16>
    %55 = vector.extract_strided_slice %6 {offsets = [0, 320], sizes = [32, 32], strides = [1, 1]} : vector<32x384xf32> to vector<32x32xf32>
    %56 = arith.truncf %55 : vector<32x32xf32> to vector<32x32xbf16>
    %cst_18 = arith.constant dense<0.000000e+00> : vector<32x32xf32>
    %57 = tpu.matmul %52, %54, %cst_18 {dimension_numbers = #tpu.dot_dimension_numbers<[1], [1], [0], [0], [0, 0, 1, 0], [], []>} : vector<32x32xbf16>, vector<32x32xbf16>, vector<32x32xf32> -> vector<32x32xf32>
    %c2 = arith.constant 2 : index
    %c0_19 = arith.constant 0 : index
    %c0_20 = arith.constant 0 : index
    %58 = vector.load %arg4[%c2, %c0_19, %c0_20] : memref<4x32x32xf32, #tpu.memory_space<vmem>>, vector<1x32x32xf32>
    %59 = vector.shape_cast %58 : vector<1x32x32xf32> to vector<32x32xf32>
    %60 = arith.addf %57, %59 : vector<32x32xf32>
    %cst_21 = arith.constant dense<0xFF800000> : vector<32xf32>
    %61 = vector.multi_reduction <maximumf>, %60, %cst_21 [1] : vector<32x32xf32> to vector<32xf32>
    %62 = vector.shape_cast %61 : vector<32xf32> to vector<32x1xf32>
    %63 = vector.broadcast %62 : vector<32x1xf32> to vector<32x32xf32>
    %64 = arith.subf %60, %63 : vector<32x32xf32>
    %65 = math.exp %64 : vector<32x32xf32>
    %cst_22 = arith.constant dense<0.000000e+00> : vector<32xf32>
    %66 = vector.multi_reduction <add>, %65, %cst_22 [1] : vector<32x32xf32> to vector<32xf32>
    %67 = vector.shape_cast %66 : vector<32xf32> to vector<32x1xf32>
    %68 = arith.truncf %65 : vector<32x32xf32> to vector<32x32xbf16>
    %cst_23 = arith.constant dense<0.000000e+00> : vector<32x32xf32>
    %69 = tpu.matmul %68, %56, %cst_23 {dimension_numbers = #tpu.dot_dimension_numbers<[1], [0], [0], [1], [0, 0, 1, 1], [], []>} : vector<32x32xbf16>, vector<32x32xbf16>, vector<32x32xf32> -> vector<32x32xf32>
    %70 = tpu.reciprocal %67 {approx = true} : vector<32x1xf32> -> vector<32x1xf32>
    %71 = vector.broadcast %70 : vector<32x1xf32> to vector<32x32xf32>
    %72 = arith.mulf %69, %71 : vector<32x32xf32>
    %73 = vector.extract_strided_slice %6 {offsets = [0, 96], sizes = [32, 32], strides = [1, 1]} : vector<32x384xf32> to vector<32x32xf32>
    %74 = arith.truncf %73 : vector<32x32xf32> to vector<32x32xbf16>
    %75 = vector.extract_strided_slice %6 {offsets = [0, 224], sizes = [32, 32], strides = [1, 1]} : vector<32x384xf32> to vector<32x32xf32>
    %76 = arith.truncf %75 : vector<32x32xf32> to vector<32x32xbf16>
    %77 = vector.extract_strided_slice %6 {offsets = [0, 352], sizes = [32, 32], strides = [1, 1]} : vector<32x384xf32> to vector<32x32xf32>
    %78 = arith.truncf %77 : vector<32x32xf32> to vector<32x32xbf16>
    %cst_24 = arith.constant dense<0.000000e+00> : vector<32x32xf32>
    %79 = tpu.matmul %74, %76, %cst_24 {dimension_numbers = #tpu.dot_dimension_numbers<[1], [1], [0], [0], [0, 0, 1, 0], [], []>} : vector<32x32xbf16>, vector<32x32xbf16>, vector<32x32xf32> -> vector<32x32xf32>
    %c3 = arith.constant 3 : index
    %c0_25 = arith.constant 0 : index
    %c0_26 = arith.constant 0 : index
    %80 = vector.load %arg4[%c3, %c0_25, %c0_26] : memref<4x32x32xf32, #tpu.memory_space<vmem>>, vector<1x32x32xf32>
    %81 = vector.shape_cast %80 : vector<1x32x32xf32> to vector<32x32xf32>
    %82 = arith.addf %79, %81 : vector<32x32xf32>
    %cst_27 = arith.constant dense<0xFF800000> : vector<32xf32>
    %83 = vector.multi_reduction <maximumf>, %82, %cst_27 [1] : vector<32x32xf32> to vector<32xf32>
    %84 = vector.shape_cast %83 : vector<32xf32> to vector<32x1xf32>
    %85 = vector.broadcast %84 : vector<32x1xf32> to vector<32x32xf32>
    %86 = arith.subf %82, %85 : vector<32x32xf32>
    %87 = math.exp %86 : vector<32x32xf32>
    %cst_28 = arith.constant dense<0.000000e+00> : vector<32xf32>
    %88 = vector.multi_reduction <add>, %87, %cst_28 [1] : vector<32x32xf32> to vector<32xf32>
    %89 = vector.shape_cast %88 : vector<32xf32> to vector<32x1xf32>
    %90 = arith.truncf %87 : vector<32x32xf32> to vector<32x32xbf16>
    %cst_29 = arith.constant dense<0.000000e+00> : vector<32x32xf32>
    %91 = tpu.matmul %90, %78, %cst_29 {dimension_numbers = #tpu.dot_dimension_numbers<[1], [0], [0], [1], [0, 0, 1, 1], [], []>} : vector<32x32xbf16>, vector<32x32xbf16>, vector<32x32xf32> -> vector<32x32xf32>
    %92 = tpu.reciprocal %89 {approx = true} : vector<32x1xf32> -> vector<32x1xf32>
    %93 = vector.broadcast %92 : vector<32x1xf32> to vector<32x32xf32>
    %94 = arith.mulf %91, %93 : vector<32x32xf32>
    %95 = tpu.concatenate %28, %50, %72, %94 in 1 : vector<32x32xf32>, vector<32x32xf32>, vector<32x32xf32>, vector<32x32xf32> -> vector<32x128xf32>
    %96 = vector.extract_strided_slice %5 {offsets = [32, 0], sizes = [32, 384], strides = [1, 1]} : vector<256x384xf32> to vector<32x384xf32>
    %97 = vector.extract_strided_slice %96 {offsets = [0, 0], sizes = [32, 32], strides = [1, 1]} : vector<32x384xf32> to vector<32x32xf32>
    %98 = arith.truncf %97 : vector<32x32xf32> to vector<32x32xbf16>
    %99 = vector.extract_strided_slice %96 {offsets = [0, 128], sizes = [32, 32], strides = [1, 1]} : vector<32x384xf32> to vector<32x32xf32>
    %100 = arith.truncf %99 : vector<32x32xf32> to vector<32x32xbf16>
    %101 = vector.extract_strided_slice %96 {offsets = [0, 256], sizes = [32, 32], strides = [1, 1]} : vector<32x384xf32> to vector<32x32xf32>
    %102 = arith.truncf %101 : vector<32x32xf32> to vector<32x32xbf16>
    %cst_30 = arith.constant dense<0.000000e+00> : vector<32x32xf32>
    %103 = tpu.matmul %98, %100, %cst_30 {dimension_numbers = #tpu.dot_dimension_numbers<[1], [1], [0], [0], [0, 0, 1, 0], [], []>} : vector<32x32xbf16>, vector<32x32xbf16>, vector<32x32xf32> -> vector<32x32xf32>
    %c0_31 = arith.constant 0 : index
    %c0_32 = arith.constant 0 : index
    %c0_33 = arith.constant 0 : index
    %104 = vector.load %arg4[%c0_31, %c0_32, %c0_33] : memref<4x32x32xf32, #tpu.memory_space<vmem>>, vector<1x32x32xf32>
    %105 = vector.shape_cast %104 : vector<1x32x32xf32> to vector<32x32xf32>
    %106 = arith.addf %103, %105 : vector<32x32xf32>
    %cst_34 = arith.constant dense<0xFF800000> : vector<32xf32>
    %107 = vector.multi_reduction <maximumf>, %106, %cst_34 [1] : vector<32x32xf32> to vector<32xf32>
    %108 = vector.shape_cast %107 : vector<32xf32> to vector<32x1xf32>
    %109 = vector.broadcast %108 : vector<32x1xf32> to vector<32x32xf32>
    %110 = arith.subf %106, %109 : vector<32x32xf32>
    %111 = math.exp %110 : vector<32x32xf32>
    %cst_35 = arith.constant dense<0.000000e+00> : vector<32xf32>
    %112 = vector.multi_reduction <add>, %111, %cst_35 [1] : vector<32x32xf32> to vector<32xf32>
    %113 = vector.shape_cast %112 : vector<32xf32> to vector<32x1xf32>
    %114 = arith.truncf %111 : vector<32x32xf32> to vector<32x32xbf16>
    %cst_36 = arith.constant dense<0.000000e+00> : vector<32x32xf32>
    %115 = tpu.matmul %114, %102, %cst_36 {dimension_numbers = #tpu.dot_dimension_numbers<[1], [0], [0], [1], [0, 0, 1, 1], [], []>} : vector<32x32xbf16>, vector<32x32xbf16>, vector<32x32xf32> -> vector<32x32xf32>
    %116 = tpu.reciprocal %113 {approx = true} : vector<32x1xf32> -> vector<32x1xf32>
    %117 = vector.broadcast %116 : vector<32x1xf32> to vector<32x32xf32>
    %118 = arith.mulf %115, %117 : vector<32x32xf32>
    %119 = vector.extract_strided_slice %96 {offsets = [0, 32], sizes = [32, 32], strides = [1, 1]} : vector<32x384xf32> to vector<32x32xf32>
    %120 = arith.truncf %119 : vector<32x32xf32> to vector<32x32xbf16>
    %121 = vector.extract_strided_slice %96 {offsets = [0, 160], sizes = [32, 32], strides = [1, 1]} : vector<32x384xf32> to vector<32x32xf32>
    %122 = arith.truncf %121 : vector<32x32xf32> to vector<32x32xbf16>
    %123 = vector.extract_strided_slice %96 {offsets = [0, 288], sizes = [32, 32], strides = [1, 1]} : vector<32x384xf32> to vector<32x32xf32>
    %124 = arith.truncf %123 : vector<32x32xf32> to vector<32x32xbf16>
    %cst_37 = arith.constant dense<0.000000e+00> : vector<32x32xf32>
    %125 = tpu.matmul %120, %122, %cst_37 {dimension_numbers = #tpu.dot_dimension_numbers<[1], [1], [0], [0], [0, 0, 1, 0], [], []>} : vector<32x32xbf16>, vector<32x32xbf16>, vector<32x32xf32> -> vector<32x32xf32>
    %c1_38 = arith.constant 1 : index
    %c0_39 = arith.constant 0 : index
    %c0_40 = arith.constant 0 : index
    %126 = vector.load %arg4[%c1_38, %c0_39, %c0_40] : memref<4x32x32xf32, #tpu.memory_space<vmem>>, vector<1x32x32xf32>
    %127 = vector.shape_cast %126 : vector<1x32x32xf32> to vector<32x32xf32>
    %128 = arith.addf %125, %127 : vector<32x32xf32>
    %cst_41 = arith.constant dense<0xFF800000> : vector<32xf32>
    %129 = vector.multi_reduction <maximumf>, %128, %cst_41 [1] : vector<32x32xf32> to vector<32xf32>
    %130 = vector.shape_cast %129 : vector<32xf32> to vector<32x1xf32>
    %131 = vector.broadcast %130 : vector<32x1xf32> to vector<32x32xf32>
    %132 = arith.subf %128, %131 : vector<32x32xf32>
    %133 = math.exp %132 : vector<32x32xf32>
    %cst_42 = arith.constant dense<0.000000e+00> : vector<32xf32>
    %134 = vector.multi_reduction <add>, %133, %cst_42 [1] : vector<32x32xf32> to vector<32xf32>
    %135 = vector.shape_cast %134 : vector<32xf32> to vector<32x1xf32>
    %136 = arith.truncf %133 : vector<32x32xf32> to vector<32x32xbf16>
    %cst_43 = arith.constant dense<0.000000e+00> : vector<32x32xf32>
    %137 = tpu.matmul %136, %124, %cst_43 {dimension_numbers = #tpu.dot_dimension_numbers<[1], [0], [0], [1], [0, 0, 1, 1], [], []>} : vector<32x32xbf16>, vector<32x32xbf16>, vector<32x32xf32> -> vector<32x32xf32>
    %138 = tpu.reciprocal %135 {approx = true} : vector<32x1xf32> -> vector<32x1xf32>
    %139 = vector.broadcast %138 : vector<32x1xf32> to vector<32x32xf32>
    %140 = arith.mulf %137, %139 : vector<32x32xf32>
    %141 = vector.extract_strided_slice %96 {offsets = [0, 64], sizes = [32, 32], strides = [1, 1]} : vector<32x384xf32> to vector<32x32xf32>
    %142 = arith.truncf %141 : vector<32x32xf32> to vector<32x32xbf16>
    %143 = vector.extract_strided_slice %96 {offsets = [0, 192], sizes = [32, 32], strides = [1, 1]} : vector<32x384xf32> to vector<32x32xf32>
    %144 = arith.truncf %143 : vector<32x32xf32> to vector<32x32xbf16>
    %145 = vector.extract_strided_slice %96 {offsets = [0, 320], sizes = [32, 32], strides = [1, 1]} : vector<32x384xf32> to vector<32x32xf32>
    %146 = arith.truncf %145 : vector<32x32xf32> to vector<32x32xbf16>
    %cst_44 = arith.constant dense<0.000000e+00> : vector<32x32xf32>
    %147 = tpu.matmul %142, %144, %cst_44 {dimension_numbers = #tpu.dot_dimension_numbers<[1], [1], [0], [0], [0, 0, 1, 0], [], []>} : vector<32x32xbf16>, vector<32x32xbf16>, vector<32x32xf32> -> vector<32x32xf32>
    %c2_45 = arith.constant 2 : index
    %c0_46 = arith.constant 0 : index
    %c0_47 = arith.constant 0 : index
    %148 = vector.load %arg4[%c2_45, %c0_46, %c0_47] : memref<4x32x32xf32, #tpu.memory_space<vmem>>, vector<1x32x32xf32>
    %149 = vector.shape_cast %148 : vector<1x32x32xf32> to vector<32x32xf32>
    %150 = arith.addf %147, %149 : vector<32x32xf32>
    %cst_48 = arith.constant dense<0xFF800000> : vector<32xf32>
    %151 = vector.multi_reduction <maximumf>, %150, %cst_48 [1] : vector<32x32xf32> to vector<32xf32>
    %152 = vector.shape_cast %151 : vector<32xf32> to vector<32x1xf32>
    %153 = vector.broadcast %152 : vector<32x1xf32> to vector<32x32xf32>
    %154 = arith.subf %150, %153 : vector<32x32xf32>
    %155 = math.exp %154 : vector<32x32xf32>
    %cst_49 = arith.constant dense<0.000000e+00> : vector<32xf32>
    %156 = vector.multi_reduction <add>, %155, %cst_49 [1] : vector<32x32xf32> to vector<32xf32>
    %157 = vector.shape_cast %156 : vector<32xf32> to vector<32x1xf32>
    %158 = arith.truncf %155 : vector<32x32xf32> to vector<32x32xbf16>
    %cst_50 = arith.constant dense<0.000000e+00> : vector<32x32xf32>
    %159 = tpu.matmul %158, %146, %cst_50 {dimension_numbers = #tpu.dot_dimension_numbers<[1], [0], [0], [1], [0, 0, 1, 1], [], []>} : vector<32x32xbf16>, vector<32x32xbf16>, vector<32x32xf32> -> vector<32x32xf32>
    %160 = tpu.reciprocal %157 {approx = true} : vector<32x1xf32> -> vector<32x1xf32>
    %161 = vector.broadcast %160 : vector<32x1xf32> to vector<32x32xf32>
    %162 = arith.mulf %159, %161 : vector<32x32xf32>
    %163 = vector.extract_strided_slice %96 {offsets = [0, 96], sizes = [32, 32], strides = [1, 1]} : vector<32x384xf32> to vector<32x32xf32>
    %164 = arith.truncf %163 : vector<32x32xf32> to vector<32x32xbf16>
    %165 = vector.extract_strided_slice %96 {offsets = [0, 224], sizes = [32, 32], strides = [1, 1]} : vector<32x384xf32> to vector<32x32xf32>
    %166 = arith.truncf %165 : vector<32x32xf32> to vector<32x32xbf16>
    %167 = vector.extract_strided_slice %96 {offsets = [0, 352], sizes = [32, 32], strides = [1, 1]} : vector<32x384xf32> to vector<32x32xf32>
    %168 = arith.truncf %167 : vector<32x32xf32> to vector<32x32xbf16>
    %cst_51 = arith.constant dense<0.000000e+00> : vector<32x32xf32>
    %169 = tpu.matmul %164, %166, %cst_51 {dimension_numbers = #tpu.dot_dimension_numbers<[1], [1], [0], [0], [0, 0, 1, 0], [], []>} : vector<32x32xbf16>, vector<32x32xbf16>, vector<32x32xf32> -> vector<32x32xf32>
    %c3_52 = arith.constant 3 : index
    %c0_53 = arith.constant 0 : index
    %c0_54 = arith.constant 0 : index
    %170 = vector.load %arg4[%c3_52, %c0_53, %c0_54] : memref<4x32x32xf32, #tpu.memory_space<vmem>>, vector<1x32x32xf32>
    %171 = vector.shape_cast %170 : vector<1x32x32xf32> to vector<32x32xf32>
    %172 = arith.addf %169, %171 : vector<32x32xf32>
    %cst_55 = arith.constant dense<0xFF800000> : vector<32xf32>
    %173 = vector.multi_reduction <maximumf>, %172, %cst_55 [1] : vector<32x32xf32> to vector<32xf32>
    %174 = vector.shape_cast %173 : vector<32xf32> to vector<32x1xf32>
    %175 = vector.broadcast %174 : vector<32x1xf32> to vector<32x32xf32>
    %176 = arith.subf %172, %175 : vector<32x32xf32>
    %177 = math.exp %176 : vector<32x32xf32>
    %cst_56 = arith.constant dense<0.000000e+00> : vector<32xf32>
    %178 = vector.multi_reduction <add>, %177, %cst_56 [1] : vector<32x32xf32> to vector<32xf32>
    %179 = vector.shape_cast %178 : vector<32xf32> to vector<32x1xf32>
    %180 = arith.truncf %177 : vector<32x32xf32> to vector<32x32xbf16>
    %cst_57 = arith.constant dense<0.000000e+00> : vector<32x32xf32>
    %181 = tpu.matmul %180, %168, %cst_57 {dimension_numbers = #tpu.dot_dimension_numbers<[1], [0], [0], [1], [0, 0, 1, 1], [], []>} : vector<32x32xbf16>, vector<32x32xbf16>, vector<32x32xf32> -> vector<32x32xf32>
    %182 = tpu.reciprocal %179 {approx = true} : vector<32x1xf32> -> vector<32x1xf32>
    %183 = vector.broadcast %182 : vector<32x1xf32> to vector<32x32xf32>
    %184 = arith.mulf %181, %183 : vector<32x32xf32>
    %185 = tpu.concatenate %118, %140, %162, %184 in 1 : vector<32x32xf32>, vector<32x32xf32>, vector<32x32xf32>, vector<32x32xf32> -> vector<32x128xf32>
    %186 = vector.extract_strided_slice %5 {offsets = [64, 0], sizes = [32, 384], strides = [1, 1]} : vector<256x384xf32> to vector<32x384xf32>
    %187 = vector.extract_strided_slice %186 {offsets = [0, 0], sizes = [32, 32], strides = [1, 1]} : vector<32x384xf32> to vector<32x32xf32>
    %188 = arith.truncf %187 : vector<32x32xf32> to vector<32x32xbf16>
    %189 = vector.extract_strided_slice %186 {offsets = [0, 128], sizes = [32, 32], strides = [1, 1]} : vector<32x384xf32> to vector<32x32xf32>
    %190 = arith.truncf %189 : vector<32x32xf32> to vector<32x32xbf16>
    %191 = vector.extract_strided_slice %186 {offsets = [0, 256], sizes = [32, 32], strides = [1, 1]} : vector<32x384xf32> to vector<32x32xf32>
    %192 = arith.truncf %191 : vector<32x32xf32> to vector<32x32xbf16>
    %cst_58 = arith.constant dense<0.000000e+00> : vector<32x32xf32>
    %193 = tpu.matmul %188, %190, %cst_58 {dimension_numbers = #tpu.dot_dimension_numbers<[1], [1], [0], [0], [0, 0, 1, 0], [], []>} : vector<32x32xbf16>, vector<32x32xbf16>, vector<32x32xf32> -> vector<32x32xf32>
    %c0_59 = arith.constant 0 : index
    %c0_60 = arith.constant 0 : index
    %c0_61 = arith.constant 0 : index
    %194 = vector.load %arg4[%c0_59, %c0_60, %c0_61] : memref<4x32x32xf32, #tpu.memory_space<vmem>>, vector<1x32x32xf32>
    %195 = vector.shape_cast %194 : vector<1x32x32xf32> to vector<32x32xf32>
    %196 = arith.addf %193, %195 : vector<32x32xf32>
    %cst_62 = arith.constant dense<0xFF800000> : vector<32xf32>
    %197 = vector.multi_reduction <maximumf>, %196, %cst_62 [1] : vector<32x32xf32> to vector<32xf32>
    %198 = vector.shape_cast %197 : vector<32xf32> to vector<32x1xf32>
    %199 = vector.broadcast %198 : vector<32x1xf32> to vector<32x32xf32>
    %200 = arith.subf %196, %199 : vector<32x32xf32>
    %201 = math.exp %200 : vector<32x32xf32>
    %cst_63 = arith.constant dense<0.000000e+00> : vector<32xf32>
    %202 = vector.multi_reduction <add>, %201, %cst_63 [1] : vector<32x32xf32> to vector<32xf32>
    %203 = vector.shape_cast %202 : vector<32xf32> to vector<32x1xf32>
    %204 = arith.truncf %201 : vector<32x32xf32> to vector<32x32xbf16>
    %cst_64 = arith.constant dense<0.000000e+00> : vector<32x32xf32>
    %205 = tpu.matmul %204, %192, %cst_64 {dimension_numbers = #tpu.dot_dimension_numbers<[1], [0], [0], [1], [0, 0, 1, 1], [], []>} : vector<32x32xbf16>, vector<32x32xbf16>, vector<32x32xf32> -> vector<32x32xf32>
    %206 = tpu.reciprocal %203 {approx = true} : vector<32x1xf32> -> vector<32x1xf32>
    %207 = vector.broadcast %206 : vector<32x1xf32> to vector<32x32xf32>
    %208 = arith.mulf %205, %207 : vector<32x32xf32>
    %209 = vector.extract_strided_slice %186 {offsets = [0, 32], sizes = [32, 32], strides = [1, 1]} : vector<32x384xf32> to vector<32x32xf32>
    %210 = arith.truncf %209 : vector<32x32xf32> to vector<32x32xbf16>
    %211 = vector.extract_strided_slice %186 {offsets = [0, 160], sizes = [32, 32], strides = [1, 1]} : vector<32x384xf32> to vector<32x32xf32>
    %212 = arith.truncf %211 : vector<32x32xf32> to vector<32x32xbf16>
    %213 = vector.extract_strided_slice %186 {offsets = [0, 288], sizes = [32, 32], strides = [1, 1]} : vector<32x384xf32> to vector<32x32xf32>
    %214 = arith.truncf %213 : vector<32x32xf32> to vector<32x32xbf16>
    %cst_65 = arith.constant dense<0.000000e+00> : vector<32x32xf32>
    %215 = tpu.matmul %210, %212, %cst_65 {dimension_numbers = #tpu.dot_dimension_numbers<[1], [1], [0], [0], [0, 0, 1, 0], [], []>} : vector<32x32xbf16>, vector<32x32xbf16>, vector<32x32xf32> -> vector<32x32xf32>
    %c1_66 = arith.constant 1 : index
    %c0_67 = arith.constant 0 : index
    %c0_68 = arith.constant 0 : index
    %216 = vector.load %arg4[%c1_66, %c0_67, %c0_68] : memref<4x32x32xf32, #tpu.memory_space<vmem>>, vector<1x32x32xf32>
    %217 = vector.shape_cast %216 : vector<1x32x32xf32> to vector<32x32xf32>
    %218 = arith.addf %215, %217 : vector<32x32xf32>
    %cst_69 = arith.constant dense<0xFF800000> : vector<32xf32>
    %219 = vector.multi_reduction <maximumf>, %218, %cst_69 [1] : vector<32x32xf32> to vector<32xf32>
    %220 = vector.shape_cast %219 : vector<32xf32> to vector<32x1xf32>
    %221 = vector.broadcast %220 : vector<32x1xf32> to vector<32x32xf32>
    %222 = arith.subf %218, %221 : vector<32x32xf32>
    %223 = math.exp %222 : vector<32x32xf32>
    %cst_70 = arith.constant dense<0.000000e+00> : vector<32xf32>
    %224 = vector.multi_reduction <add>, %223, %cst_70 [1] : vector<32x32xf32> to vector<32xf32>
    %225 = vector.shape_cast %224 : vector<32xf32> to vector<32x1xf32>
    %226 = arith.truncf %223 : vector<32x32xf32> to vector<32x32xbf16>
    %cst_71 = arith.constant dense<0.000000e+00> : vector<32x32xf32>
    %227 = tpu.matmul %226, %214, %cst_71 {dimension_numbers = #tpu.dot_dimension_numbers<[1], [0], [0], [1], [0, 0, 1, 1], [], []>} : vector<32x32xbf16>, vector<32x32xbf16>, vector<32x32xf32> -> vector<32x32xf32>
    %228 = tpu.reciprocal %225 {approx = true} : vector<32x1xf32> -> vector<32x1xf32>
    %229 = vector.broadcast %228 : vector<32x1xf32> to vector<32x32xf32>
    %230 = arith.mulf %227, %229 : vector<32x32xf32>
    %231 = vector.extract_strided_slice %186 {offsets = [0, 64], sizes = [32, 32], strides = [1, 1]} : vector<32x384xf32> to vector<32x32xf32>
    %232 = arith.truncf %231 : vector<32x32xf32> to vector<32x32xbf16>
    %233 = vector.extract_strided_slice %186 {offsets = [0, 192], sizes = [32, 32], strides = [1, 1]} : vector<32x384xf32> to vector<32x32xf32>
    %234 = arith.truncf %233 : vector<32x32xf32> to vector<32x32xbf16>
    %235 = vector.extract_strided_slice %186 {offsets = [0, 320], sizes = [32, 32], strides = [1, 1]} : vector<32x384xf32> to vector<32x32xf32>
    %236 = arith.truncf %235 : vector<32x32xf32> to vector<32x32xbf16>
    %cst_72 = arith.constant dense<0.000000e+00> : vector<32x32xf32>
    %237 = tpu.matmul %232, %234, %cst_72 {dimension_numbers = #tpu.dot_dimension_numbers<[1], [1], [0], [0], [0, 0, 1, 0], [], []>} : vector<32x32xbf16>, vector<32x32xbf16>, vector<32x32xf32> -> vector<32x32xf32>
    %c2_73 = arith.constant 2 : index
    %c0_74 = arith.constant 0 : index
    %c0_75 = arith.constant 0 : index
    %238 = vector.load %arg4[%c2_73, %c0_74, %c0_75] : memref<4x32x32xf32, #tpu.memory_space<vmem>>, vector<1x32x32xf32>
    %239 = vector.shape_cast %238 : vector<1x32x32xf32> to vector<32x32xf32>
    %240 = arith.addf %237, %239 : vector<32x32xf32>
    %cst_76 = arith.constant dense<0xFF800000> : vector<32xf32>
    %241 = vector.multi_reduction <maximumf>, %240, %cst_76 [1] : vector<32x32xf32> to vector<32xf32>
    %242 = vector.shape_cast %241 : vector<32xf32> to vector<32x1xf32>
    %243 = vector.broadcast %242 : vector<32x1xf32> to vector<32x32xf32>
    %244 = arith.subf %240, %243 : vector<32x32xf32>
    %245 = math.exp %244 : vector<32x32xf32>
    %cst_77 = arith.constant dense<0.000000e+00> : vector<32xf32>
    %246 = vector.multi_reduction <add>, %245, %cst_77 [1] : vector<32x32xf32> to vector<32xf32>
    %247 = vector.shape_cast %246 : vector<32xf32> to vector<32x1xf32>
    %248 = arith.truncf %245 : vector<32x32xf32> to vector<32x32xbf16>
    %cst_78 = arith.constant dense<0.000000e+00> : vector<32x32xf32>
    %249 = tpu.matmul %248, %236, %cst_78 {dimension_numbers = #tpu.dot_dimension_numbers<[1], [0], [0], [1], [0, 0, 1, 1], [], []>} : vector<32x32xbf16>, vector<32x32xbf16>, vector<32x32xf32> -> vector<32x32xf32>
    %250 = tpu.reciprocal %247 {approx = true} : vector<32x1xf32> -> vector<32x1xf32>
    %251 = vector.broadcast %250 : vector<32x1xf32> to vector<32x32xf32>
    %252 = arith.mulf %249, %251 : vector<32x32xf32>
    %253 = vector.extract_strided_slice %186 {offsets = [0, 96], sizes = [32, 32], strides = [1, 1]} : vector<32x384xf32> to vector<32x32xf32>
    %254 = arith.truncf %253 : vector<32x32xf32> to vector<32x32xbf16>
    %255 = vector.extract_strided_slice %186 {offsets = [0, 224], sizes = [32, 32], strides = [1, 1]} : vector<32x384xf32> to vector<32x32xf32>
    %256 = arith.truncf %255 : vector<32x32xf32> to vector<32x32xbf16>
    %257 = vector.extract_strided_slice %186 {offsets = [0, 352], sizes = [32, 32], strides = [1, 1]} : vector<32x384xf32> to vector<32x32xf32>
    %258 = arith.truncf %257 : vector<32x32xf32> to vector<32x32xbf16>
    %cst_79 = arith.constant dense<0.000000e+00> : vector<32x32xf32>
    %259 = tpu.matmul %254, %256, %cst_79 {dimension_numbers = #tpu.dot_dimension_numbers<[1], [1], [0], [0], [0, 0, 1, 0], [], []>} : vector<32x32xbf16>, vector<32x32xbf16>, vector<32x32xf32> -> vector<32x32xf32>
    %c3_80 = arith.constant 3 : index
    %c0_81 = arith.constant 0 : index
    %c0_82 = arith.constant 0 : index
    %260 = vector.load %arg4[%c3_80, %c0_81, %c0_82] : memref<4x32x32xf32, #tpu.memory_space<vmem>>, vector<1x32x32xf32>
    %261 = vector.shape_cast %260 : vector<1x32x32xf32> to vector<32x32xf32>
    %262 = arith.addf %259, %261 : vector<32x32xf32>
    %cst_83 = arith.constant dense<0xFF800000> : vector<32xf32>
    %263 = vector.multi_reduction <maximumf>, %262, %cst_83 [1] : vector<32x32xf32> to vector<32xf32>
    %264 = vector.shape_cast %263 : vector<32xf32> to vector<32x1xf32>
    %265 = vector.broadcast %264 : vector<32x1xf32> to vector<32x32xf32>
    %266 = arith.subf %262, %265 : vector<32x32xf32>
    %267 = math.exp %266 : vector<32x32xf32>
    %cst_84 = arith.constant dense<0.000000e+00> : vector<32xf32>
    %268 = vector.multi_reduction <add>, %267, %cst_84 [1] : vector<32x32xf32> to vector<32xf32>
    %269 = vector.shape_cast %268 : vector<32xf32> to vector<32x1xf32>
    %270 = arith.truncf %267 : vector<32x32xf32> to vector<32x32xbf16>
    %cst_85 = arith.constant dense<0.000000e+00> : vector<32x32xf32>
    %271 = tpu.matmul %270, %258, %cst_85 {dimension_numbers = #tpu.dot_dimension_numbers<[1], [0], [0], [1], [0, 0, 1, 1], [], []>} : vector<32x32xbf16>, vector<32x32xbf16>, vector<32x32xf32> -> vector<32x32xf32>
    %272 = tpu.reciprocal %269 {approx = true} : vector<32x1xf32> -> vector<32x1xf32>
    %273 = vector.broadcast %272 : vector<32x1xf32> to vector<32x32xf32>
    %274 = arith.mulf %271, %273 : vector<32x32xf32>
    %275 = tpu.concatenate %208, %230, %252, %274 in 1 : vector<32x32xf32>, vector<32x32xf32>, vector<32x32xf32>, vector<32x32xf32> -> vector<32x128xf32>
    %276 = vector.extract_strided_slice %5 {offsets = [96, 0], sizes = [32, 384], strides = [1, 1]} : vector<256x384xf32> to vector<32x384xf32>
    %277 = vector.extract_strided_slice %276 {offsets = [0, 0], sizes = [32, 32], strides = [1, 1]} : vector<32x384xf32> to vector<32x32xf32>
    %278 = arith.truncf %277 : vector<32x32xf32> to vector<32x32xbf16>
    %279 = vector.extract_strided_slice %276 {offsets = [0, 128], sizes = [32, 32], strides = [1, 1]} : vector<32x384xf32> to vector<32x32xf32>
    %280 = arith.truncf %279 : vector<32x32xf32> to vector<32x32xbf16>
    %281 = vector.extract_strided_slice %276 {offsets = [0, 256], sizes = [32, 32], strides = [1, 1]} : vector<32x384xf32> to vector<32x32xf32>
    %282 = arith.truncf %281 : vector<32x32xf32> to vector<32x32xbf16>
    %cst_86 = arith.constant dense<0.000000e+00> : vector<32x32xf32>
    %283 = tpu.matmul %278, %280, %cst_86 {dimension_numbers = #tpu.dot_dimension_numbers<[1], [1], [0], [0], [0, 0, 1, 0], [], []>} : vector<32x32xbf16>, vector<32x32xbf16>, vector<32x32xf32> -> vector<32x32xf32>
    %c0_87 = arith.constant 0 : index
    %c0_88 = arith.constant 0 : index
    %c0_89 = arith.constant 0 : index
    %284 = vector.load %arg4[%c0_87, %c0_88, %c0_89] : memref<4x32x32xf32, #tpu.memory_space<vmem>>, vector<1x32x32xf32>
    %285 = vector.shape_cast %284 : vector<1x32x32xf32> to vector<32x32xf32>
    %286 = arith.addf %283, %285 : vector<32x32xf32>
    %cst_90 = arith.constant dense<0xFF800000> : vector<32xf32>
    %287 = vector.multi_reduction <maximumf>, %286, %cst_90 [1] : vector<32x32xf32> to vector<32xf32>
    %288 = vector.shape_cast %287 : vector<32xf32> to vector<32x1xf32>
    %289 = vector.broadcast %288 : vector<32x1xf32> to vector<32x32xf32>
    %290 = arith.subf %286, %289 : vector<32x32xf32>
    %291 = math.exp %290 : vector<32x32xf32>
    %cst_91 = arith.constant dense<0.000000e+00> : vector<32xf32>
    %292 = vector.multi_reduction <add>, %291, %cst_91 [1] : vector<32x32xf32> to vector<32xf32>
    %293 = vector.shape_cast %292 : vector<32xf32> to vector<32x1xf32>
    %294 = arith.truncf %291 : vector<32x32xf32> to vector<32x32xbf16>
    %cst_92 = arith.constant dense<0.000000e+00> : vector<32x32xf32>
    %295 = tpu.matmul %294, %282, %cst_92 {dimension_numbers = #tpu.dot_dimension_numbers<[1], [0], [0], [1], [0, 0, 1, 1], [], []>} : vector<32x32xbf16>, vector<32x32xbf16>, vector<32x32xf32> -> vector<32x32xf32>
    %296 = tpu.reciprocal %293 {approx = true} : vector<32x1xf32> -> vector<32x1xf32>
    %297 = vector.broadcast %296 : vector<32x1xf32> to vector<32x32xf32>
    %298 = arith.mulf %295, %297 : vector<32x32xf32>
    %299 = vector.extract_strided_slice %276 {offsets = [0, 32], sizes = [32, 32], strides = [1, 1]} : vector<32x384xf32> to vector<32x32xf32>
    %300 = arith.truncf %299 : vector<32x32xf32> to vector<32x32xbf16>
    %301 = vector.extract_strided_slice %276 {offsets = [0, 160], sizes = [32, 32], strides = [1, 1]} : vector<32x384xf32> to vector<32x32xf32>
    %302 = arith.truncf %301 : vector<32x32xf32> to vector<32x32xbf16>
    %303 = vector.extract_strided_slice %276 {offsets = [0, 288], sizes = [32, 32], strides = [1, 1]} : vector<32x384xf32> to vector<32x32xf32>
    %304 = arith.truncf %303 : vector<32x32xf32> to vector<32x32xbf16>
    %cst_93 = arith.constant dense<0.000000e+00> : vector<32x32xf32>
    %305 = tpu.matmul %300, %302, %cst_93 {dimension_numbers = #tpu.dot_dimension_numbers<[1], [1], [0], [0], [0, 0, 1, 0], [], []>} : vector<32x32xbf16>, vector<32x32xbf16>, vector<32x32xf32> -> vector<32x32xf32>
    %c1_94 = arith.constant 1 : index
    %c0_95 = arith.constant 0 : index
    %c0_96 = arith.constant 0 : index
    %306 = vector.load %arg4[%c1_94, %c0_95, %c0_96] : memref<4x32x32xf32, #tpu.memory_space<vmem>>, vector<1x32x32xf32>
    %307 = vector.shape_cast %306 : vector<1x32x32xf32> to vector<32x32xf32>
    %308 = arith.addf %305, %307 : vector<32x32xf32>
    %cst_97 = arith.constant dense<0xFF800000> : vector<32xf32>
    %309 = vector.multi_reduction <maximumf>, %308, %cst_97 [1] : vector<32x32xf32> to vector<32xf32>
    %310 = vector.shape_cast %309 : vector<32xf32> to vector<32x1xf32>
    %311 = vector.broadcast %310 : vector<32x1xf32> to vector<32x32xf32>
    %312 = arith.subf %308, %311 : vector<32x32xf32>
    %313 = math.exp %312 : vector<32x32xf32>
    %cst_98 = arith.constant dense<0.000000e+00> : vector<32xf32>
    %314 = vector.multi_reduction <add>, %313, %cst_98 [1] : vector<32x32xf32> to vector<32xf32>
    %315 = vector.shape_cast %314 : vector<32xf32> to vector<32x1xf32>
    %316 = arith.truncf %313 : vector<32x32xf32> to vector<32x32xbf16>
    %cst_99 = arith.constant dense<0.000000e+00> : vector<32x32xf32>
    %317 = tpu.matmul %316, %304, %cst_99 {dimension_numbers = #tpu.dot_dimension_numbers<[1], [0], [0], [1], [0, 0, 1, 1], [], []>} : vector<32x32xbf16>, vector<32x32xbf16>, vector<32x32xf32> -> vector<32x32xf32>
    %318 = tpu.reciprocal %315 {approx = true} : vector<32x1xf32> -> vector<32x1xf32>
    %319 = vector.broadcast %318 : vector<32x1xf32> to vector<32x32xf32>
    %320 = arith.mulf %317, %319 : vector<32x32xf32>
    %321 = vector.extract_strided_slice %276 {offsets = [0, 64], sizes = [32, 32], strides = [1, 1]} : vector<32x384xf32> to vector<32x32xf32>
    %322 = arith.truncf %321 : vector<32x32xf32> to vector<32x32xbf16>
    %323 = vector.extract_strided_slice %276 {offsets = [0, 192], sizes = [32, 32], strides = [1, 1]} : vector<32x384xf32> to vector<32x32xf32>
    %324 = arith.truncf %323 : vector<32x32xf32> to vector<32x32xbf16>
    %325 = vector.extract_strided_slice %276 {offsets = [0, 320], sizes = [32, 32], strides = [1, 1]} : vector<32x384xf32> to vector<32x32xf32>
    %326 = arith.truncf %325 : vector<32x32xf32> to vector<32x32xbf16>
    %cst_100 = arith.constant dense<0.000000e+00> : vector<32x32xf32>
    %327 = tpu.matmul %322, %324, %cst_100 {dimension_numbers = #tpu.dot_dimension_numbers<[1], [1], [0], [0], [0, 0, 1, 0], [], []>} : vector<32x32xbf16>, vector<32x32xbf16>, vector<32x32xf32> -> vector<32x32xf32>
    %c2_101 = arith.constant 2 : index
    %c0_102 = arith.constant 0 : index
    %c0_103 = arith.constant 0 : index
    %328 = vector.load %arg4[%c2_101, %c0_102, %c0_103] : memref<4x32x32xf32, #tpu.memory_space<vmem>>, vector<1x32x32xf32>
    %329 = vector.shape_cast %328 : vector<1x32x32xf32> to vector<32x32xf32>
    %330 = arith.addf %327, %329 : vector<32x32xf32>
    %cst_104 = arith.constant dense<0xFF800000> : vector<32xf32>
    %331 = vector.multi_reduction <maximumf>, %330, %cst_104 [1] : vector<32x32xf32> to vector<32xf32>
    %332 = vector.shape_cast %331 : vector<32xf32> to vector<32x1xf32>
    %333 = vector.broadcast %332 : vector<32x1xf32> to vector<32x32xf32>
    %334 = arith.subf %330, %333 : vector<32x32xf32>
    %335 = math.exp %334 : vector<32x32xf32>
    %cst_105 = arith.constant dense<0.000000e+00> : vector<32xf32>
    %336 = vector.multi_reduction <add>, %335, %cst_105 [1] : vector<32x32xf32> to vector<32xf32>
    %337 = vector.shape_cast %336 : vector<32xf32> to vector<32x1xf32>
    %338 = arith.truncf %335 : vector<32x32xf32> to vector<32x32xbf16>
    %cst_106 = arith.constant dense<0.000000e+00> : vector<32x32xf32>
    %339 = tpu.matmul %338, %326, %cst_106 {dimension_numbers = #tpu.dot_dimension_numbers<[1], [0], [0], [1], [0, 0, 1, 1], [], []>} : vector<32x32xbf16>, vector<32x32xbf16>, vector<32x32xf32> -> vector<32x32xf32>
    %340 = tpu.reciprocal %337 {approx = true} : vector<32x1xf32> -> vector<32x1xf32>
    %341 = vector.broadcast %340 : vector<32x1xf32> to vector<32x32xf32>
    %342 = arith.mulf %339, %341 : vector<32x32xf32>
    %343 = vector.extract_strided_slice %276 {offsets = [0, 96], sizes = [32, 32], strides = [1, 1]} : vector<32x384xf32> to vector<32x32xf32>
    %344 = arith.truncf %343 : vector<32x32xf32> to vector<32x32xbf16>
    %345 = vector.extract_strided_slice %276 {offsets = [0, 224], sizes = [32, 32], strides = [1, 1]} : vector<32x384xf32> to vector<32x32xf32>
    %346 = arith.truncf %345 : vector<32x32xf32> to vector<32x32xbf16>
    %347 = vector.extract_strided_slice %276 {offsets = [0, 352], sizes = [32, 32], strides = [1, 1]} : vector<32x384xf32> to vector<32x32xf32>
    %348 = arith.truncf %347 : vector<32x32xf32> to vector<32x32xbf16>
    %cst_107 = arith.constant dense<0.000000e+00> : vector<32x32xf32>
    %349 = tpu.matmul %344, %346, %cst_107 {dimension_numbers = #tpu.dot_dimension_numbers<[1], [1], [0], [0], [0, 0, 1, 0], [], []>} : vector<32x32xbf16>, vector<32x32xbf16>, vector<32x32xf32> -> vector<32x32xf32>
    %c3_108 = arith.constant 3 : index
    %c0_109 = arith.constant 0 : index
    %c0_110 = arith.constant 0 : index
    %350 = vector.load %arg4[%c3_108, %c0_109, %c0_110] : memref<4x32x32xf32, #tpu.memory_space<vmem>>, vector<1x32x32xf32>
    %351 = vector.shape_cast %350 : vector<1x32x32xf32> to vector<32x32xf32>
    %352 = arith.addf %349, %351 : vector<32x32xf32>
    %cst_111 = arith.constant dense<0xFF800000> : vector<32xf32>
    %353 = vector.multi_reduction <maximumf>, %352, %cst_111 [1] : vector<32x32xf32> to vector<32xf32>
    %354 = vector.shape_cast %353 : vector<32xf32> to vector<32x1xf32>
    %355 = vector.broadcast %354 : vector<32x1xf32> to vector<32x32xf32>
    %356 = arith.subf %352, %355 : vector<32x32xf32>
    %357 = math.exp %356 : vector<32x32xf32>
    %cst_112 = arith.constant dense<0.000000e+00> : vector<32xf32>
    %358 = vector.multi_reduction <add>, %357, %cst_112 [1] : vector<32x32xf32> to vector<32xf32>
    %359 = vector.shape_cast %358 : vector<32xf32> to vector<32x1xf32>
    %360 = arith.truncf %357 : vector<32x32xf32> to vector<32x32xbf16>
    %cst_113 = arith.constant dense<0.000000e+00> : vector<32x32xf32>
    %361 = tpu.matmul %360, %348, %cst_113 {dimension_numbers = #tpu.dot_dimension_numbers<[1], [0], [0], [1], [0, 0, 1, 1], [], []>} : vector<32x32xbf16>, vector<32x32xbf16>, vector<32x32xf32> -> vector<32x32xf32>
    %362 = tpu.reciprocal %359 {approx = true} : vector<32x1xf32> -> vector<32x1xf32>
    %363 = vector.broadcast %362 : vector<32x1xf32> to vector<32x32xf32>
    %364 = arith.mulf %361, %363 : vector<32x32xf32>
    %365 = tpu.concatenate %298, %320, %342, %364 in 1 : vector<32x32xf32>, vector<32x32xf32>, vector<32x32xf32>, vector<32x32xf32> -> vector<32x128xf32>
    %366 = vector.extract_strided_slice %5 {offsets = [128, 0], sizes = [32, 384], strides = [1, 1]} : vector<256x384xf32> to vector<32x384xf32>
    %367 = vector.extract_strided_slice %366 {offsets = [0, 0], sizes = [32, 32], strides = [1, 1]} : vector<32x384xf32> to vector<32x32xf32>
    %368 = arith.truncf %367 : vector<32x32xf32> to vector<32x32xbf16>
    %369 = vector.extract_strided_slice %366 {offsets = [0, 128], sizes = [32, 32], strides = [1, 1]} : vector<32x384xf32> to vector<32x32xf32>
    %370 = arith.truncf %369 : vector<32x32xf32> to vector<32x32xbf16>
    %371 = vector.extract_strided_slice %366 {offsets = [0, 256], sizes = [32, 32], strides = [1, 1]} : vector<32x384xf32> to vector<32x32xf32>
    %372 = arith.truncf %371 : vector<32x32xf32> to vector<32x32xbf16>
    %cst_114 = arith.constant dense<0.000000e+00> : vector<32x32xf32>
    %373 = tpu.matmul %368, %370, %cst_114 {dimension_numbers = #tpu.dot_dimension_numbers<[1], [1], [0], [0], [0, 0, 1, 0], [], []>} : vector<32x32xbf16>, vector<32x32xbf16>, vector<32x32xf32> -> vector<32x32xf32>
    %c0_115 = arith.constant 0 : index
    %c0_116 = arith.constant 0 : index
    %c0_117 = arith.constant 0 : index
    %374 = vector.load %arg4[%c0_115, %c0_116, %c0_117] : memref<4x32x32xf32, #tpu.memory_space<vmem>>, vector<1x32x32xf32>
    %375 = vector.shape_cast %374 : vector<1x32x32xf32> to vector<32x32xf32>
    %376 = arith.addf %373, %375 : vector<32x32xf32>
    %cst_118 = arith.constant dense<0xFF800000> : vector<32xf32>
    %377 = vector.multi_reduction <maximumf>, %376, %cst_118 [1] : vector<32x32xf32> to vector<32xf32>
    %378 = vector.shape_cast %377 : vector<32xf32> to vector<32x1xf32>
    %379 = vector.broadcast %378 : vector<32x1xf32> to vector<32x32xf32>
    %380 = arith.subf %376, %379 : vector<32x32xf32>
    %381 = math.exp %380 : vector<32x32xf32>
    %cst_119 = arith.constant dense<0.000000e+00> : vector<32xf32>
    %382 = vector.multi_reduction <add>, %381, %cst_119 [1] : vector<32x32xf32> to vector<32xf32>
    %383 = vector.shape_cast %382 : vector<32xf32> to vector<32x1xf32>
    %384 = arith.truncf %381 : vector<32x32xf32> to vector<32x32xbf16>
    %cst_120 = arith.constant dense<0.000000e+00> : vector<32x32xf32>
    %385 = tpu.matmul %384, %372, %cst_120 {dimension_numbers = #tpu.dot_dimension_numbers<[1], [0], [0], [1], [0, 0, 1, 1], [], []>} : vector<32x32xbf16>, vector<32x32xbf16>, vector<32x32xf32> -> vector<32x32xf32>
    %386 = tpu.reciprocal %383 {approx = true} : vector<32x1xf32> -> vector<32x1xf32>
    %387 = vector.broadcast %386 : vector<32x1xf32> to vector<32x32xf32>
    %388 = arith.mulf %385, %387 : vector<32x32xf32>
    %389 = vector.extract_strided_slice %366 {offsets = [0, 32], sizes = [32, 32], strides = [1, 1]} : vector<32x384xf32> to vector<32x32xf32>
    %390 = arith.truncf %389 : vector<32x32xf32> to vector<32x32xbf16>
    %391 = vector.extract_strided_slice %366 {offsets = [0, 160], sizes = [32, 32], strides = [1, 1]} : vector<32x384xf32> to vector<32x32xf32>
    %392 = arith.truncf %391 : vector<32x32xf32> to vector<32x32xbf16>
    %393 = vector.extract_strided_slice %366 {offsets = [0, 288], sizes = [32, 32], strides = [1, 1]} : vector<32x384xf32> to vector<32x32xf32>
    %394 = arith.truncf %393 : vector<32x32xf32> to vector<32x32xbf16>
    %cst_121 = arith.constant dense<0.000000e+00> : vector<32x32xf32>
    %395 = tpu.matmul %390, %392, %cst_121 {dimension_numbers = #tpu.dot_dimension_numbers<[1], [1], [0], [0], [0, 0, 1, 0], [], []>} : vector<32x32xbf16>, vector<32x32xbf16>, vector<32x32xf32> -> vector<32x32xf32>
    %c1_122 = arith.constant 1 : index
    %c0_123 = arith.constant 0 : index
    %c0_124 = arith.constant 0 : index
    %396 = vector.load %arg4[%c1_122, %c0_123, %c0_124] : memref<4x32x32xf32, #tpu.memory_space<vmem>>, vector<1x32x32xf32>
    %397 = vector.shape_cast %396 : vector<1x32x32xf32> to vector<32x32xf32>
    %398 = arith.addf %395, %397 : vector<32x32xf32>
    %cst_125 = arith.constant dense<0xFF800000> : vector<32xf32>
    %399 = vector.multi_reduction <maximumf>, %398, %cst_125 [1] : vector<32x32xf32> to vector<32xf32>
    %400 = vector.shape_cast %399 : vector<32xf32> to vector<32x1xf32>
    %401 = vector.broadcast %400 : vector<32x1xf32> to vector<32x32xf32>
    %402 = arith.subf %398, %401 : vector<32x32xf32>
    %403 = math.exp %402 : vector<32x32xf32>
    %cst_126 = arith.constant dense<0.000000e+00> : vector<32xf32>
    %404 = vector.multi_reduction <add>, %403, %cst_126 [1] : vector<32x32xf32> to vector<32xf32>
    %405 = vector.shape_cast %404 : vector<32xf32> to vector<32x1xf32>
    %406 = arith.truncf %403 : vector<32x32xf32> to vector<32x32xbf16>
    %cst_127 = arith.constant dense<0.000000e+00> : vector<32x32xf32>
    %407 = tpu.matmul %406, %394, %cst_127 {dimension_numbers = #tpu.dot_dimension_numbers<[1], [0], [0], [1], [0, 0, 1, 1], [], []>} : vector<32x32xbf16>, vector<32x32xbf16>, vector<32x32xf32> -> vector<32x32xf32>
    %408 = tpu.reciprocal %405 {approx = true} : vector<32x1xf32> -> vector<32x1xf32>
    %409 = vector.broadcast %408 : vector<32x1xf32> to vector<32x32xf32>
    %410 = arith.mulf %407, %409 : vector<32x32xf32>
    %411 = vector.extract_strided_slice %366 {offsets = [0, 64], sizes = [32, 32], strides = [1, 1]} : vector<32x384xf32> to vector<32x32xf32>
    %412 = arith.truncf %411 : vector<32x32xf32> to vector<32x32xbf16>
    %413 = vector.extract_strided_slice %366 {offsets = [0, 192], sizes = [32, 32], strides = [1, 1]} : vector<32x384xf32> to vector<32x32xf32>
    %414 = arith.truncf %413 : vector<32x32xf32> to vector<32x32xbf16>
    %415 = vector.extract_strided_slice %366 {offsets = [0, 320], sizes = [32, 32], strides = [1, 1]} : vector<32x384xf32> to vector<32x32xf32>
    %416 = arith.truncf %415 : vector<32x32xf32> to vector<32x32xbf16>
    %cst_128 = arith.constant dense<0.000000e+00> : vector<32x32xf32>
    %417 = tpu.matmul %412, %414, %cst_128 {dimension_numbers = #tpu.dot_dimension_numbers<[1], [1], [0], [0], [0, 0, 1, 0], [], []>} : vector<32x32xbf16>, vector<32x32xbf16>, vector<32x32xf32> -> vector<32x32xf32>
    %c2_129 = arith.constant 2 : index
    %c0_130 = arith.constant 0 : index
    %c0_131 = arith.constant 0 : index
    %418 = vector.load %arg4[%c2_129, %c0_130, %c0_131] : memref<4x32x32xf32, #tpu.memory_space<vmem>>, vector<1x32x32xf32>
    %419 = vector.shape_cast %418 : vector<1x32x32xf32> to vector<32x32xf32>
    %420 = arith.addf %417, %419 : vector<32x32xf32>
    %cst_132 = arith.constant dense<0xFF800000> : vector<32xf32>
    %421 = vector.multi_reduction <maximumf>, %420, %cst_132 [1] : vector<32x32xf32> to vector<32xf32>
    %422 = vector.shape_cast %421 : vector<32xf32> to vector<32x1xf32>
    %423 = vector.broadcast %422 : vector<32x1xf32> to vector<32x32xf32>
    %424 = arith.subf %420, %423 : vector<32x32xf32>
    %425 = math.exp %424 : vector<32x32xf32>
    %cst_133 = arith.constant dense<0.000000e+00> : vector<32xf32>
    %426 = vector.multi_reduction <add>, %425, %cst_133 [1] : vector<32x32xf32> to vector<32xf32>
    %427 = vector.shape_cast %426 : vector<32xf32> to vector<32x1xf32>
    %428 = arith.truncf %425 : vector<32x32xf32> to vector<32x32xbf16>
    %cst_134 = arith.constant dense<0.000000e+00> : vector<32x32xf32>
    %429 = tpu.matmul %428, %416, %cst_134 {dimension_numbers = #tpu.dot_dimension_numbers<[1], [0], [0], [1], [0, 0, 1, 1], [], []>} : vector<32x32xbf16>, vector<32x32xbf16>, vector<32x32xf32> -> vector<32x32xf32>
    %430 = tpu.reciprocal %427 {approx = true} : vector<32x1xf32> -> vector<32x1xf32>
    %431 = vector.broadcast %430 : vector<32x1xf32> to vector<32x32xf32>
    %432 = arith.mulf %429, %431 : vector<32x32xf32>
    %433 = vector.extract_strided_slice %366 {offsets = [0, 96], sizes = [32, 32], strides = [1, 1]} : vector<32x384xf32> to vector<32x32xf32>
    %434 = arith.truncf %433 : vector<32x32xf32> to vector<32x32xbf16>
    %435 = vector.extract_strided_slice %366 {offsets = [0, 224], sizes = [32, 32], strides = [1, 1]} : vector<32x384xf32> to vector<32x32xf32>
    %436 = arith.truncf %435 : vector<32x32xf32> to vector<32x32xbf16>
    %437 = vector.extract_strided_slice %366 {offsets = [0, 352], sizes = [32, 32], strides = [1, 1]} : vector<32x384xf32> to vector<32x32xf32>
    %438 = arith.truncf %437 : vector<32x32xf32> to vector<32x32xbf16>
    %cst_135 = arith.constant dense<0.000000e+00> : vector<32x32xf32>
    %439 = tpu.matmul %434, %436, %cst_135 {dimension_numbers = #tpu.dot_dimension_numbers<[1], [1], [0], [0], [0, 0, 1, 0], [], []>} : vector<32x32xbf16>, vector<32x32xbf16>, vector<32x32xf32> -> vector<32x32xf32>
    %c3_136 = arith.constant 3 : index
    %c0_137 = arith.constant 0 : index
    %c0_138 = arith.constant 0 : index
    %440 = vector.load %arg4[%c3_136, %c0_137, %c0_138] : memref<4x32x32xf32, #tpu.memory_space<vmem>>, vector<1x32x32xf32>
    %441 = vector.shape_cast %440 : vector<1x32x32xf32> to vector<32x32xf32>
    %442 = arith.addf %439, %441 : vector<32x32xf32>
    %cst_139 = arith.constant dense<0xFF800000> : vector<32xf32>
    %443 = vector.multi_reduction <maximumf>, %442, %cst_139 [1] : vector<32x32xf32> to vector<32xf32>
    %444 = vector.shape_cast %443 : vector<32xf32> to vector<32x1xf32>
    %445 = vector.broadcast %444 : vector<32x1xf32> to vector<32x32xf32>
    %446 = arith.subf %442, %445 : vector<32x32xf32>
    %447 = math.exp %446 : vector<32x32xf32>
    %cst_140 = arith.constant dense<0.000000e+00> : vector<32xf32>
    %448 = vector.multi_reduction <add>, %447, %cst_140 [1] : vector<32x32xf32> to vector<32xf32>
    %449 = vector.shape_cast %448 : vector<32xf32> to vector<32x1xf32>
    %450 = arith.truncf %447 : vector<32x32xf32> to vector<32x32xbf16>
    %cst_141 = arith.constant dense<0.000000e+00> : vector<32x32xf32>
    %451 = tpu.matmul %450, %438, %cst_141 {dimension_numbers = #tpu.dot_dimension_numbers<[1], [0], [0], [1], [0, 0, 1, 1], [], []>} : vector<32x32xbf16>, vector<32x32xbf16>, vector<32x32xf32> -> vector<32x32xf32>
    %452 = tpu.reciprocal %449 {approx = true} : vector<32x1xf32> -> vector<32x1xf32>
    %453 = vector.broadcast %452 : vector<32x1xf32> to vector<32x32xf32>
    %454 = arith.mulf %451, %453 : vector<32x32xf32>
    %455 = tpu.concatenate %388, %410, %432, %454 in 1 : vector<32x32xf32>, vector<32x32xf32>, vector<32x32xf32>, vector<32x32xf32> -> vector<32x128xf32>
    %456 = vector.extract_strided_slice %5 {offsets = [160, 0], sizes = [32, 384], strides = [1, 1]} : vector<256x384xf32> to vector<32x384xf32>
    %457 = vector.extract_strided_slice %456 {offsets = [0, 0], sizes = [32, 32], strides = [1, 1]} : vector<32x384xf32> to vector<32x32xf32>
    %458 = arith.truncf %457 : vector<32x32xf32> to vector<32x32xbf16>
    %459 = vector.extract_strided_slice %456 {offsets = [0, 128], sizes = [32, 32], strides = [1, 1]} : vector<32x384xf32> to vector<32x32xf32>
    %460 = arith.truncf %459 : vector<32x32xf32> to vector<32x32xbf16>
    %461 = vector.extract_strided_slice %456 {offsets = [0, 256], sizes = [32, 32], strides = [1, 1]} : vector<32x384xf32> to vector<32x32xf32>
    %462 = arith.truncf %461 : vector<32x32xf32> to vector<32x32xbf16>
    %cst_142 = arith.constant dense<0.000000e+00> : vector<32x32xf32>
    %463 = tpu.matmul %458, %460, %cst_142 {dimension_numbers = #tpu.dot_dimension_numbers<[1], [1], [0], [0], [0, 0, 1, 0], [], []>} : vector<32x32xbf16>, vector<32x32xbf16>, vector<32x32xf32> -> vector<32x32xf32>
    %c0_143 = arith.constant 0 : index
    %c0_144 = arith.constant 0 : index
    %c0_145 = arith.constant 0 : index
    %464 = vector.load %arg4[%c0_143, %c0_144, %c0_145] : memref<4x32x32xf32, #tpu.memory_space<vmem>>, vector<1x32x32xf32>
    %465 = vector.shape_cast %464 : vector<1x32x32xf32> to vector<32x32xf32>
    %466 = arith.addf %463, %465 : vector<32x32xf32>
    %cst_146 = arith.constant dense<0xFF800000> : vector<32xf32>
    %467 = vector.multi_reduction <maximumf>, %466, %cst_146 [1] : vector<32x32xf32> to vector<32xf32>
    %468 = vector.shape_cast %467 : vector<32xf32> to vector<32x1xf32>
    %469 = vector.broadcast %468 : vector<32x1xf32> to vector<32x32xf32>
    %470 = arith.subf %466, %469 : vector<32x32xf32>
    %471 = math.exp %470 : vector<32x32xf32>
    %cst_147 = arith.constant dense<0.000000e+00> : vector<32xf32>
    %472 = vector.multi_reduction <add>, %471, %cst_147 [1] : vector<32x32xf32> to vector<32xf32>
    %473 = vector.shape_cast %472 : vector<32xf32> to vector<32x1xf32>
    %474 = arith.truncf %471 : vector<32x32xf32> to vector<32x32xbf16>
    %cst_148 = arith.constant dense<0.000000e+00> : vector<32x32xf32>
    %475 = tpu.matmul %474, %462, %cst_148 {dimension_numbers = #tpu.dot_dimension_numbers<[1], [0], [0], [1], [0, 0, 1, 1], [], []>} : vector<32x32xbf16>, vector<32x32xbf16>, vector<32x32xf32> -> vector<32x32xf32>
    %476 = tpu.reciprocal %473 {approx = true} : vector<32x1xf32> -> vector<32x1xf32>
    %477 = vector.broadcast %476 : vector<32x1xf32> to vector<32x32xf32>
    %478 = arith.mulf %475, %477 : vector<32x32xf32>
    %479 = vector.extract_strided_slice %456 {offsets = [0, 32], sizes = [32, 32], strides = [1, 1]} : vector<32x384xf32> to vector<32x32xf32>
    %480 = arith.truncf %479 : vector<32x32xf32> to vector<32x32xbf16>
    %481 = vector.extract_strided_slice %456 {offsets = [0, 160], sizes = [32, 32], strides = [1, 1]} : vector<32x384xf32> to vector<32x32xf32>
    %482 = arith.truncf %481 : vector<32x32xf32> to vector<32x32xbf16>
    %483 = vector.extract_strided_slice %456 {offsets = [0, 288], sizes = [32, 32], strides = [1, 1]} : vector<32x384xf32> to vector<32x32xf32>
    %484 = arith.truncf %483 : vector<32x32xf32> to vector<32x32xbf16>
    %cst_149 = arith.constant dense<0.000000e+00> : vector<32x32xf32>
    %485 = tpu.matmul %480, %482, %cst_149 {dimension_numbers = #tpu.dot_dimension_numbers<[1], [1], [0], [0], [0, 0, 1, 0], [], []>} : vector<32x32xbf16>, vector<32x32xbf16>, vector<32x32xf32> -> vector<32x32xf32>
    %c1_150 = arith.constant 1 : index
    %c0_151 = arith.constant 0 : index
    %c0_152 = arith.constant 0 : index
    %486 = vector.load %arg4[%c1_150, %c0_151, %c0_152] : memref<4x32x32xf32, #tpu.memory_space<vmem>>, vector<1x32x32xf32>
    %487 = vector.shape_cast %486 : vector<1x32x32xf32> to vector<32x32xf32>
    %488 = arith.addf %485, %487 : vector<32x32xf32>
    %cst_153 = arith.constant dense<0xFF800000> : vector<32xf32>
    %489 = vector.multi_reduction <maximumf>, %488, %cst_153 [1] : vector<32x32xf32> to vector<32xf32>
    %490 = vector.shape_cast %489 : vector<32xf32> to vector<32x1xf32>
    %491 = vector.broadcast %490 : vector<32x1xf32> to vector<32x32xf32>
    %492 = arith.subf %488, %491 : vector<32x32xf32>
    %493 = math.exp %492 : vector<32x32xf32>
    %cst_154 = arith.constant dense<0.000000e+00> : vector<32xf32>
    %494 = vector.multi_reduction <add>, %493, %cst_154 [1] : vector<32x32xf32> to vector<32xf32>
    %495 = vector.shape_cast %494 : vector<32xf32> to vector<32x1xf32>
    %496 = arith.truncf %493 : vector<32x32xf32> to vector<32x32xbf16>
    %cst_155 = arith.constant dense<0.000000e+00> : vector<32x32xf32>
    %497 = tpu.matmul %496, %484, %cst_155 {dimension_numbers = #tpu.dot_dimension_numbers<[1], [0], [0], [1], [0, 0, 1, 1], [], []>} : vector<32x32xbf16>, vector<32x32xbf16>, vector<32x32xf32> -> vector<32x32xf32>
    %498 = tpu.reciprocal %495 {approx = true} : vector<32x1xf32> -> vector<32x1xf32>
    %499 = vector.broadcast %498 : vector<32x1xf32> to vector<32x32xf32>
    %500 = arith.mulf %497, %499 : vector<32x32xf32>
    %501 = vector.extract_strided_slice %456 {offsets = [0, 64], sizes = [32, 32], strides = [1, 1]} : vector<32x384xf32> to vector<32x32xf32>
    %502 = arith.truncf %501 : vector<32x32xf32> to vector<32x32xbf16>
    %503 = vector.extract_strided_slice %456 {offsets = [0, 192], sizes = [32, 32], strides = [1, 1]} : vector<32x384xf32> to vector<32x32xf32>
    %504 = arith.truncf %503 : vector<32x32xf32> to vector<32x32xbf16>
    %505 = vector.extract_strided_slice %456 {offsets = [0, 320], sizes = [32, 32], strides = [1, 1]} : vector<32x384xf32> to vector<32x32xf32>
    %506 = arith.truncf %505 : vector<32x32xf32> to vector<32x32xbf16>
    %cst_156 = arith.constant dense<0.000000e+00> : vector<32x32xf32>
    %507 = tpu.matmul %502, %504, %cst_156 {dimension_numbers = #tpu.dot_dimension_numbers<[1], [1], [0], [0], [0, 0, 1, 0], [], []>} : vector<32x32xbf16>, vector<32x32xbf16>, vector<32x32xf32> -> vector<32x32xf32>
    %c2_157 = arith.constant 2 : index
    %c0_158 = arith.constant 0 : index
    %c0_159 = arith.constant 0 : index
    %508 = vector.load %arg4[%c2_157, %c0_158, %c0_159] : memref<4x32x32xf32, #tpu.memory_space<vmem>>, vector<1x32x32xf32>
    %509 = vector.shape_cast %508 : vector<1x32x32xf32> to vector<32x32xf32>
    %510 = arith.addf %507, %509 : vector<32x32xf32>
    %cst_160 = arith.constant dense<0xFF800000> : vector<32xf32>
    %511 = vector.multi_reduction <maximumf>, %510, %cst_160 [1] : vector<32x32xf32> to vector<32xf32>
    %512 = vector.shape_cast %511 : vector<32xf32> to vector<32x1xf32>
    %513 = vector.broadcast %512 : vector<32x1xf32> to vector<32x32xf32>
    %514 = arith.subf %510, %513 : vector<32x32xf32>
    %515 = math.exp %514 : vector<32x32xf32>
    %cst_161 = arith.constant dense<0.000000e+00> : vector<32xf32>
    %516 = vector.multi_reduction <add>, %515, %cst_161 [1] : vector<32x32xf32> to vector<32xf32>
    %517 = vector.shape_cast %516 : vector<32xf32> to vector<32x1xf32>
    %518 = arith.truncf %515 : vector<32x32xf32> to vector<32x32xbf16>
    %cst_162 = arith.constant dense<0.000000e+00> : vector<32x32xf32>
    %519 = tpu.matmul %518, %506, %cst_162 {dimension_numbers = #tpu.dot_dimension_numbers<[1], [0], [0], [1], [0, 0, 1, 1], [], []>} : vector<32x32xbf16>, vector<32x32xbf16>, vector<32x32xf32> -> vector<32x32xf32>
    %520 = tpu.reciprocal %517 {approx = true} : vector<32x1xf32> -> vector<32x1xf32>
    %521 = vector.broadcast %520 : vector<32x1xf32> to vector<32x32xf32>
    %522 = arith.mulf %519, %521 : vector<32x32xf32>
    %523 = vector.extract_strided_slice %456 {offsets = [0, 96], sizes = [32, 32], strides = [1, 1]} : vector<32x384xf32> to vector<32x32xf32>
    %524 = arith.truncf %523 : vector<32x32xf32> to vector<32x32xbf16>
    %525 = vector.extract_strided_slice %456 {offsets = [0, 224], sizes = [32, 32], strides = [1, 1]} : vector<32x384xf32> to vector<32x32xf32>
    %526 = arith.truncf %525 : vector<32x32xf32> to vector<32x32xbf16>
    %527 = vector.extract_strided_slice %456 {offsets = [0, 352], sizes = [32, 32], strides = [1, 1]} : vector<32x384xf32> to vector<32x32xf32>
    %528 = arith.truncf %527 : vector<32x32xf32> to vector<32x32xbf16>
    %cst_163 = arith.constant dense<0.000000e+00> : vector<32x32xf32>
    %529 = tpu.matmul %524, %526, %cst_163 {dimension_numbers = #tpu.dot_dimension_numbers<[1], [1], [0], [0], [0, 0, 1, 0], [], []>} : vector<32x32xbf16>, vector<32x32xbf16>, vector<32x32xf32> -> vector<32x32xf32>
    %c3_164 = arith.constant 3 : index
    %c0_165 = arith.constant 0 : index
    %c0_166 = arith.constant 0 : index
    %530 = vector.load %arg4[%c3_164, %c0_165, %c0_166] : memref<4x32x32xf32, #tpu.memory_space<vmem>>, vector<1x32x32xf32>
    %531 = vector.shape_cast %530 : vector<1x32x32xf32> to vector<32x32xf32>
    %532 = arith.addf %529, %531 : vector<32x32xf32>
    %cst_167 = arith.constant dense<0xFF800000> : vector<32xf32>
    %533 = vector.multi_reduction <maximumf>, %532, %cst_167 [1] : vector<32x32xf32> to vector<32xf32>
    %534 = vector.shape_cast %533 : vector<32xf32> to vector<32x1xf32>
    %535 = vector.broadcast %534 : vector<32x1xf32> to vector<32x32xf32>
    %536 = arith.subf %532, %535 : vector<32x32xf32>
    %537 = math.exp %536 : vector<32x32xf32>
    %cst_168 = arith.constant dense<0.000000e+00> : vector<32xf32>
    %538 = vector.multi_reduction <add>, %537, %cst_168 [1] : vector<32x32xf32> to vector<32xf32>
    %539 = vector.shape_cast %538 : vector<32xf32> to vector<32x1xf32>
    %540 = arith.truncf %537 : vector<32x32xf32> to vector<32x32xbf16>
    %cst_169 = arith.constant dense<0.000000e+00> : vector<32x32xf32>
    %541 = tpu.matmul %540, %528, %cst_169 {dimension_numbers = #tpu.dot_dimension_numbers<[1], [0], [0], [1], [0, 0, 1, 1], [], []>} : vector<32x32xbf16>, vector<32x32xbf16>, vector<32x32xf32> -> vector<32x32xf32>
    %542 = tpu.reciprocal %539 {approx = true} : vector<32x1xf32> -> vector<32x1xf32>
    %543 = vector.broadcast %542 : vector<32x1xf32> to vector<32x32xf32>
    %544 = arith.mulf %541, %543 : vector<32x32xf32>
    %545 = tpu.concatenate %478, %500, %522, %544 in 1 : vector<32x32xf32>, vector<32x32xf32>, vector<32x32xf32>, vector<32x32xf32> -> vector<32x128xf32>
    %546 = vector.extract_strided_slice %5 {offsets = [192, 0], sizes = [32, 384], strides = [1, 1]} : vector<256x384xf32> to vector<32x384xf32>
    %547 = vector.extract_strided_slice %546 {offsets = [0, 0], sizes = [32, 32], strides = [1, 1]} : vector<32x384xf32> to vector<32x32xf32>
    %548 = arith.truncf %547 : vector<32x32xf32> to vector<32x32xbf16>
    %549 = vector.extract_strided_slice %546 {offsets = [0, 128], sizes = [32, 32], strides = [1, 1]} : vector<32x384xf32> to vector<32x32xf32>
    %550 = arith.truncf %549 : vector<32x32xf32> to vector<32x32xbf16>
    %551 = vector.extract_strided_slice %546 {offsets = [0, 256], sizes = [32, 32], strides = [1, 1]} : vector<32x384xf32> to vector<32x32xf32>
    %552 = arith.truncf %551 : vector<32x32xf32> to vector<32x32xbf16>
    %cst_170 = arith.constant dense<0.000000e+00> : vector<32x32xf32>
    %553 = tpu.matmul %548, %550, %cst_170 {dimension_numbers = #tpu.dot_dimension_numbers<[1], [1], [0], [0], [0, 0, 1, 0], [], []>} : vector<32x32xbf16>, vector<32x32xbf16>, vector<32x32xf32> -> vector<32x32xf32>
    %c0_171 = arith.constant 0 : index
    %c0_172 = arith.constant 0 : index
    %c0_173 = arith.constant 0 : index
    %554 = vector.load %arg4[%c0_171, %c0_172, %c0_173] : memref<4x32x32xf32, #tpu.memory_space<vmem>>, vector<1x32x32xf32>
    %555 = vector.shape_cast %554 : vector<1x32x32xf32> to vector<32x32xf32>
    %556 = arith.addf %553, %555 : vector<32x32xf32>
    %cst_174 = arith.constant dense<0xFF800000> : vector<32xf32>
    %557 = vector.multi_reduction <maximumf>, %556, %cst_174 [1] : vector<32x32xf32> to vector<32xf32>
    %558 = vector.shape_cast %557 : vector<32xf32> to vector<32x1xf32>
    %559 = vector.broadcast %558 : vector<32x1xf32> to vector<32x32xf32>
    %560 = arith.subf %556, %559 : vector<32x32xf32>
    %561 = math.exp %560 : vector<32x32xf32>
    %cst_175 = arith.constant dense<0.000000e+00> : vector<32xf32>
    %562 = vector.multi_reduction <add>, %561, %cst_175 [1] : vector<32x32xf32> to vector<32xf32>
    %563 = vector.shape_cast %562 : vector<32xf32> to vector<32x1xf32>
    %564 = arith.truncf %561 : vector<32x32xf32> to vector<32x32xbf16>
    %cst_176 = arith.constant dense<0.000000e+00> : vector<32x32xf32>
    %565 = tpu.matmul %564, %552, %cst_176 {dimension_numbers = #tpu.dot_dimension_numbers<[1], [0], [0], [1], [0, 0, 1, 1], [], []>} : vector<32x32xbf16>, vector<32x32xbf16>, vector<32x32xf32> -> vector<32x32xf32>
    %566 = tpu.reciprocal %563 {approx = true} : vector<32x1xf32> -> vector<32x1xf32>
    %567 = vector.broadcast %566 : vector<32x1xf32> to vector<32x32xf32>
    %568 = arith.mulf %565, %567 : vector<32x32xf32>
    %569 = vector.extract_strided_slice %546 {offsets = [0, 32], sizes = [32, 32], strides = [1, 1]} : vector<32x384xf32> to vector<32x32xf32>
    %570 = arith.truncf %569 : vector<32x32xf32> to vector<32x32xbf16>
    %571 = vector.extract_strided_slice %546 {offsets = [0, 160], sizes = [32, 32], strides = [1, 1]} : vector<32x384xf32> to vector<32x32xf32>
    %572 = arith.truncf %571 : vector<32x32xf32> to vector<32x32xbf16>
    %573 = vector.extract_strided_slice %546 {offsets = [0, 288], sizes = [32, 32], strides = [1, 1]} : vector<32x384xf32> to vector<32x32xf32>
    %574 = arith.truncf %573 : vector<32x32xf32> to vector<32x32xbf16>
    %cst_177 = arith.constant dense<0.000000e+00> : vector<32x32xf32>
    %575 = tpu.matmul %570, %572, %cst_177 {dimension_numbers = #tpu.dot_dimension_numbers<[1], [1], [0], [0], [0, 0, 1, 0], [], []>} : vector<32x32xbf16>, vector<32x32xbf16>, vector<32x32xf32> -> vector<32x32xf32>
    %c1_178 = arith.constant 1 : index
    %c0_179 = arith.constant 0 : index
    %c0_180 = arith.constant 0 : index
    %576 = vector.load %arg4[%c1_178, %c0_179, %c0_180] : memref<4x32x32xf32, #tpu.memory_space<vmem>>, vector<1x32x32xf32>
    %577 = vector.shape_cast %576 : vector<1x32x32xf32> to vector<32x32xf32>
    %578 = arith.addf %575, %577 : vector<32x32xf32>
    %cst_181 = arith.constant dense<0xFF800000> : vector<32xf32>
    %579 = vector.multi_reduction <maximumf>, %578, %cst_181 [1] : vector<32x32xf32> to vector<32xf32>
    %580 = vector.shape_cast %579 : vector<32xf32> to vector<32x1xf32>
    %581 = vector.broadcast %580 : vector<32x1xf32> to vector<32x32xf32>
    %582 = arith.subf %578, %581 : vector<32x32xf32>
    %583 = math.exp %582 : vector<32x32xf32>
    %cst_182 = arith.constant dense<0.000000e+00> : vector<32xf32>
    %584 = vector.multi_reduction <add>, %583, %cst_182 [1] : vector<32x32xf32> to vector<32xf32>
    %585 = vector.shape_cast %584 : vector<32xf32> to vector<32x1xf32>
    %586 = arith.truncf %583 : vector<32x32xf32> to vector<32x32xbf16>
    %cst_183 = arith.constant dense<0.000000e+00> : vector<32x32xf32>
    %587 = tpu.matmul %586, %574, %cst_183 {dimension_numbers = #tpu.dot_dimension_numbers<[1], [0], [0], [1], [0, 0, 1, 1], [], []>} : vector<32x32xbf16>, vector<32x32xbf16>, vector<32x32xf32> -> vector<32x32xf32>
    %588 = tpu.reciprocal %585 {approx = true} : vector<32x1xf32> -> vector<32x1xf32>
    %589 = vector.broadcast %588 : vector<32x1xf32> to vector<32x32xf32>
    %590 = arith.mulf %587, %589 : vector<32x32xf32>
    %591 = vector.extract_strided_slice %546 {offsets = [0, 64], sizes = [32, 32], strides = [1, 1]} : vector<32x384xf32> to vector<32x32xf32>
    %592 = arith.truncf %591 : vector<32x32xf32> to vector<32x32xbf16>
    %593 = vector.extract_strided_slice %546 {offsets = [0, 192], sizes = [32, 32], strides = [1, 1]} : vector<32x384xf32> to vector<32x32xf32>
    %594 = arith.truncf %593 : vector<32x32xf32> to vector<32x32xbf16>
    %595 = vector.extract_strided_slice %546 {offsets = [0, 320], sizes = [32, 32], strides = [1, 1]} : vector<32x384xf32> to vector<32x32xf32>
    %596 = arith.truncf %595 : vector<32x32xf32> to vector<32x32xbf16>
    %cst_184 = arith.constant dense<0.000000e+00> : vector<32x32xf32>
    %597 = tpu.matmul %592, %594, %cst_184 {dimension_numbers = #tpu.dot_dimension_numbers<[1], [1], [0], [0], [0, 0, 1, 0], [], []>} : vector<32x32xbf16>, vector<32x32xbf16>, vector<32x32xf32> -> vector<32x32xf32>
    %c2_185 = arith.constant 2 : index
    %c0_186 = arith.constant 0 : index
    %c0_187 = arith.constant 0 : index
    %598 = vector.load %arg4[%c2_185, %c0_186, %c0_187] : memref<4x32x32xf32, #tpu.memory_space<vmem>>, vector<1x32x32xf32>
    %599 = vector.shape_cast %598 : vector<1x32x32xf32> to vector<32x32xf32>
    %600 = arith.addf %597, %599 : vector<32x32xf32>
    %cst_188 = arith.constant dense<0xFF800000> : vector<32xf32>
    %601 = vector.multi_reduction <maximumf>, %600, %cst_188 [1] : vector<32x32xf32> to vector<32xf32>
    %602 = vector.shape_cast %601 : vector<32xf32> to vector<32x1xf32>
    %603 = vector.broadcast %602 : vector<32x1xf32> to vector<32x32xf32>
    %604 = arith.subf %600, %603 : vector<32x32xf32>
    %605 = math.exp %604 : vector<32x32xf32>
    %cst_189 = arith.constant dense<0.000000e+00> : vector<32xf32>
    %606 = vector.multi_reduction <add>, %605, %cst_189 [1] : vector<32x32xf32> to vector<32xf32>
    %607 = vector.shape_cast %606 : vector<32xf32> to vector<32x1xf32>
    %608 = arith.truncf %605 : vector<32x32xf32> to vector<32x32xbf16>
    %cst_190 = arith.constant dense<0.000000e+00> : vector<32x32xf32>
    %609 = tpu.matmul %608, %596, %cst_190 {dimension_numbers = #tpu.dot_dimension_numbers<[1], [0], [0], [1], [0, 0, 1, 1], [], []>} : vector<32x32xbf16>, vector<32x32xbf16>, vector<32x32xf32> -> vector<32x32xf32>
    %610 = tpu.reciprocal %607 {approx = true} : vector<32x1xf32> -> vector<32x1xf32>
    %611 = vector.broadcast %610 : vector<32x1xf32> to vector<32x32xf32>
    %612 = arith.mulf %609, %611 : vector<32x32xf32>
    %613 = vector.extract_strided_slice %546 {offsets = [0, 96], sizes = [32, 32], strides = [1, 1]} : vector<32x384xf32> to vector<32x32xf32>
    %614 = arith.truncf %613 : vector<32x32xf32> to vector<32x32xbf16>
    %615 = vector.extract_strided_slice %546 {offsets = [0, 224], sizes = [32, 32], strides = [1, 1]} : vector<32x384xf32> to vector<32x32xf32>
    %616 = arith.truncf %615 : vector<32x32xf32> to vector<32x32xbf16>
    %617 = vector.extract_strided_slice %546 {offsets = [0, 352], sizes = [32, 32], strides = [1, 1]} : vector<32x384xf32> to vector<32x32xf32>
    %618 = arith.truncf %617 : vector<32x32xf32> to vector<32x32xbf16>
    %cst_191 = arith.constant dense<0.000000e+00> : vector<32x32xf32>
    %619 = tpu.matmul %614, %616, %cst_191 {dimension_numbers = #tpu.dot_dimension_numbers<[1], [1], [0], [0], [0, 0, 1, 0], [], []>} : vector<32x32xbf16>, vector<32x32xbf16>, vector<32x32xf32> -> vector<32x32xf32>
    %c3_192 = arith.constant 3 : index
    %c0_193 = arith.constant 0 : index
    %c0_194 = arith.constant 0 : index
    %620 = vector.load %arg4[%c3_192, %c0_193, %c0_194] : memref<4x32x32xf32, #tpu.memory_space<vmem>>, vector<1x32x32xf32>
    %621 = vector.shape_cast %620 : vector<1x32x32xf32> to vector<32x32xf32>
    %622 = arith.addf %619, %621 : vector<32x32xf32>
    %cst_195 = arith.constant dense<0xFF800000> : vector<32xf32>
    %623 = vector.multi_reduction <maximumf>, %622, %cst_195 [1] : vector<32x32xf32> to vector<32xf32>
    %624 = vector.shape_cast %623 : vector<32xf32> to vector<32x1xf32>
    %625 = vector.broadcast %624 : vector<32x1xf32> to vector<32x32xf32>
    %626 = arith.subf %622, %625 : vector<32x32xf32>
    %627 = math.exp %626 : vector<32x32xf32>
    %cst_196 = arith.constant dense<0.000000e+00> : vector<32xf32>
    %628 = vector.multi_reduction <add>, %627, %cst_196 [1] : vector<32x32xf32> to vector<32xf32>
    %629 = vector.shape_cast %628 : vector<32xf32> to vector<32x1xf32>
    %630 = arith.truncf %627 : vector<32x32xf32> to vector<32x32xbf16>
    %cst_197 = arith.constant dense<0.000000e+00> : vector<32x32xf32>
    %631 = tpu.matmul %630, %618, %cst_197 {dimension_numbers = #tpu.dot_dimension_numbers<[1], [0], [0], [1], [0, 0, 1, 1], [], []>} : vector<32x32xbf16>, vector<32x32xbf16>, vector<32x32xf32> -> vector<32x32xf32>
    %632 = tpu.reciprocal %629 {approx = true} : vector<32x1xf32> -> vector<32x1xf32>
    %633 = vector.broadcast %632 : vector<32x1xf32> to vector<32x32xf32>
    %634 = arith.mulf %631, %633 : vector<32x32xf32>
    %635 = tpu.concatenate %568, %590, %612, %634 in 1 : vector<32x32xf32>, vector<32x32xf32>, vector<32x32xf32>, vector<32x32xf32> -> vector<32x128xf32>
    %636 = vector.extract_strided_slice %5 {offsets = [224, 0], sizes = [32, 384], strides = [1, 1]} : vector<256x384xf32> to vector<32x384xf32>
    %637 = vector.extract_strided_slice %636 {offsets = [0, 0], sizes = [32, 32], strides = [1, 1]} : vector<32x384xf32> to vector<32x32xf32>
    %638 = arith.truncf %637 : vector<32x32xf32> to vector<32x32xbf16>
    %639 = vector.extract_strided_slice %636 {offsets = [0, 128], sizes = [32, 32], strides = [1, 1]} : vector<32x384xf32> to vector<32x32xf32>
    %640 = arith.truncf %639 : vector<32x32xf32> to vector<32x32xbf16>
    %641 = vector.extract_strided_slice %636 {offsets = [0, 256], sizes = [32, 32], strides = [1, 1]} : vector<32x384xf32> to vector<32x32xf32>
    %642 = arith.truncf %641 : vector<32x32xf32> to vector<32x32xbf16>
    %cst_198 = arith.constant dense<0.000000e+00> : vector<32x32xf32>
    %643 = tpu.matmul %638, %640, %cst_198 {dimension_numbers = #tpu.dot_dimension_numbers<[1], [1], [0], [0], [0, 0, 1, 0], [], []>} : vector<32x32xbf16>, vector<32x32xbf16>, vector<32x32xf32> -> vector<32x32xf32>
    %c0_199 = arith.constant 0 : index
    %c0_200 = arith.constant 0 : index
    %c0_201 = arith.constant 0 : index
    %644 = vector.load %arg4[%c0_199, %c0_200, %c0_201] : memref<4x32x32xf32, #tpu.memory_space<vmem>>, vector<1x32x32xf32>
    %645 = vector.shape_cast %644 : vector<1x32x32xf32> to vector<32x32xf32>
    %646 = arith.addf %643, %645 : vector<32x32xf32>
    %cst_202 = arith.constant dense<0xFF800000> : vector<32xf32>
    %647 = vector.multi_reduction <maximumf>, %646, %cst_202 [1] : vector<32x32xf32> to vector<32xf32>
    %648 = vector.shape_cast %647 : vector<32xf32> to vector<32x1xf32>
    %649 = vector.broadcast %648 : vector<32x1xf32> to vector<32x32xf32>
    %650 = arith.subf %646, %649 : vector<32x32xf32>
    %651 = math.exp %650 : vector<32x32xf32>
    %cst_203 = arith.constant dense<0.000000e+00> : vector<32xf32>
    %652 = vector.multi_reduction <add>, %651, %cst_203 [1] : vector<32x32xf32> to vector<32xf32>
    %653 = vector.shape_cast %652 : vector<32xf32> to vector<32x1xf32>
    %654 = arith.truncf %651 : vector<32x32xf32> to vector<32x32xbf16>
    %cst_204 = arith.constant dense<0.000000e+00> : vector<32x32xf32>
    %655 = tpu.matmul %654, %642, %cst_204 {dimension_numbers = #tpu.dot_dimension_numbers<[1], [0], [0], [1], [0, 0, 1, 1], [], []>} : vector<32x32xbf16>, vector<32x32xbf16>, vector<32x32xf32> -> vector<32x32xf32>
    %656 = tpu.reciprocal %653 {approx = true} : vector<32x1xf32> -> vector<32x1xf32>
    %657 = vector.broadcast %656 : vector<32x1xf32> to vector<32x32xf32>
    %658 = arith.mulf %655, %657 : vector<32x32xf32>
    %659 = vector.extract_strided_slice %636 {offsets = [0, 32], sizes = [32, 32], strides = [1, 1]} : vector<32x384xf32> to vector<32x32xf32>
    %660 = arith.truncf %659 : vector<32x32xf32> to vector<32x32xbf16>
    %661 = vector.extract_strided_slice %636 {offsets = [0, 160], sizes = [32, 32], strides = [1, 1]} : vector<32x384xf32> to vector<32x32xf32>
    %662 = arith.truncf %661 : vector<32x32xf32> to vector<32x32xbf16>
    %663 = vector.extract_strided_slice %636 {offsets = [0, 288], sizes = [32, 32], strides = [1, 1]} : vector<32x384xf32> to vector<32x32xf32>
    %664 = arith.truncf %663 : vector<32x32xf32> to vector<32x32xbf16>
    %cst_205 = arith.constant dense<0.000000e+00> : vector<32x32xf32>
    %665 = tpu.matmul %660, %662, %cst_205 {dimension_numbers = #tpu.dot_dimension_numbers<[1], [1], [0], [0], [0, 0, 1, 0], [], []>} : vector<32x32xbf16>, vector<32x32xbf16>, vector<32x32xf32> -> vector<32x32xf32>
    %c1_206 = arith.constant 1 : index
    %c0_207 = arith.constant 0 : index
    %c0_208 = arith.constant 0 : index
    %666 = vector.load %arg4[%c1_206, %c0_207, %c0_208] : memref<4x32x32xf32, #tpu.memory_space<vmem>>, vector<1x32x32xf32>
    %667 = vector.shape_cast %666 : vector<1x32x32xf32> to vector<32x32xf32>
    %668 = arith.addf %665, %667 : vector<32x32xf32>
    %cst_209 = arith.constant dense<0xFF800000> : vector<32xf32>
    %669 = vector.multi_reduction <maximumf>, %668, %cst_209 [1] : vector<32x32xf32> to vector<32xf32>
    %670 = vector.shape_cast %669 : vector<32xf32> to vector<32x1xf32>
    %671 = vector.broadcast %670 : vector<32x1xf32> to vector<32x32xf32>
    %672 = arith.subf %668, %671 : vector<32x32xf32>
    %673 = math.exp %672 : vector<32x32xf32>
    %cst_210 = arith.constant dense<0.000000e+00> : vector<32xf32>
    %674 = vector.multi_reduction <add>, %673, %cst_210 [1] : vector<32x32xf32> to vector<32xf32>
    %675 = vector.shape_cast %674 : vector<32xf32> to vector<32x1xf32>
    %676 = arith.truncf %673 : vector<32x32xf32> to vector<32x32xbf16>
    %cst_211 = arith.constant dense<0.000000e+00> : vector<32x32xf32>
    %677 = tpu.matmul %676, %664, %cst_211 {dimension_numbers = #tpu.dot_dimension_numbers<[1], [0], [0], [1], [0, 0, 1, 1], [], []>} : vector<32x32xbf16>, vector<32x32xbf16>, vector<32x32xf32> -> vector<32x32xf32>
    %678 = tpu.reciprocal %675 {approx = true} : vector<32x1xf32> -> vector<32x1xf32>
    %679 = vector.broadcast %678 : vector<32x1xf32> to vector<32x32xf32>
    %680 = arith.mulf %677, %679 : vector<32x32xf32>
    %681 = vector.extract_strided_slice %636 {offsets = [0, 64], sizes = [32, 32], strides = [1, 1]} : vector<32x384xf32> to vector<32x32xf32>
    %682 = arith.truncf %681 : vector<32x32xf32> to vector<32x32xbf16>
    %683 = vector.extract_strided_slice %636 {offsets = [0, 192], sizes = [32, 32], strides = [1, 1]} : vector<32x384xf32> to vector<32x32xf32>
    %684 = arith.truncf %683 : vector<32x32xf32> to vector<32x32xbf16>
    %685 = vector.extract_strided_slice %636 {offsets = [0, 320], sizes = [32, 32], strides = [1, 1]} : vector<32x384xf32> to vector<32x32xf32>
    %686 = arith.truncf %685 : vector<32x32xf32> to vector<32x32xbf16>
    %cst_212 = arith.constant dense<0.000000e+00> : vector<32x32xf32>
    %687 = tpu.matmul %682, %684, %cst_212 {dimension_numbers = #tpu.dot_dimension_numbers<[1], [1], [0], [0], [0, 0, 1, 0], [], []>} : vector<32x32xbf16>, vector<32x32xbf16>, vector<32x32xf32> -> vector<32x32xf32>
    %c2_213 = arith.constant 2 : index
    %c0_214 = arith.constant 0 : index
    %c0_215 = arith.constant 0 : index
    %688 = vector.load %arg4[%c2_213, %c0_214, %c0_215] : memref<4x32x32xf32, #tpu.memory_space<vmem>>, vector<1x32x32xf32>
    %689 = vector.shape_cast %688 : vector<1x32x32xf32> to vector<32x32xf32>
    %690 = arith.addf %687, %689 : vector<32x32xf32>
    %cst_216 = arith.constant dense<0xFF800000> : vector<32xf32>
    %691 = vector.multi_reduction <maximumf>, %690, %cst_216 [1] : vector<32x32xf32> to vector<32xf32>
    %692 = vector.shape_cast %691 : vector<32xf32> to vector<32x1xf32>
    %693 = vector.broadcast %692 : vector<32x1xf32> to vector<32x32xf32>
    %694 = arith.subf %690, %693 : vector<32x32xf32>
    %695 = math.exp %694 : vector<32x32xf32>
    %cst_217 = arith.constant dense<0.000000e+00> : vector<32xf32>
    %696 = vector.multi_reduction <add>, %695, %cst_217 [1] : vector<32x32xf32> to vector<32xf32>
    %697 = vector.shape_cast %696 : vector<32xf32> to vector<32x1xf32>
    %698 = arith.truncf %695 : vector<32x32xf32> to vector<32x32xbf16>
    %cst_218 = arith.constant dense<0.000000e+00> : vector<32x32xf32>
    %699 = tpu.matmul %698, %686, %cst_218 {dimension_numbers = #tpu.dot_dimension_numbers<[1], [0], [0], [1], [0, 0, 1, 1], [], []>} : vector<32x32xbf16>, vector<32x32xbf16>, vector<32x32xf32> -> vector<32x32xf32>
    %700 = tpu.reciprocal %697 {approx = true} : vector<32x1xf32> -> vector<32x1xf32>
    %701 = vector.broadcast %700 : vector<32x1xf32> to vector<32x32xf32>
    %702 = arith.mulf %699, %701 : vector<32x32xf32>
    %703 = vector.extract_strided_slice %636 {offsets = [0, 96], sizes = [32, 32], strides = [1, 1]} : vector<32x384xf32> to vector<32x32xf32>
    %704 = arith.truncf %703 : vector<32x32xf32> to vector<32x32xbf16>
    %705 = vector.extract_strided_slice %636 {offsets = [0, 224], sizes = [32, 32], strides = [1, 1]} : vector<32x384xf32> to vector<32x32xf32>
    %706 = arith.truncf %705 : vector<32x32xf32> to vector<32x32xbf16>
    %707 = vector.extract_strided_slice %636 {offsets = [0, 352], sizes = [32, 32], strides = [1, 1]} : vector<32x384xf32> to vector<32x32xf32>
    %708 = arith.truncf %707 : vector<32x32xf32> to vector<32x32xbf16>
    %cst_219 = arith.constant dense<0.000000e+00> : vector<32x32xf32>
    %709 = tpu.matmul %704, %706, %cst_219 {dimension_numbers = #tpu.dot_dimension_numbers<[1], [1], [0], [0], [0, 0, 1, 0], [], []>} : vector<32x32xbf16>, vector<32x32xbf16>, vector<32x32xf32> -> vector<32x32xf32>
    %c3_220 = arith.constant 3 : index
    %c0_221 = arith.constant 0 : index
    %c0_222 = arith.constant 0 : index
    %710 = vector.load %arg4[%c3_220, %c0_221, %c0_222] : memref<4x32x32xf32, #tpu.memory_space<vmem>>, vector<1x32x32xf32>
    %711 = vector.shape_cast %710 : vector<1x32x32xf32> to vector<32x32xf32>
    %712 = arith.addf %709, %711 : vector<32x32xf32>
    %cst_223 = arith.constant dense<0xFF800000> : vector<32xf32>
    %713 = vector.multi_reduction <maximumf>, %712, %cst_223 [1] : vector<32x32xf32> to vector<32xf32>
    %714 = vector.shape_cast %713 : vector<32xf32> to vector<32x1xf32>
    %715 = vector.broadcast %714 : vector<32x1xf32> to vector<32x32xf32>
    %716 = arith.subf %712, %715 : vector<32x32xf32>
    %717 = math.exp %716 : vector<32x32xf32>
    %cst_224 = arith.constant dense<0.000000e+00> : vector<32xf32>
    %718 = vector.multi_reduction <add>, %717, %cst_224 [1] : vector<32x32xf32> to vector<32xf32>
    %719 = vector.shape_cast %718 : vector<32xf32> to vector<32x1xf32>
    %720 = arith.truncf %717 : vector<32x32xf32> to vector<32x32xbf16>
    %cst_225 = arith.constant dense<0.000000e+00> : vector<32x32xf32>
    %721 = tpu.matmul %720, %708, %cst_225 {dimension_numbers = #tpu.dot_dimension_numbers<[1], [0], [0], [1], [0, 0, 1, 1], [], []>} : vector<32x32xbf16>, vector<32x32xbf16>, vector<32x32xf32> -> vector<32x32xf32>
    %722 = tpu.reciprocal %719 {approx = true} : vector<32x1xf32> -> vector<32x1xf32>
    %723 = vector.broadcast %722 : vector<32x1xf32> to vector<32x32xf32>
    %724 = arith.mulf %721, %723 : vector<32x32xf32>
    %725 = tpu.concatenate %658, %680, %702, %724 in 1 : vector<32x32xf32>, vector<32x32xf32>, vector<32x32xf32>, vector<32x32xf32> -> vector<32x128xf32>
    %726 = tpu.concatenate %95, %185, %275, %365, %455, %545, %635, %725 in 0 : vector<32x128xf32>, vector<32x128xf32>, vector<32x128xf32>, vector<32x128xf32>, vector<32x128xf32>, vector<32x128xf32>, vector<32x128xf32>, vector<32x128xf32> -> vector<256x128xf32>
    %727 = arith.truncf %726 : vector<256x128xf32> to vector<256x128xbf16>
    %c0_226 = arith.constant 0 : index
    %c0_227 = arith.constant 0 : index
    %728 = vector.load %arg5[%c0_226, %c0_227] : memref<128x128xbf16, #tpu.memory_space<vmem>>, vector<128x128xbf16>
    %cst_228 = arith.constant dense<0.000000e+00> : vector<256x128xf32>
    %729 = tpu.matmul %727, %728, %cst_228 {dimension_numbers = #tpu.dot_dimension_numbers<[1], [0], [0], [1], [0, 0, 1, 1], [], []>} : vector<256x128xbf16>, vector<128x128xbf16>, vector<256x128xf32> -> vector<256x128xf32>
    %c0_229 = arith.constant 0 : index
    %c0_230 = arith.constant 0 : index
    %730 = vector.load %arg6[%c0_229, %c0_230] : memref<1x128xf32, #tpu.memory_space<vmem>>, vector<1x128xf32>
    %731 = vector.broadcast %730 : vector<1x128xf32> to vector<256x128xf32>
    %732 = arith.addf %729, %731 : vector<256x128xf32>
    %c0_231 = arith.constant 0 : index
    %c0_232 = arith.constant 0 : index
    %733 = vector.load %arg7[%c0_231, %c0_232] : memref<256x128xf32, #tpu.memory_space<vmem>>, vector<256x128xf32>
    tpu.vector_store %arg7[%c0_231, %c0_232], %732 {strides = array<i32>} : memref<256x128xf32, #tpu.memory_space<vmem>>, vector<256x128xf32>,
    return
  }
  func.func @transform_0(%arg0: i32) -> (i32, i32) {
    %c0_i32 = arith.constant 0 : i32
    %c0_i32_0 = arith.constant 0 : i32
    return %arg0, %c0_i32 : i32, i32
  }
  func.func @transform_1(%arg0: i32) -> (i32, i32) {
    %c0_i32 = arith.constant 0 : i32
    %c0_i32_0 = arith.constant 0 : i32
    %c0_i32_1 = arith.constant 0 : i32
    return %c0_i32, %c0_i32_0 : i32, i32
  }
  func.func @transform_2(%arg0: i32) -> (i32, i32) {
    %c0_i32 = arith.constant 0 : i32
    %c0_i32_0 = arith.constant 0 : i32
    %c0_i32_1 = arith.constant 0 : i32
    return %c0_i32, %c0_i32_0 : i32, i32
  }
  func.func @transform_3(%arg0: i32) -> (i32, i32, i32) {
    %c0_i32 = arith.constant 0 : i32
    %c0_i32_0 = arith.constant 0 : i32
    %c0_i32_1 = arith.constant 0 : i32
    %c0_i32_2 = arith.constant 0 : i32
    return %c0_i32, %c0_i32_0, %c0_i32_1 : i32, i32, i32
  }
  func.func @transform_4(%arg0: i32) -> (i32, i32) {
    %c0_i32 = arith.constant 0 : i32
    %c0_i32_0 = arith.constant 0 : i32
    %c0_i32_1 = arith.constant 0 : i32
    return %c0_i32, %c0_i32_0 : i32, i32
  }
  func.func @transform_5(%arg0: i32) -> (i32, i32) {
    %c0_i32 = arith.constant 0 : i32
    %c0_i32_0 = arith.constant 0 : i32
    %c0_i32_1 = arith.constant 0 : i32
    return %c0_i32, %c0_i32_0 : i32, i32
  }
  func.func @transform_6(%arg0: i32) -> (i32, i32) {
    %c0_i32 = arith.constant 0 : i32
    %c0_i32_0 = arith.constant 0 : i32
    return %arg0, %c0_i32 : i32, i32
  }
}

</mosaic_0001>

<bundles_post_ra>
// kernel: tpu_custom_call.1
= control target key start
LH: loop header
LB: loop body
LE: loop exit
PB: predicated region body
PF: predicated region fallthrough
CT: control target
= control target key end

     0   :  { %11 = vsyncpa [#allocation3], 0  ;;  %s10268_s0 = inlined_call_operand.hbm [shape: bf16[512,128], index: 0, kind: input, shape index: {}]   ;;  %s10269_s1 = inlined_call_operand.hbm [shape: bf16[128,384], index: 1, kind: input, shape index: {}]   ;;  %s10270_s2 = inlined_call_operand.hbm [shape: f32[1,384], index: 2, kind: input, shape index: {}]   ;;  %s10271_s3 = inlined_call_operand.hbm [shape: f32[4,32,32], index: 3, kind: input, shape index: {}]   ;;  %s10272_s4 = inlined_call_operand.hbm [shape: bf16[128,128], index: 4, kind: input, shape index: {}]   ;;  %s10273_s5 = inlined_call_operand.vmem [shape: f32[1,128], index: 5, kind: input, shape index: {}]   ;;  %s10274_s6 = inlined_call_operand.hbm [shape: f32[512,128], index: 6, kind: output, shape index: {}]  }
   0x1   :  { %13 = vsyncpa [#allocation3 + $0x1], 0 }
   0x2   :  { %14 = vsyncpa [#allocation6], 0 }
   0x3   :  { %15 = vsyncpa [#allocation9], 0 }
   0x4   :  { %16 = vsyncpa [#allocation4], 0 }
   0x5   :  { %18 = vsyncpa [#allocation4 + $0x1], 0  ;;  %s7009_s21 = smov 0   ;;  %s7011_s22 = smov 0  }
   0x6   :  { %s7013_s23 = smov 0   ;;  %s7015_s24 = smov 0  }
   0x7 LB: > { %s7030_s25 = sadd.s32 4294967295, %s6957_s24   ;;  %s5432_s26 = sadd.s32 4294967294, %s6957_s24   ;;  %s6957_s24 = sphi %s7015_s24, %s10607_s24   ;;  %s6953_s23 = sphi %s7013_s23, %s10606_s23   ;;  %s6949_s22 = sphi %s7011_s22, %s10605_s22   ;;  %s6945_s21 = sphi %s7009_s21, %s10604_s21  }
   0x8   : > { %p44_p0 = scmp.ne.s32.totalorder %s6949_s22, %s6945_s21  ;;  %p45_p1 = scmp.eq.s32.totalorder %s7030_s25, 0 }
   0x9   : > { %p173_p2 = scmp.eq.s32.totalorder %s7030_s25, 1  ;;  %p179_p3 = scmp.eq.s32.totalorder %s5432_s26, 1 }
   0xa   : > { %p7039_p4 = por %p45_p1, %p44_p0  ;;  %p5433_p5 = scmp.ge.s32.totalorder %s6957_s24, 1 }
   0xb   : > { %p7044_p6 = por %p179_p3, %p44_p0  ;;  %p186_p7 = scmp.lt.s32.totalorder %s6957_s24, 3 }
   0xc   : > { %s197_s7 = sshll.u32 %s10269_s1, 4  ;;  %s6959_s9 = smov [#allocation5]   ;;  %s198_s7 = int_to_ptr.hbm [resolvable:$true] %s197_s7 }
   0xd   : > { %p7052_p8 = pnand %p5433_p5, %p186_p7  ;;  %s199_s10 = sshll.u32 %s6959_s9, 4  ;;  %s200_s10 = int_to_ptr.vmem [resolvable:$true] %s199_s10 }
   0xe   : > { %s223_s14 = sshll.u32 %s10271_s3, 4  ;;  %s6960_s15 = smov 192   ;;  %s224_s14 = int_to_ptr.hbm [resolvable:$true] %s223_s14 }
   0xf   : > { %p5868_p9 = pneg %p7052_p8  ;;  %s6961_s16 = smov 12  }
  0x10   : > { %s6962_s17 = smov [#allocation8]   ;;  %s6963_s19 = smov 128  }
  0x11   : > { %p7060_p10 = pnand %p5868_p9, %p45_p1  ;;  %s225_s18 = sshll.u32 %s6962_s17, 4  ;;  %s226_s18 = int_to_ptr.vmem [resolvable:$true] %s225_s18 }
  0x12   : > { %s6964_s20 = smov 8   ;;  %s212_s30 = sshll.u32 %s10270_s2, 4  ;;  %s213_s30 = int_to_ptr.hbm [resolvable:$true] %s212_s30 }
  0x13   : > { %5871 = dma.hbm_to_vmem [thread:$0]  (!%p7060_p10), %s198_s7, 3072, %s200_s10, [#allocation6], %s6960_s15, %s6960_s15, %s6961_s16  }
  0x14   : > { %5877 = dma.hbm_to_vmem [thread:$0]  (!%p7060_p10), %s224_s14, 2048, %s226_s18, [#allocation9], %s6963_s19, %s6963_s19, %s6964_s20  }
  0x15   : > { %s6965_s9 = smov [#allocation7]   ;;  %s237_s13 = sshll.u32 %s10272_s4, 4  ;;  %s238_s13 = int_to_ptr.hbm [resolvable:$true] %s237_s13 }
  0x16   : > { %s214_s7 = sshll.u32 %s6965_s9, 4  ;;  %s6966_s14 = smov [#allocation10]   ;;  %s215_s7 = int_to_ptr.vmem [resolvable:$true] %s214_s7 }
  0x17   : > { %5874 = dma.hbm_to_vmem [thread:$0]  (!%p7060_p10), %s213_s30, 48, %s215_s7, [#allocation6]  }
  0x18   : > { %s239_s15 = sshll.u32 %s6966_s14, 4  ;;  %s10275_s16 = smov 64   ;;  %s240_s15 = int_to_ptr.vmem [resolvable:$true] %s239_s15 }
  0x19   : > { %s10276_s17 = smov 4   ;;  %s7086_s18 = sadd.s32 1, %s6957_s24  }
  0x1a   : > { %5880 = dma.hbm_to_vmem [thread:$0]  (!%p7060_p10), %s238_s13, 1024, %s240_s15, [#allocation9], %s10275_s16, %s10275_s16, %s10276_s17  }
  0x1b   : > { %s28_s19 = ssub.s32 %s6957_s24, %s7086_s18  ;;  %s31_s20 = sadd.s32 1, %s6953_s23 }
  0x1c   : > { %p29_p12 = scmp.eq.s32.totalorder %s28_s19, 0  ;;  %p38_p13 = scmp.ne.s32.totalorder %s6953_s23, %s6949_s22 }
  0x1d   : > { %p39_p0 = scmp.eq.s32.totalorder %s6957_s24, 0  ;;  %p5893_p7 = scmp.lt.s32.totalorder %s6957_s24, 2 }
  0x1e   : > { %s7095_s26 = scalar_select %p29_p12, %s6953_s23, %s31_s20  }
  0x1f   : > { %p40_p3 = por %p39_p0, %p38_p13  ;;  %p7099_p5 = por %p173_p2, %p38_p13 }
  0x20   : > { %s256_s11 = sand.u32 1, %s6953_s23   ;;  %s5774_s9 = sshll.u32 %s6957_s24, 7 }
  0x21   : > { %s5439_s30 = sshll.u32 %s256_s11, 7  ;;  %s265_s12 = scalar_lea.hbm %s10268_s0, %s5774_s9 }
  0x22   : > { %s260_s13 = scalar_lea.vmem [#allocation2], %s5439_s30  ;;  %s266_s15 = sshll.u32 %s265_s12, 4  ;;  %s267_s15 = int_to_ptr.hbm [resolvable:$true] %s266_s15 }
  0x23   : > { %s268_s14 = sshll.u32 %s260_s13, 4  ;;  %p7109_p9 = pnand %p5893_p7, %p40_p3  ;;  %s269_s14 = int_to_ptr.vmem [resolvable:$true] %s268_s14 }
  0x24   : > { %s257_s20 = scalar_lea.sflag [#allocation3], %s256_s11  ;;  %s6853_s16 = sshra.s32 %s267_s15, 4  ;;  %s6854_s16 = int_to_ptr.hbm [resolvable:$true] %s6853_s16 }
  0x25   : > { %s6855_s17 = scalar_lea.hbm %s6854_s16, 128  ;;  %p6857_p10 = pneg %p7109_p9 }
  0x26   : > { %p6856_p2 = scmp.ne.s32.totalorder %s6854_s16, %s6855_s17  ;;  %s6860_s7 = scalar_lea.hbm %s10268_s0, 256 }
  0x27   : > { %p6861_p0 = scmp.lt.s32.totalorder %s6854_s16, %s10268_s0  ;;  %p6862_p3 = scmp.lt.s32.totalorder %s6860_s7, %s6855_s17 }
  0x28   : > { %p6858_p12 = pnand %p6857_p10, %p6856_p2 }
  0x29   : > { %p6863_p7 = por %p6862_p3, %p6861_p0 }
  0x2a   : > { %p6859_p13 = pneg %p6858_p12 }
  0x2c   : > { %p6864_p11 = pnand %p6863_p7, %p6859_p13 }
  0x2e   : > { %6867 = shalt.err (!%p6864_p11)
}
  0x2f   : > { %s10343_s11 = smov 4   ;;  %s10344_s13 = smov 64  }
  0x30   : > { %5884 = dma.hbm_to_vmem [thread:$0]  (!%p7109_p9), %s267_s15, 2048, %s269_s14, %s257_s20, %s10344_s13, %s10344_s13, %s10343_s11  }
  0x31   : > { %280 = sbr.rel (%p7052_p8) target bundleno = 4295 (0x10c7), region = 44 }
  0x36   : > { %s7129_s9 = sand.u32 1, %s6949_s22  }
  0x37   : > { %s5443_s16 = sshll.u32 %s7129_s9, 7  ;;  %s283_s17 = scalar_lea.sflag [#allocation3], %s7129_s9 }
  0x38   : > { %s7133_s30 = scalar_lea.vmem [#allocation2], %s5443_s16 }
  0x39   : > { %6928 = dma.done.wait (%p7039_p4), %s283_s17, 2048  }
  0x3a   : > { %6930 = vsyncadd (%p7039_p4), %s283_s17, 4294965248 }
  0x3b   : > { %6932 = dma.done.wait (%p45_p1), [#allocation6], 3120  }
  0x3c   : > { %6934 = vsyncadd (%p45_p1), [#allocation6], 4294964176 }
  0x3d   : > { %6936 = dma.done.wait (%p45_p1), [#allocation9], 3072  }
  0x3e   : > { %6938 = vsyncadd (%p45_p1), [#allocation9], 4294964224  ;;  %v5599_v0 = vld [vmem:[#allocation5 + $0xa8] sm:$0xf]  ;;  %v5813_v1 = vld [vmem:[#allocation5 + $0xb0] sm:$0xf0] }
  0x3f   : > { %v5587_v2 = vld [vmem:[#allocation5 + $0x90] sm:$0xf]  ;;  %v5600_v3 = vor.u32 %v5813_v1, %v5599_v0  ;;  %v5810_v4 = vld [vmem:[#allocation5 + $0x98] sm:$0xf0]  ;;  %v5575_v6 = vld [vmem:[#allocation5 + $0x78] sm:$0xf] }
  0x40   : > { %v5588_v5 = vor.u32 %v5810_v4, %v5587_v2  ;;  %v5807_v7 = vld [vmem:[#allocation5 + $0x80] sm:$0xf0]  ;;  %v5563_v9 = vld [vmem:[#allocation5 + $0x60] sm:$0xf]  ;;  %v5804_v10 = vld [vmem:[#allocation5 + $0x68] sm:$0xf0] }
  0x41   : > { %635 = vmatpush.bf16.msra.mxu0 %v5600_v3  ;;  %5824 = vmatpush.bf16.msra.mxu1 %v5600_v3  ;;  %v5576_v8 = vor.u32 %v5807_v7, %v5575_v6  ;;  %v5564_v11 = vor.u32 %v5804_v10, %v5563_v9  ;;  %v5551_v12 = vld [vmem:[#allocation5 + $0x48] sm:$0xf]  ;;  %v5801_v13 = vld [vmem:[#allocation5 + $0x50] sm:$0xf0]  ;;  %v5539_v15 = vld [vmem:[#allocation5 + $0x30] sm:$0xf] }
  0x42   : > { %5825 = vmatpush.bf16.msra.mxu2 %v5600_v3  ;;  %v5552_v14 = vor.u32 %v5801_v13, %v5551_v12  ;;  %v5798_v16 = vld [vmem:[#allocation5 + $0x38] sm:$0xf0]  ;;  %v5527_v18 = vld [vmem:[#allocation5 + $0x18] sm:$0xf]  ;;  %v5795_v19 = vld [vmem:[#allocation5 + $0x20] sm:$0xf0] }
  0x43   : > { %v5540_v17 = vor.u32 %v5798_v16, %v5539_v15  ;;  %v5528_v20 = vor.u32 %v5795_v19, %v5527_v18  ;;  %v5515_v21 = vld [vmem:[#allocation5] sm:$0xf]  ;;  %v5792_v22 = vld [vmem:[#allocation5 + $0x8] sm:$0xf0]  ;;  %v5607_v23 = vld [vmem:[#allocation5 + $0xb0] sm:$0xf] }
  0x44   : > { %v5814_v24 = vld [vmem:[#allocation5 + $0xb8] sm:$0xf0]  ;;  %v5516_v25 = vor.u32 %v5792_v22, %v5515_v21  ;;  %v7148_v26 = vld [vmem:[%s7133_s30] sm:$0xff]  ;;  %v7151_v28 = vld [vmem:[%s7133_s30 + $0x48] sm:$0xff]  ;;  %s6969_s27 = smov 32   ;;  %s6970_s8 = smov 96  }
  0x45   : > { %636 = vmatpush.bf16.msra.mxu0 %v5588_v5  ;;  %5826 = vmatpush.bf16.msra.mxu1 %v5588_v5  ;;  %v5608_v27 = vor.u32 %v5814_v24, %v5607_v23  ;;  %v5595_v29 = vld [vmem:[#allocation5 + $0x98] sm:$0xf]  ;;  %v5811_v30 = vld [vmem:[#allocation5 + $0xa0] sm:$0xf0]  ;;  %v7154_v31 = vld [vmem:[%s7133_s30 + $0x68] sm:$0xff]  ;;  %s6971_s14 = smov 64  }
  0x46   : > { %5827 = vmatpush.bf16.msra.mxu2 %v5588_v5  ;;  %v5596_v32 = vor.u32 %v5811_v30, %v5595_v29  ;;  %v5812_v33 = vld [vmem:[#allocation5 + $0xac] sm:$0xf]  ;;  %v5583_v34 = vld [vmem:[#allocation5 + $0x80] sm:$0xf]  ;;  %v5601_v36 = vld [vmem:[#allocation5 + $0xb4] sm:$0xf0] }
  0x47   : > { %v5808_v35 = vld [vmem:[#allocation5 + $0x88] sm:$0xf0]  ;;  %v5604_v37 = vor.u32 %v5812_v33, %v5601_v36  ;;  %v5809_v38 = vld [vmem:[#allocation5 + $0x94] sm:$0xf]  ;;  %v5589_v39 = vld [vmem:[#allocation5 + $0x9c] sm:$0xf0] }
  0x48   : > { %v5584_v40 = vor.u32 %v5808_v35, %v5583_v34  ;;  %v5571_v41 = vld [vmem:[#allocation5 + $0x68] sm:$0xf]  ;;  %v5592_v42 = vor.u32 %v5809_v38, %v5589_v39  ;;  %v5805_v43 = vld [vmem:[#allocation5 + $0x70] sm:$0xf0]  ;;  %v5806_v44 = vld [vmem:[#allocation5 + $0x7c] sm:$0xf] }
  0x49   : > { %637 = vmatpush.bf16.msra.mxu0 %v5576_v8  ;;  %5828 = vmatpush.bf16.msra.mxu1 %v5576_v8  ;;  %v5577_v45 = vld [vmem:[#allocation5 + $0x84] sm:$0xf0]  ;;  %v5572_v46 = vor.u32 %v5805_v43, %v5571_v41  ;;  %v5559_v47 = vld [vmem:[#allocation5 + $0x50] sm:$0xf]  ;;  %v5802_v49 = vld [vmem:[#allocation5 + $0x58] sm:$0xf0] }
  0x4a   : > { %5829 = vmatpush.bf16.msra.mxu2 %v5576_v8  ;;  %v5580_v48 = vor.u32 %v5806_v44, %v5577_v45  ;;  %v5803_v50 = vld [vmem:[#allocation5 + $0x64] sm:$0xf]  ;;  %v5565_v51 = vld [vmem:[#allocation5 + $0x6c] sm:$0xf0]  ;;  %v5776_v52 = vld [vmem:[%s7133_s30 + $0x8] sm:$0xff]  ;;  %v5560_v53 = vor.u32 %v5802_v49, %v5559_v47  ;;  %vm912_vm0 = vcmask 261120  }
  0x4b   : > { %v5568_v54 = vor.u32 %v5803_v50, %v5565_v51  ;;  %v7161_v55 = vld [vmem:[%s7133_s30 + $0x50] sm:$0xff]  ;;  %v5547_v56 = vld [vmem:[#allocation5 + $0x38] sm:$0xf]  ;;  %v5799_v57 = vld [vmem:[#allocation5 + $0x40] sm:$0xf0]  ;;  %vm1436_vm1 = vcmask 523264  }
  0x4c   : > { %v7164_v58 = vld [vmem:[%s7133_s30 + $0x70] sm:$0xff]  ;;  %v5548_v59 = vor.u32 %v5799_v57, %v5547_v56  ;;  %v5800_v60 = vld [vmem:[#allocation5 + $0x4c] sm:$0xf]  ;;  %v5553_v61 = vld [vmem:[#allocation5 + $0x54] sm:$0xf0]  ;;  %vm1441_vm2 = vcmask 785408  }
  0x4d   : > { %638 = vmatpush.bf16.msra.mxu0 %v5564_v11  ;;  %5830 = vmatpush.bf16.msra.mxu1 %v5564_v11  ;;  %v5535_v62 = vld [vmem:[#allocation5 + $0x20] sm:$0xf]  ;;  %v5796_v63 = vld [vmem:[#allocation5 + $0x28] sm:$0xf0]  ;;  %v5556_v0 = vor.u32 %v5800_v60, %v5553_v61  ;;  %v5797_v1 = vld [vmem:[#allocation5 + $0x34] sm:$0xf] }
  0x4e   : > { %5831 = vmatpush.bf16.msra.mxu2 %v5564_v11  ;;  %v5541_v2 = vld [vmem:[#allocation5 + $0x3c] sm:$0xf0]  ;;  %v5536_v3 = vor.u32 %v5796_v63, %v5535_v62  ;;  %v5523_v4 = vld [vmem:[#allocation5 + $0x8] sm:$0xf]  ;;  %v5793_v6 = vld [vmem:[#allocation5 + $0x10] sm:$0xf0] }
  0x4f   : > { %v5544_v5 = vor.u32 %v5797_v1, %v5541_v2  ;;  %v5794_v7 = vld [vmem:[#allocation5 + $0x1c] sm:$0xf]  ;;  %v5529_v8 = vld [vmem:[#allocation5 + $0x24] sm:$0xf0]  ;;  %v5524_v9 = vor.u32 %v5793_v6, %v5523_v4  ;;  %v5791_v11 = vld [vmem:[#allocation5 + $0x4] sm:$0xf] }
  0x50   : > { %v5532_v10 = vor.u32 %v5794_v7, %v5529_v8  ;;  %v5517_v12 = vld [vmem:[#allocation5 + $0xc] sm:$0xf0]  ;;  %v7170_v15 = vld [vmem:[%s7133_s30 + $0x58] sm:$0xff]  ;;  %v7179_v18 = vld [vmem:[%s7133_s30 + $0x60] sm:$0xff]  ;;  %s5448_s15 = sshll.u32 %s7129_s9, 8  ;;  %s5823_s10 = sshll.u32 %s7030_s25, 8 }
  0x51   : > { %639 = vmatpush.bf16.msra.mxu0 %v5552_v14  ;;  %5832 = vmatpush.bf16.msra.mxu1 %v5552_v14  ;;  %v5520_v13 = vor.u32 %v5791_v11, %v5517_v12  ;;  %v7173_v16 = vld [vmem:[%s7133_s30 + $0x78] sm:$0xff]  ;;  %v5779_v19 = vld [vmem:[%s7133_s30 + $0x20] sm:$0xff]  ;;  %v5781_v21 = vld [vmem:[%s7133_s30 + $0x30] sm:$0xff]  ;;  %s10097_s7 = scalar_lea.vmem [#allocation11], %s5448_s15  ;;  %s5317_s13 = scalar_lea.hbm %s10274_s6, %s5823_s10 }
  0x52   : > { %5833 = vmatpush.bf16.msra.mxu2 %v5552_v14  ;;  %v5777_v14 = vld [vmem:[%s7133_s30 + $0x10] sm:$0xff]  ;;  %v7189_v24 = vld [vmem:[#allocation7] sm:$0x7]  ;;  %v5782_v33 = vld [vmem:[%s7133_s30 + $0x38] sm:$0xff]  ;;  %s5318_s16 = sshll.u32 %s10097_s7, 4  ;;  %s5320_s17 = sshll.u32 %s5317_s13, 4  ;;  %s5319_s16 = int_to_ptr.vmem [resolvable:$true] %s5318_s16  ;;  %s5321_s17 = int_to_ptr.hbm [resolvable:$true] %s5320_s17 }
  0x53   : > { %v7265_v7 = vperm.slane %v7189_v24, 1  ;;  %s6903_s15 = scalar_lea.hbm %s10274_s6, 512 }
  0x55   : > { %640 = vmatpush.bf16.msra.mxu0 %v5540_v17  ;;  %5834 = vmatpush.bf16.msra.mxu1 %v5540_v17 }
  0x56   : > { %5835 = vmatpush.bf16.msra.mxu2 %v5540_v17  ;;  %v5778_v17 = vld [vmem:[%s7133_s30 + $0x18] sm:$0xff] }
  0x59   : > { %641 = vmatpush.bf16.msra.mxu0 %v5528_v20  ;;  %5836 = vmatpush.bf16.msra.mxu1 %v5528_v20 }
  0x5a   : > { %5837 = vmatpush.bf16.msra.mxu2 %v5528_v20  ;;  %v5780_v20 = vld [vmem:[%s7133_s30 + $0x28] sm:$0xff] }
  0x5d   : > { %642 = vmatpush.bf16.msra.mxu0 %v5516_v25  ;;  %5838 = vmatpush.bf16.msra.mxu1 %v5516_v25 }
  0x5e   : > { %5839 = vmatpush.bf16.msra.mxu2 %v5516_v25  ;;  %v7192_v25 = vperm.slane %v7189_v24, 0 }
  0x60   : > { %643 = vmatmul.bf16.vlgmr.msra.gmra.mxu0 %v7148_v26  ;;  %688 = vmatmul.bf16.vlgmr.msra.gmra.mxu1 %v7151_v28 }
  0x61   : > { %708 = vmatmul.bf16.vlgmr.msra.gmra.mxu2 %v7154_v31  ;;  %724 = vmatpush.bf16.msrb.mxu1 %v5604_v37 }
  0x62   : > { %813 = vmatpush.bf16.msrb.mxu2 %v5608_v27 }
  0x65   : > { %725 = vmatpush.bf16.msrb.mxu1 %v5592_v42 }
  0x66   : > { %814 = vmatpush.bf16.msrb.mxu2 %v5596_v32 }
  0x69   : > { %726 = vmatpush.bf16.msrb.mxu1 %v5580_v48 }
  0x6a   : > { %815 = vmatpush.bf16.msrb.mxu2 %v5584_v40 }
  0x6d   : > { %727 = vmatpush.bf16.msrb.mxu1 %v5568_v54 }
  0x6e   : > { %816 = vmatpush.bf16.msrb.mxu2 %v5572_v46 }
  0x70   : > { %648 = vmatmul.bf16.gmra.mxu0 %v5776_v52  ;;  %693 = vmatmul.bf16.gmra.mxu1 %v7161_v55 }
  0x71   : > { %713 = vmatmul.bf16.gmra.mxu2 %v7164_v58  ;;  %728 = vmatpush.bf16.msrb.mxu1 %v5556_v0  ;;  %v7256_v0 = vperm.slane %v7189_v24, 2 }
  0x72   : > { %817 = vmatpush.bf16.msrb.mxu2 %v5560_v53 }
  0x73   : > { %10359 = vst [vmem:[#allocation30_spill] sm:$0xff] %v7256_v0 }
  0x75   : > { %729 = vmatpush.bf16.msrb.mxu1 %v5544_v5 }
  0x76   : > { %818 = vmatpush.bf16.msrb.mxu2 %v5548_v59 }
  0x79   : > { %730 = vmatpush.bf16.msrb.mxu1 %v5532_v10 }
  0x7a   : > { %819 = vmatpush.bf16.msrb.mxu2 %v5536_v3 }
  0x7d   : > { %731 = vmatpush.bf16.msrb.mxu1 %v5520_v13 }
  0x7e   : > { %820 = vmatpush.bf16.msrb.mxu2 %v5524_v9 }
  0x80   : > { %653 = vmatmul.bf16.gmra.mxu0 %v5777_v14  ;;  %698 = vmatmul.bf16.gmra.mxu1 %v7170_v15 }
  0x81   : > { %718 = vmatmul.bf16.gmra.mxu2 %v7173_v16 }
  0x90   : > { %658 = vmatmul.bf16.gmra.mxu0 %v5778_v17  ;;  %703 = vmatmul.bf16.gmra.mxu1 %v7179_v18 }
  0x91   : > { %821 = vmatmul.bf16.vlgmr.msrb.gmra.mxu2 %v7148_v26 }
  0xa0   : > { %732 = vmatmul.bf16.vlgmr.msrb.gmra.mxu1 %v7148_v26  ;;  %663 = vmatmul.bf16.gmra.mxu0 %v5779_v19 }
  0xa1   : > { %826 = vmatmul.bf16.gmra.mxu2 %v5776_v52 }
  0xb0   : > { %737 = vmatmul.bf16.gmra.mxu1 %v5776_v52  ;;  %668 = vmatmul.bf16.gmra.mxu0 %v5780_v20 }
  0xb1   : > { %831 = vmatmul.bf16.gmra.mxu2 %v5777_v14 }
  0xc0   : > { %742 = vmatmul.bf16.gmra.mxu1 %v5777_v14  ;;  %673 = vmatmul.bf16.gmra.mxu0 %v5781_v21 }
  0xc1   : > { %836 = vmatmul.bf16.gmra.mxu2 %v5778_v17 }
  0xd0   : > { %747 = vmatmul.bf16.gmra.mxu1 %v5778_v17  ;;  %678 = vmatmul.bf16.gmra.mxu0 %v5782_v33 }
  0xd1   : > { %841 = vmatmul.bf16.gmra.mxu2 %v5779_v19 }
  0xdd   : > { %v644_v22 = vpop.f32.mrf.mxu0  ;;  %v7187_v23 = vpop.f32.mrf.mxu1 }
  0xde   : > { %v645_v30 = vadd.f32 %v644_v22, %v7192_v25 }
  0xe0   : > { %752 = vmatmul.bf16.gmra.mxu1 %v5779_v19 }
  0xe1   : > { %846 = vmatmul.bf16.gmra.mxu2 %v5780_v20 }
  0xe4   : > { %v7194_v26 = vpop.f32.mrf.mxu2 }
  0xe5   : > { %10345 = vst [vmem:[#allocation16_spill] sm:$0xff] %v7194_v26  ;;  %v646_v27 = vpop.f32.mrf.mxu0  ;;  %v7196_v29 = vpop.f32.mrf.mxu1 }
  0xe6   : > { %v647_v32 = vadd.f32 %v646_v27, %v7192_v25 }
  0xe8   : > { %v7201_v34 = vpack.c.bf16 %v647_v32, %v645_v30 }
  0xea   : > { %1268 = vrot.lane.b32.xlu1 %v7201_v34, %s6969_s27  ;;  %1022 = vrot.lane.b32.xlu2 %v7201_v34, %s6970_s8 }
  0xec   : > { %v7207_v35 = vpop.f32.mrf.mxu2 }
  0xed   : > { %10346 = vst [vmem:[#allocation17_spill] sm:$0xff] %v7207_v35  ;;  %v649_v36 = vpop.f32.mrf.mxu0  ;;  %v7209_v37 = vpop.f32.mrf.mxu1 }
  0xee   : > { %10347 = vst [vmem:[#allocation18_spill] sm:$0xff] %v7209_v37  ;;  %v650_v41 = vadd.f32 %v649_v36, %v7192_v25 }
  0xf0   : > { %757 = vmatmul.bf16.gmra.mxu1 %v5780_v20 }
  0xf1   : > { %851 = vmatmul.bf16.gmra.mxu2 %v5781_v21 }
  0xf2   : > { %1147 = vrot.lane.b32.xlu2 %v7201_v34, %s6971_s14 }
  0xf4   : > { %v7213_v38 = vpop.f32.mrf.mxu2 }
  0xf5   : > { %10348 = vst [vmem:[#allocation19_spill] sm:$0xff] %v7213_v38  ;;  %v651_v39 = vpop.f32.mrf.mxu0  ;;  %v7215_v40 = vpop.f32.mrf.mxu1 }
  0xf6   : > { %10349 = vst [vmem:[#allocation20_spill] sm:$0xff] %v7215_v40  ;;  %v652_v42 = vadd.f32 %v651_v39, %v7192_v25 }
  0xf8   : > { %v7219_v43 = vpack.c.bf16 %v652_v42, %v650_v41 }
  0xfa   : > { %1024 = vrot.lane.b32.xlu0 %v7219_v43, %s6970_s8 }
  0xfc   : > { %v7223_v44 = vpop.f32.mrf.mxu2 }
  0xfd   : > { %10350 = vst [vmem:[#allocation21_spill] sm:$0xff] %v7223_v44  ;;  %v654_v45 = vpop.f32.mrf.mxu0  ;;  %v7225_v46 = vpop.f32.mrf.mxu1 }
  0xfe   : > { %10351 = vst [vmem:[#allocation22_spill] sm:$0xff] %v7225_v46  ;;  %v655_v50 = vadd.f32 %v654_v45, %v7192_v25 }
 0x100   : > { %762 = vmatmul.bf16.gmra.mxu1 %v5781_v21 }
 0x101   : > { %856 = vmatmul.bf16.gmra.mxu2 %v5782_v33 }
 0x102   : > { %1149 = vrot.lane.b32.xlu0 %v7219_v43, %s6971_s14 }
 0x104   : > { %v7229_v47 = vpop.f32.mrf.mxu2 }
 0x105   : > { %10352 = vst [vmem:[#allocation23_spill] sm:$0xff] %v7229_v47  ;;  %v656_v48 = vpop.f32.mrf.mxu0  ;;  %v7231_v49 = vpop.f32.mrf.mxu1 }
 0x106   : > { %10353 = vst [vmem:[#allocation24_spill] sm:$0xff] %v7231_v49  ;;  %v657_v51 = vadd.f32 %v656_v48, %v7192_v25 }
 0x108   : > { %v7235_v52 = vpack.c.bf16 %v657_v51, %v655_v50 }
 0x10a   : > { %10354 = vst [vmem:[#allocation25_spill] sm:$0xff] %v7235_v52  ;;  %1270 = vrot.lane.b32.xlu0 %v7219_v43, %s6969_s27  ;;  %1556 = vrot.lane.b32.xlu1 %v7235_v52, %s6970_s8 }
 0x10b   : > { %1792 = vrot.lane.b32.xlu2 %v7235_v52, %s6969_s27 }
 0x10c   : > { %v7243_v53 = vpop.f32.mrf.mxu2 }
 0x10d   : > { %10355 = vst [vmem:[#allocation26_spill] sm:$0xff] %v7243_v53  ;;  %v659_v54 = vpop.f32.mrf.mxu0  ;;  %v7245_v56 = vpop.f32.mrf.mxu1 }
 0x10e   : > { %10356 = vst [vmem:[#allocation27_spill] sm:$0xff] %v7245_v56  ;;  %v660_v61 = vadd.f32 %v659_v54, %v7192_v25 }
 0x110   : > { %767 = vmatmul.bf16.gmra.mxu1 %v5782_v33 }
 0x112   : > { %1676 = vrot.lane.b32.xlu1 %v7235_v52, %s6971_s14 }
 0x114   : > { %v822_v57 = vpop.f32.mrf.mxu2 }
 0x115   : > { %v661_v59 = vpop.f32.mrf.mxu0  ;;  %v7249_v60 = vpop.f32.mrf.mxu1  ;;  %v823_v2 = vadd.f32 %v822_v57, %v7256_v0 }
 0x116   : > { %10357 = vst [vmem:[#allocation28_spill] sm:$0xff] %v7249_v60  ;;  %v662_v62 = vadd.f32 %v661_v59, %v7192_v25 }
 0x118   : > { %v7253_v63 = vpack.c.bf16 %v662_v62, %v660_v61 }
 0x11a   : > { %10358 = vst [vmem:[#allocation29_spill] sm:$0xff] %v7253_v63  ;;  %1678 = vrot.lane.b32.xlu0 %v7253_v63, %s6971_s14  ;;  %1558 = vrot.lane.b32.xlu2 %v7253_v63, %s6970_s8 }
 0x11c   : > { %v824_v1 = vpop.f32.mrf.mxu2 }
 0x11d   : > { %v825_v3 = vadd.f32 %v824_v1, %v7256_v0  ;;  %v733_v4 = vpop.f32.mrf.mxu1  ;;  %v664_v6 = vpop.f32.mrf.mxu0 }
 0x11e   : > { %v734_v8 = vadd.f32 %v733_v4, %v7265_v7  ;;  %v665_v14 = vadd.f32 %v664_v6, %v7192_v25 }
 0x11f   : > { %v906_v5 = vpack.c.bf16 %v825_v3, %v823_v2 }
 0x121   : > { %1103 = vrot.lane.b32.xlu1 %v906_v5, %s6970_s8 }
 0x122   : > { %1794 = vrot.lane.b32.xlu0 %v7253_v63, %s6969_s27  ;;  %1224 = vrot.lane.b32.xlu2 %v906_v5, %s6971_s14  ;;  %v911_v63 = vld [vmem:[#allocation8 + $0x18] sm:$0xff] }
 0x124   : > { %v827_v9 = vpop.f32.mrf.mxu2 }
 0x125   : > { %v735_v10 = vpop.f32.mrf.mxu1  ;;  %v666_v13 = vpop.f32.mrf.mxu0  ;;  %v828_v20 = vadd.f32 %v827_v9, %v7256_v0 }
 0x126   : > { %v736_v11 = vadd.f32 %v735_v10, %v7265_v7  ;;  %v667_v17 = vadd.f32 %v666_v13, %v7192_v25 }
 0x128   : > { %v904_v12 = vpack.c.bf16 %v736_v11, %v734_v8  ;;  %v7279_v27 = vpack.c.bf16 %v667_v17, %v665_v14 }
 0x129   : > { %1345 = vrot.lane.b32.xlu1 %v906_v5, %s6969_s27 }
 0x12a   : > { %1272 = vrot.lane.b32.xlu2 %v904_v12, %s6969_s27  ;;  %10360 = vst [vmem:[#allocation31_spill] sm:$0xff] %v7279_v27  ;;  %v920_v51 = vsel %vm912_vm0, %v904_v12, 0 }
 0x12c   : > { %v829_v19 = vpop.f32.mrf.mxu2 }
 0x12d   : > { %v830_v21 = vadd.f32 %v829_v19, %v7256_v0  ;;  %v738_v22 = vpop.f32.mrf.mxu1  ;;  %v669_v36 = vpop.f32.mrf.mxu0 }
 0x12e   : > { %v739_v30 = vadd.f32 %v738_v22, %v7265_v7  ;;  %v670_v54 = vadd.f32 %v669_v36, %v7192_v25 }
 0x12f   : > { %v907_v24 = vpack.c.bf16 %v830_v21, %v828_v20  ;;  %v5783_v20 = vld [vmem:[%s7133_s30 + $0x40] sm:$0xff]  ;;  %s5306_s30 = scalar_lea.sflag [#allocation4], %s7129_s9 }
 0x130   : > { %772 = vmatmul.bf16.gmra.mxu1 %v5783_v20  ;;  %861 = vmatmul.bf16.gmra.mxu2 %v5783_v20 }
 0x131   : > { %1105 = vrot.lane.b32.xlu0 %v907_v24, %s6970_s8  ;;  %1028 = vrot.lane.b32.xlu1 %v904_v12, %s6970_s8 }
 0x132   : > { %2078 = vrot.lane.b32.xlu2 %v7279_v27, %s6970_s8  ;;  %683 = vmatmul.bf16.gmra.mxu0 %v5783_v20 }
 0x134   : > { %v832_v32 = vpop.f32.mrf.mxu2 }
 0x135   : > { %v740_v33 = vpop.f32.mrf.mxu1  ;;  %v671_v50 = vpop.f32.mrf.mxu0  ;;  %v833_v1 = vadd.f32 %v832_v32, %v7256_v0 }
 0x136   : > { %v741_v39 = vadd.f32 %v740_v33, %v7265_v7  ;;  %v672_v57 = vadd.f32 %v671_v50, %v7192_v25 }
 0x138   : > { %v905_v41 = vpack.c.bf16 %v741_v39, %v739_v30  ;;  %v7299_v62 = vpack.c.bf16 %v672_v57, %v670_v54 }
 0x139   : > { %1226 = vrot.lane.b32.xlu0 %v907_v24, %s6971_s14  ;;  %1151 = vrot.lane.b32.xlu1 %v904_v12, %s6971_s14 }
 0x13a   : > { %2198 = vrot.lane.b32.xlu2 %v7279_v27, %s6971_s14  ;;  %v923_v42 = vsel %vm912_vm0, %v905_v41, 0  ;;  %10361 = vst [vmem:[#allocation32_spill] sm:$0xff] %v7299_v62 }
 0x13b   : > { %931 = vmatpush.bf16.xpose.msra.mxu3 %v923_v42 }
 0x13c   : > { %v834_v45 = vpop.f32.mrf.mxu2 }
 0x13d   : > { %v743_v48 = vpop.f32.mrf.mxu1  ;;  %v835_v2 = vadd.f32 %v834_v45, %v7256_v0  ;;  %v674_v39 = vpop.f32.mrf.mxu0 }
 0x13e   : > { %v744_v10 = vadd.f32 %v743_v48, %v7265_v7 }
 0x13f   : > { %v1450_v8 = vpack.c.bf16 %v835_v2, %v833_v1 }
 0x140   : > { %777 = vmatmul.bf16.gmra.mxu1 %v7151_v28  ;;  %866 = vmatmul.bf16.gmra.mxu2 %v7151_v28 }
 0x141   : > { %1347 = vrot.lane.b32.xlu0 %v907_v24, %s6969_s27  ;;  %2314 = vrot.lane.b32.xlu1 %v7279_v27, %s6969_s27 }
 0x142   : > { %1030 = vrot.lane.b32.xlu2 %v905_v41, %s6970_s8 }
 0x143   : > { %932 = vmatpush.bf16.xpose.msra.mxu3 %v920_v51 }
 0x144   : > { %v837_v59 = vpop.f32.mrf.mxu2  ;;  %v7321_v14 = vpop.permute.xlu2 %1022 }
 0x145   : > { %v745_v61 = vpop.f32.mrf.mxu1  ;;  %v838_v3 = vadd.f32 %v837_v59, %v7256_v0  ;;  %v676_v54 = vpop.f32.mrf.mxu0 }
 0x146   : > { %v746_v11 = vadd.f32 %v745_v61, %v7265_v7 }
 0x148   : > { %v7317_v13 = vpack.c.bf16 %v746_v11, %v744_v10 }
 0x149   : > { %2080 = vrot.lane.b32.xlu0 %v7299_v62, %s6970_s8  ;;  %1274 = vrot.lane.b32.xlu1 %v905_v41, %s6969_s27 }
 0x14a   : > { %1153 = vrot.lane.b32.xlu2 %v905_v41, %s6971_s14  ;;  %5609 = vmatmul.msk.bf16.vlgmr.msra.gmra.mxu3 %vm912_vm0, %v7201_v34  ;;  %10362 = vst [vmem:[#allocation33_spill] sm:$0xff] %v7317_v13 }
 0x14b   : > { %994 = vmatpush.bf16.msrb.mxu3 %v907_v24 }
 0x14c   : > { %v839_v4 = vpop.f32.mrf.mxu2  ;;  %v7341_v32 = vpop.permute.xlu2 %1147 }
 0x14d   : > { %v840_v6 = vadd.f32 %v839_v4, %v7256_v0  ;;  %v679_v4 = vpop.f32.mrf.mxu0 }
 0x14f   : > { %995 = vmatpush.bf16.msrb.mxu3 %v906_v5  ;;  %v748_v5 = vpop.f32.mrf.mxu1  ;;  %v1451_v9 = vpack.c.bf16 %v840_v6, %v838_v3 }
 0x150   : > { %v749_v17 = vadd.f32 %v748_v5, %v7265_v7  ;;  %782 = vmatmul.bf16.gmra.mxu1 %v7161_v55  ;;  %871 = vmatmul.bf16.gmra.mxu2 %v7161_v55 }
 0x151   : > { %1533 = vmatpush.bf16.msrb.mxu0 %v1451_v9  ;;  %2200 = vrot.lane.b32.xlu0 %v7299_v62, %s6971_s14 }
 0x152   : > { %1753 = vrot.lane.b32.xlu1 %v1450_v8, %s6971_s14  ;;  %1637 = vrot.lane.b32.xlu2 %v1450_v8, %s6970_s8 }
 0x154   : > { %v842_v12 = vpop.f32.mrf.mxu2 }
 0x155   : > { %1534 = vmatpush.bf16.msrb.mxu0 %v1450_v8  ;;  %v843_v30 = vadd.f32 %v842_v12, %v7256_v0  ;;  %v681_v20 = vpop.f32.mrf.mxu0 }
 0x157   : > { %v750_v34 = vpop.f32.mrf.mxu1 }
 0x158   : > { %v751_v19 = vadd.f32 %v750_v34, %v7265_v7 }
 0x159   : > { %2316 = vrot.lane.b32.xlu0 %v7299_v62, %s6969_s27 }
 0x15a   : > { %1796 = vrot.lane.b32.xlu1 %v7317_v13, %s6969_s27  ;;  %1869 = vrot.lane.b32.xlu2 %v1450_v8, %s6969_s27  ;;  %v7331_v22 = vpack.c.bf16 %v751_v19, %v749_v17 }
 0x15b   : > { %5610 = vmatmul.msk.bf16.gmra.mxu3 %vm912_vm0, %v7219_v43 }
 0x15c   : > { %10363 = vst [vmem:[#allocation34_spill] sm:$0xff] %v7331_v22  ;;  %v844_v24 = vpop.f32.mrf.mxu2  ;;  %v7367_v1 = vpop.permute.xlu1 %1268 }
 0x15d   : > { %v845_v43 = vadd.f32 %v844_v24, %v7256_v0  ;;  %10366 = vst [vmem:[#allocation37_spill] sm:$0xff] %v7367_v1  ;;  %v675_v24 = vadd.f32 %v674_v39, %v7192_v25 }
 0x15f   : > { %v753_v21 = vpop.f32.mrf.mxu1  ;;  %v7343_v36 = vpack.c.bf16 %v845_v43, %v843_v30  ;;  %v677_v30 = vadd.f32 %v676_v54, %v7192_v25  ;;  %v680_v43 = vadd.f32 %v679_v4, %v7192_v25 }
 0x160   : > { %v754_v41 = vadd.f32 %v753_v21, %v7265_v7  ;;  %787 = vmatmul.bf16.gmra.mxu1 %v7170_v15  ;;  %876 = vmatmul.bf16.gmra.mxu2 %v7170_v15 }
 0x161   : > { %1562 = vrot.lane.b32.xlu0 %v7317_v13, %s6970_s8  ;;  %10364 = vst [vmem:[#allocation35_spill] sm:$0xff] %v7343_v36 }
 0x162   : > { %1680 = vrot.lane.b32.xlu2 %v7317_v13, %s6971_s14  ;;  %1682 = vrot.lane.b32.xlu1 %v7331_v22, %s6971_s14 }
 0x164   : > { %v847_v51 = vpop.f32.mrf.mxu2 }
 0x165   : > { %v7352_v45 = vpop.permute.xlu2 %1792  ;;  %v848_v10 = vadd.f32 %v847_v51, %v7256_v0 }
 0x167   : > { %v755_v33 = vpop.f32.mrf.mxu1 }
 0x168   : > { %v756_v42 = vadd.f32 %v755_v33, %v7265_v7  ;;  %v682_v33 = vadd.f32 %v681_v20, %v7192_v25 }
 0x169   : > { %1639 = vrot.lane.b32.xlu0 %v1451_v9, %s6970_s8 }
 0x16a   : > { %2159 = vrot.lane.b32.xlu1 %v7343_v36, %s6970_s8  ;;  %1798 = vrot.lane.b32.xlu2 %v7331_v22, %s6969_s27  ;;  %v7356_v50 = vpack.c.bf16 %v756_v42, %v754_v41  ;;  %v7418_v51 = vpack.c.bf16 %v682_v33, %v680_v43 }
 0x16c   : > { %10365 = vst [vmem:[#allocation36_spill] sm:$0xff] %v7356_v50  ;;  %v7365_v59 = vpop.permute.xlu0 %1024  ;;  %v849_v3 = vpop.f32.mrf.mxu2 }
 0x16d   : > { %v850_v34 = vadd.f32 %v849_v3, %v7256_v0  ;;  %10372 = vst [vmem:[#allocation43_spill] sm:$0xff] %v7418_v51 }
 0x16f   : > { %v758_v48 = vpop.f32.mrf.mxu1  ;;  %v7394_v12 = vpack.c.bf16 %v850_v34, %v848_v10 }
 0x170   : > { %v759_v28 = vadd.f32 %v758_v48, %v7265_v7  ;;  %v7416_v48 = vpack.c.bf16 %v677_v30, %v675_v24  ;;  %792 = vmatmul.bf16.gmra.mxu1 %v7179_v18  ;;  %881 = vmatmul.bf16.gmra.mxu2 %v7179_v18 }
 0x171   : > { %1755 = vrot.lane.b32.xlu0 %v1451_v9, %s6971_s14  ;;  %10368 = vst [vmem:[#allocation39_spill] sm:$0xff] %v7394_v12 }
 0x172   : > { %2084 = vrot.lane.b32.xlu1 %v7356_v50, %s6970_s8  ;;  %2275 = vrot.lane.b32.xlu2 %v7343_v36, %s6971_s14  ;;  %10371 = vst [vmem:[#allocation42_spill] sm:$0xff] %v7416_v48 }
 0x174   : > { %v7363_v57 = vpop.permute.xlu2 %1558  ;;  %v852_v55 = vpop.f32.mrf.mxu2 }
 0x177   : > { %v760_v61 = vpop.f32.mrf.mxu1 }
 0x178   : > { %v761_v2 = vadd.f32 %v760_v61, %v7265_v7 }
 0x179   : > { %1871 = vrot.lane.b32.xlu0 %v1451_v9, %s6969_s27  ;;  %v7382_v9 = vpop.permute.xlu0 %1149 }
 0x17a   : > { %2202 = vrot.lane.b32.xlu1 %v7356_v50, %s6971_s14  ;;  %2318 = vrot.lane.b32.xlu2 %v7356_v50, %s6969_s27  ;;  %v7380_v8 = vpack.c.bf16 %v761_v2, %v759_v28  ;;  %v853_v28 = vadd.f32 %v852_v55, %v7256_v0 }
 0x17c   : > { %v7376_v6 = vpop.permute.xlu2 %1224  ;;  %10367 = vst [vmem:[#allocation38_spill] sm:$0xff] %v7380_v8  ;;  %v7385_v11 = vpop.permute.xlu1 %1556 }
 0x17d   : > { %v854_v54 = vpop.f32.mrf.mxu2 }
 0x17e   : > { %v855_v2 = vadd.f32 %v854_v54, %v7256_v0 }
 0x17f   : > { %v763_v5 = vpop.f32.mrf.mxu1 }
 0x180   : > { %v7434_v4 = vpack.c.bf16 %v855_v2, %v853_v28  ;;  %v764_v34 = vadd.f32 %v763_v5, %v7265_v7  ;;  %797 = vmatmul.bf16.gmra.mxu1 %v7154_v31  ;;  %886 = vmatmul.bf16.gmra.mxu2 %v7154_v31 }
 0x181   : > { %1564 = vrot.lane.b32.xlu0 %v7331_v22, %s6970_s8  ;;  %v7398_v21 = vpop.permute.xlu0 %1270 }
 0x182   : > { %2391 = vrot.lane.b32.xlu1 %v7343_v36, %s6969_s27  ;;  %2086 = vrot.lane.b32.xlu2 %v7380_v8, %s6970_s8  ;;  %10369 = vst [vmem:[#allocation40_spill] sm:$0xff] %v7398_v21 }
 0x184   : > { %v7396_v17 = vpop.permute.xlu2 %1272  ;;  %v7410_v41 = vpop.permute.xlu1 %1676 }
 0x185   : > { %10370 = vst [vmem:[#allocation41_spill] sm:$0xff] %v7410_v41  ;;  %v857_v5 = vpop.f32.mrf.mxu2 }
 0x187   : > { %v765_v19 = vpop.f32.mrf.mxu1 }
 0x188   : > { %v766_v55 = vadd.f32 %v765_v19, %v7265_v7 }
 0x189   : > { %2161 = vrot.lane.b32.xlu0 %v7394_v12, %s6970_s8 }
 0x18a   : > { %2320 = vrot.lane.b32.xlu1 %v7380_v8, %s6969_s27  ;;  %2204 = vrot.lane.b32.xlu2 %v7380_v8, %s6971_s14  ;;  %v7452_v19 = vpack.c.bf16 %v766_v55, %v764_v34  ;;  %v858_v34 = vadd.f32 %v857_v5, %v7256_v0 }
 0x18c   : > { %v7412_v42 = vpop.permute.xlu2 %2078  ;;  %v7420_v61 = vpop.permute.xlu0 %1678  ;;  %10375 = vst [vmem:[#allocation46_spill] sm:$0xff] %v7452_v19 }
 0x18d   : > { %10373 = vst [vmem:[#allocation44_spill] sm:$0xff] %v7420_v61 }
 0x18f   : > { %v768_v39 = vpop.f32.mrf.mxu1 }
 0x190   : > { %v769_v20 = vadd.f32 %v768_v39, %v7265_v7  ;;  %802 = vmatmul.bf16.gmra.mxu1 %v7164_v58  ;;  %891 = vmatmul.bf16.gmra.mxu2 %v7164_v58 }
 0x191   : > { %2277 = vrot.lane.b32.xlu0 %v7394_v12, %s6971_s14 }
 0x192   : > { %2600 = vrot.lane.b32.xlu1 %v7416_v48, %s6970_s8  ;;  %2602 = vrot.lane.b32.xlu2 %v7418_v51, %s6970_s8 }
 0x193   : > { %v7430_v15 = vpop.permute.xlu1 %1103 }
 0x194   : > { %v7432_v3 = vpop.permute.xlu2 %2198  ;;  %v7446_v30 = vpop.permute.xlu0 %1794 }
 0x195   : > { %10374 = vst [vmem:[#allocation45_spill] sm:$0xff] %v7432_v3 }
 0x197   : > { %v770_v10 = vpop.f32.mrf.mxu1 }
 0x198   : > { %v771_v24 = vadd.f32 %v770_v10, %v7265_v7  ;;  %v859_v10 = vpop.f32.mrf.mxu2 }
 0x199   : > { %2393 = vrot.lane.b32.xlu0 %v7394_v12, %s6969_s27  ;;  %v860_v55 = vadd.f32 %v859_v10, %v7256_v0 }
 0x19a   : > { %2720 = vrot.lane.b32.xlu1 %v7416_v48, %s6971_s14  ;;  %2681 = vrot.lane.b32.xlu2 %v7434_v4, %s6970_s8  ;;  %v7455_v54 = vpack.c.bf16 %v771_v24, %v769_v20 }
 0x19b   : > { %v7448_v43 = vpop.permute.xlu1 %1345  ;;  %v7476_v24 = vpack.c.bf16 %v860_v55, %v858_v34 }
 0x19c   : > { %v1031_v33 = vpop.permute.xlu2 %1030  ;;  %10376 = vst [vmem:[#allocation47_spill] sm:$0xff] %v7455_v54 }
 0x19d   : > { %v1042_v39 = vsel %vm912_vm0, %v1031_v33, 0 }
 0x19e   : > { %1050 = vmatpush.bf16.xpose.msra.mxu3 %v1042_v39 }
 0x1a0   : > { %807 = vmatmul.bf16.gmra.mxu1 %v7173_v16  ;;  %896 = vmatmul.bf16.gmra.mxu2 %v7173_v16 }
 0x1a1   : > { %2722 = vrot.lane.b32.xlu0 %v7418_v51, %s6971_s14 }
 0x1a2   : > { %2726 = vrot.lane.b32.xlu1 %v7455_v54, %s6971_s14  ;;  %2724 = vrot.lane.b32.xlu2 %v7452_v19, %s6971_s14 }
 0x1a3   : > { %v7463_v28 = vpop.permute.xlu0 %1105  ;;  %v1029_v2 = vpop.permute.xlu1 %1028 }
 0x1a4   : > { %v1039_v18 = vsel %vm912_vm0, %v1029_v2, 0  ;;  %v7496_v31 = vpop.permute.xlu2 %1153 }
 0x1a6   : > { %1051 = vmatpush.bf16.xpose.msra.mxu3 %v1039_v18 }
 0x1a9   : > { %2606 = vrot.lane.b32.xlu0 %v7452_v19, %s6970_s8 }
 0x1aa   : > { %2797 = vrot.lane.b32.xlu1 %v7434_v4, %s6971_s14  ;;  %2836 = vrot.lane.b32.xlu2 %v7416_v48, %s6969_s27 }
 0x1ab   : > { %v7474_v20 = vpop.permute.xlu0 %1226  ;;  %v7488_v33 = vpop.permute.xlu1 %1151 }
 0x1ac   : > { %v1638_v10 = vpop.permute.xlu2 %1637 }
 0x1ad   : > { %v7518_v16 = vpop.f32.mrf.mxu1 }
 0x1b1   : > { %2683 = vrot.lane.b32.xlu0 %v7476_v24, %s6970_s8 }
 0x1b2   : > { %2840 = vrot.lane.b32.xlu1 %v7452_v19, %s6969_s27  ;;  %2842 = vrot.lane.b32.xlu2 %v7455_v54, %s6969_s27 }
 0x1b3   : > { %v7486_v5 = vpop.permute.xlu0 %1347  ;;  %v7498_v2 = vpop.permute.xlu1 %2314 }
 0x1b4   : > { %v1870_v58 = vpop.permute.xlu2 %1869  ;;  %v7753_v49 = vpop.f32.mrf.mxu2 }
 0x1b9   : > { %2608 = vrot.lane.b32.xlu0 %v7455_v54, %s6970_s8 }
 0x1bb   : > { %v7492_v39 = vpop.permute.xlu0 %2080  ;;  %v7506_v34 = vpop.permute.xlu1 %1274 }
 0x1bc   : > { %v7512_v19 = vpop.permute.xlu2 %1680 }
 0x1bd   : > { %10378 = vst [vmem:[#allocation49_spill] sm:$0xff] %v7512_v19 }
 0x1c1   : > { %2799 = vrot.lane.b32.xlu0 %v7476_v24, %s6971_s14 }
 0x1c3   : > { %v7502_v18 = vpop.permute.xlu0 %2200 }
 0x1c4   : > { %10377 = vst [vmem:[#allocation48_spill] sm:$0xff] %v7502_v18  ;;  %v1754_v48 = vpop.permute.xlu1 %1753  ;;  %v910_v18 = vld [vmem:[#allocation8 + $0x10] sm:$0xff]  ;;  %v1799_v8 = vpop.permute.xlu2 %1798 }
 0x1c9   : > { %2838 = vrot.lane.b32.xlu0 %v7418_v51, %s6969_s27 }
 0x1cb   : > { %v7508_v55 = vpop.permute.xlu0 %2316 }
 0x1cc   : > { %v1797_v51 = vpop.permute.xlu1 %1796 }
 0x1cd   : > { %v934_v36 = vpop.f32.mrf.mxu3 }
 0x1d3   : > { %v1563_v12 = vpop.permute.xlu0 %1562 }
 0x1d5   : > { %v936_v3 = vpop.f32.mrf.mxu3 }
 0x1db   : > { %v1640_v62 = vpop.permute.xlu0 %1639 }
 0x1dc   : > { %1655 = vmatpush.bf16.msra.mxu2 %v1640_v62 }
 0x1de   : > { %v939_v54 = vpop.f32.mrf.mxu3 }
 0x1df   : > { %v7514_v27 = vadd.f32 %v939_v54, %v910_v18  ;;  %v7524_v54 = vpop.permute.xlu1 %1682  ;;  %v908_v18 = vld [vmem:[#allocation8] sm:$0xff] }
 0x1e0   : > { %1656 = vmatpush.bf16.msra.mxu2 %v1638_v10  ;;  %10379 = vst [vmem:[#allocation50_spill] sm:$0xff] %v7524_v54  ;;  %v7528_v19 = vadd.f32 %v934_v36, %v908_v18  ;;  %v1573_v18 = vsel %vm912_vm0, %v1563_v12, 0 }
 0x1e1   : > { %v950_v61 = vsel %vm912_vm0, %v7514_v27, -inf }
 0x1e2   : > { %951 = vmax.xlane.f32.xlu1 %v950_v61  ;;  %v7526_v61 = vpop.f32.mrf.mxu1 }
 0x1e3   : > { %v1756_v41 = vpop.permute.xlu0 %1755 }
 0x1e4   : > { %1771 = vmatpush.bf16.msra.mxu0 %v1756_v41  ;;  %v7530_v41 = vpop.permute.xlu2 %2275 }
 0x1e5   : > { %10380 = vst [vmem:[#allocation51_spill] sm:$0xff] %v7530_v41  ;;  %v1810_v41 = vsel %vm912_vm0, %v1799_v8, 0 }
 0x1e6   : > { %v941_v50 = vpop.f32.mrf.mxu3 }
 0x1e7   : > { %v7520_v62 = vadd.f32 %v941_v50, %v911_v63  ;;  %v944_v63 = vsel %vm912_vm0, %v7528_v19, -inf  ;;  %v909_v50 = vld [vmem:[#allocation8 + $0x8] sm:$0xff]  ;;  %v7534_v47 = vpop.permute.xlu1 %2159 }
 0x1e8   : > { %1772 = vmatpush.bf16.msra.mxu0 %v1754_v48  ;;  %v7537_v54 = vadd.f32 %v936_v3, %v909_v50  ;;  %v1807_v3 = vsel %vm912_vm0, %v1797_v51, 0 }
 0x1e9   : > { %v953_v52 = vsel %vm912_vm0, %v7520_v62, -inf }
 0x1ea   : > { %954 = vmax.xlane.f32.xlu1 %v953_v52  ;;  %v947_v36 = vsel %vm912_vm0, %v7537_v54, -inf }
 0x1eb   : > { %v1872_v10 = vpop.permute.xlu0 %1871 }
 0x1ec   : > { %1887 = vmatpush.bf16.msrb.mxu2 %v1872_v10  ;;  %v7539_v10 = vpop.f32.mrf.mxu1 }
 0x1f0   : > { %1888 = vmatpush.bf16.msrb.mxu2 %v1870_v58  ;;  %v2319_v58 = vpop.permute.xlu2 %2318 }
 0x1f3   : > { %v1565_v48 = vpop.permute.xlu0 %1564  ;;  %945 = vmax.xlane.f32.xlu0 %v944_v63  ;;  %v2085_v63 = vpop.permute.xlu1 %2084 }
 0x1f4   : > { %v1576_v52 = vsel %vm912_vm0, %v1565_v48, 0  ;;  %v7545_v53 = vpop.f32.mrf.mxu1  ;;  %v2095_v12 = vsel %vm912_vm0, %v2085_v63, 0 }
 0x1f5   : > { %1584 = vmatpush.bf16.xpose.msra.mxu1 %v1576_v52 }
 0x1f8   : > { %v2087_v50 = vpop.permute.xlu2 %2086 }
 0x1f9   : > { %v2098_v48 = vsel %vm912_vm0, %v2087_v50, 0 }
 0x1fb   : > { %948 = vmax.xlane.f32.xlu0 %v947_v36  ;;  %v7551_v52 = vpop.permute.xlu1 %2202  ;;  %v7553_v36 = vpop.permute.xlu0 %2161 }
 0x1fc   : > { %10381 = vst [vmem:[#allocation52_spill] sm:$0xff] %v7551_v52  ;;  %v7555_v8 = vpop.f32.mrf.mxu1 }
 0x1fd   : > { %1585 = vmatpush.bf16.xpose.msra.mxu1 %v1573_v18  ;;  %10382 = vst [vmem:[#allocation53_spill] sm:$0xff] %v7555_v8 }
 0x200   : > { %v7582_v44 = vpop.permute.xlu2 %2204 }
 0x201   : > { %10389 = vst [vmem:[#allocation60_spill] sm:$0xff] %v7582_v44 }
 0x203   : > { %v7560_v18 = vpop.permute.xlu0 %2277 }
 0x204   : > { %5629 = vmatmul.msk.bf16.vlgmr.msra.gmra.mxu1 %vm912_vm0, %v7385_v11  ;;  %10383 = vst [vmem:[#allocation54_spill] sm:$0xff] %v7560_v18  ;;  %v7564_v11 = vpop.f32.mrf.mxu1 }
 0x205   : > { %1818 = vmatpush.bf16.xpose.msrb.mxu1 %v1810_v41  ;;  %v7558_v41 = vpop.permute.xlu1 %2391  ;;  %10384 = vst [vmem:[#allocation55_spill] sm:$0xff] %v7564_v11 }
 0x20c   : > { %v7568_v50 = vpop.f32.mrf.mxu1 }
 0x20d   : > { %1819 = vmatpush.bf16.xpose.msrb.mxu1 %v1807_v3  ;;  %v2321_v51 = vpop.permute.xlu1 %2320  ;;  %v7566_v3 = vpop.permute.xlu0 %2393  ;;  %10385 = vst [vmem:[#allocation56_spill] sm:$0xff] %v7568_v50 }
 0x20e   : > { %v2332_v63 = vsel %vm912_vm0, %v2321_v51, 0 }
 0x214   : > { %5630 = vmatmul.msk.bf16.gmra.mxu1 %vm912_vm0, %v7363_v57  ;;  %v7577_v18 = vpop.f32.mrf.mxu1  ;;  %v2329_v57 = vsel %vm912_vm0, %v2319_v58, 0 }
 0x215   : > { %2106 = vmatpush.bf16.xpose.msra.mxu1 %v2098_v48  ;;  %v7573_v48 = vpop.permute.xlu1 %2600  ;;  %10387 = vst [vmem:[#allocation58_spill] sm:$0xff] %v7577_v18 }
 0x21c   : > { %v7584_v60 = vpop.f32.mrf.mxu1 }
 0x21d   : > { %2107 = vmatpush.bf16.xpose.msra.mxu1 %v2095_v12  ;;  %v7575_v12 = vpop.permute.xlu0 %2722  ;;  %v7580_v52 = vpop.permute.xlu1 %2720  ;;  %10390 = vst [vmem:[#allocation61_spill] sm:$0xff] %v7584_v60 }
 0x21e   : > { %10386 = vst [vmem:[#allocation57_spill] sm:$0xff] %v7575_v12 }
 0x21f   : > { %10388 = vst [vmem:[#allocation59_spill] sm:$0xff] %v7580_v52 }
 0x224   : > { %5637 = vmatmul.msk.bf16.vlgmr.msrb.gmra.mxu1 %vm912_vm0, %v7352_v45  ;;  %v7594_v12 = vpop.f32.mrf.mxu1 }
 0x225   : > { %2340 = vmatpush.bf16.xpose.msrb.mxu1 %v2332_v63  ;;  %v2607_v38 = vpop.permute.xlu0 %2606  ;;  %v7588_v45 = vpop.permute.xlu1 %2726  ;;  %10392 = vst [vmem:[#allocation63_spill] sm:$0xff] %v7594_v12 }
 0x226   : > { %10391 = vst [vmem:[#allocation62_spill] sm:$0xff] %v7588_v45  ;;  %v7592_v63 = vpop.permute.xlu2 %2602  ;;  %v2617_v45 = vsel %vm912_vm0, %v2607_v38, 0 }
 0x22d   : > { %2341 = vmatpush.bf16.xpose.msrb.mxu1 %v2329_v57  ;;  %v7590_v51 = vpop.permute.xlu0 %2683  ;;  %v7596_v58 = vpop.permute.xlu1 %2797 }
 0x22e   : > { %10393 = vst [vmem:[#allocation64_spill] sm:$0xff] %v7596_v58  ;;  %v7601_v44 = vpop.permute.xlu2 %2681 }
 0x234   : > { %5638 = vmatmul.msk.bf16.gmra.mxu1 %vm912_vm0, %v7446_v30  ;;  %v7603_v30 = vpop.f32.mrf.mxu1 }
 0x235   : > { %v2609_v57 = vpop.permute.xlu0 %2608  ;;  %10394 = vst [vmem:[#allocation65_spill] sm:$0xff] %v7603_v30  ;;  %v2841_v60 = vpop.permute.xlu1 %2840 }
 0x236   : > { %v2620_v52 = vsel %vm912_vm0, %v2609_v57, 0  ;;  %v7606_v56 = vpop.permute.xlu2 %2724 }
 0x237   : > { %10395 = vst [vmem:[#allocation66_spill] sm:$0xff] %v7606_v56 }
 0x23c   : > { %v7608_v12 = vpop.f32.mrf.mxu1 }
 0x23d   : > { %10396 = vst [vmem:[#allocation67_spill] sm:$0xff] %v7608_v12  ;;  %v7612_v58 = vpop.permute.xlu0 %2799 }
 0x23e   : > { %10397 = vst [vmem:[#allocation68_spill] sm:$0xff] %v7612_v58  ;;  %v7615_v26 = vpop.permute.xlu2 %2836 }
 0x244   : > { %5645 = vmatmul.msk.bf16.vlgmr.msra.gmra.mxu1 %vm912_vm0, %v7412_v42  ;;  %v7617_v30 = vpop.f32.mrf.mxu1 }
 0x245   : > { %2628 = vmatpush.bf16.xpose.msra.mxu1 %v2620_v52  ;;  %10398 = vst [vmem:[#allocation69_spill] sm:$0xff] %v7617_v30  ;;  %v7619_v38 = vpop.permute.xlu0 %2838 }
 0x246   : > { %v2843_v12 = vpop.permute.xlu2 %2842 }
 0x24c   : > { %v7625_v58 = vpop.f32.mrf.mxu1 }
 0x24d   : > { %2629 = vmatpush.bf16.xpose.msra.mxu1 %v2617_v45  ;;  %10399 = vst [vmem:[#allocation70_spill] sm:$0xff] %v7625_v58 }
 0x254   : > { %5646 = vmatmul.msk.bf16.gmra.mxu1 %vm912_vm0, %v7492_v39  ;;  %v2854_v39 = vsel %vm912_vm0, %v2843_v12, 0 }
 0x255   : > { %v952_v42 = vpop.xlane.xlu1 %951 }
 0x256   : > { %v958_v52 = vsub.f32 %v7514_v27, %v952_v42 }
 0x258   : > { %v964_v57 = vmul.f32 1.442695, %v958_v52 }
 0x25a   : > { %6187 = vpow2.f32 %v964_v57  ;;  %v2851_v57 = vsel %vm912_vm0, %v2841_v60, 0 }
 0x260   : > { %v6188_v45 = vpop.eup %6187 }
 0x261   : > { %v974_v56 = vsel %vm912_vm0, %v6188_v45, 0.0 }
 0x262   : > { %975 = vadd.xlane.f32.xlu0 %v974_v56  ;;  %v7630_v56 = vpop.f32.mrf.mxu1 }
 0x263   : > { %10400 = vst [vmem:[#allocation71_spill] sm:$0xff] %v7630_v56 }
 0x264   : > { %5653 = vmatmul.msk.bf16.vlgmr.msrb.gmra.mxu1 %vm912_vm0, %v7498_v2 }
 0x265   : > { %2862 = vmatpush.bf16.xpose.msrb.mxu1 %v2854_v39 }
 0x266   : > { %v946_v27 = vpop.xlane.xlu0 %945 }
 0x267   : > { %v956_v42 = vsub.f32 %v7528_v19, %v946_v27  ;;  %v955_v19 = vpop.xlane.xlu1 %954 }
 0x268   : > { %v959_v27 = vsub.f32 %v7520_v62, %v955_v19  ;;  %v7659_v19 = vld [vmem:[#allocation8 + $0x30] sm:$0xff] }
 0x269   : > { %v960_v52 = vmul.f32 1.442695, %v956_v42 }
 0x26a   : > { %v7636_v60 = vpop.f32.mrf.mxu1 }
 0x26b   : > { %6189 = vpow2.f32 %v960_v52  ;;  %10401 = vst [vmem:[#allocation72_spill] sm:$0xff] %v7636_v60 }
 0x26d   : > { %2863 = vmatpush.bf16.xpose.msrb.mxu1 %v2851_v57  ;;  %v7651_v57 = vld [vmem:[#allocation8 + $0x28] sm:$0xff] }
 0x26e   : > { %v949_v30 = vpop.xlane.xlu0 %948 }
 0x26f   : > { %v957_v35 = vsub.f32 %v7537_v54, %v949_v30  ;;  %v7641_v30 = vld [vmem:[#allocation8 + $0x20] sm:$0xff] }
 0x271   : > { %v6190_v11 = vpop.eup %6189  ;;  %v962_v2 = vmul.f32 1.442695, %v957_v35  ;;  %v966_v35 = vmul.f32 1.442695, %v959_v27 }
 0x272   : > { %v968_v12 = vsel %vm912_vm0, %v6190_v11, 0.0 }
 0x273   : > { %6191 = vpow2.f32 %v962_v2  ;;  %969 = vadd.xlane.f32.xlu2 %v968_v12 }
 0x274   : > { %5654 = vmatmul.msk.bf16.gmra.mxu1 %vm912_vm0, %v7508_v55  ;;  %6193 = vpow2.f32 %v966_v35 }
 0x279   : > { %v6192_v39 = vpop.eup %6191 }
 0x27a   : > { %v971_v42 = vsel %vm912_vm0, %v6192_v39, 0.0  ;;  %v980_v54 = vpack.c.bf16 %v6192_v39, %v6190_v11  ;;  %v6194_v11 = vpop.eup %6193 }
 0x27b   : > { %972 = vadd.xlane.f32.xlu2 %v971_v42  ;;  %v981_v12 = vpack.c.bf16 %v6194_v11, %v6188_v45  ;;  %v977_v27 = vsel %vm912_vm0, %v6194_v11, 0.0  ;;  %v7669_v42 = vld [vmem:[#allocation8 + $0x38] sm:$0xff] }
 0x27c   : > { %5611 = vmatmul.msk.bf16.vlgmr.msrb.gmra.mxu3 %vm912_vm0, %v980_v54 }
 0x27d   : > { %1121 = vmatpush.bf16.msrb.mxu3 %v7463_v28 }
 0x281   : > { %1122 = vmatpush.bf16.msrb.mxu3 %v7430_v15  ;;  %v1587_v55 = vpop.f32.mrf.mxu1 }
 0x282   : > { %v7645_v52 = vadd.f32 %v1587_v55, %v7641_v30  ;;  %v1165_v55 = vsel %vm912_vm0, %v7496_v31, 0 }
 0x284   : > { %5661 = vmatmul.msk.bf16.vlgmr.msra.gmra.mxu1 %vm912_vm0, %v7573_v48  ;;  %v1597_v62 = vsel %vm912_vm0, %v7645_v52, -inf }
 0x285   : > { %1598 = vmax.xlane.f32.xlu2 %v1597_v62  ;;  %v7680_v62 = vld [vmem:[#allocation8 + $0x60] sm:$0xff] }
 0x289   : > { %v1589_v28 = vpop.f32.mrf.mxu1 }
 0x28a   : > { %v7654_v2 = vadd.f32 %v1589_v28, %v7651_v57 }
 0x28c   : > { %5612 = vmatmul.msk.bf16.gmra.mxu3 %vm912_vm0, %v981_v12  ;;  %v1600_v15 = vsel %vm912_vm0, %v7654_v2, -inf  ;;  %v1162_v12 = vsel %vm912_vm0, %v7488_v33, 0 }
 0x28d   : > { %1601 = vmax.xlane.f32.xlu1 %v1600_v15 }
 0x291   : > { %v1592_v48 = vpop.f32.mrf.mxu1 }
 0x292   : > { %v7662_v39 = vadd.f32 %v1592_v48, %v7659_v19 }
 0x294   : > { %5662 = vmatmul.msk.bf16.gmra.mxu1 %vm912_vm0, %v7592_v63  ;;  %v1603_v45 = vsel %vm912_vm0, %v7662_v39, -inf }
 0x295   : > { %978 = vadd.xlane.f32.xlu1 %v977_v27  ;;  %1604 = vmax.xlane.f32.xlu0 %v1603_v45  ;;  %v7700_v27 = vld [vmem:[#allocation8 + $0x70] sm:$0xff] }
 0x299   : > { %v1594_v54 = vpop.f32.mrf.mxu1 }
 0x29a   : > { %v7672_v35 = vadd.f32 %v1594_v54, %v7669_v42 }
 0x29c   : > { %5613 = vmatmul.msk.bf16.vlgmr.msra.gmra.mxu3 %vm912_vm0, %v7321_v14  ;;  %v1606_v63 = vsel %vm912_vm0, %v7672_v35, -inf  ;;  %v7691_v14 = vld [vmem:[#allocation8 + $0x68] sm:$0xff] }
 0x29d   : > { %1173 = vmatpush.bf16.xpose.msra.mxu3 %v1165_v55  ;;  %1607 = vmax.xlane.f32.xlu2 %v1606_v63  ;;  %v7709_v55 = vld [vmem:[#allocation8 + $0x78] sm:$0xff] }
 0x2a1   : > { %v1821_v11 = vpop.f32.mrf.mxu1 }
 0x2a2   : > { %v7683_v28 = vadd.f32 %v1821_v11, %v7680_v62 }
 0x2a4   : > { %v1831_v31 = vsel %vm912_vm0, %v7683_v28, -inf  ;;  %5669 = vmatmul.msk.bf16.vlgmr.msrb.gmra.mxu1 %vm912_vm0, %v7615_v26 }
 0x2a5   : > { %1174 = vmatpush.bf16.xpose.msra.mxu3 %v1162_v12  ;;  %1832 = vmax.xlane.f32.xlu0 %v1831_v31 }
 0x2a9   : > { %v1823_v15 = vpop.f32.mrf.mxu1 }
 0x2aa   : > { %v7694_v48 = vadd.f32 %v1823_v15, %v7691_v14 }
 0x2ac   : > { %5614 = vmatmul.msk.bf16.gmra.mxu3 %vm912_vm0, %v7365_v59  ;;  %v1834_v33 = vsel %vm912_vm0, %v7694_v48, -inf }
 0x2ad   : > { %1835 = vmax.xlane.f32.xlu1 %v1834_v33 }
 0x2b1   : > { %v1826_v45 = vpop.f32.mrf.mxu1 }
 0x2b2   : > { %v7703_v26 = vadd.f32 %v1826_v45, %v7700_v27 }
 0x2b4   : > { %v1837_v54 = vsel %vm912_vm0, %v7703_v26, -inf  ;;  %5670 = vmatmul.msk.bf16.gmra.mxu1 %vm912_vm0, %v7619_v38 }
 0x2b5   : > { %1838 = vmax.xlane.f32.xlu2 %v1837_v54 }
 0x2b9   : > { %v1828_v59 = vpop.f32.mrf.mxu1 }
 0x2ba   : > { %v7712_v63 = vadd.f32 %v1828_v59, %v7709_v55 }
 0x2bc   : > { %v1840_v11 = vsel %vm912_vm0, %v7712_v63, -inf }
 0x2bd   : > { %1841 = vmax.xlane.f32.xlu0 %v1840_v11 }
 0x2c1   : > { %v2109_v12 = vpop.f32.mrf.mxu1 }
 0x2c2   : > { %v7717_v31 = vadd.f32 %v2109_v12, %v7641_v30 }
 0x2c4   : > { %v2119_v15 = vsel %vm912_vm0, %v7717_v31, -inf }
 0x2c5   : > { %2120 = vmax.xlane.f32.xlu0 %v2119_v15 }
 0x2c9   : > { %v2111_v38 = vpop.f32.mrf.mxu1 }
 0x2ca   : > { %v7722_v33 = vadd.f32 %v2111_v38, %v7651_v57 }
 0x2cc   : > { %v2122_v45 = vsel %vm912_vm0, %v7722_v33, -inf }
 0x2cd   : > { %2123 = vmax.xlane.f32.xlu2 %v2122_v45 }
 0x2d1   : > { %v2114_v54 = vpop.f32.mrf.mxu1 }
 0x2d2   : > { %v7727_v59 = vadd.f32 %v2114_v54, %v7659_v19 }
 0x2d4   : > { %v2125_v11 = vsel %vm912_vm0, %v7727_v59, -inf }
 0x2d5   : > { %2126 = vmax.xlane.f32.xlu1 %v2125_v11  ;;  %v7767_v18 = vpop.xlane.xlu0 %975 }
 0x2d6   : > { %10405 = vst [vmem:[#allocation76_spill] sm:$0xff] %v7767_v18 }
 0x2d9   : > { %v2116_v12 = vpop.f32.mrf.mxu1 }
 0x2da   : > { %v7732_v60 = vadd.f32 %v2116_v12, %v7669_v42 }
 0x2dc   : > { %v2128_v15 = vsel %vm912_vm0, %v7732_v60, -inf }
 0x2dd   : > { %2129 = vmax.xlane.f32.xlu0 %v2128_v15 }
 0x2e1   : > { %v2343_v38 = vpop.f32.mrf.mxu1 }
 0x2e2   : > { %v7737_v56 = vadd.f32 %v2343_v38, %v7680_v62 }
 0x2e4   : > { %v2353_v45 = vsel %vm912_vm0, %v7737_v56, -inf }
 0x2e5   : > { %2354 = vmax.xlane.f32.xlu0 %v2353_v45 }
 0x2e6   : > { %v7741_v54 = vpop.xlane.xlu2 %969 }
 0x2e7   : > { %10402 = vst [vmem:[#allocation73_spill] sm:$0xff] %v7741_v54 }
 0x2e9   : > { %v2345_v58 = vpop.f32.mrf.mxu1 }
 0x2ea   : > { %v7744_v11 = vadd.f32 %v2345_v58, %v7691_v14 }
 0x2ec   : > { %v2356_v12 = vsel %vm912_vm0, %v7744_v11, -inf }
 0x2ed   : > { %2357 = vmax.xlane.f32.xlu2 %v2356_v12 }
 0x2ee   : > { %v7748_v8 = vpop.xlane.xlu2 %972 }
 0x2ef   : > { %10403 = vst [vmem:[#allocation74_spill] sm:$0xff] %v7748_v8 }
 0x2f1   : > { %v2348_v15 = vpop.f32.mrf.mxu1 }
 0x2f2   : > { %v7751_v38 = vadd.f32 %v2348_v15, %v7700_v27  ;;  %v7763_v15 = vpop.f32.mrf.mxu2 }
 0x2f4   : > { %v2359_v45 = vsel %vm912_vm0, %v7751_v38, -inf }
 0x2f5   : > { %2360 = vmax.xlane.f32.xlu1 %v2359_v45 }
 0x2f8   : > { %v1599_v54 = vpop.xlane.xlu2 %1598 }
 0x2f9   : > { %v1609_v58 = vsub.f32 %v7645_v52, %v1599_v54  ;;  %v2350_v46 = vpop.f32.mrf.mxu1 }
 0x2fa   : > { %v7759_v40 = vadd.f32 %v2350_v46, %v7709_v55  ;;  %v7778_v18 = vpop.f32.mrf.mxu2 }
 0x2fb   : > { %v1613_v12 = vmul.f32 1.442695, %v1609_v58 }
 0x2fc   : > { %v2362_v8 = vsel %vm912_vm0, %v7759_v40, -inf }
 0x2fd   : > { %6195 = vpow2.f32 %v1613_v12  ;;  %2363 = vmax.xlane.f32.xlu0 %v2362_v8 }
 0x2ff   : > { %v7765_v37 = vpop.f32.mrf.mxu3 }
 0x300   : > { %10404 = vst [vmem:[#allocation75_spill] sm:$0xff] %v7765_v37  ;;  %v1602_v45 = vpop.xlane.xlu1 %1601 }
 0x301   : > { %v1610_v50 = vsub.f32 %v7654_v2, %v1602_v45  ;;  %v2631_v52 = vpop.f32.mrf.mxu1 }
 0x302   : > { %v7771_v54 = vadd.f32 %v2631_v52, %v7641_v30 }
 0x303   : > { %v6196_v46 = vpop.eup %6195  ;;  %v1615_v58 = vmul.f32 1.442695, %v1610_v50 }
 0x304   : > { %v2641_v21 = vsel %vm912_vm0, %v7771_v54, -inf  ;;  %v1621_v8 = vsel %vm912_vm0, %v6196_v46, 0.0 }
 0x305   : > { %6197 = vpow2.f32 %v1615_v58  ;;  %2642 = vmax.xlane.f32.xlu2 %v2641_v21  ;;  %1622 = vadd.xlane.f32.xlu1 %v1621_v8 }
 0x307   : > { %v7776_v12 = vpop.f32.mrf.mxu3 }
 0x308   : > { %10406 = vst [vmem:[#allocation77_spill] sm:$0xff] %v7776_v12  ;;  %v1605_v37 = vpop.xlane.xlu0 %1604 }
 0x309   : > { %v1611_v2 = vsub.f32 %v7662_v39, %v1605_v37  ;;  %v2633_v45 = vpop.f32.mrf.mxu1 }
 0x30a   : > { %v7782_v52 = vadd.f32 %v2633_v45, %v7651_v57 }
 0x30b   : > { %v6198_v50 = vpop.eup %6197  ;;  %v1617_v13 = vmul.f32 1.442695, %v1611_v2  ;;  %v7792_v2 = vpop.f32.mrf.mxu2 }
 0x30c   : > { %v1633_v22 = vpack.c.bf16 %v6198_v50, %v6196_v46  ;;  %v1624_v1 = vsel %vm912_vm0, %v6198_v50, 0.0  ;;  %v2644_v21 = vsel %vm912_vm0, %v7782_v52, -inf }
 0x30d   : > { %6199 = vpow2.f32 %v1617_v13  ;;  %1625 = vadd.xlane.f32.xlu2 %v1624_v1  ;;  %2645 = vmax.xlane.f32.xlu1 %v2644_v21 }
 0x30e   : > { %5631 = vmatmul.msk.bf16.vlgmr.msra.gmra.mxu2 %vm912_vm0, %v1633_v22  ;;  %v7798_v22 = vpop.xlane.xlu1 %978 }
 0x30f   : > { %2177 = vmatpush.bf16.msra.mxu2 %v7553_v36  ;;  %v7789_v37 = vpop.f32.mrf.mxu3  ;;  %10409 = vst [vmem:[#allocation80_spill] sm:$0xff] %v7798_v22 }
 0x310   : > { %10407 = vst [vmem:[#allocation78_spill] sm:$0xff] %v7789_v37  ;;  %v1608_v39 = vpop.xlane.xlu2 %1607 }
 0x311   : > { %v1612_v58 = vsub.f32 %v7672_v35, %v1608_v39  ;;  %v2636_v8 = vpop.f32.mrf.mxu1 }
 0x312   : > { %v7801_v50 = vadd.f32 %v2636_v8, %v7659_v19 }
 0x313   : > { %v6200_v46 = vpop.eup %6199  ;;  %v1619_v45 = vmul.f32 1.442695, %v1612_v58  ;;  %2178 = vmatpush.bf16.msra.mxu2 %v7534_v47  ;;  %v7807_v37 = vpop.f32.mrf.mxu2 }
 0x314   : > { %v1627_v13 = vsel %vm912_vm0, %v6200_v46, 0.0  ;;  %10410 = vst [vmem:[#allocation81_spill] sm:$0xff] %v7807_v37 }
 0x315   : > { %6201 = vpow2.f32 %v1619_v45  ;;  %1628 = vadd.xlane.f32.xlu0 %v1627_v13 }
 0x317   : > { %v7796_v1 = vpop.f32.mrf.mxu3 }
 0x318   : > { %10408 = vst [vmem:[#allocation79_spill] sm:$0xff] %v7796_v1  ;;  %v1833_v36 = vpop.xlane.xlu0 %1832 }
 0x319   : > { %v1843_v35 = vsub.f32 %v7683_v28, %v1833_v36  ;;  %v2638_v21 = vpop.f32.mrf.mxu1  ;;  %v2647_v28 = vsel %vm912_vm0, %v7801_v50, -inf }
 0x31a   : > { %v7805_v39 = vadd.f32 %v2638_v21, %v7669_v42 }
 0x31b   : > { %v6202_v58 = vpop.eup %6201  ;;  %v1847_v47 = vmul.f32 1.442695, %v1843_v35 }
 0x31c   : > { %v2650_v45 = vsel %vm912_vm0, %v7805_v39, -inf  ;;  %v1630_v13 = vsel %vm912_vm0, %v6202_v58, 0.0  ;;  %v1634_v1 = vpack.c.bf16 %v6202_v58, %v6200_v46 }
 0x31d   : > { %6203 = vpow2.f32 %v1847_v47  ;;  %2651 = vmax.xlane.f32.xlu2 %v2650_v45  ;;  %1631 = vadd.xlane.f32.xlu1 %v1630_v13  ;;  %v7822_v47 = vpop.f32.mrf.mxu2 }
 0x31e   : > { %2648 = vmax.xlane.f32.xlu0 %v2647_v28  ;;  %5632 = vmatmul.msk.bf16.gmra.mxu2 %vm912_vm0, %v1634_v1  ;;  %10411 = vst [vmem:[#allocation82_spill] sm:$0xff] %v7822_v47 }
 0x31f   : > { %v1053_v8 = vpop.f32.mrf.mxu3 }
 0x320   : > { %v1836_v36 = vpop.xlane.xlu1 %1835  ;;  %v7816_v35 = vadd.f32 %v1053_v8, %v7641_v30 }
 0x321   : > { %v1844_v21 = vsub.f32 %v7694_v48, %v1836_v36  ;;  %v2865_v45 = vpop.f32.mrf.mxu1 }
 0x322   : > { %v1063_v58 = vsel %vm912_vm0, %v7816_v35, -inf }
 0x323   : > { %v6204_v22 = vpop.eup %6203  ;;  %v1849_v12 = vmul.f32 1.442695, %v1844_v21 }
 0x324   : > { %v1855_v46 = vsel %vm912_vm0, %v6204_v22, 0.0 }
 0x325   : > { %6205 = vpow2.f32 %v1849_v12  ;;  %1856 = vadd.xlane.f32.xlu1 %v1855_v46  ;;  %v7828_v21 = vpop.f32.mrf.mxu2 }
 0x326   : > { %1064 = vmax.xlane.f32.xlu0 %v1063_v58  ;;  %10412 = vst [vmem:[#allocation83_spill] sm:$0xff] %v7828_v21 }
 0x327   : > { %v1055_v1 = vpop.f32.mrf.mxu3 }
 0x328   : > { %v1839_v13 = vpop.xlane.xlu2 %1838  ;;  %v7831_v46 = vadd.f32 %v1055_v1, %v7651_v57 }
 0x329   : > { %v1845_v28 = vsub.f32 %v7703_v26, %v1839_v13  ;;  %v2867_v13 = vpop.f32.mrf.mxu1 }
 0x32b   : > { %v6206_v8 = vpop.eup %6205  ;;  %v1851_v37 = vmul.f32 1.442695, %v1845_v28 }
 0x32c   : > { %v1867_v48 = vpack.c.bf16 %v6206_v8, %v6204_v22  ;;  %v1858_v36 = vsel %vm912_vm0, %v6206_v8, 0.0 }
 0x32d   : > { %6207 = vpow2.f32 %v1851_v37  ;;  %1859 = vadd.xlane.f32.xlu2 %v1858_v36 }
 0x32e   : > { %5639 = vmatmul.msk.bf16.vlgmr.msrb.gmra.mxu2 %vm912_vm0, %v1867_v48  ;;  %v7844_v48 = vadd.f32 %v2865_v45, %v7680_v62 }
 0x32f   : > { %2409 = vmatpush.bf16.msrb.mxu2 %v7566_v3  ;;  %v1058_v12 = vpop.f32.mrf.mxu3  ;;  %v1066_v3 = vsel %vm912_vm0, %v7831_v46, -inf }
 0x330   : > { %v7834_v58 = vadd.f32 %v1058_v12, %v7659_v19  ;;  %v1842_v26 = vpop.xlane.xlu0 %1841  ;;  %v7847_v12 = vpop.f32.mrf.mxu2 }
 0x331   : > { %v1846_v22 = vsub.f32 %v7712_v63, %v1842_v26 }
 0x332   : > { %v1069_v37 = vsel %vm912_vm0, %v7834_v58, -inf }
 0x333   : > { %v6208_v28 = vpop.eup %6207  ;;  %v1853_v8 = vmul.f32 1.442695, %v1846_v22  ;;  %2410 = vmatpush.bf16.msrb.mxu2 %v7558_v41  ;;  %1070 = vmax.xlane.f32.xlu1 %v1069_v37  ;;  %v2870_v41 = vpop.f32.mrf.mxu1  ;;  %v2875_v37 = vsel %vm912_vm0, %v7844_v48, -inf }
 0x334   : > { %v1861_v1 = vsel %vm912_vm0, %v6208_v28, 0.0 }
 0x335   : > { %6209 = vpow2.f32 %v1853_v8  ;;  %1067 = vmax.xlane.f32.xlu2 %v1066_v3  ;;  %1862 = vadd.xlane.f32.xlu0 %v1861_v1 }
 0x337   : > { %v1060_v8 = vpop.f32.mrf.mxu3 }
 0x338   : > { %v2121_v63 = vpop.xlane.xlu0 %2120  ;;  %v7854_v62 = vadd.f32 %v1060_v8, %v7669_v42 }
 0x339   : > { %v2131_v36 = vsub.f32 %v7717_v31, %v2121_v63  ;;  %v7857_v63 = vpop.f32.mrf.mxu2 }
 0x33a   : > { %10413 = vst [vmem:[#allocation84_spill] sm:$0xff] %v7857_v63 }
 0x33b   : > { %v6210_v26 = vpop.eup %6209  ;;  %v2135_v22 = vmul.f32 1.442695, %v2131_v36  ;;  %v1072_v36 = vsel %vm912_vm0, %v7854_v62, -inf }
 0x33c   : > { %v1864_v47 = vsel %vm912_vm0, %v6210_v26, 0.0  ;;  %v1868_v21 = vpack.c.bf16 %v6210_v26, %v6208_v28 }
 0x33d   : > { %6211 = vpow2.f32 %v2135_v22  ;;  %2876 = vmax.xlane.f32.xlu0 %v2875_v37  ;;  %1865 = vadd.xlane.f32.xlu1 %v1864_v47  ;;  %v2872_v47 = vpop.f32.mrf.mxu1  ;;  %v7866_v22 = vadd.f32 %v2870_v41, %v7700_v27  ;;  %v7879_v27 = vadd.f32 %v2867_v13, %v7691_v14 }
 0x33e   : > { %5640 = vmatmul.msk.bf16.gmra.mxu2 %vm912_vm0, %v1868_v21  ;;  %v7863_v26 = vadd.f32 %v2872_v47, %v7709_v55 }
 0x33f   : > { %v2881_v55 = vsel %vm912_vm0, %v7866_v22, -inf }
 0x340   : > { %v2124_v31 = vpop.xlane.xlu2 %2123 }
 0x341   : > { %v2132_v45 = vsub.f32 %v7722_v33, %v2124_v31 }
 0x343   : > { %v6212_v3 = vpop.eup %6211  ;;  %v2137_v1 = vmul.f32 1.442695, %v2132_v45  ;;  %v2884_v45 = vsel %vm912_vm0, %v7863_v26, -inf }
 0x344   : > { %v2143_v28 = vsel %vm912_vm0, %v6212_v3, 0.0 }
 0x345   : > { %6213 = vpow2.f32 %v2137_v1  ;;  %1073 = vmax.xlane.f32.xlu0 %v1072_v36  ;;  %2144 = vadd.xlane.f32.xlu2 %v2143_v28  ;;  %v7874_v36 = vpop.f32.mrf.mxu2 }
 0x346   : > { %10414 = vst [vmem:[#allocation85_spill] sm:$0xff] %v7874_v36 }
 0x348   : > { %v2127_v21 = vpop.xlane.xlu1 %2126 }
 0x349   : > { %v2133_v33 = vsub.f32 %v7727_v59, %v2127_v21  ;;  %v2878_v21 = vsel %vm912_vm0, %v7879_v27, -inf }
 0x34b   : > { %v6214_v37 = vpop.eup %6213  ;;  %v2139_v8 = vmul.f32 1.442695, %v2133_v33 }
 0x34c   : > { %v2155_v31 = vpack.c.bf16 %v6214_v37, %v6212_v3  ;;  %v2146_v1 = vsel %vm912_vm0, %v6214_v37, 0.0 }
 0x34d   : > { %6215 = vpow2.f32 %v2139_v8  ;;  %2885 = vmax.xlane.f32.xlu0 %v2884_v45  ;;  %2147 = vadd.xlane.f32.xlu1 %v2146_v1  ;;  %v7886_v33 = vpop.f32.mrf.mxu2 }
 0x34e   : > { %2882 = vmax.xlane.f32.xlu2 %v2881_v55  ;;  %5647 = vmatmul.msk.bf16.vlgmr.msra.gmra.mxu2 %vm912_vm0, %v2155_v31  ;;  %10415 = vst [vmem:[#allocation86_spill] sm:$0xff] %v7886_v33 }
 0x34f   : > { %2699 = vmatpush.bf16.msra.mxu2 %v7590_v51 }
 0x350   : > { %v2130_v59 = vpop.xlane.xlu0 %2129 }
 0x351   : > { %v2134_v41 = vsub.f32 %v7732_v60, %v2130_v59 }
 0x353   : > { %v6216_v3 = vpop.eup %6215  ;;  %v2141_v28 = vmul.f32 1.442695, %v2134_v41  ;;  %2700 = vmatpush.bf16.msra.mxu2 %v7601_v44 }
 0x354   : > { %v2149_v47 = vsel %vm912_vm0, %v6216_v3, 0.0 }
 0x355   : > { %6217 = vpow2.f32 %v2141_v28  ;;  %2150 = vadd.xlane.f32.xlu0 %v2149_v47  ;;  %2879 = vmax.xlane.f32.xlu1 %v2878_v21  ;;  %v7891_v31 = vpop.f32.mrf.mxu2 }
 0x356   : > { %10416 = vst [vmem:[#allocation87_spill] sm:$0xff] %v7891_v31 }
 0x358   : > { %v2355_v51 = vpop.xlane.xlu0 %2354 }
 0x359   : > { %v2365_v13 = vsub.f32 %v7737_v56, %v2355_v51 }
 0x35b   : > { %v6218_v14 = vpop.eup %6217  ;;  %v2369_v60 = vmul.f32 1.442695, %v2365_v13 }
 0x35c   : > { %v2156_v37 = vpack.c.bf16 %v6218_v14, %v6216_v3 }
 0x35d   : > { %6219 = vpow2.f32 %v2369_v60  ;;  %v7897_v59 = vpop.f32.mrf.mxu2 }
 0x35e   : > { %5648 = vmatmul.msk.bf16.gmra.mxu2 %vm912_vm0, %v2156_v37  ;;  %10417 = vst [vmem:[#allocation88_spill] sm:$0xff] %v7897_v59 }
 0x360   : > { %v2358_v8 = vpop.xlane.xlu2 %2357 }
 0x361   : > { %v2366_v44 = vsub.f32 %v7744_v11, %v2358_v8 }
 0x363   : > { %v2371_v45 = vmul.f32 1.442695, %v2366_v44  ;;  %v6220_v56 = vpop.eup %6219 }
 0x365   : > { %6221 = vpow2.f32 %v2371_v45  ;;  %v7903_v13 = vpop.f32.mrf.mxu2 }
 0x366   : > { %2913 = vrot.lane.b32.xlu2 %v7434_v4, %s6969_s27  ;;  %10418 = vst [vmem:[#allocation89_spill] sm:$0xff] %v7903_v13 }
 0x368   : > { %v2361_v1 = vpop.xlane.xlu1 %2360 }
 0x369   : > { %2915 = vrot.lane.b32.xlu0 %v7476_v24, %s6969_s27  ;;  %v2367_v3 = vsub.f32 %v7751_v38, %v2361_v1 }
 0x36b   : > { %v6222_v55 = vpop.eup %6221  ;;  %v2373_v28 = vmul.f32 1.442695, %v2367_v3 }
 0x36c   : > { %v2389_v41 = vpack.c.bf16 %v6222_v55, %v6220_v56  ;;  %v2380_v11 = vsel %vm912_vm0, %v6222_v55, 0.0 }
 0x36d   : > { %2381 = vadd.xlane.f32.xlu1 %v2380_v11  ;;  %6223 = vpow2.f32 %v2373_v28  ;;  %v7910_v55 = vpop.f32.mrf.mxu2 }
 0x36e   : > { %5655 = vmatmul.msk.bf16.vlgmr.msrb.gmra.mxu2 %vm912_vm0, %v2389_v41  ;;  %10419 = vst [vmem:[#allocation90_spill] sm:$0xff] %v7910_v55  ;;  %v684_v55 = vpop.f32.mrf.mxu0 }
 0x370   : > { %v2364_v47 = vpop.xlane.xlu0 %2363 }
 0x371   : > { %v2368_v21 = vsub.f32 %v7759_v40, %v2364_v47 }
 0x373   : > { %v2375_v51 = vmul.f32 1.442695, %v2368_v21  ;;  %v6224_v44 = vpop.eup %6223 }
 0x375   : > { %6225 = vpow2.f32 %v2375_v51  ;;  %v7916_v21 = vpop.f32.mrf.mxu2 }
 0x376   : > { %10420 = vst [vmem:[#allocation91_spill] sm:$0xff] %v7916_v21 }
 0x378   : > { %v1623_v37 = vpop.xlane.xlu1 %1622  ;;  %v2643_v60 = vpop.xlane.xlu2 %2642 }
 0x379   : > { %v2653_v8 = vsub.f32 %v7771_v54, %v2643_v60 }
 0x37b   : > { %v7906_v38 = vpop.eup %6225  ;;  %v2657_v45 = vmul.f32 1.442695, %v2653_v8  ;;  %v2152_v8 = vsel %vm912_vm0, %v6218_v14, 0.0  ;;  %v2377_v14 = vsel %vm912_vm0, %v6220_v56, 0.0  ;;  %v690_v56 = vadd.f32 %v7187_v23, %v7192_v25 }
 0x37c   : > { %v2390_v1 = vpack.c.bf16 %v7906_v38, %v6224_v44 }
 0x37d   : > { %6227 = vpow2.f32 %v2657_v45 }
 0x37e   : > { %5656 = vmatmul.msk.bf16.gmra.mxu2 %vm912_vm0, %v2390_v1 }
 0x380   : > { %v2646_v40 = vpop.xlane.xlu1 %2645  ;;  %v1626_v54 = vpop.xlane.xlu2 %1625 }
 0x381   : > { %v2654_v41 = vsub.f32 %v7782_v52, %v2646_v40 }
 0x383   : > { %v6228_v3 = vpop.eup %6227  ;;  %v2659_v11 = vmul.f32 1.442695, %v2654_v41 }
 0x384   : > { %v2665_v28 = vsel %vm912_vm0, %v6228_v3, 0.0 }
 0x385   : > { %6229 = vpow2.f32 %v2659_v11  ;;  %2666 = vadd.xlane.f32.xlu1 %v2665_v28  ;;  %v2383_v11 = vsel %vm912_vm0, %v6224_v44, 0.0 }
 0x386   : > { %6231 = vrcp.f32 %v1623_v37 }
 0x387   : > { %6233 = vrcp.f32 %v1626_v54 }
 0x388   : > { %v7914_v47 = vpop.xlane.xlu0 %1628 }
 0x38b   : > { %v7918_v51 = vpop.eup %6229 }
 0x38c   : > { %v2677_v60 = vpack.c.bf16 %v7918_v51, %v6228_v3  ;;  %v6232_v3 = vpop.eup %6231 }
 0x38e   : > { %5663 = vmatmul.msk.bf16.vlgmr.msra.gmra.mxu2 %vm912_vm0, %v2677_v60  ;;  %v6234_v60 = vpop.eup %6233 }
 0x38f   : > { %2153 = vadd.xlane.f32.xlu2 %v2152_v8 }
 0x390   : > { %v2652_v52 = vpop.xlane.xlu2 %2651  ;;  %v7928_v44 = vpop.xlane.xlu1 %1631 }
 0x391   : > { %v2656_v45 = vsub.f32 %v7805_v39, %v2652_v52  ;;  %v2649_v1 = vpop.xlane.xlu0 %2648  ;;  %v1658_v40 = vpop.f32.mrf.mxu2 }
 0x392   : > { %v2655_v41 = vsub.f32 %v7801_v50, %v2649_v1  ;;  %v1672_v39 = vmul.f32 %v6232_v3, %v1658_v40 }
 0x393   : > { %v2663_v28 = vmul.f32 1.442695, %v2656_v45  ;;  %2384 = vadd.xlane.f32.xlu0 %v2383_v11  ;;  %v692_v45 = vadd.f32 %v7196_v29, %v7192_v25 }
 0x394   : > { %v2661_v21 = vmul.f32 1.442695, %v2655_v41  ;;  %v686_v41 = vpop.f32.mrf.mxu0 }
 0x395   : > { %6235 = vpow2.f32 %v2663_v28  ;;  %v7938_v11 = vpack.c.bf16 %v692_v45, %v690_v56  ;;  %v685_v28 = vadd.f32 %v684_v55, %v7192_v25 }
 0x396   : > { %6237 = vpow2.f32 %v2661_v21 }
 0x397   : > { %2378 = vadd.xlane.f32.xlu2 %v2377_v14  ;;  %v687_v14 = vadd.f32 %v686_v41, %v7192_v25 }
 0x398   : > { %v7946_v23 = vpop.xlane.xlu1 %1856 }
 0x399   : > { %v1660_v8 = vpop.f32.mrf.mxu2  ;;  %v1065_v54 = vpop.xlane.xlu0 %1064 }
 0x39a   : > { %v1673_v52 = vmul.f32 %v6234_v60, %v1660_v8  ;;  %v1075_v40 = vsub.f32 %v7816_v35, %v1065_v54  ;;  %v7949_v35 = vpack.c.bf16 %v687_v14, %v685_v28 }
 0x39b   : > { %v6236_v37 = vpop.eup %6235 }
 0x39c   : > { %v6238_v13 = vpop.eup %6237  ;;  %v5946_v50 = vpack.i.bf16 %v1673_v52, %v1672_v39  ;;  %v1079_v3 = vmul.f32 1.442695, %v1075_v40 }
 0x39d   : > { %v2678_v1 = vpack.c.bf16 %v6236_v37, %v6238_v13 }
 0x39e   : > { %5947 = vrot.lane.b32.xlu1 %v5946_v50, %s6969_s27  ;;  %6239 = vpow2.f32 %v1079_v3 }
 0x39f   : > { %5664 = vmatmul.msk.bf16.gmra.mxu2 %vm912_vm0, %v2678_v1 }
 0x3a0   : > { %v7931_v21 = vpop.xlane.xlu2 %1859 }
 0x3a4   : > { %v7953_v50 = vpop.eup %6239 }
 0x3a6   : > { %v1071_v52 = vpop.xlane.xlu1 %1070 }
 0x3a7   : > { %3124 = vrot.lane.b32.xlu0 %v7938_v11, %s6970_s8  ;;  %v1077_v54 = vsub.f32 %v7834_v58, %v1071_v52 }
 0x3a8   : > { %v1068_v60 = vpop.xlane.xlu2 %1067  ;;  %v7944_v8 = vpop.xlane.xlu0 %1862 }
 0x3a9   : > { %v1076_v29 = vsub.f32 %v7831_v46, %v1068_v60  ;;  %v1083_v46 = vmul.f32 1.442695, %v1077_v54 }
 0x3ab   : > { %v1081_v39 = vmul.f32 1.442695, %v1076_v29 }
 0x3ad   : > { %6241 = vpow2.f32 %v1081_v39  ;;  %v1663_v39 = vpop.f32.mrf.mxu2 }
 0x3ae   : > { %6243 = vpow2.f32 %v1083_v46  ;;  %v2671_v46 = vsel %vm912_vm0, %v6238_v13, 0.0 }
 0x3af   : > { %3122 = vrot.lane.b32.xlu2 %v7949_v35, %s6970_s8 }
 0x3b0   : > { %v2877_v55 = vpop.xlane.xlu0 %2876  ;;  %v7960_v41 = vpop.xlane.xlu1 %1865 }
 0x3b1   : > { %v2887_v14 = vsub.f32 %v7844_v48, %v2877_v55 }
 0x3b3   : > { %v6242_v1 = vpop.eup %6241  ;;  %v2891_v3 = vmul.f32 1.442695, %v2887_v14  ;;  %v1286_v14 = vsel %vm912_vm0, %v7506_v34, 0 }
 0x3b4   : > { %v1099_v56 = vpack.c.bf16 %v6242_v1, %v7953_v50  ;;  %v7964_v58 = vpop.eup %6243  ;;  %v1090_v13 = vsel %vm912_vm0, %v6242_v1, 0.0 }
 0x3b6   : > { %5615 = vmatmul.msk.bf16.vlgmr.msrb.gmra.mxu3 %vm912_vm0, %v1099_v56 }
 0x3b7   : > { %1242 = vmatpush.bf16.msrb.mxu3 %v7474_v20 }
 0x3b8   : > { %v1074_v45 = vpop.xlane.xlu0 %1073  ;;  %v7974_v52 = vpop.xlane.xlu2 %2144 }
 0x3b9   : > { %v1078_v40 = vsub.f32 %v7854_v62, %v1074_v45  ;;  %v2674_v62 = vsel %vm912_vm0, %v6236_v37, 0.0 }
 0x3bb   : > { %v1085_v28 = vmul.f32 1.442695, %v1078_v40  ;;  %1243 = vmatpush.bf16.msrb.mxu3 %v7376_v6  ;;  %v1665_v40 = vpop.f32.mrf.mxu2 }
 0x3bd   : > { %6245 = vpow2.f32 %v1085_v28 }
 0x3be   : > { %6247 = vpow2.f32 %v2891_v3 }
 0x3bf   : > { %6249 = vrcp.f32 %v7928_v44 }
 0x3c0   : > { %v7968_v29 = vpop.xlane.xlu1 %2147  ;;  %v2886_v6 = vpop.xlane.xlu0 %2885 }
 0x3c1   : > { %v2883_v37 = vpop.xlane.xlu2 %2882 }
 0x3c3   : > { %v7966_v60 = vpop.eup %6245 }
 0x3c4   : > { %v1100_v20 = vpack.c.bf16 %v7966_v60, %v7964_v58  ;;  %v6248_v48 = vpop.eup %6247 }
 0x3c5   : > { %v2899_v54 = vsel %vm912_vm0, %v6248_v48, 0.0 }
 0x3c6   : > { %5616 = vmatmul.msk.bf16.gmra.mxu3 %vm912_vm0, %v1100_v20  ;;  %v6250_v20 = vpop.eup %6249 }
 0x3c7   : > { %v1675_v44 = vmul.f32 %v6250_v20, %v1665_v40  ;;  %v1093_v20 = vsel %vm912_vm0, %v7964_v58, 0.0 }
 0x3c8   : > { %2675 = vadd.xlane.f32.xlu1 %v2674_v62  ;;  %v2880_v55 = vpop.xlane.xlu1 %2879  ;;  %v7979_v45 = vpop.xlane.xlu0 %2150 }
 0x3c9   : > { %v2888_v56 = vsub.f32 %v7879_v27, %v2880_v55  ;;  %v2386_v27 = vsel %vm912_vm0, %v7906_v38, 0.0  ;;  %v1890_v62 = vpop.f32.mrf.mxu2  ;;  %v2890_v55 = vsub.f32 %v7863_v26, %v2886_v6  ;;  %v2668_v38 = vsel %vm912_vm0, %v7918_v51, 0.0 }
 0x3ca   : > { %v1087_v26 = vsel %vm912_vm0, %v7953_v50, 0.0  ;;  %v781_v50 = vadd.f32 %v7545_v53, %v7265_v7  ;;  %v776_v53 = vadd.f32 %v7526_v61, %v7265_v7 }
 0x3cb   : > { %v2893_v28 = vmul.f32 1.442695, %v2888_v56  ;;  %v2889_v56 = vsub.f32 %v7866_v22, %v2883_v37 }
 0x3cd   : > { %6251 = vpow2.f32 %v2893_v28 }
 0x3ce   : > { %6253 = vrcp.f32 %v7914_v47 }
 0x3cf   : > { %6255 = vrcp.f32 %v7931_v21 }
 0x3d0   : > { %2900 = vadd.xlane.f32.xlu1 %v2899_v54  ;;  %v2914_v54 = vpop.permute.xlu2 %2913  ;;  %6257 = vrcp.f32 %v7946_v23  ;;  %v779_v23 = vadd.f32 %v7539_v10, %v7265_v7  ;;  %v774_v10 = vadd.f32 %v7518_v16, %v7265_v7 }
 0x3d1   : > { %2672 = vadd.xlane.f32.xlu0 %v2671_v46  ;;  %v1892_v22 = vpop.f32.mrf.mxu2 }
 0x3d3   : > { %v6252_v34 = vpop.eup %6251 }
 0x3d4   : > { %v6254_v1 = vpop.eup %6253  ;;  %v2911_v46 = vpack.c.bf16 %v6252_v34, %v6248_v48 }
 0x3d5   : > { %v1674_v47 = vmul.f32 %v6254_v1, %v1663_v39  ;;  %v6256_v51 = vpop.eup %6255 }
 0x3d6   : > { %5617 = vmatmul.msk.bf16.vlgmr.msra.gmra.mxu3 %vm912_vm0, %v7341_v32  ;;  %v1283_v32 = vsel %vm912_vm0, %v7396_v17, 0  ;;  %v2895_v17 = vmul.f32 1.442695, %v2889_v56  ;;  %v1905_v6 = vmul.f32 %v6256_v51, %v1892_v22  ;;  %v6258_v39 = vpop.eup %6257 }
 0x3d7   : > { %1294 = vmatpush.bf16.xpose.msra.mxu3 %v1286_v14  ;;  %v5951_v28 = vpack.i.bf16 %v1675_v44, %v1674_v47  ;;  %v2897_v14 = vmul.f32 1.442695, %v2890_v55  ;;  %v1904_v21 = vmul.f32 %v6258_v39, %v1890_v62  ;;  %v8027_v55 = vpack.c.bf16 %v776_v53, %v774_v10 }
 0x3d8   : > { %2387 = vadd.xlane.f32.xlu2 %v2386_v27  ;;  %1091 = vadd.xlane.f32.xlu1 %v1090_v13  ;;  %v2902_v27 = vsel %vm912_vm0, %v6252_v34, 0.0  ;;  %v8011_v13 = vpack.c.bf16 %v781_v50, %v779_v23 }
 0x3d9   : > { %6259 = vpow2.f32 %v2897_v14  ;;  %v5956_v37 = vpack.i.bf16 %v1905_v6, %v1904_v21  ;;  %v1895_v62 = vpop.f32.mrf.mxu2 }
 0x3da   : > { %6261 = vpow2.f32 %v2895_v17 }
 0x3db   : > { %v2916_v3 = vpop.permute.xlu0 %2915  ;;  %6263 = vrcp.f32 %v7960_v41 }
 0x3dc   : > { %2931 = vmatpush.bf16.msrb.mxu2 %v2916_v3  ;;  %6265 = vrcp.f32 %v7944_v8 }
 0x3dd   : > { %6267 = vrcp.f32 %v7968_v29 }
 0x3de   : > { %6269 = vrcp.f32 %v7974_v52 }
 0x3df   : > { %1295 = vmatpush.bf16.xpose.msra.mxu3 %v1283_v32  ;;  %v6260_v48 = vpop.eup %6259  ;;  %v1096_v32 = vsel %vm912_vm0, %v7966_v60, 0.0 }
 0x3e0   : > { %2669 = vadd.xlane.f32.xlu2 %v2668_v38  ;;  %2932 = vmatpush.bf16.msrb.mxu2 %v2914_v54  ;;  %v6262_v40 = vpop.eup %6261  ;;  %v2908_v34 = vsel %vm912_vm0, %v6260_v48, 0.0  ;;  %v8045_v29 = vpop.xlane.xlu1 %2381 }
 0x3e1   : > { %v2905_v3 = vsel %vm912_vm0, %v6262_v40, 0.0  ;;  %v1897_v58 = vpop.f32.mrf.mxu2  ;;  %v6264_v61 = vpop.eup %6263 }
 0x3e2   : > { %v1907_v38 = vmul.f32 %v6264_v61, %v1897_v58  ;;  %v6266_v60 = vpop.eup %6265 }
 0x3e3   : > { %5671 = vmatmul.msk.bf16.vlgmr.msrb.gmra.mxu2 %vm912_vm0, %v2911_v46  ;;  %v1906_v56 = vmul.f32 %v6266_v60, %v1895_v62 }
 0x3e5   : > { %5952 = vrot.lane.b32.xlu0 %v5951_v28, %s6969_s27  ;;  %v5961_v47 = vpack.i.bf16 %v1907_v38, %v1906_v56  ;;  %v6268_v28 = vpop.eup %6267 }
 0x3e6   : > { %5618 = vmatmul.msk.bf16.gmra.mxu3 %vm912_vm0, %v7382_v9  ;;  %v2912_v9 = vpack.c.bf16 %v6260_v48, %v6262_v40  ;;  %v6270_v41 = vpop.eup %6269 }
 0x3e8   : > { %1088 = vadd.xlane.f32.xlu2 %v1087_v26 }
 0x3e9   : > { %v2180_v16 = vpop.f32.mrf.mxu2 }
 0x3ea   : > { %v2194_v8 = vmul.f32 %v6270_v41, %v2180_v16 }
 0x3f0   : > { %2903 = vadd.xlane.f32.xlu2 %v2902_v27 }
 0x3f1   : > { %5957 = vrot.lane.b32.xlu1 %v5956_v37, %s6970_s8  ;;  %v2182_v46 = vpop.f32.mrf.mxu2 }
 0x3f2   : > { %v2195_v14 = vmul.f32 %v6268_v28, %v2182_v46 }
 0x3f3   : > { %5672 = vmatmul.msk.bf16.gmra.mxu2 %vm912_vm0, %v2912_v9 }
 0x3f4   : > { %v5966_v26 = vpack.i.bf16 %v2195_v14, %v2194_v8 }
 0x3f8   : > { %v8049_v6 = vpop.xlane.xlu1 %2666 }
 0x402   : > { %v8025_v44 = vpop.xlane.xlu2 %2153 }
 0x408   : > { %3130 = vrot.lane.b32.xlu2 %v8011_v13, %s6970_s8 }
 0x40a   : > { %v8031_v54 = vpop.xlane.xlu2 %2378 }
 0x40f   : > { %2906 = vadd.xlane.f32.xlu0 %v2905_v3 }
 0x410   : > { %v8052_v21 = vpop.permute.xlu1 %5947 }
 0x412   : > { %v3123_v1 = vpop.permute.xlu2 %3122 }
 0x417   : > { %1094 = vadd.xlane.f32.xlu0 %v1093_v20  ;;  %v8066_v20 = vpop.xlane.xlu0 %2384 }
 0x41b   : > { %2909 = vadd.xlane.f32.xlu1 %v2908_v34 }
 0x41f   : > { %v3125_v34 = vpop.permute.xlu0 %3124 }
 0x431   : > { %1097 = vadd.xlane.f32.xlu2 %v1096_v32 }
 0x434   : > { %3128 = vrot.lane.b32.xlu1 %v8027_v55, %s6970_s8 }
 0x43b   : > { %v8054_v40 = vpop.xlane.xlu1 %2675 }
 0x443   : > { %v8056_v37 = vpop.xlane.xlu1 %2900 }
 0x444   : > { %v8083_v14 = vpop.xlane.xlu0 %2672 }
 0x449   : > { %5962 = vrot.lane.b32.xlu2 %v5961_v47, %s6970_s8  ;;  %v8077_v47 = vpop.f32.mrf.mxu2 }
 0x44b   : > { %v8038_v17 = vpop.xlane.xlu2 %2387  ;;  %v8058_v27 = vpop.xlane.xlu1 %1091 }
 0x451   : > { %5967 = vrot.lane.b32.xlu2 %v5966_v26, %s6969_s27  ;;  %v2187_v46 = vpop.f32.mrf.mxu2 }
 0x453   : > { %v8041_v22 = vpop.xlane.xlu2 %2669 }
 0x459   : > { %v8079_v28 = vpop.f32.mrf.mxu2 }
 0x45b   : > { %v8043_v51 = vpop.xlane.xlu2 %1088 }
 0x463   : > { %v8047_v52 = vpop.xlane.xlu2 %2903  ;;  %v8060_v9 = vpop.permute.xlu1 %5957 }
 0x464   : > { %10421 = vst [vmem:[#allocation92_spill] sm:$0xff] %v8060_v9 }
 0x46b   : > { %v3131_v39 = vpop.permute.xlu2 %3130 }
 0x46c   : > { %v3142_v48 = vsel %vm912_vm0, %v3131_v39, 0 }
 0x46d   : > { %3150 = vmatpush.bf16.xpose.msra.mxu1 %v3142_v48 }
 0x48e   : > { %v8062_v23 = vpop.xlane.xlu1 %2909 }
 0x4a4   : > { %v8087_v8 = vpop.xlane.xlu2 %1097 }
 0x4a6   : > { %v3129_v50 = vpop.permute.xlu1 %3128 }
 0x4a7   : > { %v3139_v3 = vsel %vm912_vm0, %v3129_v50, 0 }
 0x4a8   : > { %3151 = vmatpush.bf16.xpose.msra.mxu1 %v3139_v3 }
 0x4ac   : > { %v8091_v39 = vpop.permute.xlu2 %5962 }
 0x4ad   : > { %10423 = vst [vmem:[#allocation94_spill] sm:$0xff] %v8091_v39 }
 0x4af   : > { %5677 = vmatmul.msk.bf16.vlgmr.msra.gmra.mxu1 %vm912_vm0, %v3123_v1 }
 0x4b4   : > { %v8097_v3 = vpop.permute.xlu2 %5967 }
 0x4b5   : > { %10424 = vst [vmem:[#allocation95_spill] sm:$0xff] %v8097_v3 }
 0x4bf   : > { %5678 = vmatmul.msk.bf16.gmra.mxu1 %vm912_vm0, %v3125_v34 }
 0x52c   : > { %v3153_v62 = vpop.f32.mrf.mxu1 }
 0x52d   : > { %v3154_v10 = vadd.f32 %v3153_v62, %v7641_v30 }
 0x52f   : > { %v3163_v53 = vsel %vm912_vm0, %v3154_v10, -inf }
 0x530   : > { %3164 = vmax.xlane.f32.xlu0 %v3163_v53 }
 0x534   : > { %v3155_v32 = vpop.f32.mrf.mxu1 }
 0x535   : > { %v3156_v58 = vadd.f32 %v3155_v32, %v7651_v57  ;;  %v8081_v57 = vpop.f32.mrf.mxu2 }
 0x537   : > { %v3166_v16 = vsel %vm912_vm0, %v3156_v58, -inf }
 0x538   : > { %3167 = vmax.xlane.f32.xlu2 %v3166_v16 }
 0x53c   : > { %v3158_v61 = vpop.f32.mrf.mxu1 }
 0x53d   : > { %v3159_v38 = vadd.f32 %v3158_v61, %v7659_v19  ;;  %v2417_v41 = vpop.f32.mrf.mxu2  ;;  %v8085_v19 = vpop.permute.xlu0 %5952 }
 0x53e   : > { %10422 = vst [vmem:[#allocation93_spill] sm:$0xff] %v8085_v19 }
 0x53f   : > { %v3169_v1 = vsel %vm912_vm0, %v3159_v38, -inf }
 0x540   : > { %3170 = vmax.xlane.f32.xlu1 %v3169_v1 }
 0x544   : > { %v3160_v60 = vpop.f32.mrf.mxu1 }
 0x545   : > { %v3161_v56 = vadd.f32 %v3160_v60, %v7669_v42  ;;  %v8089_v26 = vpop.xlane.xlu0 %2906  ;;  %v2419_v42 = vpop.f32.mrf.mxu2 }
 0x547   : > { %v3172_v30 = vsel %vm912_vm0, %v3161_v56, -inf }
 0x548   : > { %3173 = vmax.xlane.f32.xlu0 %v3172_v30 }
 0x54d   : > { %v8093_v48 = vpop.xlane.xlu0 %1094  ;;  %v8095_v50 = vpop.f32.mrf.mxu2 }
 0x555   : > { %v2704_v32 = vpop.f32.mrf.mxu2 }
 0x55d   : > { %v8103_v59 = vpop.f32.mrf.mxu2 }
 0x5a3   : > { %v3165_v34 = vpop.xlane.xlu0 %3164 }
 0x5a4   : > { %v3175_v62 = vsub.f32 %v3154_v10, %v3165_v34 }
 0x5a6   : > { %v3179_v53 = vmul.f32 1.442695, %v3175_v62  ;;  %v8111_v62 = vpop.f32.mrf.mxu2 }
 0x5a8   : > { %6271 = vpow2.f32 %v3179_v53 }
 0x5ab   : > { %v3168_v16 = vpop.xlane.xlu2 %3167 }
 0x5ac   : > { %v3176_v61 = vsub.f32 %v3156_v58, %v3168_v16 }
 0x5ae   : > { %v8099_v1 = vpop.eup %6271  ;;  %v3181_v60 = vmul.f32 1.442695, %v3176_v61 }
 0x5af   : > { %v3187_v30 = vsel %vm912_vm0, %v8099_v1, 0.0 }
 0x5b0   : > { %6273 = vpow2.f32 %v3181_v60  ;;  %3188 = vadd.xlane.f32.xlu2 %v3187_v30  ;;  %v1124_v30 = vpop.f32.mrf.mxu3 }
 0x5b3   : > { %v3171_v31 = vpop.xlane.xlu1 %3170 }
 0x5b4   : > { %v3177_v33 = vsub.f32 %v3159_v38, %v3171_v31 }
 0x5b6   : > { %v8105_v3 = vpop.eup %6273  ;;  %v3183_v10 = vmul.f32 1.442695, %v3177_v33  ;;  %v2934_v33 = vpop.f32.mrf.mxu2 }
 0x5b7   : > { %v3190_v58 = vsel %vm912_vm0, %v8105_v3, 0.0 }
 0x5b8   : > { %6275 = vpow2.f32 %v3183_v10  ;;  %3191 = vadd.xlane.f32.xlu1 %v3190_v58 }
 0x5bb   : > { %v3174_v53 = vpop.xlane.xlu0 %3173 }
 0x5bc   : > { %v3178_v16 = vsub.f32 %v3161_v56, %v3174_v53 }
 0x5be   : > { %v8113_v61 = vpop.eup %6275  ;;  %v3185_v60 = vmul.f32 1.442695, %v3178_v16 }
 0x5bf   : > { %v3193_v31 = vsel %vm912_vm0, %v8113_v61, 0.0 }
 0x5c0   : > { %6277 = vpow2.f32 %v3185_v60  ;;  %3194 = vadd.xlane.f32.xlu0 %v3193_v31 }
 0x5c1   : > { %6279 = vrcp.f32 %v8038_v17 }
 0x5c2   : > { %6281 = vrcp.f32 %v8066_v20 }
 0x5c3   : > { %6283 = vrcp.f32 %v8025_v44  ;;  %v2936_v44 = vpop.f32.mrf.mxu2 }
 0x5c4   : > { %6285 = vrcp.f32 %v7979_v45  ;;  %v1126_v45 = vpop.f32.mrf.mxu3 }
 0x5c5   : > { %6287 = vrcp.f32 %v8041_v22 }
 0x5c6   : > { %v8120_v38 = vpop.eup %6277  ;;  %6289 = vrcp.f32 %v8031_v54 }
 0x5c7   : > { %v3196_v56 = vsel %vm912_vm0, %v8120_v38, 0.0  ;;  %v3200_v10 = vpack.c.bf16 %v8120_v38, %v8113_v61  ;;  %v6280_v58 = vpop.eup %6279  ;;  %6291 = vrcp.f32 %v8049_v6 }
 0x5c8   : > { %3197 = vadd.xlane.f32.xlu2 %v3196_v56  ;;  %v6282_v53 = vpop.eup %6281  ;;  %v2429_v20 = vmul.f32 %v6280_v58, %v2419_v42  ;;  %6293 = vrcp.f32 %v8045_v29 }
 0x5c9   : > { %v6284_v17 = vpop.eup %6283  ;;  %v2428_v16 = vmul.f32 %v6282_v53, %v2417_v41  ;;  %6295 = vrcp.f32 %v8043_v51 }
 0x5ca   : > { %v2197_v60 = vmul.f32 %v6284_v17, %v2187_v46  ;;  %v6286_v31 = vpop.eup %6285  ;;  %6297 = vrcp.f32 %v8058_v27 }
 0x5cb   : > { %v5981_v34 = vpack.i.bf16 %v2429_v20, %v2428_v16  ;;  %v6288_v36 = vpop.eup %6287  ;;  %v2196_v56 = vmul.f32 %v6286_v31, %v8077_v47  ;;  %6299 = vrcp.f32 %v8047_v52  ;;  %v2939_v46 = vpop.f32.mrf.mxu2 }
 0x5cc   : > { %v6290_v42 = vpop.eup %6289  ;;  %v2717_v54 = vmul.f32 %v6288_v36, %v2704_v32  ;;  %6301 = vrcp.f32 %v8083_v14  ;;  %v1129_v58 = vpop.f32.mrf.mxu3 }
 0x5cd   : > { %v5971_v22 = vpack.i.bf16 %v2197_v60, %v2196_v56  ;;  %v6292_v41 = vpop.eup %6291  ;;  %v2426_v47 = vmul.f32 %v6290_v42, %v8079_v28  ;;  %6303 = vrcp.f32 %v8056_v37 }
 0x5ce   : > { %v2716_v6 = vmul.f32 %v6292_v41, %v8095_v50  ;;  %v6294_v29 = vpop.eup %6293  ;;  %6305 = vrcp.f32 %v8054_v40 }
 0x5cf   : > { %v6296_v51 = vpop.eup %6295  ;;  %v2427_v36 = vmul.f32 %v6294_v29, %v8081_v57  ;;  %6307 = vrcp.f32 %v8062_v23 }
 0x5d0   : > { %v5986_v27 = vpack.i.bf16 %v2717_v54, %v2716_v6  ;;  %v6298_v32 = vpop.eup %6297  ;;  %v1138_v50 = vmul.f32 %v6296_v51, %v1124_v30  ;;  %6309 = vrcp.f32 %v8089_v26  ;;  %v1144_v54 = vld [vmem:[#allocation8 + $0x48] sm:$0xff] }
 0x5d1   : > { %5982 = vrot.lane.b32.xlu1 %v5981_v34, %s6970_s8  ;;  %v6300_v52 = vpop.eup %6299  ;;  %v5976_v14 = vpack.i.bf16 %v2427_v36, %v2426_v47  ;;  %v1139_v53 = vmul.f32 %v6298_v32, %v1126_v45  ;;  %6311 = vrcp.f32 %v8087_v8  ;;  %v1143_v47 = vld [vmem:[#allocation8 + $0x40] sm:$0xff] }
 0x5d2   : > { %v6302_v34 = vpop.eup %6301  ;;  %v2949_v28 = vmul.f32 %v6300_v52, %v2936_v44  ;;  %6313 = vrcp.f32 %v8093_v48  ;;  %v863_v52 = vadd.f32 %v7753_v49, %v7256_v0 }
 0x5d3   : > { %v6304_v37 = vpop.eup %6303  ;;  %v2718_v23 = vmul.f32 %v6302_v34, %v8103_v59  ;;  %v6001_v57 = vpack.i.bf16 %v1139_v53, %v1138_v50  ;;  %v2941_v44 = vpop.f32.mrf.mxu2  ;;  %v865_v50 = vadd.f32 %v7763_v15, %v7256_v0 }
 0x5d4   : > { %5972 = vrot.lane.b32.xlu0 %v5971_v22, %s6969_s27  ;;  %v6306_v40 = vpop.eup %6305  ;;  %v2948_v17 = vmul.f32 %v6304_v37, %v2934_v33  ;;  %v1131_v8 = vpop.f32.mrf.mxu3 }
 0x5d5   : > { %v6308_v20 = vpop.eup %6307  ;;  %v2719_v30 = vmul.f32 %v6306_v40, %v8111_v62  ;;  %v8170_v34 = vpack.c.bf16 %v865_v50, %v863_v52 }
 0x5d6   : > { %v5996_v16 = vpack.i.bf16 %v2949_v28, %v2948_v17  ;;  %v6310_v26 = vpop.eup %6309  ;;  %v2951_v60 = vmul.f32 %v6308_v20, %v2941_v44  ;;  %v870_v28 = vadd.f32 %v7792_v2, %v7256_v0  ;;  %v1146_v2 = vld [vmem:[#allocation8 + $0x58] sm:$0xff] }
 0x5d7   : > { %v5991_v31 = vpack.i.bf16 %v2719_v30, %v2718_v23  ;;  %v6312_v33 = vpop.eup %6311  ;;  %v2950_v56 = vmul.f32 %v6310_v26, %v2939_v46 }
 0x5d8   : > { %v6314_v59 = vpop.eup %6313  ;;  %v1141_v45 = vmul.f32 %v6312_v33, %v1131_v8 }
 0x5d9   : > { %5987 = vrot.lane.b32.xlu1 %v5986_v27, %s6969_s27  ;;  %v6006_v22 = vpack.i.bf16 %v2951_v60, %v2950_v56  ;;  %v1140_v42 = vmul.f32 %v6314_v59, %v1129_v58  ;;  %v1145_v27 = vld [vmem:[#allocation8 + $0x50] sm:$0xff]  ;;  %v868_v58 = vadd.f32 %v7778_v18, %v7256_v0 }
 0x5db   : > { %v6011_v48 = vpack.i.bf16 %v1141_v45, %v1140_v42  ;;  %v8178_v37 = vpack.c.bf16 %v870_v28, %v868_v58 }
 0x5dc   : > { %5977 = vrot.lane.b32.xlu0 %v5976_v14, %s6970_s8  ;;  %v1176_v62 = vpop.f32.mrf.mxu3 }
 0x5dd   : > { %v1177_v51 = vadd.f32 %v1176_v62, %v1143_v47 }
 0x5df   : > { %v1186_v46 = vsel %vm912_vm0, %v1177_v51, -inf }
 0x5e0   : > { %6002 = vrot.lane.b32.xlu2 %v6001_v57, %s6969_s27 }
 0x5e1   : > { %5997 = vrot.lane.b32.xlu1 %v5996_v16, %s6970_s8 }
 0x5e4   : > { %5992 = vrot.lane.b32.xlu0 %v5991_v31, %s6969_s27  ;;  %v1178_v41 = vpop.f32.mrf.mxu3 }
 0x5e5   : > { %v1179_v6 = vadd.f32 %v1178_v41, %v1144_v54 }
 0x5e7   : > { %v1189_v29 = vsel %vm912_vm0, %v1179_v6, -inf }
 0x5e8   : > { %6007 = vrot.lane.b32.xlu2 %v6006_v22, %s6970_s8 }
 0x5ec   : > { %6012 = vrot.lane.b32.xlu0 %v6011_v48, %s6969_s27  ;;  %v1181_v36 = vpop.f32.mrf.mxu3 }
 0x5ed   : > { %v8162_v32 = vadd.f32 %v1181_v36, %v1145_v27  ;;  %v10434_v27 = vpack.c.bf16 %v8105_v3, %v8099_v1 }
 0x5ef   : > { %v1192_v14 = vsel %vm912_vm0, %v8162_v32, -inf }
 0x5f0   : > { %3242 = vrot.lane.b32.xlu2 %v7949_v35, %s6971_s14 }
 0x5f4   : > { %v1183_v53 = vpop.f32.mrf.mxu3 }
 0x5f5   : > { %v1184_v17 = vadd.f32 %v1183_v53, %v1146_v2 }
 0x5f7   : > { %v1195_v57 = vsel %vm912_vm0, %v1184_v17, -inf }
 0x5f8   : > { %3248 = vrot.lane.b32.xlu2 %v8011_v13, %s6971_s14 }
 0x60b   : > { %1190 = vmax.xlane.f32.xlu1 %v1189_v29 }
 0x616   : > { %1187 = vmax.xlane.f32.xlu0 %v1186_v46 }
 0x621   : > { %1193 = vmax.xlane.f32.xlu2 %v1192_v14 }
 0x623   : > { %v8206_v23 = vpop.xlane.xlu2 %3188 }
 0x624   : > { %3203 = vrot.lane.b32.xlu1 %v8170_v34, %s6970_s8 }
 0x62a   : > { %3205 = vrot.lane.b32.xlu0 %v8178_v37, %s6970_s8 }
 0x62b   : > { %v8200_v18 = vpop.xlane.xlu1 %3191 }
 0x62c   : > { %3246 = vrot.lane.b32.xlu1 %v8027_v55, %s6971_s14 }
 0x632   : > { %3244 = vrot.lane.b32.xlu0 %v7938_v11, %s6971_s14 }
 0x633   : > { %v8198_v49 = vpop.xlane.xlu0 %3194 }
 0x634   : > { %3358 = vrot.lane.b32.xlu1 %v7949_v35, %s6969_s27 }
 0x639   : > { %3319 = vrot.lane.b32.xlu2 %v8170_v34, %s6971_s14 }
 0x63a   : > { %3321 = vrot.lane.b32.xlu0 %v8178_v37, %s6971_s14 }
 0x63b   : > { %v8211_v16 = vpop.xlane.xlu2 %3197 }
 0x63c   : > { %3364 = vrot.lane.b32.xlu1 %v8011_v13, %s6969_s27 }
 0x641   : > { %3362 = vrot.lane.b32.xlu2 %v8027_v55, %s6969_s27 }
 0x642   : > { %3360 = vrot.lane.b32.xlu0 %v7938_v11, %s6969_s27 }
 0x643   : > { %v8204_v40 = vpop.permute.xlu1 %5982  ;;  %v8217_v44 = vpop.permute.xlu2 %6002 }
 0x644   : > { %10426 = vst [vmem:[#allocation97_spill] sm:$0xff] %v8204_v40 }
 0x645   : > { %10430 = vst [vmem:[#allocation101_spill] sm:$0xff] %v8217_v44 }
 0x646   : > { %v8202_v15 = vpop.permute.xlu0 %5972 }
 0x647   : > { %10425 = vst [vmem:[#allocation96_spill] sm:$0xff] %v8202_v15 }
 0x64b   : > { %v8213_v30 = vpop.permute.xlu1 %5987  ;;  %v8223_v56 = vpop.permute.xlu2 %6007 }
 0x64c   : > { %10428 = vst [vmem:[#allocation99_spill] sm:$0xff] %v8213_v30 }
 0x64d   : > { %10433 = vst [vmem:[#allocation104_spill] sm:$0xff] %v8223_v56  ;;  %v880_v56 = vadd.f32 %v7847_v12, %v7256_v0 }
 0x64e   : > { %v8209_v20 = vpop.permute.xlu0 %5977 }
 0x64f   : > { %10427 = vst [vmem:[#allocation98_spill] sm:$0xff] %v8209_v20 }
 0x653   : > { %v8219_v60 = vpop.permute.xlu1 %5997  ;;  %v8225_v48 = vpop.permute.xlu2 %3242 }
 0x654   : > { %10431 = vst [vmem:[#allocation102_spill] sm:$0xff] %v8219_v60 }
 0x656   : > { %v8215_v26 = vpop.permute.xlu0 %5992 }
 0x657   : > { %10429 = vst [vmem:[#allocation100_spill] sm:$0xff] %v8215_v26 }
 0x65b   : > { %v8234_v47 = vpop.permute.xlu2 %3248 }
 0x65e   : > { %v8221_v31 = vpop.permute.xlu0 %6012 }
 0x65f   : > { %10432 = vst [vmem:[#allocation103_spill] sm:$0xff] %v8221_v31 }
 0x66c   : > { %1196 = vmax.xlane.f32.xlu0 %v1195_v57 }
 0x67e   : > { %v1191_v33 = vpop.xlane.xlu1 %1190 }
 0x67f   : > { %v1199_v59 = vsub.f32 %v1179_v6, %v1191_v33 }
 0x681   : > { %v1204_v8 = vmul.f32 1.442695, %v1199_v59  ;;  %v10435_v59 = vld [vmem:[#allocation37_spill] sm:$0xff] }
 0x683   : > { %6315 = vpow2.f32 %v1204_v8  ;;  %v10436_v8 = vld [vmem:[#allocation34_spill] sm:$0xff] }
 0x689   : > { %v1188_v45 = vpop.xlane.xlu0 %1187  ;;  %v8227_v62 = vpop.eup %6315 }
 0x68a   : > { %v1198_v22 = vsub.f32 %v1177_v51, %v1188_v45 }
 0x68c   : > { %v1202_v42 = vmul.f32 1.442695, %v1198_v22  ;;  %v10438_v22 = vld [vmem:[#allocation40_spill] sm:$0xff] }
 0x68e   : > { %6317 = vpow2.f32 %v1202_v42 }
 0x694   : > { %v8229_v54 = vpop.eup %6317  ;;  %v1194_v46 = vpop.xlane.xlu2 %1193 }
 0x695   : > { %v1222_v41 = vpack.c.bf16 %v8227_v62, %v8229_v54  ;;  %v1200_v28 = vsub.f32 %v8162_v32, %v1194_v46  ;;  %v1462_v32 = vsel %vm912_vm0, %v10436_v8, 0 }
 0x696   : > { %v3204_v29 = vpop.permute.xlu1 %3203 }
 0x697   : > { %5619 = vmatmul.msk.bf16.vlgmr.msrb.gmra.mxu3 %vm912_vm0, %v1222_v41  ;;  %v1206_v2 = vmul.f32 1.442695, %v1200_v28  ;;  %v8274_v41 = vld [vmem:[#allocation8 + $0x60] sm:$0xff] }
 0x698   : > { %1363 = vmatpush.bf16.msrb.mxu3 %v7486_v5 }
 0x699   : > { %6319 = vpow2.f32 %v1206_v2  ;;  %v8286_v2 = vld [vmem:[#allocation8 + $0x78] sm:$0xff] }
 0x69c   : > { %1364 = vmatpush.bf16.msrb.mxu3 %v7448_v43  ;;  %v3206_v6 = vpop.permute.xlu0 %3205  ;;  %v8244_v52 = vpop.permute.xlu2 %3319 }
 0x69d   : > { %3221 = vmatpush.bf16.msra.mxu2 %v3206_v6 }
 0x69e   : > { %v8238_v51 = vpop.permute.xlu1 %3246 }
 0x69f   : > { %v8259_v38 = vpop.eup %6319 }
 0x6a1   : > { %3222 = vmatpush.bf16.msra.mxu2 %v3204_v29 }
 0x6a4   : > { %5679 = vmatmul.msk.bf16.vlgmr.msra.gmra.mxu2 %vm912_vm0, %v10434_v27  ;;  %v3363_v5 = vpop.permute.xlu2 %3362  ;;  %v8252_v58 = vpop.permute.xlu0 %3244  ;;  %v8278_v27 = vld [vmem:[#allocation8 + $0x68] sm:$0xff] }
 0x6a5   : > { %v3373_v43 = vsel %vm912_vm0, %v3363_v5, 0  ;;  %v8282_v5 = vld [vmem:[#allocation8 + $0x70] sm:$0xff] }
 0x6a6   : > { %v3359_v36 = vpop.permute.xlu1 %3358 }
 0x6ac   : > { %v8255_v3 = vpop.permute.xlu0 %3321 }
 0x6ae   : > { %v3365_v50 = vpop.permute.xlu1 %3364 }
 0x6af   : > { %v3376_v14 = vsel %vm912_vm0, %v3365_v50, 0 }
 0x6b0   : > { %3384 = vmatpush.bf16.xpose.msrb.mxu1 %v3376_v14 }
 0x6b4   : > { %5680 = vmatmul.msk.bf16.gmra.mxu2 %vm912_vm0, %v3200_v10  ;;  %v3361_v1 = vpop.permute.xlu0 %3360 }
 0x6b8   : > { %3385 = vmatpush.bf16.xpose.msrb.mxu1 %v3373_v43 }
 0x6bf   : > { %5685 = vmatmul.msk.bf16.vlgmr.msrb.gmra.mxu1 %vm912_vm0, %v3359_v36 }
 0x6cf   : > { %5686 = vmatmul.msk.bf16.gmra.mxu1 %vm912_vm0, %v3361_v1 }
 0x6df   : > { %v1197_v53 = vpop.xlane.xlu0 %1196 }
 0x6e0   : > { %v1201_v57 = vsub.f32 %v1184_v17, %v1197_v53  ;;  %v10437_v17 = vld [vmem:[#allocation33_spill] sm:$0xff] }
 0x6e1   : > { %v1459_v45 = vsel %vm912_vm0, %v10437_v17, 0 }
 0x6e2   : > { %v1208_v61 = vmul.f32 1.442695, %v1201_v57 }
 0x6e4   : > { %6321 = vpow2.f32 %v1208_v61 }
 0x6ea   : > { %v8261_v10 = vpop.eup %6321 }
 0x6eb   : > { %v1223_v33 = vpack.c.bf16 %v8261_v10, %v8259_v38 }
 0x6ed   : > { %5620 = vmatmul.msk.bf16.gmra.mxu3 %vm912_vm0, %v1223_v33 }
 0x6fd   : > { %5621 = vmatmul.msk.bf16.vlgmr.msra.gmra.mxu3 %vm912_vm0, %v10435_v59 }
 0x6fe   : > { %1470 = vmatpush.bf16.xpose.msra.mxu3 %v1462_v32 }
 0x706   : > { %1471 = vmatpush.bf16.xpose.msra.mxu3 %v1459_v45 }
 0x70d   : > { %5622 = vmatmul.msk.bf16.gmra.mxu3 %vm912_vm0, %v10438_v22 }
 0x73c   : > { %v3387_v42 = vpop.f32.mrf.mxu1 }
 0x73d   : > { %v3388_v29 = vadd.f32 %v8274_v41, %v3387_v42 }
 0x73f   : > { %v3397_v6 = vsel %vm912_vm0, %v3388_v29, -inf }
 0x740   : > { %3398 = vmax.xlane.f32.xlu0 %v3397_v6 }
 0x744   : > { %v3389_v46 = vpop.f32.mrf.mxu1 }
 0x745   : > { %v3390_v36 = vadd.f32 %v8278_v27, %v3389_v46  ;;  %v3224_v46 = vpop.f32.mrf.mxu2 }
 0x747   : > { %v3400_v50 = vsel %vm912_vm0, %v3390_v36, -inf }
 0x748   : > { %3401 = vmax.xlane.f32.xlu2 %v3400_v50 }
 0x74c   : > { %v3392_v14 = vpop.f32.mrf.mxu1 }
 0x74d   : > { %v3393_v43 = vadd.f32 %v8282_v5, %v3392_v14 }
 0x74f   : > { %v3403_v1 = vsel %vm912_vm0, %v3393_v43, -inf }
 0x750   : > { %3404 = vmax.xlane.f32.xlu1 %v3403_v1 }
 0x754   : > { %v3394_v28 = vpop.f32.mrf.mxu1 }
 0x755   : > { %v3395_v53 = vadd.f32 %v8286_v2, %v3394_v28 }
 0x757   : > { %v3406_v57 = vsel %vm912_vm0, %v3395_v53, -inf }
 0x758   : > { %3407 = vmax.xlane.f32.xlu0 %v3406_v57 }
 0x7b3   : > { %v3399_v61 = vpop.xlane.xlu0 %3398 }
 0x7b4   : > { %v3409_v33 = vsub.f32 %v3388_v29, %v3399_v61 }
 0x7b6   : > { %v3413_v59 = vmul.f32 1.442695, %v3409_v33  ;;  %v3226_v33 = vpop.f32.mrf.mxu2 }
 0x7b8   : > { %6323 = vpow2.f32 %v3413_v59 }
 0x7bb   : > { %v3402_v8 = vpop.xlane.xlu2 %3401 }
 0x7bc   : > { %v3410_v32 = vsub.f32 %v3390_v36, %v3402_v8 }
 0x7be   : > { %v8290_v17 = vpop.eup %6323  ;;  %v3415_v45 = vmul.f32 1.442695, %v3410_v32 }
 0x7bf   : > { %v3421_v22 = vsel %vm912_vm0, %v8290_v17, 0.0 }
 0x7c0   : > { %6325 = vpow2.f32 %v3415_v45  ;;  %3422 = vadd.xlane.f32.xlu2 %v3421_v22  ;;  %v3229_v45 = vpop.f32.mrf.mxu2 }
 0x7c3   : > { %v3405_v42 = vpop.xlane.xlu1 %3404 }
 0x7c4   : > { %v3411_v6 = vsub.f32 %v3393_v43, %v3405_v42  ;;  %v1210_v43 = vsel %vm912_vm0, %v8229_v54, 0.0 }
 0x7c6   : > { %v8294_v50 = vpop.eup %6325  ;;  %v3417_v14 = vmul.f32 1.442695, %v3411_v6 }
 0x7c7   : > { %v3433_v29 = vpack.c.bf16 %v8294_v50, %v8290_v17  ;;  %v3424_v36 = vsel %vm912_vm0, %v8294_v50, 0.0  ;;  %v10453_v17 = vld [vmem:[#allocation21_spill] sm:$0xff] }
 0x7c8   : > { %6327 = vpow2.f32 %v3417_v14  ;;  %3425 = vadd.xlane.f32.xlu1 %v3424_v36  ;;  %v3231_v54 = vpop.f32.mrf.mxu2  ;;  %v717_v50 = vadd.f32 %v10453_v17, %v7192_v25 }
 0x7cb   : > { %v3408_v1 = vpop.xlane.xlu0 %3407 }
 0x7cc   : > { %v3412_v28 = vsub.f32 %v3395_v53, %v3408_v1 }
 0x7ce   : > { %v8300_v57 = vpop.eup %6327  ;;  %v3419_v61 = vmul.f32 1.442695, %v3412_v28 }
 0x7cf   : > { %v3427_v59 = vsel %vm912_vm0, %v8300_v57, 0.0 }
 0x7d0   : > { %6329 = vpow2.f32 %v3419_v61  ;;  %1211 = vadd.xlane.f32.xlu1 %v1210_v43  ;;  %3428 = vadd.xlane.f32.xlu0 %v3427_v59  ;;  %v10440_v61 = vld [vmem:[#allocation58_spill] sm:$0xff] }
 0x7d1   : > { %6331 = vrcp.f32 %v8211_v16  ;;  %v791_v43 = vadd.f32 %v10440_v61, %v7265_v7 }
 0x7d2   : > { %6333 = vrcp.f32 %v8198_v49  ;;  %v10439_v49 = vld [vmem:[#allocation56_spill] sm:$0xff] }
 0x7d3   : > { %6335 = vrcp.f32 %v8200_v18  ;;  %v789_v18 = vadd.f32 %v10439_v49, %v7265_v7  ;;  %v10446_v49 = vld [vmem:[#allocation55_spill] sm:$0xff] }
 0x7d4   : > { %6337 = vrcp.f32 %v8206_v23 }
 0x7d6   : > { %v8306_v8 = vpop.eup %6329 }
 0x7d7   : > { %v3430_v32 = vsel %vm912_vm0, %v8306_v8, 0.0  ;;  %v3434_v53 = vpack.c.bf16 %v8306_v8, %v8300_v57  ;;  %v6332_v22 = vpop.eup %6331  ;;  %v1245_v8 = vpop.f32.mrf.mxu3 }
 0x7d8   : > { %3431 = vadd.xlane.f32.xlu2 %v3430_v32  ;;  %v3241_v42 = vmul.f32 %v6332_v22, %v3231_v54  ;;  %v6334_v6 = vpop.eup %6333  ;;  %v8325_v32 = vpack.c.bf16 %v791_v43, %v789_v18  ;;  %v10442_v22 = vld [vmem:[#allocation20_spill] sm:$0xff]  ;;  %v786_v18 = vadd.f32 %v10446_v49, %v7265_v7 }
 0x7d9   : > { %v3240_v14 = vmul.f32 %v6334_v6, %v3229_v45  ;;  %v6336_v36 = vpop.eup %6335  ;;  %v1219_v45 = vsel %vm912_vm0, %v8261_v10, 0.0  ;;  %v10445_v10 = vld [vmem:[#allocation53_spill] sm:$0xff] }
 0x7da   : > { %v3239_v1 = vmul.f32 %v6336_v36, %v3226_v33  ;;  %v6338_v28 = vpop.eup %6337  ;;  %v1213_v33 = vsel %vm912_vm0, %v8227_v62, 0.0  ;;  %v10444_v62 = vld [vmem:[#allocation24_spill] sm:$0xff] }
 0x7db   : > { %v6021_v16 = vpack.i.bf16 %v3241_v42, %v3240_v14  ;;  %v3238_v59 = vmul.f32 %v6338_v28, %v3224_v46  ;;  %v10441_v46 = vld [vmem:[#allocation18_spill] sm:$0xff]  ;;  %v697_v42 = vadd.f32 %v10442_v22, %v7192_v25  ;;  %v784_v28 = vadd.f32 %v10445_v10, %v7265_v7 }
 0x7dc   : > { %v695_v54 = vadd.f32 %v10441_v46, %v7192_v25  ;;  %v10443_v14 = vld [vmem:[#allocation22_spill] sm:$0xff] }
 0x7dd   : > { %v6016_v23 = vpack.i.bf16 %v3239_v1, %v3238_v59  ;;  %v700_v36 = vadd.f32 %v10443_v14, %v7192_v25  ;;  %v702_v1 = vadd.f32 %v10444_v62, %v7192_v25  ;;  %v8354_v61 = vpack.c.bf16 %v786_v18, %v784_v28  ;;  %v10447_v59 = vld [vmem:[#allocation17_spill] sm:$0xff] }
 0x7de   : > { %v8338_v6 = vpack.c.bf16 %v697_v42, %v695_v54  ;;  %v10449_v42 = vld [vmem:[#allocation27_spill] sm:$0xff] }
 0x7df   : > { %v705_v14 = vadd.f32 %v10449_v42, %v7192_v25 }
 0x7e4   : > { %3437 = vrot.lane.b32.xlu0 %v8178_v37, %s6969_s27 }
 0x7e9   : > { %3435 = vrot.lane.b32.xlu1 %v8170_v34, %s6969_s27 }
 0x7ec   : > { %6022 = vrot.lane.b32.xlu0 %v6021_v16, %s6969_s27  ;;  %v8346_v16 = vpack.c.bf16 %v702_v1, %v700_v36  ;;  %v10450_v36 = vld [vmem:[#allocation28_spill] sm:$0xff] }
 0x7ed   : > { %v707_v62 = vadd.f32 %v10450_v36, %v7192_v25 }
 0x7ef   : > { %v8374_v10 = vpack.c.bf16 %v707_v62, %v705_v14 }
 0x7f0   : > { %6017 = vrot.lane.b32.xlu2 %v6016_v23, %s6969_s27  ;;  %v712_v23 = vadd.f32 %v10447_v59, %v7192_v25  ;;  %v10451_v59 = vld [vmem:[#allocation69_spill] sm:$0xff] }
 0x7f1   : > { %3652 = vrot.lane.b32.xlu1 %v8325_v32, %s6970_s8 }
 0x819   : > { %1214 = vadd.xlane.f32.xlu2 %v1213_v33 }
 0x81b   : > { %1220 = vadd.xlane.f32.xlu1 %v1219_v45  ;;  %v10448_v45 = vld [vmem:[#allocation16_spill] sm:$0xff] }
 0x81c   : > { %v710_v46 = vadd.f32 %v10448_v45, %v7192_v25  ;;  %v10452_v45 = vld [vmem:[#allocation70_spill] sm:$0xff] }
 0x81e   : > { %v8366_v54 = vpack.c.bf16 %v712_v23, %v710_v46  ;;  %v804_v23 = vadd.f32 %v10451_v59, %v7265_v7  ;;  %v806_v46 = vadd.f32 %v10452_v45, %v7265_v7 }
 0x820   : > { %v8389_v42 = vpack.c.bf16 %v806_v46, %v804_v23  ;;  %v1247_v23 = vpop.f32.mrf.mxu3 }
 0x828   : > { %v8419_v17 = vpop.f32.mrf.mxu3 }
 0x833   : > { %v3423_v62 = vpop.xlane.xlu2 %3422 }
 0x834   : > { %3644 = vrot.lane.b32.xlu1 %v8338_v6, %s6970_s8 }
 0x83b   : > { %v3426_v43 = vpop.xlane.xlu1 %3425 }
 0x83c   : > { %3646 = vrot.lane.b32.xlu1 %v8346_v16, %s6970_s8 }
 0x843   : > { %v8362_v33 = vpop.xlane.xlu0 %3428  ;;  %v1212_v22 = vpop.xlane.xlu1 %1211 }
 0x844   : > { %3768 = vrot.lane.b32.xlu1 %v8354_v61, %s6971_s14  ;;  %6339 = vrcp.f32 %v1212_v22 }
 0x84a   : > { %v6340_v46 = vpop.eup %6339 }
 0x84b   : > { %v3432_v57 = vpop.xlane.xlu2 %3431 }
 0x84c   : > { %3764 = vrot.lane.b32.xlu1 %v8338_v6, %s6971_s14 }
 0x854   : > { %4168 = vrot.lane.b32.xlu1 %v8366_v54, %s6970_s8 }
 0x856   : > { %v3438_v1 = vpop.permute.xlu0 %3437 }
 0x857   : > { %3453 = vmatpush.bf16.msrb.mxu2 %v3438_v1  ;;  %v10455_v1 = vld [vmem:[#allocation71_spill] sm:$0xff] }
 0x85b   : > { %v3436_v28 = vpop.permute.xlu1 %3435 }
 0x85c   : > { %4286 = vrot.lane.b32.xlu1 %v8374_v10, %s6971_s14  ;;  %3454 = vmatpush.bf16.msrb.mxu2 %v3436_v28  ;;  %v809_v28 = vadd.f32 %v10455_v1, %v7265_v7 }
 0x85f   : > { %5687 = vmatmul.msk.bf16.vlgmr.msrb.gmra.mxu2 %vm912_vm0, %v3433_v29  ;;  %v10454_v29 = vld [vmem:[#allocation19_spill] sm:$0xff] }
 0x860   : > { %v715_v14 = vadd.f32 %v10454_v29, %v7192_v25  ;;  %v1259_v29 = vmul.f32 %v6340_v46, %v1245_v8 }
 0x862   : > { %v8401_v36 = vpack.c.bf16 %v717_v50, %v715_v14 }
 0x863   : > { %v3653_v49 = vpop.permute.xlu1 %3652 }
 0x864   : > { %v3664_v18 = vsel %vm912_vm0, %v3653_v49, 0  ;;  %4288 = vrot.lane.b32.xlu1 %v8366_v54, %s6971_s14  ;;  %v10456_v49 = vld [vmem:[#allocation72_spill] sm:$0xff] }
 0x865   : > { %3672 = vmatpush.bf16.xpose.msra.mxu1 %v3664_v18  ;;  %v811_v18 = vadd.f32 %v10456_v49, %v7265_v7 }
 0x867   : > { %v8409_v59 = vpack.c.bf16 %v811_v18, %v809_v28  ;;  %v8422_v28 = vpop.f32.mrf.mxu3 }
 0x86c   : > { %4694 = vrot.lane.b32.xlu1 %v8389_v42, %s6970_s8 }
 0x86f   : > { %5688 = vmatmul.msk.bf16.gmra.mxu2 %vm912_vm0, %v3434_v53  ;;  %v8413_v53 = vpop.permute.xlu2 %6017  ;;  %v8424_v49 = vpop.f32.mrf.mxu3 }
 0x870   : > { %10457 = vst [vmem:[#allocation37_spill] sm:$0xff] %v8413_v53 }
 0x874   : > { %4688 = vrot.lane.b32.xlu1 %v8401_v36, %s6970_s8 }
 0x877   : > { %v8426_v18 = vpop.f32.mrf.mxu3 }
 0x87c   : > { %4814 = vrot.lane.b32.xlu1 %v8409_v59, %s6971_s14 }
 0x87f   : > { %v1302_v22 = vpop.f32.mrf.mxu3 }
 0x880   : > { %v8429_v31 = vadd.f32 %v8282_v5, %v1302_v22 }
 0x884   : > { %4930 = vrot.lane.b32.xlu1 %v8409_v59, %s6969_s27 }
 0x88c   : > { %4928 = vrot.lane.b32.xlu1 %v8389_v42, %s6969_s27  ;;  %v1215_v45 = vpop.xlane.xlu2 %1214 }
 0x88d   : > { %6341 = vrcp.f32 %v1215_v45  ;;  %v1313_v45 = vsel %vm912_vm0, %v8429_v31, -inf }
 0x88e   : > { %6343 = vrcp.f32 %v3423_v62 }
 0x88f   : > { %6345 = vrcp.f32 %v3426_v43 }
 0x890   : > { %6347 = vrcp.f32 %v8362_v33  ;;  %v10458_v33 = vld [vmem:[#allocation26_spill] sm:$0xff] }
 0x891   : > { %6349 = vrcp.f32 %v3432_v57  ;;  %v722_v57 = vadd.f32 %v10458_v33, %v7192_v25  ;;  %v1221_v33 = vpop.xlane.xlu1 %1220 }
 0x892   : > { %6351 = vrcp.f32 %v1221_v33 }
 0x893   : > { %v6342_v50 = vpop.eup %6341 }
 0x894   : > { %v1260_v14 = vmul.f32 %v6342_v50, %v1247_v23  ;;  %v6344_v23 = vpop.eup %6343 }
 0x895   : > { %v6346_v46 = vpop.eup %6345 }
 0x896   : > { %v6036_v1 = vpack.i.bf16 %v1260_v14, %v1259_v29  ;;  %v6348_v22 = vpop.eup %6347 }
 0x898   : > { %6037 = vrot.lane.b32.xlu1 %v6036_v1, %s6971_s14 }
 0x8c2   : > { %1314 = vmax.xlane.f32.xlu1 %v1313_v45  ;;  %v6350_v45 = vpop.eup %6349 }
 0x8db   : > { %4924 = vrot.lane.b32.xlu1 %v8401_v36, %s6969_s27 }
 0x8e2   : > { %v3456_v8 = vpop.f32.mrf.mxu2 }
 0x8e3   : > { %v3470_v29 = vmul.f32 %v6344_v23, %v3456_v8  ;;  %v10459_v8 = vld [vmem:[#allocation23_spill] sm:$0xff] }
 0x8e4   : > { %v720_v23 = vadd.f32 %v10459_v8, %v7192_v25  ;;  %v10460_v25 = vld [vmem:[#allocation65_spill] sm:$0xff] }
 0x8ea   : > { %v3458_v50 = vpop.f32.mrf.mxu2 }
 0x8eb   : > { %v3471_v14 = vmul.f32 %v6346_v46, %v3458_v50  ;;  %v8448_v46 = vpack.c.bf16 %v722_v57, %v720_v23  ;;  %v3645_v23 = vpop.permute.xlu1 %3644 }
 0x8ed   : > { %v6026_v1 = vpack.i.bf16 %v3471_v14, %v3470_v29  ;;  %v8472_v29 = vpop.permute.xlu0 %6022 }
 0x8ee   : > { %10462 = vst [vmem:[#allocation34_spill] sm:$0xff] %v8472_v29 }
 0x8ef   : > { %6027 = vrot.lane.b32.xlu0 %v6026_v1, %s6970_s8  ;;  %v10463_v1 = vld [vmem:[#allocation61_spill] sm:$0xff] }
 0x8f2   : > { %v3461_v5 = vpop.f32.mrf.mxu2 }
 0x8f3   : > { %v3472_v62 = vmul.f32 %v6348_v22, %v3461_v5  ;;  %v794_v5 = vadd.f32 %v10463_v1, %v7265_v7  ;;  %v10464_v22 = vld [vmem:[#allocation63_spill] sm:$0xff] }
 0x8f7   : > { %3650 = vrot.lane.b32.xlu0 %v8354_v61, %s6970_s8 }
 0x8fa   : > { %v3463_v44 = vpop.f32.mrf.mxu2 }
 0x8fb   : > { %v3473_v43 = vmul.f32 %v6350_v45, %v3463_v44  ;;  %v1216_v44 = vsel %vm912_vm0, %v8259_v38, 0.0  ;;  %v799_v38 = vadd.f32 %v10460_v25, %v7265_v7  ;;  %v796_v45 = vadd.f32 %v10464_v22, %v7265_v7  ;;  %v6352_v25 = vpop.eup %6351 }
 0x8fd   : > { %v6031_v53 = vpack.i.bf16 %v3473_v43, %v3472_v62  ;;  %v8484_v43 = vpack.c.bf16 %v796_v45, %v794_v5 }
 0x8ff   : > { %6032 = vrot.lane.b32.xlu2 %v6031_v53, %s6970_s8  ;;  %v10461_v53 = vld [vmem:[#allocation67_spill] sm:$0xff] }
 0x900   : > { %v801_v50 = vadd.f32 %v10461_v53, %v7265_v7  ;;  %v3647_v7 = vpop.permute.xlu1 %3646  ;;  %v1262_v53 = vmul.f32 %v6352_v25, %v8422_v28  ;;  %v8519_v28 = vadd.f32 %v8278_v27, %v8426_v18 }
 0x902   : > { %v8474_v14 = vpack.c.bf16 %v801_v50, %v799_v38 }
 0x907   : > { %3882 = vrot.lane.b32.xlu2 %v8346_v16, %s6969_s27 }
 0x90f   : > { %4404 = vrot.lane.b32.xlu2 %v8366_v54, %s6969_s27 }
 0x917   : > { %4690 = vrot.lane.b32.xlu2 %v8448_v46, %s6970_s8 }
 0x91f   : > { %4812 = vrot.lane.b32.xlu2 %v8389_v42, %s6971_s14 }
 0x921   : > { %1217 = vadd.xlane.f32.xlu0 %v1216_v44 }
 0x927   : > { %4808 = vrot.lane.b32.xlu2 %v8401_v36, %s6971_s14 }
 0x935   : > { %3770 = vrot.lane.b32.xlu0 %v8325_v32, %s6971_s14 }
 0x93d   : > { %3886 = vrot.lane.b32.xlu0 %v8325_v32, %s6969_s27 }
 0x945   : > { %3884 = vrot.lane.b32.xlu0 %v8354_v61, %s6969_s27 }
 0x94d   : > { %3880 = vrot.lane.b32.xlu0 %v8338_v6, %s6969_s27 }
 0x955   : > { %3766 = vrot.lane.b32.xlu0 %v8346_v16, %s6971_s14 }
 0x95d   : > { %4174 = vrot.lane.b32.xlu0 %v8474_v14, %s6970_s8 }
 0x961   : > { %v8482_v62 = vpop.permute.xlu0 %6027 }
 0x962   : > { %10465 = vst [vmem:[#allocation33_spill] sm:$0xff] %v8482_v62 }
 0x965   : > { %4172 = vrot.lane.b32.xlu0 %v8484_v43, %s6970_s8 }
 0x969   : > { %v3651_v57 = vpop.permute.xlu0 %3650 }
 0x96a   : > { %v3661_v8 = vsel %vm912_vm0, %v3651_v57, 0 }
 0x96b   : > { %3673 = vmatpush.bf16.xpose.msra.mxu1 %v3661_v8 }
 0x96d   : > { %4166 = vrot.lane.b32.xlu0 %v8374_v10, %s6970_s8 }
 0x972   : > { %5693 = vmatmul.msk.bf16.vlgmr.msra.gmra.mxu1 %vm912_vm0, %v3645_v23  ;;  %v8521_v23 = vpop.permute.xlu1 %3768 }
 0x975   : > { %4292 = vrot.lane.b32.xlu0 %v8474_v14, %s6971_s14 }
 0x97d   : > { %4408 = vrot.lane.b32.xlu0 %v8474_v14, %s6969_s27 }
 0x982   : > { %5694 = vmatmul.msk.bf16.gmra.mxu1 %vm912_vm0, %v3647_v7  ;;  %v8523_v7 = vpop.permute.xlu2 %6032 }
 0x983   : > { %10466 = vst [vmem:[#allocation40_spill] sm:$0xff] %v8523_v7  ;;  %v1304_v7 = vpop.f32.mrf.mxu3 }
 0x984   : > { %v8556_v62 = vadd.f32 %v8286_v2, %v1304_v7  ;;  %v6705_v7 = vld [vmem:[#allocation8 + $0x28] sm:$0xff] }
 0x985   : > { %4290 = vrot.lane.b32.xlu0 %v8484_v43, %s6971_s14 }
 0x98d   : > { %4406 = vrot.lane.b32.xlu0 %v8484_v43, %s6969_s27 }
 0x994   : > { %v1218_v44 = vpop.xlane.xlu0 %1217 }
 0x995   : > { %6353 = vrcp.f32 %v1218_v44  ;;  %4402 = vrot.lane.b32.xlu0 %v8374_v10, %s6969_s27 }
 0x99b   : > { %v6354_v38 = vpop.eup %6353 }
 0x99c   : > { %v1261_v50 = vmul.f32 %v6354_v38, %v8419_v17  ;;  %v8515_v17 = vadd.f32 %v8274_v41, %v8424_v49  ;;  %v1310_v38 = vsel %vm912_vm0, %v8519_v28, -inf  ;;  %v8531_v41 = vpop.permute.xlu1 %3764  ;;  %v3883_v49 = vpop.permute.xlu2 %3882 }
 0x99d   : > { %4696 = vrot.lane.b32.xlu0 %v8409_v59, %s6970_s8 }
 0x99e   : > { %v6041_v1 = vpack.i.bf16 %v1262_v53, %v1261_v50  ;;  %v1307_v44 = vsel %vm912_vm0, %v8515_v17, -inf }
 0x9a0   : > { %6042 = vrot.lane.b32.xlu2 %v6041_v1, %s6971_s14 }
 0x9a4   : > { %v4169_v50 = vpop.permute.xlu1 %4168 }
 0x9a7   : > { %v8508_v5 = vpop.permute.xlu0 %3770 }
 0x9af   : > { %v3887_v22 = vpop.permute.xlu0 %3886 }
 0x9b0   : > { %v3898_v45 = vsel %vm912_vm0, %v3887_v22, 0 }
 0x9b1   : > { %3906 = vmatpush.bf16.xpose.msrb.mxu1 %v3898_v45  ;;  %v8541_v45 = vpop.permute.xlu1 %4286 }
 0x9b7   : > { %v3885_v33 = vpop.permute.xlu0 %3884 }
 0x9b8   : > { %v3895_v57 = vsel %vm912_vm0, %v3885_v33, 0 }
 0x9b9   : > { %3907 = vmatpush.bf16.xpose.msrb.mxu1 %v3895_v57  ;;  %v8545_v57 = vpop.permute.xlu1 %4288 }
 0x9bf   : > { %v3881_v8 = vpop.permute.xlu0 %3880 }
 0x9c0   : > { %5701 = vmatmul.msk.bf16.vlgmr.msrb.gmra.mxu1 %vm912_vm0, %v3881_v8 }
 0x9c7   : > { %1308 = vmax.xlane.f32.xlu0 %v1307_v44  ;;  %v8527_v25 = vpop.permute.xlu0 %3766 }
 0x9c9   : > { %1311 = vmax.xlane.f32.xlu2 %v1310_v38  ;;  %v6703_v38 = vld [vmem:[#allocation8 + $0x20] sm:$0xff] }
 0x9cf   : > { %v4175_v53 = vpop.permute.xlu0 %4174 }
 0x9d0   : > { %v4186_v27 = vsel %vm912_vm0, %v4175_v53, 0  ;;  %5702 = vmatmul.msk.bf16.gmra.mxu1 %vm912_vm0, %v3883_v49 }
 0x9d1   : > { %4194 = vmatpush.bf16.xpose.msra.mxu1 %v4186_v27 }
 0x9d7   : > { %v4173_v18 = vpop.permute.xlu0 %4172 }
 0x9d8   : > { %v4183_v1 = vsel %vm912_vm0, %v4173_v18, 0  ;;  %v4695_v18 = vpop.permute.xlu1 %4694 }
 0x9d9   : > { %4195 = vmatpush.bf16.xpose.msra.mxu1 %v4183_v1 }
 0x9db   : > { %4810 = vrot.lane.b32.xlu0 %v8448_v46, %s6971_s14 }
 0x9df   : > { %v4167_v22 = vpop.permute.xlu0 %4166 }
 0x9e0   : > { %5709 = vmatmul.msk.bf16.vlgmr.msra.gmra.mxu1 %vm912_vm0, %v4167_v22 }
 0x9e1   : > { %4926 = vrot.lane.b32.xlu2 %v8448_v46, %s6969_s27 }
 0x9e7   : > { %v8543_v33 = vpop.permute.xlu0 %4292 }
 0x9ef   : > { %v3675_v8 = vpop.f32.mrf.mxu1  ;;  %v4409_v44 = vpop.permute.xlu0 %4408 }
 0x9f0   : > { %v8547_v49 = vadd.f32 %v6703_v38, %v3675_v8  ;;  %v4420_v53 = vsel %vm912_vm0, %v4409_v44, 0  ;;  %5710 = vmatmul.msk.bf16.gmra.mxu1 %vm912_vm0, %v4169_v50  ;;  %v4689_v8 = vpop.permute.xlu1 %4688  ;;  %v1316_v50 = vsel %vm912_vm0, %v8556_v62, -inf }
 0x9f1   : > { %4428 = vmatpush.bf16.xpose.msrb.mxu1 %v4420_v53  ;;  %v6704_v53 = vld [vmem:[#allocation8 + $0x30] sm:$0xff] }
 0x9f2   : > { %v3685_v27 = vsel %vm912_vm0, %v8547_v49, -inf }
 0x9f3   : > { %3686 = vmax.xlane.f32.xlu1 %v3685_v27  ;;  %v10467_v27 = vld [vmem:[#allocation83_spill] sm:$0xff] }
 0x9f4   : > { %v878_v30 = vadd.f32 %v10467_v27, %v7256_v0 }
 0x9f7   : > { %v8553_v1 = vpop.permute.xlu0 %4290  ;;  %v3677_v22 = vpop.f32.mrf.mxu1 }
 0x9f8   : > { %v8567_v26 = vadd.f32 %v6705_v7, %v3677_v22  ;;  %v10468_v7 = vld [vmem:[#allocation81_spill] sm:$0xff] }
 0x9fa   : > { %v3688_v12 = vsel %vm912_vm0, %v8567_v26, -inf }
 0x9ff   : > { %v4407_v29 = vpop.permute.xlu0 %4406  ;;  %v3680_v44 = vpop.f32.mrf.mxu1 }
 0xa00   : > { %v4417_v38 = vsel %vm912_vm0, %v4407_v29, 0  ;;  %v8561_v60 = vadd.f32 %v6704_v53, %v3680_v44  ;;  %v8574_v44 = vpop.permute.xlu1 %4814 }
 0xa01   : > { %4429 = vmatpush.bf16.xpose.msrb.mxu1 %v4417_v38  ;;  %v8572_v38 = vpack.c.bf16 %v880_v56, %v878_v30  ;;  %v4705_v30 = vsel %vm912_vm0, %v4695_v18, 0 }
 0xa02   : > { %v3691_v29 = vsel %vm912_vm0, %v8561_v60, -inf }
 0xa05   : > { %1317 = vmax.xlane.f32.xlu0 %v1316_v50  ;;  %v4405_v50 = vpop.permute.xlu2 %4404 }
 0xa07   : > { %v4403_v2 = vpop.permute.xlu0 %4402 }
 0xa08   : > { %5717 = vmatmul.msk.bf16.vlgmr.msrb.gmra.mxu1 %vm912_vm0, %v4403_v2  ;;  %v4931_v27 = vpop.permute.xlu1 %4930 }
 0xa09   : > { %v4942_v56 = vsel %vm912_vm0, %v4931_v27, 0 }
 0xa0a   : > { %3692 = vmax.xlane.f32.xlu2 %v3691_v29  ;;  %v873_v29 = vadd.f32 %v10468_v7, %v7256_v0 }
 0xa0c   : > { %3727 = vrot.lane.b32.xlu1 %v8572_v38, %s6970_s8 }
 0xa0d   : > { %3689 = vmax.xlane.f32.xlu0 %v3688_v12  ;;  %v4691_v2 = vpop.permute.xlu2 %4690  ;;  %v10469_v12 = vld [vmem:[#allocation82_spill] sm:$0xff] }
 0xa0e   : > { %v875_v40 = vadd.f32 %v10469_v12, %v7256_v0 }
 0xa0f   : > { %v4697_v22 = vpop.permute.xlu0 %4696 }
 0xa10   : > { %v4708_v53 = vsel %vm912_vm0, %v4697_v22, 0  ;;  %v4929_v15 = vpop.permute.xlu1 %4928  ;;  %v8588_v20 = vpack.c.bf16 %v875_v40, %v873_v29 }
 0xa11   : > { %4716 = vmatpush.bf16.xpose.msra.mxu1 %v4708_v53 }
 0xa15   : > { %v8593_v22 = vpop.permute.xlu2 %4812 }
 0xa18   : > { %5718 = vmatmul.msk.bf16.gmra.mxu1 %vm912_vm0, %v4405_v50  ;;  %v4939_v50 = vsel %vm912_vm0, %v4929_v15, 0  ;;  %v8598_v53 = vpop.permute.xlu1 %6037 }
 0xa19   : > { %4717 = vmatpush.bf16.xpose.msra.mxu1 %v4705_v30  ;;  %10470 = vst [vmem:[#allocation56_spill] sm:$0xff] %v8598_v53 }
 0xa1d   : > { %v8596_v18 = vpop.permute.xlu2 %4808 }
 0xa20   : > { %v1315_v30 = vpop.xlane.xlu1 %1314 }
 0xa21   : > { %4950 = vmatpush.bf16.xpose.msrb.mxu1 %v4942_v56  ;;  %3725 = vrot.lane.b32.xlu0 %v8588_v20, %s6970_s8  ;;  %v1321_v40 = vsub.f32 %v8429_v31, %v1315_v30  ;;  %v10472_v30 = vld [vmem:[#allocation50_spill] sm:$0xff] }
 0xa23   : > { %v1327_v15 = vmul.f32 1.442695, %v1321_v40 }
 0xa25   : > { %v8600_v27 = vpop.permute.xlu2 %6042 }
 0xa26   : > { %10471 = vst [vmem:[#allocation58_spill] sm:$0xff] %v8600_v27 }
 0xa28   : > { %5725 = vmatmul.msk.bf16.vlgmr.msra.gmra.mxu1 %vm912_vm0, %v4689_v8  ;;  %v4925_v31 = vpop.permute.xlu1 %4924 }
 0xa29   : > { %4951 = vmatpush.bf16.xpose.msrb.mxu1 %v4939_v50 }
 0xa38   : > { %5726 = vmatmul.msk.bf16.gmra.mxu1 %vm912_vm0, %v4691_v2 }
 0xa3a   : > { %v1309_v56 = vpop.xlane.xlu0 %1308 }
 0xa3b   : > { %v1319_v7 = vsub.f32 %v8515_v17, %v1309_v56  ;;  %v10473_v56 = vld [vmem:[#allocation49_spill] sm:$0xff] }
 0xa3c   : > { %v1312_v29 = vpop.xlane.xlu2 %1311 }
 0xa3d   : > { %v1323_v12 = vmul.f32 1.442695, %v1319_v7  ;;  %v1320_v50 = vsub.f32 %v8519_v28, %v1312_v29  ;;  %v1694_v28 = vsel %vm912_vm0, %v10472_v30, 0  ;;  %v1691_v7 = vsel %vm912_vm0, %v10473_v56, 0 }
 0xa3f   : > { %6355 = vpow2.f32 %v1323_v12  ;;  %v1325_v8 = vmul.f32 1.442695, %v1320_v50 }
 0xa40   : > { %6357 = vpow2.f32 %v1327_v15 }
 0xa41   : > { %6359 = vpow2.f32 %v1325_v8 }
 0xa45   : > { %v6356_v53 = vpop.eup %6355 }
 0xa46   : > { %v6358_v63 = vpop.eup %6357  ;;  %v1331_v27 = vsel %vm912_vm0, %v6356_v53, 0.0 }
 0xa47   : > { %v6360_v0 = vpop.eup %6359  ;;  %1332 = vadd.xlane.f32.xlu2 %v1331_v27  ;;  %v1337_v40 = vsel %vm912_vm0, %v6358_v63, 0.0  ;;  %v4927_v27 = vpop.permute.xlu2 %4926 }
 0xa48   : > { %v1343_v2 = vpack.c.bf16 %v6360_v0, %v6356_v53  ;;  %5733 = vmatmul.msk.bf16.vlgmr.msrb.gmra.mxu1 %vm912_vm0, %v4925_v31  ;;  %v1334_v17 = vsel %vm912_vm0, %v6360_v0, 0.0 }
 0xa49   : > { %1335 = vadd.xlane.f32.xlu1 %v1334_v17 }
 0xa4a   : > { %5623 = vmatmul.msk.bf16.vlgmr.msrb.gmra.mxu3 %vm912_vm0, %v1343_v2 }
 0xa4b   : > { %1702 = vmatpush.bf16.xpose.msrb.mxu3 %v1694_v28  ;;  %1338 = vadd.xlane.f32.xlu0 %v1337_v40 }
 0xa4d   : > { %v8616_v53 = vpop.permute.xlu0 %4810 }
 0xa53   : > { %1703 = vmatpush.bf16.xpose.msrb.mxu3 %v1691_v7 }
 0xa58   : > { %5734 = vmatmul.msk.bf16.gmra.mxu1 %vm912_vm0, %v4927_v27 }
 0xa66   : > { %v3687_v0 = vpop.xlane.xlu1 %3686 }
 0xa67   : > { %v3697_v28 = vsub.f32 %v8547_v49, %v3687_v0  ;;  %v10478_v0 = vld [vmem:[#allocation36_spill] sm:$0xff] }
 0xa69   : > { %v3701_v56 = vmul.f32 1.442695, %v3697_v28  ;;  %v10483_v28 = vld [vmem:[#allocation44_spill] sm:$0xff] }
 0xa78   : > { %v1318_v15 = vpop.xlane.xlu0 %1317 }
 0xa79   : > { %v1322_v29 = vsub.f32 %v8556_v62, %v1318_v15  ;;  %v10476_v15 = vld [vmem:[#allocation25_spill] sm:$0xff] }
 0xa7b   : > { %v1329_v12 = vmul.f32 1.442695, %v1322_v29  ;;  %v1981_v29 = vsel %vm912_vm0, %v10478_v0, 0 }
 0xa7d   : > { %6361 = vpow2.f32 %v1329_v12  ;;  %v10479_v12 = vld [vmem:[#allocation29_spill] sm:$0xff] }
 0xa7e   : > { %v3728_v50 = vpop.permute.xlu1 %3727 }
 0xa7f   : > { %3743 = vmatpush.bf16.msra.mxu2 %v3728_v50  ;;  %v10480_v50 = vld [vmem:[#allocation60_spill] sm:$0xff] }
 0xa80   : > { %v3690_v8 = vpop.xlane.xlu0 %3689 }
 0xa81   : > { %v3698_v2 = vsub.f32 %v8567_v26, %v3690_v8  ;;  %v2216_v8 = vsel %vm912_vm0, %v10480_v50, 0 }
 0xa83   : > { %v6362_v31 = vpop.eup %6361  ;;  %v3703_v40 = vmul.f32 1.442695, %v3698_v2  ;;  %v10482_v2 = vld [vmem:[#allocation52_spill] sm:$0xff] }
 0xa84   : > { %v1340_v17 = vsel %vm912_vm0, %v6362_v31, 0.0  ;;  %v1344_v30 = vpack.c.bf16 %v6362_v31, %v6358_v63  ;;  %v10477_v63 = vld [vmem:[#allocation38_spill] sm:$0xff]  ;;  %v10481_v31 = vld [vmem:[#allocation41_spill] sm:$0xff] }
 0xa85   : > { %1341 = vadd.xlane.f32.xlu2 %v1340_v17  ;;  %6363 = vpow2.f32 %v3703_v40  ;;  %v1984_v49 = vsel %vm912_vm0, %v10477_v63, 0  ;;  %v2213_v17 = vsel %vm912_vm0, %v10482_v2, 0 }
 0xa86   : > { %5624 = vmatmul.msk.bf16.gmra.mxu3 %vm912_vm0, %v1344_v30  ;;  %6365 = vpow2.f32 %v3701_v56  ;;  %v8644_v30 = vpop.xlane.xlu2 %3692 }
 0xa8b   : > { %v8623_v62 = vpop.eup %6363 }
 0xa8c   : > { %10474 = vst [vmem:[#allocation18_spill] sm:$0xff] %v8623_v62  ;;  %v8625_v27 = vpop.eup %6365 }
 0xa8d   : > { %10475 = vst [vmem:[#allocation20_spill] sm:$0xff] %v8625_v27  ;;  %v3721_v26 = vpack.c.bf16 %v8623_v62, %v8625_v27 }
 0xa93   : > { %v3726_v7 = vpop.permute.xlu0 %3725 }
 0xa94   : > { %3744 = vmatpush.bf16.msra.mxu2 %v3726_v7 }
 0xa96   : > { %5625 = vmatmul.msk.bf16.vlgmr.msra.gmra.mxu3 %vm912_vm0, %v10476_v15 }
 0xa97   : > { %1992 = vmatpush.bf16.xpose.msra.mxu3 %v1984_v49  ;;  %5695 = vmatmul.msk.bf16.vlgmr.msra.gmra.mxu2 %vm912_vm0, %v3721_v26 }
 0xa9f   : > { %1993 = vmatpush.bf16.xpose.msra.mxu3 %v1981_v29  ;;  %v10484_v29 = vld [vmem:[#allocation31_spill] sm:$0xff] }
 0xaa6   : > { %5626 = vmatmul.msk.bf16.gmra.mxu3 %vm912_vm0, %v10479_v12  ;;  %v10485_v12 = vld [vmem:[#allocation47_spill] sm:$0xff] }
 0xaa7   : > { %v2506_v50 = vsel %vm912_vm0, %v10485_v12, 0 }
 0xab6   : > { %5633 = vmatmul.msk.bf16.vlgmr.msrb.gmra.mxu3 %vm912_vm0, %v10481_v31  ;;  %v10486_v31 = vld [vmem:[#allocation46_spill] sm:$0xff] }
 0xab7   : > { %2224 = vmatpush.bf16.xpose.msrb.mxu3 %v2216_v8  ;;  %v2503_v2 = vsel %vm912_vm0, %v10486_v31, 0 }
 0xaba   : > { %v1333_v40 = vpop.xlane.xlu2 %1332 }
 0xabb   : > { %6367 = vrcp.f32 %v1333_v40 }
 0xabc   : > { %v1336_v56 = vpop.xlane.xlu1 %1335 }
 0xabd   : > { %6369 = vrcp.f32 %v1336_v56  ;;  %v10489_v56 = vld [vmem:[#allocation45_spill] sm:$0xff] }
 0xabf   : > { %2225 = vmatpush.bf16.xpose.msrb.mxu3 %v2213_v17  ;;  %v10487_v17 = vld [vmem:[#allocation32_spill] sm:$0xff] }
 0xac1   : > { %v6368_v26 = vpop.eup %6367 }
 0xac3   : > { %v6370_v15 = vpop.eup %6369 }
 0xac6   : > { %5634 = vmatmul.msk.bf16.gmra.mxu3 %vm912_vm0, %v10483_v28  ;;  %v10488_v28 = vld [vmem:[#allocation62_spill] sm:$0xff] }
 0xac7   : > { %v2738_v40 = vsel %vm912_vm0, %v10488_v28, 0  ;;  %v3028_v28 = vsel %vm912_vm0, %v8011_v13, 0 }
 0xacd   : > { %v1366_v7 = vpop.f32.mrf.mxu3 }
 0xace   : > { %v1380_v49 = vmul.f32 %v6368_v26, %v1366_v7  ;;  %v10490_v7 = vld [vmem:[#allocation66_spill] sm:$0xff] }
 0xacf   : > { %v2735_v26 = vsel %vm912_vm0, %v10490_v7, 0 }
 0xad5   : > { %v1368_v63 = vpop.f32.mrf.mxu3 }
 0xad6   : > { %v1381_v0 = vmul.f32 %v6370_v15, %v1368_v63  ;;  %5641 = vmatmul.msk.bf16.vlgmr.msra.gmra.mxu3 %vm912_vm0, %v10484_v29  ;;  %v10491_v15 = vld [vmem:[#allocation48_spill] sm:$0xff]  ;;  %v1339_v63 = vpop.xlane.xlu0 %1338 }
 0xad7   : > { %2514 = vmatpush.bf16.xpose.msra.mxu3 %v2506_v50  ;;  %6371 = vrcp.f32 %v1339_v63 }
 0xad8   : > { %v6046_v8 = vpack.i.bf16 %v1381_v0, %v1380_v49 }
 0xada   : > { %6047 = vrot.lane.b32.xlu0 %v6046_v8, %s6970_s8 }
 0xadd   : > { %v6372_v29 = vpop.eup %6371 }
 0xadf   : > { %2515 = vmatpush.bf16.xpose.msra.mxu3 %v2503_v2 }
 0xae6   : > { %5642 = vmatmul.msk.bf16.gmra.mxu3 %vm912_vm0, %v10487_v17  ;;  %v10492_v17 = vld [vmem:[#allocation42_spill] sm:$0xff] }
 0xaf6   : > { %5649 = vmatmul.msk.bf16.vlgmr.msrb.gmra.mxu3 %vm912_vm0, %v10489_v56  ;;  %v8670_v56 = vld [vmem:[#allocation8] sm:$0xff] }
 0xaf7   : > { %2746 = vmatpush.bf16.xpose.msrb.mxu3 %v2738_v40 }
 0xaf8   : > { %v1342_v49 = vpop.xlane.xlu2 %1341 }
 0xaf9   : > { %6373 = vrcp.f32 %v1342_v49  ;;  %v8679_v49 = vld [vmem:[#allocation8 + $0x8] sm:$0xff] }
 0xaff   : > { %2747 = vmatpush.bf16.xpose.msrb.mxu3 %v2735_v26  ;;  %v6374_v12 = vpop.eup %6373 }
 0xb06   : > { %5650 = vmatmul.msk.bf16.gmra.mxu3 %vm912_vm0, %v10491_v15  ;;  %v3025_v15 = vsel %vm912_vm0, %v8027_v55, 0 }
 0xb09   : > { %v1371_v0 = vpop.f32.mrf.mxu3 }
 0xb0a   : > { %v1382_v8 = vmul.f32 %v6372_v29, %v1371_v0  ;;  %v10493_v29 = vld [vmem:[#allocation43_spill] sm:$0xff] }
 0xb11   : > { %v1373_v50 = vpop.f32.mrf.mxu3 }
 0xb12   : > { %v1383_v31 = vmul.f32 %v6374_v12, %v1373_v50 }
 0xb14   : > { %v6051_v2 = vpack.i.bf16 %v1383_v31, %v1382_v8  ;;  %v8688_v8 = vld [vmem:[#allocation8 + $0x18] sm:$0xff] }
 0xb16   : > { %5657 = vmatmul.msk.bf16.vlgmr.msra.gmra.mxu3 %vm912_vm0, %v10492_v17  ;;  %6052 = vrot.lane.b32.xlu1 %v6051_v2, %s6970_s8  ;;  %v3260_v2 = vsel %vm912_vm0, %v8234_v47, 0  ;;  %v10494_v17 = vld [vmem:[#allocation59_spill] sm:$0xff]  ;;  %v3257_v47 = vsel %vm912_vm0, %v8238_v51, 0  ;;  %v8724_v51 = vld [vmem:[#allocation8 + $0x50] sm:$0xff] }
 0xb17   : > { %3036 = vmatpush.bf16.xpose.msra.mxu3 %v3028_v28 }
 0xb19   : > { %v1473_v40 = vpop.f32.mrf.mxu3 }
 0xb1a   : > { %v8673_v7 = vadd.f32 %v8670_v56, %v1473_v40  ;;  %v8699_v40 = vld [vmem:[#allocation8 + $0x40] sm:$0xff] }
 0xb1c   : > { %v1483_v26 = vsel %vm912_vm0, %v8673_v7, -inf }
 0xb1d   : > { %1484 = vmax.xlane.f32.xlu2 %v1483_v26 }
 0xb1f   : > { %3037 = vmatpush.bf16.xpose.msra.mxu3 %v3025_v15  ;;  %v8704_v15 = vld [vmem:[#allocation8 + $0x10] sm:$0xff] }
 0xb21   : > { %v1475_v63 = vpop.f32.mrf.mxu3 }
 0xb22   : > { %v8682_v13 = vadd.f32 %v8679_v49, %v1475_v63 }
 0xb24   : > { %v1486_v0 = vsel %vm912_vm0, %v8682_v13, -inf }
 0xb25   : > { %1487 = vmax.xlane.f32.xlu0 %v1486_v0 }
 0xb26   : > { %5658 = vmatmul.msk.bf16.gmra.mxu3 %vm912_vm0, %v10493_v29 }
 0xb29   : > { %v1478_v12 = vpop.f32.mrf.mxu3 }
 0xb2a   : > { %v8707_v63 = vadd.f32 %v8704_v15, %v1478_v12 }
 0xb2c   : > { %v1489_v29 = vsel %vm912_vm0, %v8707_v63, -inf }
 0xb31   : > { %v1480_v50 = vpop.f32.mrf.mxu3 }
 0xb32   : > { %v8691_v55 = vadd.f32 %v8688_v8, %v1480_v50 }
 0xb34   : > { %v1492_v31 = vsel %vm912_vm0, %v8691_v55, -inf }
 0xb35   : > { %1493 = vmax.xlane.f32.xlu2 %v1492_v31  ;;  %v8715_v31 = vld [vmem:[#allocation8 + $0x48] sm:$0xff] }
 0xb36   : > { %5665 = vmatmul.msk.bf16.vlgmr.msrb.gmra.mxu3 %vm912_vm0, %v10494_v17  ;;  %v10495_v17 = vld [vmem:[#allocation57_spill] sm:$0xff] }
 0xb37   : > { %3268 = vmatpush.bf16.xpose.msrb.mxu3 %v3260_v2 }
 0xb39   : > { %v1705_v28 = vpop.f32.mrf.mxu3 }
 0xb3a   : > { %v8702_v26 = vadd.f32 %v8699_v40, %v1705_v28 }
 0xb3c   : > { %v1715_v0 = vsel %vm912_vm0, %v8702_v26, -inf }
 0xb3d   : > { %1716 = vmax.xlane.f32.xlu0 %v1715_v0 }
 0xb3f   : > { %3269 = vmatpush.bf16.xpose.msrb.mxu3 %v3257_v47 }
 0xb40   : > { %1490 = vmax.xlane.f32.xlu1 %v1489_v29 }
 0xb41   : > { %v1707_v50 = vpop.f32.mrf.mxu3 }
 0xb42   : > { %v8718_v2 = vadd.f32 %v8715_v31, %v1707_v50  ;;  %v8731_v50 = vld [vmem:[#allocation8 + $0x58] sm:$0xff] }
 0xb44   : > { %v1718_v12 = vsel %vm912_vm0, %v8718_v2, -inf }
 0xb45   : > { %1719 = vmax.xlane.f32.xlu2 %v1718_v12 }
 0xb46   : > { %5666 = vmatmul.msk.bf16.gmra.mxu3 %vm912_vm0, %v10495_v17  ;;  %v3550_v17 = vsel %vm912_vm0, %v8325_v32, 0 }
 0xb49   : > { %v1710_v28 = vpop.f32.mrf.mxu3 }
 0xb4a   : > { %v8727_v0 = vadd.f32 %v8724_v51, %v1710_v28 }
 0xb4c   : > { %v1721_v47 = vsel %vm912_vm0, %v8727_v0, -inf }
 0xb4d   : > { %1722 = vmax.xlane.f32.xlu1 %v1721_v47 }
 0xb51   : > { %v1712_v29 = vpop.f32.mrf.mxu3 }
 0xb52   : > { %v8734_v27 = vadd.f32 %v8731_v50, %v1712_v29  ;;  %v3547_v29 = vsel %vm912_vm0, %v8354_v61, 0 }
 0xb54   : > { %v1724_v12 = vsel %vm912_vm0, %v8734_v27, -inf }
 0xb55   : > { %1725 = vmax.xlane.f32.xlu0 %v1724_v12 }
 0xb56   : > { %5673 = vmatmul.msk.bf16.vlgmr.msra.gmra.mxu3 %vm912_vm0, %v7949_v35 }
 0xb57   : > { %3558 = vmatpush.bf16.xpose.msra.mxu3 %v3550_v17 }
 0xb59   : > { %v1995_v28 = vpop.f32.mrf.mxu3 }
 0xb5a   : > { %v8743_v47 = vadd.f32 %v8670_v56, %v1995_v28 }
 0xb5c   : > { %v2005_v62 = vsel %vm912_vm0, %v8743_v47, -inf }
 0xb5d   : > { %2006 = vmax.xlane.f32.xlu0 %v2005_v62 }
 0xb5f   : > { %3559 = vmatpush.bf16.xpose.msra.mxu3 %v3547_v29 }
 0xb61   : > { %v1997_v12 = vpop.f32.mrf.mxu3 }
 0xb62   : > { %v8750_v39 = vadd.f32 %v8679_v49, %v1997_v12  ;;  %v3782_v12 = vsel %vm912_vm0, %v8508_v5, 0 }
 0xb64   : > { %v2008_v35 = vsel %vm912_vm0, %v8750_v39, -inf }
 0xb65   : > { %2009 = vmax.xlane.f32.xlu1 %v2008_v35 }
 0xb66   : > { %5674 = vmatmul.msk.bf16.gmra.mxu3 %vm912_vm0, %v7938_v11 }
 0xb69   : > { %v2000_v32 = vpop.f32.mrf.mxu3 }
 0xb6a   : > { %v8757_v17 = vadd.f32 %v8704_v15, %v2000_v32 }
 0xb6c   : > { %v2011_v62 = vsel %vm912_vm0, %v8757_v17, -inf }
 0xb6d   : > { %2012 = vmax.xlane.f32.xlu2 %v2011_v62  ;;  %v3779_v62 = vsel %vm912_vm0, %v8521_v23, 0  ;;  %v8789_v23 = vpop.permute.xlu0 %6047 }
 0xb6e   : > { %10496 = vst [vmem:[#allocation22_spill] sm:$0xff] %v8789_v23 }
 0xb71   : > { %v2002_v61 = vpop.f32.mrf.mxu3 }
 0xb72   : > { %v8762_v28 = vadd.f32 %v8688_v8, %v2002_v61 }
 0xb74   : > { %v2014_v29 = vsel %vm912_vm0, %v8762_v28, -inf }
 0xb75   : > { %2015 = vmax.xlane.f32.xlu0 %v2014_v29 }
 0xb76   : > { %5681 = vmatmul.msk.bf16.vlgmr.msrb.gmra.mxu3 %vm912_vm0, %v8225_v48 }
 0xb77   : > { %3790 = vmatpush.bf16.xpose.msrb.mxu3 %v3782_v12 }
 0xb79   : > { %v2227_v11 = vpop.f32.mrf.mxu3 }
 0xb7a   : > { %v8771_v35 = vadd.f32 %v8699_v40, %v2227_v11 }
 0xb7c   : > { %v2237_v32 = vsel %vm912_vm0, %v8771_v35, -inf }
 0xb7d   : > { %2238 = vmax.xlane.f32.xlu0 %v2237_v32 }
 0xb7f   : > { %3791 = vmatpush.bf16.xpose.msrb.mxu3 %v3779_v62 }
 0xb81   : > { %v2229_v61 = vpop.f32.mrf.mxu3 }
 0xb82   : > { %v8778_v29 = vadd.f32 %v8715_v31, %v2229_v61 }
 0xb84   : > { %v2240_v48 = vsel %vm912_vm0, %v8778_v29, -inf }
 0xb85   : > { %2241 = vmax.xlane.f32.xlu1 %v2240_v48 }
 0xb86   : > { %5682 = vmatmul.msk.bf16.gmra.mxu3 %vm912_vm0, %v8252_v58 }
 0xb89   : > { %v2232_v5 = vpop.f32.mrf.mxu3 }
 0xb8a   : > { %v8785_v12 = vadd.f32 %v8724_v51, %v2232_v5  ;;  %v4072_v5 = vsel %vm912_vm0, %v8474_v14, 0 }
 0xb8c   : > { %v2243_v11 = vsel %vm912_vm0, %v8785_v12, -inf }
 0xb8d   : > { %2244 = vmax.xlane.f32.xlu2 %v2243_v11 }
 0xb90   : > { %v1485_v32 = vpop.xlane.xlu2 %1484 }
 0xb91   : > { %v1495_v62 = vsub.f32 %v8673_v7, %v1485_v32  ;;  %v2234_v61 = vpop.f32.mrf.mxu3 }
 0xb92   : > { %v8793_v19 = vadd.f32 %v8731_v50, %v2234_v61 }
 0xb93   : > { %v1499_v48 = vmul.f32 1.442695, %v1495_v62 }
 0xb94   : > { %v2246_v58 = vsel %vm912_vm0, %v8793_v19, -inf }
 0xb95   : > { %6375 = vpow2.f32 %v1499_v48  ;;  %2247 = vmax.xlane.f32.xlu0 %v2246_v58 }
 0xb96   : > { %5689 = vmatmul.msk.bf16.vlgmr.msra.gmra.mxu3 %vm912_vm0, %v8338_v6  ;;  %v4069_v6 = vsel %vm912_vm0, %v8484_v43, 0  ;;  %v10497_v43 = vld [vmem:[#allocation39_spill] sm:$0xff] }
 0xb97   : > { %4080 = vmatpush.bf16.xpose.msra.mxu3 %v4072_v5 }
 0xb98   : > { %v1488_v11 = vpop.xlane.xlu0 %1487 }
 0xb99   : > { %v1496_v7 = vsub.f32 %v8682_v13, %v1488_v11  ;;  %v2517_v32 = vpop.f32.mrf.mxu3 }
 0xb9a   : > { %v8803_v61 = vadd.f32 %v8670_v56, %v2517_v32 }
 0xb9b   : > { %v6376_v62 = vpop.eup %6375  ;;  %v1501_v23 = vmul.f32 1.442695, %v1496_v7 }
 0xb9c   : > { %v2527_v48 = vsel %vm912_vm0, %v8803_v61, -inf  ;;  %v1507_v58 = vsel %vm912_vm0, %v6376_v62, 0.0 }
 0xb9d   : > { %6377 = vpow2.f32 %v1501_v23  ;;  %2528 = vmax.xlane.f32.xlu2 %v2527_v48  ;;  %1508 = vadd.xlane.f32.xlu0 %v1507_v58 }
 0xb9f   : > { %4081 = vmatpush.bf16.xpose.msra.mxu3 %v4069_v6 }
 0xba1   : > { %v2519_v14 = vpop.f32.mrf.mxu3 }
 0xba2   : > { %v8811_v13 = vadd.f32 %v8679_v49, %v2519_v14  ;;  %v8824_v14 = vpop.permute.xlu1 %6052 }
 0xba3   : > { %v6378_v5 = vpop.eup %6377  ;;  %10498 = vst [vmem:[#allocation24_spill] sm:$0xff] %v8824_v14 }
 0xba4   : > { %v2530_v11 = vsel %vm912_vm0, %v8811_v13, -inf  ;;  %v1510_v7 = vsel %vm912_vm0, %v6378_v5, 0.0  ;;  %v1519_v32 = vpack.c.bf16 %v6378_v5, %v6376_v62  ;;  %v10499_v62 = vld [vmem:[#allocation35_spill] sm:$0xff] }
 0xba5   : > { %2531 = vmax.xlane.f32.xlu0 %v2530_v11  ;;  %1511 = vadd.xlane.f32.xlu1 %v1510_v7 }
 0xba6   : > { %5627 = vmatmul.msk.bf16.vlgmr.msrb.gmra.mxu0 %vm912_vm0, %v1519_v32  ;;  %5690 = vmatmul.msk.bf16.gmra.mxu3 %vm912_vm0, %v8346_v16 }
 0xba7   : > { %2055 = vmatpush.bf16.msrb.mxu0 %v10497_v43  ;;  %v4304_v43 = vsel %vm912_vm0, %v8543_v33, 0 }
 0xba8   : > { %v1494_v23 = vpop.xlane.xlu2 %1493 }
 0xba9   : > { %v1498_v48 = vsub.f32 %v8691_v55, %v1494_v23  ;;  %v2522_v58 = vpop.f32.mrf.mxu3 }
 0xbaa   : > { %v8822_v6 = vadd.f32 %v8704_v15, %v2522_v58 }
 0xbab   : > { %v1505_v9 = vmul.f32 1.442695, %v1498_v48  ;;  %2056 = vmatpush.bf16.msrb.mxu0 %v10499_v62 }
 0xbac   : > { %v2533_v5 = vsel %vm912_vm0, %v8822_v6, -inf }
 0xbad   : > { %6379 = vpow2.f32 %v1505_v9  ;;  %2534 = vmax.xlane.f32.xlu1 %v2533_v5 }
 0xbb1   : > { %v2524_v16 = vpop.f32.mrf.mxu3 }
 0xbb3   : > { %v6380_v11 = vpop.eup %6379  ;;  %v1491_v7 = vpop.xlane.xlu1 %1490 }
 0xbb4   : > { %v1497_v32 = vsub.f32 %v8707_v63, %v1491_v7  ;;  %v1516_v55 = vsel %vm912_vm0, %v6380_v11, 0.0  ;;  %v1717_v63 = vpop.xlane.xlu0 %1716 }
 0xbb5   : > { %1517 = vadd.xlane.f32.xlu0 %v1516_v55 }
 0xbb6   : > { %v1503_v23 = vmul.f32 1.442695, %v1497_v32  ;;  %5697 = vmatmul.msk.bf16.vlgmr.msrb.gmra.mxu3 %vm912_vm0, %v8531_v41  ;;  %v1727_v32 = vsub.f32 %v8702_v26, %v1717_v63  ;;  %v4301_v41 = vsel %vm912_vm0, %v8553_v1, 0 }
 0xbb7   : > { %4312 = vmatpush.bf16.xpose.msrb.mxu3 %v4304_v43 }
 0xbb8   : > { %6381 = vpow2.f32 %v1503_v23  ;;  %v1720_v48 = vpop.xlane.xlu2 %1719 }
 0xbb9   : > { %v1728_v9 = vsub.f32 %v8718_v2, %v1720_v48  ;;  %v2749_v58 = vpop.f32.mrf.mxu3 }
 0xbba   : > { %v8837_v62 = vadd.f32 %v8699_v40, %v2749_v58 }
 0xbbb   : > { %v1733_v5 = vmul.f32 1.442695, %v1728_v9  ;;  %v1731_v9 = vmul.f32 1.442695, %v1727_v32 }
 0xbbc   : > { %v2759_v7 = vsel %vm912_vm0, %v8837_v62, -inf }
 0xbbd   : > { %6383 = vpow2.f32 %v1733_v5  ;;  %2760 = vmax.xlane.f32.xlu0 %v2759_v7  ;;  %v8848_v5 = vadd.f32 %v8688_v8, %v2524_v16 }
 0xbbe   : > { %v6382_v33 = vpop.eup %6381 }
 0xbbf   : > { %4313 = vmatpush.bf16.xpose.msrb.mxu3 %v4301_v41  ;;  %v1513_v2 = vsel %vm912_vm0, %v6382_v33, 0.0  ;;  %v1520_v55 = vpack.c.bf16 %v6380_v11, %v6382_v33  ;;  %v2536_v1 = vsel %vm912_vm0, %v8848_v5, -inf }
 0xbc0   : > { %1514 = vadd.xlane.f32.xlu2 %v1513_v2  ;;  %v1723_v43 = vpop.xlane.xlu1 %1722 }
 0xbc1   : > { %v1729_v23 = vsub.f32 %v8727_v0, %v1723_v43  ;;  %5628 = vmatmul.msk.bf16.gmra.mxu0 %vm912_vm0, %v1520_v55  ;;  %v2751_v48 = vpop.f32.mrf.mxu3 }
 0xbc3   : > { %v6384_v58 = vpop.eup %6383  ;;  %v1735_v26 = vmul.f32 1.442695, %v1729_v23 }
 0xbc4   : > { %v1742_v63 = vsel %vm912_vm0, %v6384_v58, 0.0 }
 0xbc5   : > { %6385 = vpow2.f32 %v1735_v26  ;;  %1743 = vadd.xlane.f32.xlu1 %v1742_v63  ;;  %v10500_v63 = vld [vmem:[#allocation54_spill] sm:$0xff] }
 0xbc6   : > { %6387 = vpow2.f32 %v1731_v9  ;;  %5698 = vmatmul.msk.bf16.gmra.mxu3 %vm912_vm0, %v8527_v25 }
 0xbc8   : > { %2537 = vmax.xlane.f32.xlu2 %v2536_v1  ;;  %v1726_v0 = vpop.xlane.xlu0 %1725 }
 0xbc9   : > { %v2754_v11 = vpop.f32.mrf.mxu3  ;;  %v1730_v25 = vsub.f32 %v8734_v27, %v1726_v0  ;;  %v4594_v0 = vsel %vm912_vm0, %v8409_v59, 0 }
 0xbca   : > { %v8856_v7 = vadd.f32 %v8724_v51, %v2754_v11  ;;  %v8870_v11 = vadd.f32 %v8715_v31, %v2751_v48 }
 0xbcb   : > { %v6386_v16 = vpop.eup %6385  ;;  %v1737_v26 = vmul.f32 1.442695, %v1730_v25 }
 0xbcc   : > { %v6388_v33 = vpop.eup %6387  ;;  %v1745_v32 = vsel %vm912_vm0, %v6386_v16, 0.0  ;;  %v2765_v41 = vsel %vm912_vm0, %v8856_v7, -inf  ;;  %v2762_v48 = vsel %vm912_vm0, %v8870_v11, -inf }
 0xbcd   : > { %1746 = vadd.xlane.f32.xlu0 %v1745_v32  ;;  %2766 = vmax.xlane.f32.xlu1 %v2765_v41  ;;  %v1751_v2 = vpack.c.bf16 %v6384_v58, %v6388_v33  ;;  %v1739_v55 = vsel %vm912_vm0, %v6388_v33, 0.0 }
 0xbd0   : > { %1740 = vadd.xlane.f32.xlu2 %v1739_v55  ;;  %v2007_v43 = vpop.xlane.xlu0 %2006 }
 0xbd1   : > { %v2017_v23 = vsub.f32 %v8743_v47, %v2007_v43  ;;  %5635 = vmatmul.msk.bf16.vlgmr.msra.gmra.mxu0 %vm912_vm0, %v1751_v2  ;;  %v2756_v9 = vpop.f32.mrf.mxu3  ;;  %v10501_v47 = vld [vmem:[#allocation51_spill] sm:$0xff] }
 0xbd2   : > { %2293 = vmatpush.bf16.msra.mxu0 %v10500_v63  ;;  %v8867_v1 = vadd.f32 %v8731_v50, %v2756_v9 }
 0xbd3   : > { %v2021_v27 = vmul.f32 1.442695, %v2017_v23  ;;  %v4591_v23 = vsel %vm912_vm0, %v8389_v42, 0 }
 0xbd4   : > { %v2768_v58 = vsel %vm912_vm0, %v8867_v1, -inf }
 0xbd5   : > { %6389 = vpow2.f32 %v2021_v27  ;;  %2769 = vmax.xlane.f32.xlu0 %v2768_v58 }
 0xbd6   : > { %6391 = vpow2.f32 %v1737_v26  ;;  %2294 = vmatpush.bf16.msra.mxu0 %v10501_v47  ;;  %5705 = vmatmul.msk.bf16.vlgmr.msra.gmra.mxu3 %vm912_vm0, %v8374_v10 }
 0xbd7   : > { %4602 = vmatpush.bf16.xpose.msra.mxu3 %v4594_v0 }
 0xbd8   : > { %v2010_v33 = vpop.xlane.xlu1 %2009  ;;  %2763 = vmax.xlane.f32.xlu2 %v2762_v48 }
 0xbd9   : > { %v2018_v32 = vsub.f32 %v8750_v39, %v2010_v33  ;;  %v3039_v41 = vpop.f32.mrf.mxu3 }
 0xbda   : > { %v8883_v25 = vadd.f32 %v8670_v56, %v3039_v41 }
 0xbdb   : > { %v6390_v2 = vpop.eup %6389  ;;  %v2023_v55 = vmul.f32 1.442695, %v2018_v32 }
 0xbdc   : > { %v6392_v43 = vpop.eup %6391  ;;  %v3049_v10 = vsel %vm912_vm0, %v8883_v25, -inf  ;;  %v2029_v59 = vsel %vm912_vm0, %v6390_v2, 0.0 }
 0xbdd   : > { %3050 = vmax.xlane.f32.xlu0 %v3049_v10  ;;  %2030 = vadd.xlane.f32.xlu1 %v2029_v59  ;;  %6393 = vpow2.f32 %v2023_v55  ;;  %v1748_v39 = vsel %vm912_vm0, %v6392_v43, 0.0  ;;  %v1752_v9 = vpack.c.bf16 %v6392_v43, %v6386_v16 }
 0xbdf   : > { %4603 = vmatpush.bf16.xpose.msra.mxu3 %v4591_v23 }
 0xbe0   : > { %v2013_v26 = vpop.xlane.xlu2 %2012  ;;  %1749 = vadd.xlane.f32.xlu2 %v1748_v39 }
 0xbe1   : > { %v2019_v63 = vsub.f32 %v8757_v17, %v2013_v26  ;;  %5636 = vmatmul.msk.bf16.gmra.mxu0 %vm912_vm0, %v1752_v9  ;;  %v3041_v27 = vpop.f32.mrf.mxu3 }
 0xbe2   : > { %v8894_v58 = vadd.f32 %v8679_v49, %v3041_v27 }
 0xbe3   : > { %v2025_v47 = vmul.f32 1.442695, %v2019_v63  ;;  %v6394_v0 = vpop.eup %6393 }
 0xbe4   : > { %v3052_v48 = vsel %vm912_vm0, %v8894_v58, -inf  ;;  %v2032_v42 = vsel %vm912_vm0, %v6394_v0, 0.0  ;;  %v2041_v10 = vpack.c.bf16 %v6394_v0, %v6390_v2 }
 0xbe5   : > { %6395 = vpow2.f32 %v2025_v47  ;;  %3053 = vmax.xlane.f32.xlu1 %v3052_v48 }
 0xbe6   : > { %5706 = vmatmul.msk.bf16.gmra.mxu3 %vm912_vm0, %v8366_v54 }
 0xbe8   : > { %2033 = vadd.xlane.f32.xlu2 %v2032_v42  ;;  %v2016_v17 = vpop.xlane.xlu0 %2015 }
 0xbe9   : > { %v2020_v16 = vsub.f32 %v8762_v28, %v2016_v17  ;;  %v3044_v33 = vpop.f32.mrf.mxu3 }
 0xbea   : > { %v8903_v55 = vadd.f32 %v8704_v15, %v3044_v33 }
 0xbeb   : > { %v6396_v32 = vpop.eup %6395  ;;  %v2027_v41 = vmul.f32 1.442695, %v2020_v16 }
 0xbec   : > { %v2035_v43 = vsel %vm912_vm0, %v6396_v32, 0.0  ;;  %v3055_v54 = vsel %vm912_vm0, %v8903_v55, -inf }
 0xbed   : > { %6397 = vpow2.f32 %v2027_v41  ;;  %2036 = vadd.xlane.f32.xlu0 %v2035_v43 }
 0xbf0   : > { %3056 = vmax.xlane.f32.xlu2 %v3055_v54  ;;  %v2239_v59 = vpop.xlane.xlu0 %2238 }
 0xbf1   : > { %v2249_v23 = vsub.f32 %v8771_v35, %v2239_v59  ;;  %5643 = vmatmul.msk.bf16.vlgmr.msrb.gmra.mxu0 %vm912_vm0, %v2041_v10  ;;  %v3046_v28 = vpop.f32.mrf.mxu3  ;;  %v4826_v35 = vsel %vm912_vm0, %v8574_v44, 0 }
 0xbf2   : > { %2577 = vmatpush.bf16.msrb.mxu0 %v7476_v24  ;;  %v8912_v39 = vadd.f32 %v8688_v8, %v3046_v28 }
 0xbf3   : > { %v6398_v9 = vpop.eup %6397  ;;  %v2253_v26 = vmul.f32 1.442695, %v2249_v23 }
 0xbf4   : > { %v3058_v2 = vsel %vm912_vm0, %v8912_v39, -inf  ;;  %v2038_v63 = vsel %vm912_vm0, %v6398_v9, 0.0 }
 0xbf5   : > { %6399 = vpow2.f32 %v2253_v26  ;;  %3059 = vmax.xlane.f32.xlu0 %v3058_v2  ;;  %2039 = vadd.xlane.f32.xlu1 %v2038_v63 }
 0xbf6   : > { %2578 = vmatpush.bf16.msrb.mxu0 %v7434_v4  ;;  %5713 = vmatmul.msk.bf16.vlgmr.msrb.gmra.mxu3 %vm912_vm0, %v8541_v45  ;;  %v4823_v4 = vsel %vm912_vm0, %v8593_v22, 0  ;;  %v2042_v45 = vpack.c.bf16 %v6398_v9, %v6396_v32 }
 0xbf7   : > { %4834 = vmatpush.bf16.xpose.msrb.mxu3 %v4826_v35 }
 0xbf8   : > { %v2242_v24 = vpop.xlane.xlu1 %2241 }
 0xbf9   : > { %v2250_v27 = vsub.f32 %v8778_v29, %v2242_v24  ;;  %v3271_v47 = vpop.f32.mrf.mxu3  ;;  %v10502_v24 = vld [vmem:[#allocation68_spill] sm:$0xff] }
 0xbfa   : > { %v8924_v0 = vadd.f32 %v8699_v40, %v3271_v47 }
 0xbfb   : > { %v6400_v48 = vpop.eup %6399  ;;  %v2255_v42 = vmul.f32 1.442695, %v2250_v27 }
 0xbfc   : > { %v3281_v17 = vsel %vm912_vm0, %v8924_v0, -inf  ;;  %v2261_v44 = vsel %vm912_vm0, %v6400_v48, 0.0 }
 0xbfd   : > { %6401 = vpow2.f32 %v2255_v42  ;;  %3282 = vmax.xlane.f32.xlu0 %v3281_v17  ;;  %2262 = vadd.xlane.f32.xlu1 %v2261_v44  ;;  %v10503_v44 = vld [vmem:[#allocation64_spill] sm:$0xff] }
 0xbff   : > { %4835 = vmatpush.bf16.xpose.msrb.mxu3 %v4823_v4 }
 0xc00   : > { %v2245_v29 = vpop.xlane.xlu2 %2244 }
 0xc01   : > { %v2251_v16 = vsub.f32 %v8785_v12, %v2245_v29  ;;  %5644 = vmatmul.msk.bf16.gmra.mxu0 %vm912_vm0, %v2042_v45  ;;  %v3273_v33 = vpop.f32.mrf.mxu3 }
 0xc02   : > { %v8934_v41 = vadd.f32 %v8715_v31, %v3273_v33 }
 0xc03   : > { %v6402_v43 = vpop.eup %6401  ;;  %v2257_v10 = vmul.f32 1.442695, %v2251_v16 }
 0xc04   : > { %v2264_v54 = vsel %vm912_vm0, %v6402_v43, 0.0  ;;  %v3284_v59 = vsel %vm912_vm0, %v8934_v41, -inf  ;;  %v2273_v63 = vpack.c.bf16 %v6402_v43, %v6400_v48 }
 0xc05   : > { %6403 = vpow2.f32 %v2257_v10  ;;  %2265 = vadd.xlane.f32.xlu2 %v2264_v54  ;;  %3285 = vmax.xlane.f32.xlu1 %v3284_v59 }
 0xc06   : > { %5714 = vmatmul.msk.bf16.gmra.mxu3 %vm912_vm0, %v8545_v57 }
 0xc08   : > { %v2248_v22 = vpop.xlane.xlu0 %2247 }
 0xc09   : > { %v2252_v12 = vsub.f32 %v8793_v19, %v2248_v22  ;;  %v3276_v32 = vpop.f32.mrf.mxu3 }
 0xc0a   : > { %v8943_v23 = vadd.f32 %v8724_v51, %v3276_v32 }
 0xc0b   : > { %v6404_v28 = vpop.eup %6403  ;;  %v2259_v9 = vmul.f32 1.442695, %v2252_v12 }
 0xc0c   : > { %v2267_v26 = vsel %vm912_vm0, %v6404_v28, 0.0  ;;  %v3287_v2 = vsel %vm912_vm0, %v8943_v23, -inf }
 0xc0d   : > { %6405 = vpow2.f32 %v2259_v9  ;;  %2268 = vadd.xlane.f32.xlu0 %v2267_v26  ;;  %3288 = vmax.xlane.f32.xlu2 %v3287_v2  ;;  %v3682_v26 = vpop.f32.mrf.mxu1 }
 0xc10   : > { %v2529_v35 = vpop.xlane.xlu2 %2528  ;;  %v8948_v57 = vpop.xlane.xlu0 %1508 }
 0xc11   : > { %v2539_v19 = vsub.f32 %v8803_v61, %v2529_v35  ;;  %5651 = vmatmul.msk.bf16.vlgmr.msra.gmra.mxu0 %vm912_vm0, %v2273_v63  ;;  %v3278_v51 = vpop.f32.mrf.mxu3 }
 0xc12   : > { %2815 = vmatpush.bf16.msra.mxu0 %v10502_v24  ;;  %v8954_v27 = vadd.f32 %v8731_v50, %v3278_v51  ;;  %v8986_v51 = vld [vmem:[#allocation8 + $0x38] sm:$0xff] }
 0xc13   : > { %v6406_v47 = vpop.eup %6405  ;;  %v2543_v42 = vmul.f32 1.442695, %v2539_v19 }
 0xc14   : > { %v3290_v17 = vsel %vm912_vm0, %v8954_v27, -inf  ;;  %v2270_v48 = vsel %vm912_vm0, %v6406_v47, 0.0 }
 0xc15   : > { %6407 = vpow2.f32 %v2543_v42  ;;  %3291 = vmax.xlane.f32.xlu0 %v3290_v17  ;;  %2271 = vadd.xlane.f32.xlu1 %v2270_v48  ;;  %v8997_v42 = vpop.f32.mrf.mxu1 }
 0xc16   : > { %2816 = vmatpush.bf16.msra.mxu0 %v10503_v44  ;;  %5721 = vmatmul.msk.bf16.vlgmr.msra.gmra.mxu3 %vm912_vm0, %v8401_v36  ;;  %v2274_v36 = vpack.c.bf16 %v6406_v47, %v6404_v28 }
 0xc18   : > { %v8962_v61 = vpop.xlane.xlu1 %1511  ;;  %v2532_v4 = vpop.xlane.xlu0 %2531 }
 0xc19   : > { %v2540_v50 = vsub.f32 %v8811_v13, %v2532_v4  ;;  %v3561_v45 = vpop.f32.mrf.mxu3 }
 0xc1a   : > { %v8966_v29 = vadd.f32 %v8670_v56, %v3561_v45 }
 0xc1b   : > { %v6408_v16 = vpop.eup %6407  ;;  %v2545_v33 = vmul.f32 1.442695, %v2540_v50 }
 0xc1c   : > { %v2551_v43 = vsel %vm912_vm0, %v6408_v16, 0.0  ;;  %v3571_v10 = vsel %vm912_vm0, %v8966_v29, -inf }
 0xc1d   : > { %6409 = vpow2.f32 %v2545_v33  ;;  %2552 = vadd.xlane.f32.xlu0 %v2551_v43  ;;  %3572 = vmax.xlane.f32.xlu2 %v3571_v10  ;;  %v3911_v43 = vpop.f32.mrf.mxu1 }
 0xc20   : > { %v2535_v54 = vpop.xlane.xlu1 %2534 }
 0xc21   : > { %v2541_v59 = vsub.f32 %v8822_v6, %v2535_v54  ;;  %5652 = vmatmul.msk.bf16.gmra.mxu0 %vm912_vm0, %v2274_v36  ;;  %v3563_v56 = vpop.f32.mrf.mxu3  ;;  %v9016_v54 = vld [vmem:[#allocation8 + $0x68] sm:$0xff] }
 0xc22   : > { %v8977_v32 = vadd.f32 %v8679_v49, %v3563_v56 }
 0xc23   : > { %v6410_v13 = vpop.eup %6409  ;;  %v2547_v22 = vmul.f32 1.442695, %v2541_v59  ;;  %v8981_v6 = vpop.f32.mrf.mxu0 }
 0xc24   : > { %v2554_v12 = vsel %vm912_vm0, %v6410_v13, 0.0  ;;  %v3574_v63 = vsel %vm912_vm0, %v8977_v32, -inf  ;;  %v2563_v19 = vpack.c.bf16 %v6410_v13, %v6408_v16 }
 0xc25   : > { %6411 = vpow2.f32 %v2547_v22  ;;  %2555 = vadd.xlane.f32.xlu1 %v2554_v12 }
 0xc26   : > { %5722 = vmatmul.msk.bf16.gmra.mxu3 %vm912_vm0, %v8448_v46  ;;  %v8989_v46 = vadd.f32 %v8986_v51, %v3682_v26 }
 0xc28   : > { %v8979_v9 = vpop.xlane.xlu0 %1517  ;;  %v3694_v4 = vsel %vm912_vm0, %v8989_v46, -inf }
 0xc29   : > { %v3566_v35 = vpop.f32.mrf.mxu3 }
 0xc2a   : > { %v8992_v49 = vadd.f32 %v8704_v15, %v3566_v35 }
 0xc2b   : > { %v6412_v28 = vpop.eup %6411  ;;  %v9005_v15 = vpop.f32.mrf.mxu0 }
 0xc2c   : > { %v2557_v2 = vsel %vm912_vm0, %v6412_v28, 0.0  ;;  %v3577_v44 = vsel %vm912_vm0, %v8992_v49, -inf }
 0xc2d   : > { %2558 = vadd.xlane.f32.xlu2 %v2557_v2  ;;  %3575 = vmax.xlane.f32.xlu1 %v3574_v63 }
 0xc30   : > { %v2761_v24 = vpop.xlane.xlu0 %2760 }
 0xc31   : > { %v2771_v47 = vsub.f32 %v8837_v62, %v2761_v24  ;;  %5659 = vmatmul.msk.bf16.vlgmr.msrb.gmra.mxu0 %vm912_vm0, %v2563_v19  ;;  %v3568_v50 = vpop.f32.mrf.mxu3 }
 0xc32   : > { %3099 = vmatpush.bf16.msrb.mxu0 %v8178_v37 }
 0xc33   : > { %v2775_v17 = vmul.f32 1.442695, %v2771_v47  ;;  %v8999_v48 = vpop.xlane.xlu2 %1514  ;;  %v9036_v47 = vadd.f32 %v8688_v8, %v3568_v50 }
 0xc35   : > { %6413 = vpow2.f32 %v2775_v17  ;;  %3578 = vmax.xlane.f32.xlu2 %v3577_v44  ;;  %3695 = vmax.xlane.f32.xlu1 %v3694_v4 }
 0xc36   : > { %3100 = vmatpush.bf16.msrb.mxu0 %v8170_v34  ;;  %5729 = vmatmul.msk.bf16.vlgmr.msrb.gmra.mxu3 %vm912_vm0, %v8596_v18  ;;  %v9019_v34 = vadd.f32 %v9016_v54, %v3911_v43 }
 0xc38   : > { %v9010_v37 = vpop.xlane.xlu1 %1743 }
 0xc39   : > { %v3793_v22 = vpop.f32.mrf.mxu3 }
 0xc3a   : > { %v9032_v35 = vadd.f32 %v8699_v40, %v3793_v22  ;;  %v3580_v40 = vsel %vm912_vm0, %v9036_v47, -inf }
 0xc3b   : > { %v6414_v62 = vpop.eup %6413  ;;  %v2538_v45 = vpop.xlane.xlu2 %2537 }
 0xc3c   : > { %v2542_v16 = vsub.f32 %v8848_v5, %v2538_v45  ;;  %v2783_v33 = vsel %vm912_vm0, %v6414_v62, 0.0  ;;  %v3922_v5 = vsel %vm912_vm0, %v9019_v34, -inf }
 0xc3d   : > { %2784 = vadd.xlane.f32.xlu2 %v2783_v33 }
 0xc3e   : > { %v2549_v10 = vmul.f32 1.442695, %v2542_v16  ;;  %v9014_v36 = vpop.f32.mrf.mxu0 }
 0xc40   : > { %6415 = vpow2.f32 %v2549_v10  ;;  %v9021_v18 = vpop.xlane.xlu0 %1746  ;;  %v2767_v59 = vpop.xlane.xlu1 %2766 }
 0xc41   : > { %v2773_v12 = vsub.f32 %v8856_v7, %v2767_v59  ;;  %v3795_v59 = vpop.f32.mrf.mxu3 }
 0xc43   : > { %v1741_v13 = vpop.xlane.xlu2 %1740  ;;  %v2779_v24 = vmul.f32 1.442695, %v2773_v12 }
 0xc45   : > { %3923 = vmax.xlane.f32.xlu2 %v3922_v5  ;;  %6417 = vpow2.f32 %v2779_v24 }
 0xc46   : > { %v6416_v56 = vpop.eup %6415  ;;  %v9026_v26 = vpop.f32.mrf.mxu0  ;;  %5730 = vmatmul.msk.bf16.gmra.mxu3 %vm912_vm0, %v8616_v53  ;;  %v3803_v53 = vsel %vm912_vm0, %v9032_v35, -inf }
 0xc47   : > { %v2560_v2 = vsel %vm912_vm0, %v6416_v56, 0.0  ;;  %v2564_v63 = vpack.c.bf16 %v6416_v56, %v6412_v28 }
 0xc48   : > { %2561 = vadd.xlane.f32.xlu0 %v2560_v2  ;;  %v2770_v19 = vpop.xlane.xlu0 %2769 }
 0xc49   : > { %5660 = vmatmul.msk.bf16.gmra.mxu0 %vm912_vm0, %v2564_v63  ;;  %v2774_v8 = vsub.f32 %v8867_v1, %v2770_v19  ;;  %v9051_v1 = vld [vmem:[#allocation8 + $0x60] sm:$0xff] }
 0xc4b   : > { %v2764_v7 = vpop.xlane.xlu2 %2763  ;;  %v6418_v45 = vpop.eup %6417  ;;  %v2781_v5 = vmul.f32 1.442695, %v2774_v8 }
 0xc4c   : > { %v2772_v17 = vsub.f32 %v8870_v11, %v2764_v7  ;;  %v2789_v43 = vsel %vm912_vm0, %v6418_v45, 0.0 }
 0xc4d   : > { %3804 = vmax.xlane.f32.xlu2 %v3803_v53 }
 0xc4e   : > { %v2777_v28 = vmul.f32 1.442695, %v2772_v17  ;;  %v1774_v44 = vpop.f32.mrf.mxu0 }
 0xc50   : > { %6419 = vpow2.f32 %v2777_v28  ;;  %3581 = vmax.xlane.f32.xlu0 %v3580_v40  ;;  %v3051_v4 = vpop.xlane.xlu0 %3050  ;;  %v9047_v22 = vpop.xlane.xlu1 %2030 }
 0xc51   : > { %v3061_v16 = vsub.f32 %v8883_v25, %v3051_v4  ;;  %v9055_v25 = vadd.f32 %v9051_v1, %v8997_v42  ;;  %6421 = vpow2.f32 %v2781_v5 }
 0xc53   : > { %v3065_v56 = vmul.f32 1.442695, %v3061_v16  ;;  %v3919_v2 = vsel %vm912_vm0, %v9055_v25, -inf  ;;  %v1750_v42 = vpop.xlane.xlu2 %1749 }
 0xc55   : > { %6423 = vpow2.f32 %v3065_v56 }
 0xc56   : > { %v6420_v50 = vpop.eup %6419  ;;  %v1776_v11 = vpop.f32.mrf.mxu0  ;;  %6425 = vrcp.f32 %v9010_v37 }
 0xc57   : > { %v2795_v33 = vpack.c.bf16 %v6420_v50, %v6414_v62  ;;  %v2786_v10 = vsel %vm912_vm0, %v6420_v50, 0.0  ;;  %v9058_v62 = vadd.f32 %v8715_v31, %v3795_v59  ;;  %6427 = vrcp.f32 %v1741_v13  ;;  %v9066_v63 = vpop.eup %6421 }
 0xc58   : > { %2790 = vadd.xlane.f32.xlu0 %v2789_v43  ;;  %2787 = vadd.xlane.f32.xlu1 %v2786_v10  ;;  %v3054_v31 = vpop.xlane.xlu1 %3053  ;;  %6429 = vrcp.f32 %v1750_v42  ;;  %v2796_v37 = vpack.c.bf16 %v9066_v63, %v6418_v45 }
 0xc59   : > { %5667 = vmatmul.msk.bf16.vlgmr.msra.gmra.mxu0 %vm912_vm0, %v2795_v33  ;;  %v3062_v24 = vsub.f32 %v8894_v58, %v3054_v31  ;;  %6431 = vrcp.f32 %v9021_v18 }
 0xc5a   : > { %3337 = vmatpush.bf16.msra.mxu0 %v8255_v3  ;;  %v3806_v3 = vsel %vm912_vm0, %v9058_v62, -inf }
 0xc5b   : > { %v6424_v19 = vpop.eup %6423  ;;  %v3067_v4 = vmul.f32 1.442695, %v3062_v24  ;;  %v9075_v50 = vpop.xlane.xlu2 %2033 }
 0xc5c   : > { %v3073_v53 = vsel %vm912_vm0, %v6424_v19, 0.0 }
 0xc5d   : > { %6433 = vpow2.f32 %v3067_v4 }
 0xc5e   : > { %3338 = vmatpush.bf16.msra.mxu0 %v8244_v52  ;;  %v1779_v12 = vpop.f32.mrf.mxu0  ;;  %v6426_v52 = vpop.eup %6425 }
 0xc5f   : > { %v1789_v17 = vmul.f32 %v6426_v52, %v1776_v11  ;;  %v6428_v28 = vpop.eup %6427 }
 0xc60   : > { %3920 = vmax.xlane.f32.xlu0 %v3919_v2  ;;  %3807 = vmax.xlane.f32.xlu1 %v3806_v3  ;;  %v1788_v13 = vmul.f32 %v6428_v28, %v1774_v44  ;;  %v2037_v40 = vpop.xlane.xlu0 %2036  ;;  %v6430_v58 = vpop.eup %6429 }
 0xc61   : > { %v6432_v45 = vpop.eup %6431  ;;  %6435 = vrcp.f32 %v2037_v40 }
 0xc62   : > { %v6056_v8 = vpack.i.bf16 %v1789_v17, %v1788_v13  ;;  %v1790_v43 = vmul.f32 %v6432_v45, %v1779_v12 }
 0xc63   : > { %v6434_v10 = vpop.eup %6433  ;;  %v3057_v59 = vpop.xlane.xlu2 %3056 }
 0xc64   : > { %v3085_v2 = vpack.c.bf16 %v6434_v10, %v6424_v19  ;;  %v3063_v3 = vsub.f32 %v8903_v55, %v3057_v59 }
 0xc65   : > { %3959 = vrot.lane.b32.xlu2 %v8572_v38, %s6969_s27 }
 0xc66   : > { %v1781_v7 = vpop.f32.mrf.mxu0  ;;  %v3069_v12 = vmul.f32 1.442695, %v3063_v3 }
 0xc67   : > { %v1791_v16 = vmul.f32 %v6430_v58, %v1781_v7  ;;  %v6436_v52 = vpop.eup %6435 }
 0xc68   : > { %3074 = vadd.xlane.f32.xlu1 %v3073_v53  ;;  %v9080_v33 = vpop.xlane.xlu1 %2039  ;;  %v3060_v44 = vpop.xlane.xlu0 %3059 }
 0xc69   : > { %5668 = vmatmul.msk.bf16.gmra.mxu0 %vm912_vm0, %v2796_v37  ;;  %v6061_v18 = vpack.i.bf16 %v1791_v16, %v1790_v43  ;;  %v3064_v5 = vsub.f32 %v8912_v39, %v3060_v44  ;;  %v2792_v44 = vsel %vm912_vm0, %v9066_v63, 0.0  ;;  %v3076_v63 = vsel %vm912_vm0, %v6434_v10, 0.0 }
 0xc6b   : > { %v3071_v31 = vmul.f32 1.442695, %v3064_v5 }
 0xc6d   : > { %6057 = vrot.lane.b32.xlu2 %v6056_v8, %s6971_s14  ;;  %6437 = vpow2.f32 %v3071_v31 }
 0xc6e   : > { %v9078_v11 = vpop.f32.mrf.mxu0  ;;  %6439 = vpow2.f32 %v3069_v12 }
 0xc70   : > { %v9087_v42 = vpop.xlane.xlu1 %2262  ;;  %v3283_v19 = vpop.xlane.xlu0 %3282 }
 0xc71   : > { %v3293_v40 = vsub.f32 %v8924_v0, %v3283_v19 }
 0xc73   : > { %v6438_v7 = vpop.eup %6437  ;;  %v3297_v58 = vmul.f32 1.442695, %v3293_v40 }
 0xc74   : > { %6062 = vrot.lane.b32.xlu0 %v6061_v18, %s6971_s14  ;;  %v6440_v17 = vpop.eup %6439 }
 0xc75   : > { %v3086_v13 = vpack.c.bf16 %v6438_v7, %v6440_v17  ;;  %v3079_v19 = vsel %vm912_vm0, %v6440_v17, 0.0 }
 0xc76   : > { %v9084_v56 = vpop.f32.mrf.mxu0 }
 0xc78   : > { %v3286_v55 = vpop.xlane.xlu1 %3285  ;;  %v9096_v53 = vpop.xlane.xlu2 %2265 }
 0xc79   : > { %5675 = vmatmul.msk.bf16.vlgmr.msrb.gmra.mxu0 %vm912_vm0, %v3085_v2  ;;  %v3294_v37 = vsub.f32 %v8934_v41, %v3286_v55 }
 0xc7a   : > { %3621 = vmatpush.bf16.msrb.mxu0 %v8572_v38 }
 0xc7b   : > { %v3299_v8 = vmul.f32 1.442695, %v3294_v37 }
 0xc7d   : > { %6441 = vpow2.f32 %v3299_v8 }
 0xc7e   : > { %3622 = vmatpush.bf16.msrb.mxu0 %v8588_v20  ;;  %v2063_v24 = vpop.f32.mrf.mxu0  ;;  %6443 = vpow2.f32 %v3297_v58 }
 0xc7f   : > { %v9092_v39 = vmul.f32 %v6436_v52, %v2063_v24 }
 0xc80   : > { %v9102_v4 = vpop.xlane.xlu0 %2268  ;;  %v3289_v45 = vpop.xlane.xlu2 %3288 }
 0xc81   : > { %3957 = vrot.lane.b32.xlu1 %v8588_v20, %s6969_s27  ;;  %v3295_v3 = vsub.f32 %v8943_v23, %v3289_v45 }
 0xc83   : > { %v9109_v41 = vpop.eup %6441  ;;  %v3301_v24 = vmul.f32 1.442695, %v3295_v3 }
 0xc84   : > { %v6444_v0 = vpop.eup %6443 }
 0xc85   : > { %v3317_v2 = vpack.c.bf16 %v9109_v41, %v6444_v0 }
 0xc86   : > { %v9099_v28 = vpop.f32.mrf.mxu0 }
 0xc88   : > { %v9107_v43 = vpop.xlane.xlu1 %2271  ;;  %v3292_v18 = vpop.xlane.xlu0 %3291 }
 0xc89   : > { %5676 = vmatmul.msk.bf16.gmra.mxu0 %vm912_vm0, %v3086_v13  ;;  %v3296_v59 = vsub.f32 %v8954_v27, %v3292_v18  ;;  %v3699_v13 = vsub.f32 %v8561_v60, %v8644_v30  ;;  %v3082_v60 = vsel %vm912_vm0, %v6438_v7, 0.0 }
 0xc8b   : > { %v3303_v52 = vmul.f32 1.442695, %v3296_v59  ;;  %v3705_v45 = vmul.f32 1.442695, %v3699_v13 }
 0xc8d   : > { %6445 = vpow2.f32 %v3303_v52 }
 0xc8e   : > { %v9105_v16 = vpop.f32.mrf.mxu0  ;;  %6447 = vpow2.f32 %v3301_v24 }
 0xc90   : > { %v3573_v31 = vpop.xlane.xlu2 %3572  ;;  %v2553_v40 = vpop.xlane.xlu0 %2552 }
 0xc91   : > { %v3583_v18 = vsub.f32 %v8966_v29, %v3573_v31  ;;  %6449 = vrcp.f32 %v2553_v40 }
 0xc92   : > { %6451 = vpow2.f32 %v3705_v45 }
 0xc93   : > { %v9125_v23 = vpop.eup %6445 }
 0xc94   : > { %v9130_v58 = vpop.eup %6447 }
 0xc95   : > { %v3318_v10 = vpack.c.bf16 %v9125_v23, %v9130_v58 }
 0xc96   : > { %v9114_v5 = vpop.f32.mrf.mxu0  ;;  %2793 = vadd.xlane.f32.xlu2 %v2792_v44 }
 0xc97   : > { %v6450_v52 = vpop.eup %6449 }
 0xc98   : > { %v9118_v12 = vpop.xlane.xlu1 %2555  ;;  %v9142_v31 = vpop.eup %6451 }
 0xc99   : > { %5683 = vmatmul.msk.bf16.vlgmr.msra.gmra.mxu0 %vm912_vm0, %v3317_v2  ;;  %10504 = vst [vmem:[#allocation53_spill] sm:$0xff] %v9142_v31 }
 0xc9e   : > { %v9123_v27 = vpop.f32.mrf.mxu0  ;;  %3080 = vadd.xlane.f32.xlu0 %v3079_v19  ;;  %3077 = vadd.xlane.f32.xlu2 %v3076_v63 }
 0xca0   : > { %v2559_v55 = vpop.xlane.xlu2 %2558  ;;  %v3576_v37 = vpop.xlane.xlu1 %3575 }
 0xca1   : > { %v3584_v8 = vsub.f32 %v8977_v32, %v3576_v37  ;;  %v3587_v32 = vmul.f32 1.442695, %v3583_v18 }
 0xca3   : > { %v3589_v2 = vmul.f32 1.442695, %v3584_v8 }
 0xca5   : > { %6453 = vpow2.f32 %v3589_v2 }
 0xca6   : > { %v9132_v17 = vpop.f32.mrf.mxu0 }
 0xca8   : > { %v3579_v44 = vpop.xlane.xlu2 %3578  ;;  %v3696_v59 = vpop.xlane.xlu1 %3695 }
 0xca9   : > { %v3700_v3 = vsub.f32 %v8989_v46, %v3696_v59  ;;  %5684 = vmatmul.msk.bf16.gmra.mxu0 %vm912_vm0, %v3318_v10  ;;  %v3305_v46 = vsel %vm912_vm0, %v6444_v0, 0.0  ;;  %v3585_v10 = vsub.f32 %v8992_v49, %v3579_v44 }
 0xcab   : > { %v3707_v30 = vmul.f32 1.442695, %v3700_v3  ;;  %3083 = vadd.xlane.f32.xlu1 %v3082_v60  ;;  %v9147_v7 = vpop.eup %6453 }
 0xcac   : > { %10505 = vst [vmem:[#allocation55_spill] sm:$0xff] %v9147_v7 }
 0xcad   : > { %6455 = vpow2.f32 %v3707_v30 }
 0xcae   : > { %v2580_v24 = vpop.f32.mrf.mxu0  ;;  %6457 = vpow2.f32 %v3587_v32 }
 0xcaf   : > { %v9140_v19 = vmul.f32 %v6450_v52, %v2580_v24  ;;  %6459 = vrcp.f32 %v9096_v53 }
 0xcb0   : > { %v2785_v29 = vpop.xlane.xlu2 %2784  ;;  %6461 = vrcp.f32 %v2559_v55 }
 0xcb1   : > { %6463 = vrcp.f32 %v9087_v42 }
 0xcb2   : > { %3843 = vrot.lane.b32.xlu0 %v8572_v38, %s6971_s14  ;;  %6465 = vrcp.f32 %v8948_v57 }
 0xcb3   : > { %3306 = vadd.xlane.f32.xlu1 %v3305_v46  ;;  %v9149_v63 = vpop.eup %6455  ;;  %6467 = vrcp.f32 %v8962_v61 }
 0xcb4   : > { %10506 = vst [vmem:[#allocation17_spill] sm:$0xff] %v9149_v63  ;;  %v3722_v37 = vpack.c.bf16 %v9149_v63, %v9142_v31  ;;  %v9153_v13 = vpop.eup %6457  ;;  %v10532_v31 = vld [vmem:[#allocation95_spill] sm:$0xff] }
 0xcb5   : > { %v3607_v40 = vpack.c.bf16 %v9147_v7, %v9153_v13  ;;  %v6460_v2 = vpop.eup %6459 }
 0xcb6   : > { %3841 = vrot.lane.b32.xlu2 %v8588_v20, %s6971_s14  ;;  %5696 = vmatmul.msk.bf16.gmra.mxu2 %vm912_vm0, %v3722_v37  ;;  %v9165_v8 = vpop.f32.mrf.mxu0  ;;  %v3591_v20 = vmul.f32 1.442695, %v3585_v10  ;;  %v6462_v3 = vpop.eup %6461  ;;  %v2311_v60 = vmul.f32 %v6460_v2, %v9114_v5  ;;  %v5950_v37 = vunpack.i.h.bf16 %v8052_v21 }
 0xcb7   : > { %v6464_v49 = vpop.eup %6463 }
 0xcb8   : > { %v9160_v38 = vpop.xlane.xlu2 %3923  ;;  %6469 = vpow2.f32 %v3591_v20  ;;  %v2310_v42 = vmul.f32 %v6464_v49, %v9105_v16  ;;  %v6466_v32 = vpop.eup %6465 }
 0xcb9   : > { %5691 = vmatmul.msk.bf16.vlgmr.msrb.gmra.mxu0 %vm912_vm0, %v3607_v40  ;;  %v6468_v52 = vpop.eup %6467  ;;  %v1550_v5 = vmul.f32 %v6466_v32, %v8981_v6  ;;  %v5949_v40 = vunpack.i.l.bf16 %v8052_v21 }
 0xcba   : > { %v1551_v24 = vmul.f32 %v6468_v52, %v9005_v15  ;;  %v9213_v52 = vpop.f32.mrf.mxu3 }
 0xcbb   : > { %v9163_v0 = vpop.xlane.xlu0 %2561  ;;  %v1956_v6 = vsel %vm912_vm0, %v1550_v5, %v5949_v40  ;;  %v3311_v5 = vsel %vm912_vm0, %v9130_v58, 0.0  ;;  %v9221_v40 = vld [vmem:[#allocation8 + $0x70] sm:$0xff] }
 0xcbc   : > { %v1957_v15 = vsel %vm912_vm0, %v1551_v24, %v5950_v37  ;;  %v3914_v24 = vpop.f32.mrf.mxu1  ;;  %v3308_v37 = vsel %vm912_vm0, %v9109_v41, 0.0 }
 0xcbe   : > { %v9180_v57 = vpop.eup %6469 }
 0xcbf   : > { %10507 = vst [vmem:[#allocation16_spill] sm:$0xff] %v9180_v57 }
 0xcc0   : > { %v9169_v45 = vpop.xlane.xlu2 %3804 }
 0xcc2   : > { %v3800_v58 = vpop.f32.mrf.mxu3 }
 0xcc3   : > { %v3582_v18 = vpop.xlane.xlu0 %3581 }
 0xcc4   : > { %v3586_v59 = vsub.f32 %v9036_v47, %v3582_v18  ;;  %v6066_v47 = vpack.i.bf16 %v2311_v60, %v2310_v42 }
 0xcc6   : > { %v3593_v53 = vmul.f32 1.442695, %v3586_v59  ;;  %v2585_v30 = vpop.f32.mrf.mxu0  ;;  %v10509_v59 = vld [vmem:[#allocation92_spill] sm:$0xff] }
 0xcc7   : > { %v9176_v55 = vmul.f32 %v6462_v3, %v2585_v30  ;;  %v5959_v2 = vunpack.i.l.bf16 %v10509_v59  ;;  %v5960_v3 = vunpack.i.h.bf16 %v10509_v59 }
 0xcc8   : > { %6471 = vpow2.f32 %v3593_v53  ;;  %v3960_v44 = vpop.permute.xlu2 %3959 }
 0xcc9   : > { %3975 = vmatpush.bf16.msrb.mxu2 %v3960_v44  ;;  %6473 = vrcp.f32 %v2785_v29  ;;  %v9321_v44 = vld [vmem:[#allocation8 + $0x30] sm:$0xff] }
 0xcca   : > { %6475 = vrcp.f32 %v8979_v9 }
 0xccb   : > { %v9199_v29 = vpop.xlane.xlu0 %2790  ;;  %6477 = vrcp.f32 %v8999_v48 }
 0xccc   : > { %6067 = vrot.lane.b32.xlu1 %v6066_v47, %s6971_s14  ;;  %v9209_v47 = vpop.xlane.xlu1 %2787 }
 0xcce   : > { %v9182_v61 = vpop.eup %6471  ;;  %v9186_v46 = vpop.f32.mrf.mxu0 }
 0xccf   : > { %10508 = vst [vmem:[#allocation27_spill] sm:$0xff] %v9182_v61  ;;  %v3608_v16 = vpack.c.bf16 %v9182_v61, %v9180_v57  ;;  %v6474_v49 = vpop.eup %6473  ;;  %v9405_v57 = vld [vmem:[#allocation8 + $0x18] sm:$0xff] }
 0xcd0   : > { %v6058_v10 = vpop.permute.xlu2 %6057 }
 0xcd1   : > { %v6060_v20 = vunpack.i.h.bf16 %v6058_v10  ;;  %v6059_v18 = vunpack.i.l.bf16 %v6058_v10  ;;  %5692 = vmatmul.msk.bf16.gmra.mxu0 %vm912_vm0, %v3608_v16  ;;  %v9224_v10 = vadd.f32 %v9221_v40, %v3914_v24  ;;  %v9240_v24 = vld [vmem:[#allocation8 + $0x58] sm:$0xff] }
 0xcd3   : > { %v1961_v60 = vsel %vm1436_vm1, %v1957_v15, %v6060_v20  ;;  %v1960_v21 = vsel %vm1436_vm1, %v1956_v6, %v6059_v18  ;;  %v3921_v16 = vpop.xlane.xlu0 %3920  ;;  %v6476_v18 = vpop.eup %6475  ;;  %v3925_v9 = vsel %vm912_vm0, %v9224_v10, -inf  ;;  %v10512_v6 = vld [vmem:[#allocation93_spill] sm:$0xff] }
 0xcd4   : > { %v9202_v53 = vsel %vm1441_vm2, %v1960_v21, %v5959_v2  ;;  %v9205_v30 = vsel %vm1441_vm2, %v1961_v60, %v5960_v3  ;;  %v9226_v20 = vpop.xlane.xlu1 %3807  ;;  %v6478_v59 = vpop.eup %6477  ;;  %v1553_v2 = vmul.f32 %v6476_v18, %v9026_v26  ;;  %v3931_v41 = vsub.f32 %v9055_v25, %v3921_v16 }
 0xcd5   : > { %10510 = vst [vmem:[#allocation28_spill] sm:$0xff] %v9202_v53  ;;  %v1552_v48 = vmul.f32 %v6478_v59, %v9014_v36  ;;  %v5955_v15 = vunpack.i.h.bf16 %v10512_v6  ;;  %v5954_v3 = vunpack.i.l.bf16 %v10512_v6  ;;  %v3932_v60 = vsub.f32 %v9019_v34, %v9160_v38 }
 0xcd6   : > { %10511 = vst [vmem:[#allocation69_spill] sm:$0xff] %v9205_v30  ;;  %v2818_v42 = vpop.f32.mrf.mxu0  ;;  %v9243_v36 = vadd.f32 %v9240_v24, %v3800_v58  ;;  %v3935_v18 = vmul.f32 1.442695, %v3931_v41  ;;  %v4083_v41 = vpop.f32.mrf.mxu3 }
 0xcd7   : > { %v9211_v32 = vmul.f32 %v6474_v49, %v2818_v42  ;;  %v3595_v49 = vsel %vm912_vm0, %v9153_v13, 0.0  ;;  %v10513_v42 = vld [vmem:[#allocation94_spill] sm:$0xff]  ;;  %v1958_v34 = vsel %vm912_vm0, %v1552_v48, %v5954_v3  ;;  %v1959_v38 = vsel %vm912_vm0, %v1553_v2, %v5955_v15  ;;  %v3916_v2 = vpop.f32.mrf.mxu1  ;;  %v9264_v15 = vld [vmem:[#allocation8] sm:$0xff] }
 0xcd8   : > { %6479 = vpow2.f32 %v3935_v18  ;;  %v9267_v3 = vadd.f32 %v9264_v15, %v4083_v41  ;;  %v9282_v18 = vld [vmem:[#allocation8 + $0x78] sm:$0xff] }
 0xcdc   : > { %3312 = vadd.xlane.f32.xlu0 %v3311_v5  ;;  %v5965_v5 = vunpack.i.h.bf16 %v10513_v42 }
 0xcde   : > { %v9245_v26 = vpop.f32.mrf.mxu0 }
 0xcdf   : > { %3309 = vadd.xlane.f32.xlu2 %v3308_v37  ;;  %v5964_v37 = vunpack.i.l.bf16 %v10513_v42  ;;  %v9269_v42 = vpop.eup %6479 }
 0xce0   : > { %10516 = vst [vmem:[#allocation19_spill] sm:$0xff] %v9269_v42 }
 0xce4   : > { %3926 = vmax.xlane.f32.xlu0 %v3925_v9  ;;  %v3937_v9 = vmul.f32 1.442695, %v3932_v60 }
 0xce6   : > { %v6063_v21 = vpop.permute.xlu0 %6062  ;;  %6481 = vpow2.f32 %v3937_v9  ;;  %v2823_v60 = vpop.f32.mrf.mxu0 }
 0xce7   : > { %v6065_v25 = vunpack.i.h.bf16 %v6063_v21  ;;  %v6064_v16 = vunpack.i.l.bf16 %v6063_v21  ;;  %3596 = vadd.xlane.f32.xlu2 %v3595_v49  ;;  %v9258_v21 = vpop.xlane.xlu1 %3074  ;;  %v3812_v49 = vsel %vm912_vm0, %v9243_v36, -inf  ;;  %6483 = vrcp.f32 %v9107_v43 }
 0xce8   : > { %6485 = vrcp.f32 %v9102_v4 }
 0xce9   : > { %v1962_v13 = vsel %vm1436_vm1, %v1958_v34, %v6064_v16  ;;  %v1963_v59 = vsel %vm1436_vm1, %v1959_v38, %v6065_v25  ;;  %v4093_v25 = vsel %vm912_vm0, %v9267_v3, -inf  ;;  %v3314_v34 = vsel %vm912_vm0, %v9125_v23, 0.0  ;;  %v4197_v38 = vpop.f32.mrf.mxu1 }
 0xcea   : > { %v9253_v58 = vsel %vm1441_vm2, %v1962_v13, %v5964_v37  ;;  %v9256_v6 = vsel %vm1441_vm2, %v1963_v59, %v5965_v5  ;;  %v9285_v13 = vadd.f32 %v9282_v18, %v3916_v2  ;;  %6487 = vrcp.f32 %v9199_v29 }
 0xceb   : > { %10514 = vst [vmem:[#allocation70_spill] sm:$0xff] %v9253_v58 }
 0xcec   : > { %10515 = vst [vmem:[#allocation21_spill] sm:$0xff] %v9256_v6  ;;  %3813 = vmax.xlane.f32.xlu0 %v3812_v49  ;;  %v9274_v16 = vpop.eup %6481  ;;  %v3928_v23 = vsel %vm912_vm0, %v9285_v13, -inf }
 0xced   : > { %10517 = vst [vmem:[#allocation71_spill] sm:$0xff] %v9274_v16  ;;  %v3955_v37 = vpack.c.bf16 %v9274_v16, %v9269_v42  ;;  %v6484_v43 = vpop.eup %6483 }
 0xcee   : > { %v2313_v4 = vmul.f32 %v6484_v43, %v9132_v17  ;;  %v6486_v59 = vpop.eup %6485  ;;  %v2825_v49 = vpop.f32.mrf.mxu0  ;;  %v10519_v17 = vld [vmem:[#allocation84_spill] sm:$0xff] }
 0xcef   : > { %v2312_v9 = vmul.f32 %v6486_v59, %v9123_v27  ;;  %v10520_v27 = vld [vmem:[#allocation85_spill] sm:$0xff] }
 0xcf1   : > { %v6071_v41 = vpack.i.bf16 %v2313_v4, %v2312_v9 }
 0xcf3   : > { %v3958_v5 = vpop.permute.xlu1 %3957 }
 0xcf4   : > { %4094 = vmax.xlane.f32.xlu0 %v4093_v25  ;;  %3976 = vmatpush.bf16.msrb.mxu2 %v3958_v5  ;;  %v9292_v5 = vpop.f32.mrf.mxu1  ;;  %v9294_v25 = vld [vmem:[#allocation8 + $0x20] sm:$0xff] }
 0xcf5   : > { %v9297_v2 = vadd.f32 %v9294_v25, %v4197_v38  ;;  %v9311_v38 = vld [vmem:[#allocation8 + $0x8] sm:$0xff] }
 0xcf6   : > { %3315 = vadd.xlane.f32.xlu1 %v3314_v34  ;;  %v9303_v4 = vpop.f32.mrf.mxu0 }
 0xcf7   : > { %5703 = vmatmul.msk.bf16.vlgmr.msrb.gmra.mxu2 %vm912_vm0, %v3955_v37  ;;  %v10518_v37 = vld [vmem:[#allocation30_spill] sm:$0xff]  ;;  %v4207_v59 = vsel %vm912_vm0, %v9297_v2, -inf }
 0xcf8   : > { %v883_v34 = vadd.f32 %v10519_v17, %v10518_v37  ;;  %v885_v43 = vadd.f32 %v10520_v27, %v10518_v37 }
 0xcfa   : > { %v9307_v9 = vpack.c.bf16 %v885_v43, %v883_v34  ;;  %v6488_v34 = vpop.eup %6487 }
 0xcfc   : > { %v4202_v27 = vpop.f32.mrf.mxu1 }
 0xcfd   : > { %v9324_v7 = vadd.f32 %v9321_v44, %v4202_v27  ;;  %v3816_v27 = vsub.f32 %v9058_v62, %v9226_v20 }
 0xcfe   : > { %3929 = vmax.xlane.f32.xlu1 %v3928_v23  ;;  %v9319_v43 = vpop.f32.mrf.mxu0 }
 0xcff   : > { %6072 = vrot.lane.b32.xlu2 %v6071_v41, %s6971_s14  ;;  %v4085_v41 = vpop.f32.mrf.mxu3  ;;  %10521 = vst [vmem:[#allocation72_spill] sm:$0xff] %v9319_v43 }
 0xd00   : > { %v9314_v23 = vadd.f32 %v9311_v38, %v4085_v41  ;;  %v2834_v41 = vmul.f32 %v6488_v34, %v2823_v60  ;;  %v3821_v34 = vmul.f32 1.442695, %v3816_v27 }
 0xd02   : > { %v4096_v48 = vsel %vm912_vm0, %v9314_v23, -inf }
 0xd04   : > { %v4204_v58 = vpop.f32.mrf.mxu1 }
 0xd05   : > { %v9330_v53 = vadd.f32 %v8986_v51, %v4204_v58  ;;  %v9344_v58 = vld [vmem:[#allocation8 + $0x10] sm:$0xff] }
 0xd06   : > { %4208 = vmax.xlane.f32.xlu1 %v4207_v59  ;;  %v3107_v60 = vpop.f32.mrf.mxu0 }
 0xd08   : > { %4247 = vrot.lane.b32.xlu0 %v9307_v9, %s6970_s8 }
 0xd09   : > { %v2794_v17 = vpop.xlane.xlu2 %2793 }
 0xd0a   : > { %6489 = vrcp.f32 %v2794_v17  ;;  %v4088_v17 = vpop.f32.mrf.mxu3 }
 0xd0b   : > { %v9347_v62 = vadd.f32 %v9344_v58, %v4088_v17 }
 0xd0d   : > { %v4099_v17 = vsel %vm912_vm0, %v9347_v62, -inf }
 0xd0e   : > { %4097 = vmax.xlane.f32.xlu1 %v4096_v48  ;;  %v4213_v48 = vsel %vm912_vm0, %v9324_v7, -inf }
 0xd10   : > { %v6490_v59 = vpop.eup %6489 }
 0xd11   : > { %v2835_v16 = vmul.f32 %v6490_v59, %v2825_v49  ;;  %v3081_v42 = vpop.xlane.xlu0 %3080  ;;  %v4216_v59 = vsel %vm912_vm0, %v9330_v53, -inf }
 0xd12   : > { %6491 = vrcp.f32 %v3081_v42  ;;  %v3815_v42 = vsub.f32 %v9032_v35, %v9169_v45  ;;  %v4090_v20 = vpop.f32.mrf.mxu3  ;;  %v10523_v45 = vld [vmem:[#allocation86_spill] sm:$0xff] }
 0xd13   : > { %v6081_v29 = vpack.i.bf16 %v2835_v16, %v2834_v41  ;;  %v9338_v16 = vpop.f32.mrf.mxu1  ;;  %v9342_v41 = vpop.xlane.xlu2 %3077  ;;  %6493 = vpow2.f32 %v3821_v34 }
 0xd14   : > { %v3819_v51 = vmul.f32 1.442695, %v3815_v42 }
 0xd15   : > { %6082 = vrot.lane.b32.xlu0 %v6081_v29, %s6971_s14  ;;  %v888_v29 = vadd.f32 %v10523_v45, %v10518_v37 }
 0xd16   : > { %4214 = vmax.xlane.f32.xlu1 %v4213_v48  ;;  %6495 = vpow2.f32 %v3819_v51  ;;  %v10524_v48 = vld [vmem:[#allocation87_spill] sm:$0xff] }
 0xd17   : > { %v890_v27 = vadd.f32 %v10524_v48, %v10518_v37  ;;  %6497 = vrcp.f32 %v9047_v22 }
 0xd18   : > { %v6492_v6 = vpop.eup %6491  ;;  %6499 = vrcp.f32 %v9075_v50 }
 0xd19   : > { %v9334_v49 = vmul.f32 %v6492_v6, %v3107_v60  ;;  %v9349_v6 = vld [vmem:[#allocation8 + $0x50] sm:$0xff]  ;;  %v9361_v34 = vpop.eup %6493  ;;  %6501 = vrcp.f32 %v9209_v47 }
 0xd1a   : > { %v9353_v35 = vadd.f32 %v9349_v6, %v9213_v52  ;;  %10525 = vst [vmem:[#allocation23_spill] sm:$0xff] %v9361_v34 }
 0xd1b   : > { %10522 = vst [vmem:[#allocation26_spill] sm:$0xff] %v9334_v49  ;;  %v4433_v42 = vpop.f32.mrf.mxu1  ;;  %v3842_v51 = vpop.permute.xlu2 %3841  ;;  %v5970_v49 = vunpack.i.h.bf16 %v10532_v31 }
 0xd1c   : > { %v3809_v52 = vsel %vm912_vm0, %v9353_v35, -inf  ;;  %v9367_v45 = vpop.eup %6495  ;;  %v9370_v48 = vadd.f32 %v9016_v54, %v4433_v42  ;;  %v9387_v42 = vpop.f32.mrf.mxu0 }
 0xd1d   : > { %10526 = vst [vmem:[#allocation65_spill] sm:$0xff] %v9367_v45  ;;  %v6498_v61 = vpop.eup %6497 }
 0xd1e   : > { %4217 = vmax.xlane.f32.xlu1 %v4216_v59  ;;  %v9365_v59 = vpack.c.bf16 %v890_v27, %v888_v29  ;;  %10527 = vst [vmem:[#allocation67_spill] sm:$0xff] %v9370_v48  ;;  %v4315_v29 = vpop.f32.mrf.mxu3  ;;  %v9381_v27 = vpop.xlane.xlu1 %3083  ;;  %v4444_v54 = vsel %vm912_vm0, %v9370_v48, -inf  ;;  %v2072_v50 = vmul.f32 %v6498_v61, %v9078_v11  ;;  %v10533_v48 = vld [vmem:[#allocation98_spill] sm:$0xff] }
 0xd1f   : > { %10528 = vst [vmem:[#allocation61_spill] sm:$0xff] %v9381_v27  ;;  %v6500_v22 = vpop.eup %6499  ;;  %v5980_v43 = vunpack.i.h.bf16 %v10533_v48  ;;  %v5979_v11 = vunpack.i.l.bf16 %v10533_v48 }
 0xd20   : > { %10529 = vst [vmem:[#allocation63_spill] sm:$0xff] %v9387_v42  ;;  %v2073_v63 = vmul.f32 %v6500_v22, %v9084_v56 }
 0xd22   : > { %v2479_v61 = vsel %vm912_vm0, %v2073_v63, %v5970_v49  ;;  %v6502_v63 = vpop.eup %6501 }
 0xd23   : > { %v2833_v49 = vmul.f32 %v6502_v63, %v9245_v26  ;;  %v10536_v63 = vld [vmem:[#allocation96_spill] sm:$0xff] }
 0xd24   : > { %v3844_v60 = vpop.permute.xlu0 %3843 }
 0xd25   : > { %3859 = vmatpush.bf16.msra.mxu0 %v3844_v60  ;;  %v3839_v60 = vpack.c.bf16 %v9361_v34, %v9367_v45  ;;  %v9400_v45 = vld [vmem:[#allocation8 + $0x48] sm:$0xff] }
 0xd26   : > { %4100 = vmax.xlane.f32.xlu1 %v4099_v17  ;;  %v9375_v17 = vld [vmem:[#allocation8 + $0x28] sm:$0xff]  ;;  %v3307_v34 = vpop.xlane.xlu1 %3306 }
 0xd27   : > { %v9379_v30 = vadd.f32 %v9375_v17, %v9292_v5  ;;  %6503 = vrcp.f32 %v3307_v34 }
 0xd28   : > { %3810 = vmax.xlane.f32.xlu2 %v3809_v52 }
 0xd29   : > { %3860 = vmatpush.bf16.msra.mxu0 %v3842_v51  ;;  %v4210_v52 = vsel %vm912_vm0, %v9379_v30, -inf  ;;  %v9391_v51 = vld [vmem:[#allocation8 + $0x40] sm:$0xff] }
 0xd2a   : > { %v9394_v5 = vadd.f32 %v9391_v51, %v4315_v29  ;;  %v9408_v29 = vadd.f32 %v9405_v57, %v4090_v20 }
 0xd2c   : > { %5699 = vmatmul.msk.bf16.vlgmr.msra.gmra.mxu0 %vm912_vm0, %v3839_v60  ;;  %10530 = vst [vmem:[#allocation83_spill] sm:$0xff] %v9394_v5  ;;  %v4325_v60 = vsel %vm912_vm0, %v9394_v5, -inf  ;;  %v4102_v27 = vsel %vm912_vm0, %v9408_v29, -inf }
 0xd2d   : > { %4143 = vmatpush.bf16.msrb.mxu0 %v9365_v59  ;;  %v6504_v47 = vpop.eup %6503 }
 0xd2e   : > { %4445 = vmax.xlane.f32.xlu1 %v4444_v54  ;;  %v4317_v54 = vpop.f32.mrf.mxu3 }
 0xd2f   : > { %v9403_v14 = vadd.f32 %v9400_v45, %v4317_v54  ;;  %v5969_v54 = vunpack.i.l.bf16 %v10532_v31 }
 0xd30   : > { %4211 = vmax.xlane.f32.xlu2 %v4210_v52  ;;  %v3340_v52 = vpop.f32.mrf.mxu0 }
 0xd31   : > { %4144 = vmatpush.bf16.msrb.mxu0 %v9307_v9  ;;  %10531 = vst [vmem:[#allocation81_spill] sm:$0xff] %v9403_v14  ;;  %v2478_v56 = vsel %vm912_vm0, %v2072_v50, %v5969_v54 }
 0xd36   : > { %4326 = vmax.xlane.f32.xlu1 %v4325_v60  ;;  %v4328_v60 = vsel %vm912_vm0, %v9403_v14, -inf }
 0xd3e   : > { %v6068_v42 = vpop.permute.xlu1 %6067  ;;  %4329 = vmax.xlane.f32.xlu1 %v4328_v60 }
 0xd3f   : > { %v6070_v5 = vunpack.i.h.bf16 %v6068_v42  ;;  %v6069_v20 = vunpack.i.l.bf16 %v6068_v42  ;;  %4103 = vmax.xlane.f32.xlu0 %v4102_v27  ;;  %v3342_v27 = vpop.f32.mrf.mxu0 }
 0xd41   : > { %v2483_v22 = vsel %vm1436_vm1, %v2479_v61, %v6070_v5  ;;  %v2482_v31 = vsel %vm1436_vm1, %v2478_v56, %v6069_v20  ;;  %v6076_v5 = vpack.i.bf16 %v2833_v49, %v9211_v32  ;;  %v3354_v32 = vmul.f32 %v6504_v47, %v3340_v52  ;;  %v10538_v47 = vld [vmem:[#allocation97_spill] sm:$0xff] }
 0xd42   : > { %v9425_v60 = vsel %vm1441_vm2, %v2482_v31, %v5979_v11  ;;  %v9428_v14 = vsel %vm1441_vm2, %v2483_v22, %v5980_v43  ;;  %v5975_v49 = vunpack.i.h.bf16 %v10536_v63 }
 0xd43   : > { %10534 = vst [vmem:[#allocation82_spill] sm:$0xff] %v9425_v60 }
 0xd44   : > { %10535 = vst [vmem:[#allocation50_spill] sm:$0xff] %v9428_v14 }
 0xd47   : > { %v9436_v42 = vpop.f32.mrf.mxu0 }
 0xd48   : > { %4249 = vrot.lane.b32.xlu2 %v9365_v59, %s6970_s8 }
 0xd4f   : > { %v9442_v50 = vpop.f32.mrf.mxu0  ;;  %v9447_v26 = vpop.xlane.xlu0 %3312 }
 0xd50   : > { %6077 = vrot.lane.b32.xlu2 %v6076_v5, %s6971_s14  ;;  %v5974_v5 = vunpack.i.l.bf16 %v10536_v63 }
 0xd52   : > { %v3310_v43 = vpop.xlane.xlu2 %3309 }
 0xd53   : > { %6505 = vrcp.f32 %v3310_v43  ;;  %4479 = vrot.lane.b32.xlu0 %v9307_v9, %s6969_s27 }
 0xd54   : > { %6507 = vrcp.f32 %v9080_v33 }
 0xd57   : > { %4481 = vrot.lane.b32.xlu1 %v9365_v59, %s6969_s27  ;;  %v3624_v31 = vpop.f32.mrf.mxu0  ;;  %v3927_v48 = vpop.xlane.xlu0 %3926 }
 0xd59   : > { %v6506_v54 = vpop.eup %6505 }
 0xd5a   : > { %v3355_v20 = vmul.f32 %v6506_v54, %v3342_v27  ;;  %v3597_v11 = vpop.xlane.xlu2 %3596  ;;  %v6508_v56 = vpop.eup %6507  ;;  %v5985_v54 = vunpack.i.h.bf16 %v10538_v47 }
 0xd5b   : > { %6509 = vrcp.f32 %v3597_v11  ;;  %v2075_v61 = vmul.f32 %v6508_v56, %v9099_v28 }
 0xd5c   : > { %v6086_v34 = vpack.i.bf16 %v3355_v20, %v3354_v32  ;;  %v5984_v32 = vunpack.i.l.bf16 %v10538_v47  ;;  %v2480_v20 = vsel %vm912_vm0, %v9092_v39, %v5974_v5  ;;  %v3933_v39 = vsub.f32 %v9224_v10, %v3927_v48 }
 0xd5d   : > { %v2481_v28 = vsel %vm912_vm0, %v2075_v61, %v5975_v49  ;;  %v9475_v49 = vpop.f32.mrf.mxu3  ;;  %v9480_v47 = vadd.f32 %v9051_v1, %v9338_v16 }
 0xd5e   : > { %v3939_v5 = vmul.f32 1.442695, %v3933_v39 }
 0xd5f   : > { %6087 = vrot.lane.b32.xlu1 %v6086_v34, %s6971_s14  ;;  %v9473_v61 = vpop.xlane.xlu0 %3813  ;;  %v4441_v48 = vsel %vm912_vm0, %v9480_v47, -inf }
 0xd60   : > { %6511 = vpow2.f32 %v3939_v5 }
 0xd61   : > { %v6510_v22 = vpop.eup %6509 }
 0xd62   : > { %v9453_v43 = vmul.f32 %v6510_v22, %v3624_v31  ;;  %v6073_v33 = vpop.permute.xlu2 %6072 }
 0xd63   : > { %v6075_v52 = vunpack.i.h.bf16 %v6073_v33  ;;  %v6074_v27 = vunpack.i.l.bf16 %v6073_v33 }
 0xd64   : > { %10537 = vst [vmem:[#allocation49_spill] sm:$0xff] %v9453_v43 }
 0xd65   : > { %v2484_v11 = vsel %vm1436_vm1, %v2480_v20, %v6074_v27  ;;  %v2485_v34 = vsel %vm1436_vm1, %v2481_v28, %v6075_v52  ;;  %v4436_v27 = vpop.f32.mrf.mxu1 }
 0xd66   : > { %v9463_v56 = vsel %vm1441_vm2, %v2484_v11, %v5984_v32  ;;  %v9466_v22 = vsel %vm1441_vm2, %v2485_v34, %v5985_v54  ;;  %v9485_v10 = vadd.f32 %v9221_v40, %v4436_v27  ;;  %v9489_v32 = vpop.eup %6511 }
 0xd67   : > { %10539 = vst [vmem:[#allocation25_spill] sm:$0xff] %v9463_v56  ;;  %4363 = vrot.lane.b32.xlu1 %v9307_v9, %s6971_s14  ;;  %v9482_v54 = vpop.xlane.xlu0 %4094 }
 0xd68   : > { %10540 = vst [vmem:[#allocation38_spill] sm:$0xff] %v9466_v22  ;;  %v4447_v1 = vsel %vm912_vm0, %v9485_v10, -inf  ;;  %v10543_v22 = vld [vmem:[#allocation104_spill] sm:$0xff] }
 0xd69   : > { %v3316_v63 = vpop.xlane.xlu1 %3315  ;;  %10541 = vst [vmem:[#allocation36_spill] sm:$0xff] %v9489_v32  ;;  %v6010_v60 = vunpack.i.h.bf16 %v10543_v22  ;;  %v6009_v14 = vunpack.i.l.bf16 %v10543_v22 }
 0xd6d   : > { %v4438_v16 = vpop.f32.mrf.mxu1 }
 0xd71   : > { %v3930_v33 = vpop.xlane.xlu1 %3929 }
 0xd72   : > { %v3934_v52 = vsub.f32 %v9285_v13, %v3930_v33  ;;  %v4322_v13 = vpop.f32.mrf.mxu3 }
 0xd73   : > { %v9504_v39 = vadd.f32 %v9240_v24, %v4322_v13 }
 0xd74   : > { %v3941_v9 = vmul.f32 1.442695, %v3934_v52 }
 0xd75   : > { %v4334_v33 = vsel %vm912_vm0, %v9504_v39, -inf  ;;  %v4719_v31 = vpop.f32.mrf.mxu1 }
 0xd76   : > { %6513 = vpow2.f32 %v3941_v9 }
 0xd77   : > { %6515 = vrcp.f32 %v9163_v0 }
 0xd78   : > { %6517 = vrcp.f32 %v3316_v63 }
 0xd79   : > { %4442 = vmax.xlane.f32.xlu2 %v4441_v48  ;;  %v9491_v20 = vpop.xlane.xlu1 %4208  ;;  %v10542_v48 = vld [vmem:[#allocation100_spill] sm:$0xff]  ;;  %6519 = vrcp.f32 %v9447_v26 }
 0xd7a   : > { %v9500_v34 = vpop.permute.xlu0 %4247  ;;  %v4605_v52 = vpop.f32.mrf.mxu3  ;;  %v5994_v0 = vunpack.i.l.bf16 %v10542_v48 }
 0xd7c   : > { %v9493_v28 = vpop.eup %6513 }
 0xd7d   : > { %4448 = vmax.xlane.f32.xlu0 %v4447_v1  ;;  %v3956_v11 = vpack.c.bf16 %v9493_v28, %v9489_v32  ;;  %v6516_v5 = vpop.eup %6515  ;;  %v5995_v1 = vunpack.i.h.bf16 %v10542_v48 }
 0xd7e   : > { %v2597_v27 = vmul.f32 %v6516_v5, %v9186_v46  ;;  %v3002_v46 = vsel %vm912_vm0, %v9176_v55, %v5994_v0  ;;  %v6518_v63 = vpop.eup %6517 }
 0xd7f   : > { %5704 = vmatmul.msk.bf16.gmra.mxu2 %vm912_vm0, %v3956_v11  ;;  %v9514_v11 = vadd.f32 %v9264_v15, %v4605_v52  ;;  %v6520_v26 = vpop.eup %6519  ;;  %v9547_v52 = vadd.f32 %v9294_v25, %v4719_v31  ;;  %v10545_v25 = vld [vmem:[#allocation89_spill] sm:$0xff] }
 0xd80   : > { %v3003_v5 = vsel %vm912_vm0, %v2597_v27, %v5995_v1  ;;  %v3356_v27 = vmul.f32 %v6520_v26, %v9436_v42  ;;  %v3818_v1 = vsub.f32 %v9243_v36, %v9473_v61  ;;  %v895_v31 = vadd.f32 %v10545_v25, %v10518_v37 }
 0xd81   : > { %v9509_v9 = vpop.xlane.xlu1 %4097  ;;  %v4615_v55 = vsel %vm912_vm0, %v9514_v11, -inf  ;;  %v4219_v26 = vsub.f32 %v9297_v2, %v9491_v20  ;;  %v4105_v20 = vsub.f32 %v9267_v3, %v9482_v54 }
 0xd85   : > { %4335 = vmax.xlane.f32.xlu0 %v4334_v33 }
 0xd87   : > { %v6083_v43 = vpop.permute.xlu0 %6082 }
 0xd88   : > { %v6085_v13 = vunpack.i.h.bf16 %v6083_v43  ;;  %v6084_v56 = vunpack.i.l.bf16 %v6083_v43  ;;  %v9530_v43 = vadd.f32 %v9282_v18, %v4438_v16  ;;  %v3357_v16 = vmul.f32 %v6518_v63, %v9442_v50 }
 0xd8a   : > { %v3006_v33 = vsel %vm1436_vm1, %v3002_v46, %v6084_v56  ;;  %v3007_v48 = vsel %vm1436_vm1, %v3003_v5, %v6085_v13  ;;  %v9537_v56 = vpop.xlane.xlu1 %4214  ;;  %v6091_v0 = vpack.i.bf16 %v3357_v16, %v3356_v27  ;;  %v4729_v13 = vsel %vm912_vm0, %v9547_v52, -inf  ;;  %v4607_v46 = vpop.f32.mrf.mxu3 }
 0xd8b   : > { %v9524_v32 = vsel %vm1441_vm2, %v3006_v33, %v6009_v14  ;;  %v9527_v15 = vsel %vm1441_vm2, %v3007_v48, %v6010_v60  ;;  %v4450_v14 = vsel %vm912_vm0, %v9530_v43, -inf  ;;  %v9541_v60 = vpop.f32.mrf.mxu1  ;;  %v3825_v33 = vmul.f32 1.442695, %v3818_v1 }
 0xd8c   : > { %v9562_v36 = vadd.f32 %v9311_v38, %v4607_v46  ;;  %v4223_v46 = vmul.f32 1.442695, %v4219_v26 }
 0xd8d   : > { %4616 = vmax.xlane.f32.xlu0 %v4615_v55  ;;  %6521 = vpow2.f32 %v3825_v33 }
 0xd91   : > { %4365 = vrot.lane.b32.xlu2 %v9365_v59, %s6971_s14  ;;  %4451 = vmax.xlane.f32.xlu1 %v4450_v14  ;;  %v10544_v59 = vld [vmem:[#allocation88_spill] sm:$0xff]  ;;  %v4618_v14 = vsel %vm912_vm0, %v9562_v36, -inf }
 0xd92   : > { %v9554_v5 = vpop.xlane.xlu1 %4217  ;;  %v893_v50 = vadd.f32 %v10544_v59, %v10518_v37  ;;  %v4106_v59 = vsub.f32 %v9314_v23, %v9509_v9  ;;  %v4610_v25 = vpop.f32.mrf.mxu3  ;;  %v6730_v9 = vld [vmem:[#allocation8 + $0x38] sm:$0xff] }
 0xd93   : > { %v4724_v42 = vpop.f32.mrf.mxu1  ;;  %v9579_v1 = vpop.eup %6521 }
 0xd94   : > { %v9565_v63 = vpack.c.bf16 %v895_v31, %v893_v50 }
 0xd99   : > { %4730 = vmax.xlane.f32.xlu1 %v4729_v13  ;;  %6092 = vrot.lane.b32.xlu2 %v6091_v0, %s6971_s14 }
 0xd9a   : > { %v9573_v16 = vpop.xlane.xlu1 %4100 }
 0xd9b   : > { %v3811_v48 = vpop.xlane.xlu2 %3810  ;;  %v4726_v0 = vpop.f32.mrf.mxu1 }
 0xd9c   : > { %v3817_v61 = vsub.f32 %v9353_v35, %v3811_v48  ;;  %v9576_v35 = vadd.f32 %v9321_v44, %v4724_v42  ;;  %v4111_v44 = vmul.f32 1.442695, %v4106_v59  ;;  %v9593_v31 = vadd.f32 %v6730_v9, %v4726_v0 }
 0xd9d   : > { %v4109_v42 = vmul.f32 1.442695, %v4105_v20  ;;  %v10547_v20 = vld [vmem:[#allocation102_spill] sm:$0xff] }
 0xd9e   : > { %v3823_v55 = vmul.f32 1.442695, %v3817_v61  ;;  %v4222_v61 = vsub.f32 %v9330_v53, %v9554_v5  ;;  %v9619_v5 = vadd.f32 %v9344_v58, %v4610_v25 }
 0xda0   : > { %6523 = vpow2.f32 %v3823_v55  ;;  %v4738_v55 = vsel %vm912_vm0, %v9593_v31, -inf }
 0xda1   : > { %4619 = vmax.xlane.f32.xlu1 %v4618_v14  ;;  %4769 = vrot.lane.b32.xlu0 %v9565_v63, %s6970_s8 }
 0xda2   : > { %v9595_v33 = vpop.xlane.xlu1 %4445 }
 0xda3   : > { %v4212_v38 = vpop.xlane.xlu2 %4211  ;;  %v9599_v48 = vpop.f32.mrf.mxu1 }
 0xda4   : > { %v4220_v27 = vsub.f32 %v9379_v30, %v4212_v38  ;;  %v4735_v30 = vsel %vm912_vm0, %v9576_v35, -inf  ;;  %v4221_v38 = vsub.f32 %v9324_v7, %v9537_v56  ;;  %v5999_v7 = vunpack.i.l.bf16 %v10547_v20 }
 0xda6   : > { %v9581_v13 = vpop.eup %6523  ;;  %v4225_v50 = vmul.f32 1.442695, %v4220_v27  ;;  %v10546_v27 = vld [vmem:[#allocation99_spill] sm:$0xff] }
 0xda7   : > { %v3840_v2 = vpack.c.bf16 %v9579_v1, %v9581_v13  ;;  %v5990_v0 = vunpack.i.h.bf16 %v10546_v27 }
 0xda8   : > { %6525 = vpow2.f32 %v4225_v50 }
 0xda9   : > { %6527 = vrcp.f32 %v9118_v12  ;;  %4736 = vmax.xlane.f32.xlu1 %v4735_v30  ;;  %5700 = vmatmul.msk.bf16.gmra.mxu0 %vm912_vm0, %v3840_v2  ;;  %v6000_v30 = vunpack.i.h.bf16 %v10547_v20 }
 0xdaa   : > { %6529 = vpow2.f32 %v4223_v46  ;;  %v5989_v46 = vunpack.i.l.bf16 %v10546_v27 }
 0xdab   : > { %v4250_v23 = vpop.permute.xlu2 %4249  ;;  %6531 = vpow2.f32 %v4111_v44  ;;  %v4612_v44 = vpop.f32.mrf.mxu3 }
 0xdac   : > { %4265 = vmatpush.bf16.msra.mxu2 %v4250_v23  ;;  %6533 = vpow2.f32 %v4109_v42  ;;  %v3000_v56 = vsel %vm912_vm0, %v9140_v19, %v5989_v46  ;;  %v4227_v42 = vmul.f32 1.442695, %v4221_v38  ;;  %v4955_v27 = vpop.f32.mrf.mxu1  ;;  %v6731_v46 = vld [vmem:[#allocation8 + $0x68] sm:$0xff] }
 0xdae   : > { %v9597_v3 = vpop.eup %6525 }
 0xdaf   : > { %v6528_v54 = vpop.eup %6527 }
 0xdb0   : > { %v9601_v12 = vpop.eup %6529  ;;  %4266 = vmatpush.bf16.msra.mxu2 %v9500_v34  ;;  %v2595_v14 = vmul.f32 %v6528_v54, %v9165_v8  ;;  %v4229_v8 = vmul.f32 1.442695, %v4222_v61 }
 0xdb1   : > { %v4243_v26 = vpack.c.bf16 %v9597_v3, %v9601_v12  ;;  %4739 = vmax.xlane.f32.xlu1 %v4738_v55  ;;  %v9616_v34 = vpop.eup %6531  ;;  %v9633_v55 = vpop.xlane.xlu1 %4326 }
 0xdb2   : > { %v4104_v59 = vpop.xlane.xlu0 %4103  ;;  %v3001_v23 = vsel %vm912_vm0, %v2595_v14, %v5990_v0  ;;  %v9626_v9 = vpop.eup %6533  ;;  %6535 = vpow2.f32 %v4229_v8  ;;  %v4107_v14 = vsub.f32 %v9347_v62, %v9573_v16  ;;  %v9652_v8 = vadd.f32 %v9349_v6, %v9475_v49 }
 0xdb3   : > { %v6078_v53 = vpop.permute.xlu2 %6077  ;;  %5711 = vmatmul.msk.bf16.vlgmr.msra.gmra.mxu2 %vm912_vm0, %v4243_v26  ;;  %v4108_v54 = vsub.f32 %v9408_v29, %v4104_v59  ;;  %v4129_v61 = vpack.c.bf16 %v9616_v34, %v9626_v9  ;;  %v4621_v29 = vsel %vm912_vm0, %v9619_v5, -inf  ;;  %6537 = vpow2.f32 %v4227_v42  ;;  %v4837_v16 = vpop.f32.mrf.mxu3 }
 0xdb4   : > { %v6080_v50 = vunpack.i.h.bf16 %v6078_v53  ;;  %v6079_v2 = vunpack.i.l.bf16 %v6078_v53  ;;  %v9648_v59 = vadd.f32 %v6731_v46, %v4955_v27  ;;  %v4113_v53 = vmul.f32 1.442695, %v4107_v14  ;;  %v10549_v46 = vld [vmem:[#allocation37_spill] sm:$0xff] }
 0xdb5   : > { %v4115_v0 = vmul.f32 1.442695, %v4108_v54  ;;  %v9677_v54 = vadd.f32 %v9405_v57, %v4612_v44 }
 0xdb6   : > { %v3005_v58 = vsel %vm1436_vm1, %v3001_v23, %v6080_v50  ;;  %v3004_v25 = vsel %vm1436_vm1, %v3000_v56, %v6079_v2  ;;  %v4966_v2 = vsel %vm912_vm0, %v9648_v59, -inf  ;;  %v9668_v56 = vadd.f32 %v9391_v51, %v4837_v16 }
 0xdb7   : > { %v9636_v26 = vsel %vm1441_vm2, %v3004_v25, %v5999_v7  ;;  %v9639_v19 = vsel %vm1441_vm2, %v3005_v58, %v6000_v30  ;;  %6539 = vpow2.f32 %v4115_v0  ;;  %v4331_v30 = vsel %vm912_vm0, %v9652_v8, -inf }
 0xdb8   : > { %v5106_v38 = vpack.c.bf16 %v9639_v19, %v9636_v26  ;;  %v9654_v62 = vpop.eup %6535  ;;  %6541 = vpow2.f32 %v4113_v53  ;;  %v9672_v23 = vadd.f32 %v9375_v17, %v9541_v60  ;;  %v4847_v51 = vsel %vm912_vm0, %v9668_v56, -inf }
 0xdb9   : > { %4622 = vmax.xlane.f32.xlu1 %v4621_v29  ;;  %5707 = vmatmul.msk.bf16.vlgmr.msrb.gmra.mxu0 %vm912_vm0, %v4129_v61  ;;  %v9656_v50 = vpop.eup %6537  ;;  %v4330_v20 = vpop.xlane.xlu1 %4329  ;;  %6543 = vrcp.f32 %v9342_v41  ;;  %v4624_v57 = vsel %vm912_vm0, %v9677_v54, -inf  ;;  %v10548_v29 = vld [vmem:[#allocation72_spill] sm:$0xff]  ;;  %v6020_v53 = vunpack.i.h.bf16 %v10549_v46  ;;  %v6019_v16 = vunpack.i.l.bf16 %v10549_v46  ;;  %v10553_v46 = vld [vmem:[#allocation67_spill] sm:$0xff] }
 0xdba   : > { %v4244_v7 = vpack.c.bf16 %v9654_v62, %v9656_v50  ;;  %6545 = vrcp.f32 %v9258_v21  ;;  %v4732_v17 = vsel %vm912_vm0, %v9672_v23, -inf  ;;  %v10598_v26 = vpack.c.bf16 %v9527_v15, %v9524_v32 }
 0xdbb   : > { %v4839_v25 = vpop.f32.mrf.mxu3 }
 0xdbc   : > { %v9691_v21 = vadd.f32 %v9400_v45, %v4839_v25  ;;  %v10550_v45 = vld [vmem:[#allocation33_spill] sm:$0xff] }
 0xdbd   : > { %v9665_v49 = vpop.eup %6539 }
 0xdbe   : > { %v9674_v42 = vpop.eup %6541  ;;  %v4850_v0 = vsel %vm912_vm0, %v9691_v21, -inf }
 0xdbf   : > { %v4130_v58 = vpack.c.bf16 %v9665_v49, %v9674_v42  ;;  %v6544_v41 = vpop.eup %6543 }
 0xdc0   : > { %v6546_v44 = vpop.eup %6545  ;;  %v3117_v27 = vmul.f32 %v6544_v41, %v10548_v29 }
 0xdc1   : > { %4967 = vmax.xlane.f32.xlu1 %v4966_v2  ;;  %v3116_v14 = vmul.f32 %v6546_v44, %v9303_v4  ;;  %v10551_v44 = vld [vmem:[#allocation90_spill] sm:$0xff] }
 0xdc2   : > { %4332 = vmax.xlane.f32.xlu2 %v4331_v30  ;;  %v3523_v4 = vsel %vm912_vm0, %v3117_v27, %v6020_v53  ;;  %v898_v29 = vadd.f32 %v10551_v44, %v10518_v37  ;;  %v4454_v53 = vsub.f32 %v10553_v46, %v9595_v33 }
 0xdc3   : > { %5712 = vmatmul.msk.bf16.gmra.mxu2 %vm912_vm0, %v4244_v7  ;;  %v3522_v25 = vsel %vm912_vm0, %v3116_v14, %v6019_v16  ;;  %v10552_v14 = vld [vmem:[#allocation91_spill] sm:$0xff]  ;;  %v10554_v16 = vld [vmem:[#allocation81_spill] sm:$0xff] }
 0xdc5   : > { %v4480_v60 = vpop.permute.xlu0 %4479 }
 0xdc9   : > { %4848 = vmax.xlane.f32.xlu1 %v4847_v51  ;;  %v4482_v61 = vpop.permute.xlu1 %4481  ;;  %5708 = vmatmul.msk.bf16.gmra.mxu0 %vm912_vm0, %v4130_v58  ;;  %v6030_v58 = vunpack.i.h.bf16 %v10550_v45  ;;  %v6029_v51 = vunpack.i.l.bf16 %v10550_v45 }
 0xdca   : > { %4733 = vmax.xlane.f32.xlu2 %v4732_v17  ;;  %4497 = vmatpush.bf16.msrb.mxu2 %v4482_v61 }
 0xdcb   : > { %4625 = vmax.xlane.f32.xlu0 %v4624_v57 }
 0xdce   : > { %4498 = vmatpush.bf16.msrb.mxu2 %v4480_v60 }
 0xdd1   : > { %4851 = vmax.xlane.f32.xlu1 %v4850_v0  ;;  %v6088_v2 = vpop.permute.xlu1 %6087  ;;  %v900_v0 = vadd.f32 %v10552_v14, %v10518_v37 }
 0xdd2   : > { %v6090_v30 = vunpack.i.h.bf16 %v6088_v2  ;;  %v6089_v7 = vunpack.i.l.bf16 %v6088_v2  ;;  %v4338_v2 = vsub.f32 %v10554_v16, %v4330_v20  ;;  %v10558_v16 = vld [vmem:[#allocation34_spill] sm:$0xff] }
 0xdd3   : > { %v4583_v27 = vpack.c.bf16 %v900_v0, %v898_v29  ;;  %v10557_v0 = vld [vmem:[#allocation63_spill] sm:$0xff] }
 0xdd4   : > { %v3527_v61 = vsel %vm1436_vm1, %v3523_v4, %v6090_v30  ;;  %v3526_v17 = vsel %vm1436_vm1, %v3522_v25, %v6089_v7  ;;  %v4459_v30 = vmul.f32 1.442695, %v4454_v53  ;;  %v10555_v7 = vld [vmem:[#allocation83_spill] sm:$0xff]  ;;  %v10556_v25 = vld [vmem:[#allocation61_spill] sm:$0xff] }
 0xdd5   : > { %v9706_v57 = vsel %vm1441_vm2, %v3526_v17, %v6029_v51  ;;  %v9709_v41 = vsel %vm1441_vm2, %v3527_v61, %v6030_v58  ;;  %v4337_v45 = vsub.f32 %v10555_v7, %v9633_v55  ;;  %v4343_v58 = vmul.f32 1.442695, %v4338_v2 }
 0xdd6   : > { %6547 = vrcp.f32 %v10556_v25  ;;  %v6025_v2 = vunpack.i.h.bf16 %v10558_v16 }
 0xdd7   : > { %6549 = vpow2.f32 %v4459_v30  ;;  %v4341_v4 = vmul.f32 1.442695, %v4337_v45  ;;  %v6024_v30 = vunpack.i.l.bf16 %v10558_v16 }
 0xdd8   : > { %6551 = vpow2.f32 %v4343_v58 }
 0xddc   : > { %v6548_v33 = vpop.eup %6547 }
 0xddd   : > { %v9729_v17 = vpop.eup %6549  ;;  %v3119_v46 = vmul.f32 %v6548_v33, %v10557_v0 }
 0xdde   : > { %v9731_v55 = vpop.eup %6551 }
 0xddf   : > { %4887 = vrot.lane.b32.xlu0 %v4583_v27, %s6971_s14 }
 0xde2   : > { %4771 = vrot.lane.b32.xlu2 %v4583_v27, %s6970_s8 }
 0xdea   : > { %5003 = vrot.lane.b32.xlu1 %v4583_v27, %s6969_s27 }
 0xdec   : > { %v4443_v51 = vpop.xlane.xlu2 %4442 }
 0xded   : > { %v4453_v37 = vsub.f32 %v9480_v47, %v4443_v51  ;;  %v4364_v47 = vpop.permute.xlu1 %4363 }
 0xdef   : > { %v4457_v61 = vmul.f32 1.442695, %v4453_v37  ;;  %v10559_v37 = vld [vmem:[#allocation40_spill] sm:$0xff] }
 0xdf0   : > { %v4449_v45 = vpop.xlane.xlu0 %4448  ;;  %v6035_v25 = vunpack.i.h.bf16 %v10559_v37 }
 0xdf1   : > { %6553 = vpow2.f32 %v4457_v61  ;;  %v10560_v61 = vld [vmem:[#allocation26_spill] sm:$0xff]  ;;  %v4455_v0 = vsub.f32 %v9485_v10, %v4449_v45 }
 0xdf2   : > { %4885 = vrot.lane.b32.xlu1 %v9565_v63, %s6971_s14  ;;  %6555 = vpow2.f32 %v4341_v4  ;;  %v6034_v4 = vunpack.i.l.bf16 %v10559_v37  ;;  %v3524_v33 = vsel %vm912_vm0, %v10560_v61, %v6024_v30 }
 0xdf3   : > { %v4461_v30 = vmul.f32 1.442695, %v4455_v0 }
 0xdf4   : > { %v4366_v20 = vpop.permute.xlu2 %4365 }
 0xdf5   : > { %4381 = vmatpush.bf16.msra.mxu0 %v4366_v20  ;;  %v3525_v20 = vsel %vm912_vm0, %v3119_v46, %v6025_v2  ;;  %6557 = vpow2.f32 %v4461_v30  ;;  %v10594_v46 = vld [vmem:[#allocation25_spill] sm:$0xff] }
 0xdf7   : > { %v9733_v44 = vpop.eup %6553 }
 0xdf8   : > { %v4477_v29 = vpack.c.bf16 %v9729_v17, %v9733_v44  ;;  %v6556_v14 = vpop.eup %6555 }
 0xdf9   : > { %4382 = vmatpush.bf16.msra.mxu0 %v4364_v47  ;;  %v4361_v53 = vpack.c.bf16 %v9731_v55, %v6556_v14 }
 0xdfa   : > { %5719 = vmatmul.msk.bf16.vlgmr.msrb.gmra.mxu2 %vm912_vm0, %v4477_v29 }
 0xdfc   : > { %v6093_v7 = vpop.permute.xlu2 %6092  ;;  %5715 = vmatmul.msk.bf16.vlgmr.msra.gmra.mxu0 %vm912_vm0, %v4361_v53 }
 0xdfd   : > { %4665 = vmatpush.bf16.msrb.mxu0 %v4583_v27  ;;  %v6095_v58 = vunpack.i.h.bf16 %v6093_v7  ;;  %v6094_v51 = vunpack.i.l.bf16 %v6093_v7  ;;  %v9749_v27 = vpop.f32.mrf.mxu3  ;;  %v4958_v7 = vpop.f32.mrf.mxu1 }
 0xdfe   : > { %v9763_v2 = vadd.f32 %v9221_v40, %v4958_v7 }
 0xdff   : > { %v3528_v47 = vsel %vm1436_vm1, %v3524_v33, %v6094_v51  ;;  %v3529_v29 = vsel %vm1436_vm1, %v3525_v20, %v6095_v58  ;;  %v6732_v58 = vld [vmem:[#allocation8 + $0x60] sm:$0xff]  ;;  %v9776_v33 = vpop.eup %6557 }
 0xe00   : > { %v9755_v53 = vsel %vm1441_vm2, %v3528_v47, %v6034_v4  ;;  %v9758_v16 = vsel %vm1441_vm2, %v3529_v29, %v6035_v25  ;;  %v9767_v10 = vadd.f32 %v6732_v58, %v9599_v48  ;;  %v4969_v25 = vsel %vm912_vm0, %v9763_v2, -inf  ;;  %v10561_v58 = vld [vmem:[#allocation53_spill] sm:$0xff] }
 0xe01   : > { %4666 = vmatpush.bf16.msrb.mxu0 %v9565_v63 }
 0xe02   : > { %v4963_v40 = vsel %vm912_vm0, %v9767_v10, -inf }
 0xe04   : > { %v4452_v37 = vpop.xlane.xlu1 %4451 }
 0xe05   : > { %v4456_v51 = vsub.f32 %v9530_v43, %v4452_v37  ;;  %v4844_v4 = vpop.f32.mrf.mxu3  ;;  %v4960_v29 = vpop.f32.mrf.mxu1 }
 0xe06   : > { %v9774_v61 = vadd.f32 %v9240_v24, %v4844_v4  ;;  %v9786_v7 = vadd.f32 %v9282_v18, %v4960_v29  ;;  %v3833_v24 = vsel %vm912_vm0, %v9581_v13, 0.0  ;;  %v3715_v18 = vsel %vm912_vm0, %v10561_v58, 0.0  ;;  %v4336_v4 = vpop.xlane.xlu0 %4335 }
 0xe07   : > { %v4463_v45 = vmul.f32 1.442695, %v4456_v51  ;;  %v3952_v51 = vsel %vm912_vm0, %v9493_v28, 0.0  ;;  %v4349_v13 = vsel %vm912_vm0, %v6556_v14, 0.0  ;;  %v4468_v28 = vsel %vm912_vm0, %v9729_v17, 0.0 }
 0xe08   : > { %v4856_v20 = vsel %vm912_vm0, %v9774_v61, -inf  ;;  %v4972_v30 = vsel %vm912_vm0, %v9786_v7, -inf }
 0xe09   : > { %6559 = vpow2.f32 %v4463_v45  ;;  %4970 = vmax.xlane.f32.xlu0 %v4969_v25  ;;  %v3836_v25 = vsel %vm912_vm0, %v9579_v1, 0.0 }
 0xe0b   : > { %4964 = vmax.xlane.f32.xlu2 %v4963_v40  ;;  %v4340_v40 = vsub.f32 %v9504_v39, %v4336_v4  ;;  %v4352_v39 = vsel %vm912_vm0, %v9731_v55, 0.0 }
 0xe0c   : > { %v4731_v43 = vpop.xlane.xlu1 %4730 }
 0xe0d   : > { %v4741_v17 = vsub.f32 %v9547_v52, %v4731_v43  ;;  %v4237_v52 = vsel %vm912_vm0, %v9656_v50, 0.0 }
 0xe0e   : > { %v4617_v1 = vpop.xlane.xlu0 %4616 }
 0xe0f   : > { %v9778_v48 = vpop.eup %6559 }
 0xe10   : > { %v4478_v47 = vpack.c.bf16 %v9778_v48, %v9776_v33 }
 0xe11   : > { %4857 = vmax.xlane.f32.xlu0 %v4856_v20  ;;  %v4231_v20 = vsel %vm912_vm0, %v9601_v12, 0.0 }
 0xe12   : > { %5720 = vmatmul.msk.bf16.gmra.mxu2 %vm912_vm0, %v4478_v47  ;;  %v4347_v47 = vmul.f32 1.442695, %v4340_v40 }
 0xe14   : > { %v4620_v0 = vpop.xlane.xlu1 %4619  ;;  %6561 = vpow2.f32 %v4347_v47 }
 0xe16   : > { %v4770_v4 = vpop.permute.xlu0 %4769 }
 0xe19   : > { %3834 = vadd.xlane.f32.xlu0 %v3833_v24 }
 0xe1a   : > { %v6562_v58 = vpop.eup %6561 }
 0xe1c   : > { %4973 = vmax.xlane.f32.xlu1 %v4972_v30  ;;  %v9792_v37 = vpop.xlane.xlu1 %4736 }
 0xe21   : > { %3953 = vadd.xlane.f32.xlu0 %v3952_v51 }
 0xe23   : > { %5001 = vrot.lane.b32.xlu2 %v9565_v63, %s6969_s27 }
 0xe24   : > { %3716 = vadd.xlane.f32.xlu1 %v3715_v18  ;;  %v9800_v45 = vpop.xlane.xlu1 %4739 }
 0xe29   : > { %4350 = vadd.xlane.f32.xlu0 %v4349_v13  ;;  %v4745_v13 = vmul.f32 1.442695, %v4741_v17 }
 0xe2c   : > { %3837 = vadd.xlane.f32.xlu1 %v3836_v25  ;;  %v9808_v63 = vpop.xlane.xlu1 %4622 }
 0xe31   : > { %4469 = vadd.xlane.f32.xlu0 %v4468_v28 }
 0xe34   : > { %4232 = vadd.xlane.f32.xlu1 %v4231_v20  ;;  %v9813_v30 = vpop.xlane.xlu1 %4967  ;;  %v4627_v20 = vsub.f32 %v9514_v11, %v4617_v1 }
 0xe35   : > { %v4333_v14 = vpop.xlane.xlu2 %4332 }
 0xe36   : > { %v4339_v29 = vsub.f32 %v9652_v8, %v4333_v14  ;;  %v4628_v8 = vsub.f32 %v9562_v36, %v4620_v0  ;;  %v4631_v36 = vmul.f32 1.442695, %v4627_v20  ;;  %v9827_v0 = vadd.f32 %v9349_v6, %v9749_v27 }
 0xe37   : > { %v4358_v27 = vsel %vm912_vm0, %v6562_v58, 0.0 }
 0xe38   : > { %v4345_v24 = vmul.f32 1.442695, %v4339_v29  ;;  %v4474_v29 = vsel %vm912_vm0, %v9778_v48, 0.0  ;;  %v4853_v6 = vsel %vm912_vm0, %v9827_v0, -inf }
 0xe3a   : > { %6563 = vpow2.f32 %v4345_v24  ;;  %v4744_v24 = vsub.f32 %v9593_v31, %v9800_v45 }
 0xe3c   : > { %4353 = vadd.xlane.f32.xlu1 %v4352_v39  ;;  %v4849_v55 = vpop.xlane.xlu1 %4848  ;;  %v4751_v17 = vmul.f32 1.442695, %v4744_v24 }
 0xe3d   : > { %v4734_v51 = vpop.xlane.xlu2 %4733  ;;  %v4859_v11 = vsub.f32 %v9668_v56, %v4849_v55  ;;  %v4743_v56 = vsub.f32 %v9576_v35, %v9792_v37  ;;  %v4629_v35 = vsub.f32 %v9619_v5, %v9808_v63 }
 0xe3e   : > { %v4742_v12 = vsub.f32 %v9672_v23, %v4734_v51  ;;  %v4633_v23 = vmul.f32 1.442695, %v4628_v8  ;;  %v4626_v14 = vpop.xlane.xlu0 %4625  ;;  %v10562_v8 = vld [vmem:[#allocation17_spill] sm:$0xff] }
 0xe3f   : > { %v4863_v39 = vmul.f32 1.442695, %v4859_v11  ;;  %v4749_v51 = vmul.f32 1.442695, %v4743_v56  ;;  %v4635_v5 = vmul.f32 1.442695, %v4629_v35  ;;  %v9879_v56 = vpop.f32.mrf.mxu0 }
 0xe40   : > { %v6564_v18 = vpop.eup %6563  ;;  %v4747_v25 = vmul.f32 1.442695, %v4742_v12  ;;  %v4630_v12 = vsub.f32 %v9677_v54, %v4626_v14  ;;  %v10563_v54 = vld [vmem:[#allocation16_spill] sm:$0xff] }
 0xe41   : > { %v4355_v28 = vsel %vm912_vm0, %v6564_v18, 0.0  ;;  %v4362_v40 = vpack.c.bf16 %v6562_v58, %v6564_v18 }
 0xe42   : > { %6565 = vpow2.f32 %v4747_v25  ;;  %4356 = vadd.xlane.f32.xlu0 %v4355_v28  ;;  %v3718_v25 = vsel %vm912_vm0, %v10562_v8, 0.0  ;;  %v4637_v28 = vmul.f32 1.442695, %v4630_v12 }
 0xe43   : > { %5716 = vmatmul.msk.bf16.gmra.mxu0 %vm912_vm0, %v4362_v40  ;;  %6567 = vpow2.f32 %v4745_v13 }
 0xe44   : > { %4238 = vadd.xlane.f32.xlu1 %v4237_v52  ;;  %6569 = vpow2.f32 %v4633_v23  ;;  %v4852_v31 = vpop.xlane.xlu1 %4851  ;;  %v10564_v23 = vld [vmem:[#allocation36_spill] sm:$0xff] }
 0xe45   : > { %v4772_v43 = vpop.permute.xlu2 %4771  ;;  %6571 = vpow2.f32 %v4631_v36  ;;  %v4860_v13 = vsub.f32 %v9691_v21, %v4852_v31  ;;  %v3949_v55 = vsel %vm912_vm0, %v10564_v23, 0.0  ;;  %v9884_v31 = vpop.f32.mrf.mxu2 }
 0xe46   : > { %4787 = vmatpush.bf16.msra.mxu2 %v4772_v43  ;;  %6573 = vpow2.f32 %v4863_v39 }
 0xe47   : > { %6575 = vpow2.f32 %v4751_v17  ;;  %v4865_v40 = vmul.f32 1.442695, %v4860_v13  ;;  %v4240_v17 = vsel %vm912_vm0, %v9654_v62, 0.0  ;;  %v10565_v13 = vld [vmem:[#allocation27_spill] sm:$0xff] }
 0xe48   : > { %v6566_v47 = vpop.eup %6565  ;;  %6577 = vpow2.f32 %v4749_v51  ;;  %v4976_v51 = vsub.f32 %v9648_v59, %v9813_v30  ;;  %v3604_v8 = vsel %vm912_vm0, %v10565_v13, 0.0 }
 0xe49   : > { %v6568_v50 = vpop.eup %6567  ;;  %6579 = vpow2.f32 %v4637_v28  ;;  %v4756_v43 = vsel %vm912_vm0, %v6566_v47, 0.0 }
 0xe4a   : > { %4475 = vadd.xlane.f32.xlu0 %v4474_v29  ;;  %4788 = vmatpush.bf16.msra.mxu2 %v4770_v4  ;;  %v4765_v1 = vpack.c.bf16 %v6566_v47, %v6568_v50  ;;  %v9840_v48 = vpop.eup %6569  ;;  %v4753_v18 = vsel %vm912_vm0, %v6568_v50, 0.0  ;;  %v3601_v4 = vsel %vm912_vm0, %v10563_v54, 0.0  ;;  %6581 = vpow2.f32 %v4635_v5 }
 0xe4b   : > { %v9842_v45 = vpop.eup %6571  ;;  %6583 = vpow2.f32 %v4865_v40  ;;  %v4234_v47 = vsel %vm912_vm0, %v9597_v3, 0.0  ;;  %v9886_v3 = vpop.f32.mrf.mxu0 }
 0xe4c   : > { %4854 = vmax.xlane.f32.xlu2 %v4853_v6  ;;  %4359 = vadd.xlane.f32.xlu1 %v4358_v27  ;;  %v4651_v58 = vpack.c.bf16 %v9840_v48, %v9842_v45  ;;  %v6574_v63 = vpop.eup %6573  ;;  %v4465_v27 = vsel %vm912_vm0, %v9733_v44, 0.0  ;;  %v4471_v44 = vsel %vm912_vm0, %v9776_v33, 0.0 }
 0xe4d   : > { %5727 = vmatmul.msk.bf16.vlgmr.msra.gmra.mxu2 %vm912_vm0, %v4765_v1  ;;  %v9856_v20 = vpop.eup %6575  ;;  %v4871_v21 = vsel %vm912_vm0, %v6574_v63, 0.0  ;;  %v9892_v12 = vpop.f32.mrf.mxu2 }
 0xe4e   : > { %v9859_v52 = vpop.eup %6577 }
 0xe4f   : > { %v4766_v36 = vpack.c.bf16 %v9856_v20, %v9859_v52  ;;  %v9867_v14 = vpop.eup %6579 }
 0xe50   : > { %v9869_v29 = vpop.eup %6581 }
 0xe51   : > { %v4888_v37 = vpop.permute.xlu0 %4887  ;;  %v6584_v50 = vpop.eup %6583  ;;  %v4652_v24 = vpack.c.bf16 %v9867_v14, %v9869_v29 }
 0xe52   : > { %4754 = vadd.xlane.f32.xlu0 %v4753_v18  ;;  %4903 = vmatpush.bf16.msra.mxu0 %v4888_v37  ;;  %v4874_v1 = vsel %vm912_vm0, %v6584_v50, 0.0  ;;  %v4883_v39 = vpack.c.bf16 %v6584_v50, %v6574_v63 }
 0xe53   : > { %5723 = vmatmul.msk.bf16.vlgmr.msrb.gmra.mxu0 %vm912_vm0, %v4651_v58  ;;  %v4981_v58 = vmul.f32 1.442695, %v4976_v51  ;;  %v9895_v62 = vpop.f32.mrf.mxu0  ;;  %v5821_v51 = vld [vmem:[#allocation10 + $0x30] sm:$0xff] }
 0xe54   : > { %3719 = vadd.xlane.f32.xlu2 %v3718_v25  ;;  %3602 = vadd.xlane.f32.xlu1 %v3601_v4 }
 0xe55   : > { %6585 = vpow2.f32 %v4981_v58  ;;  %v9899_v59 = vpop.f32.mrf.mxu2 }
 0xe5a   : > { %4872 = vadd.xlane.f32.xlu0 %v4871_v21 }
 0xe5b   : > { %v6586_v25 = vpop.eup %6585  ;;  %v9901_v4 = vpop.f32.mrf.mxu0 }
 0xe5c   : > { %v5004_v11 = vpop.permute.xlu1 %5003  ;;  %3950 = vadd.xlane.f32.xlu2 %v3949_v55  ;;  %4757 = vadd.xlane.f32.xlu1 %v4756_v43 }
 0xe5d   : > { %5728 = vmatmul.msk.bf16.gmra.mxu2 %vm912_vm0, %v4766_v36  ;;  %v9906_v21 = vpop.f32.mrf.mxu2  ;;  %v4990_v36 = vsel %vm912_vm0, %v6586_v25, 0.0 }
 0xe5e   : > { %5019 = vmatpush.bf16.msrb.mxu2 %v5004_v11 }
 0xe63   : > { %5724 = vmatmul.msk.bf16.gmra.mxu0 %vm912_vm0, %v4652_v24  ;;  %v9910_v11 = vpop.f32.mrf.mxu0 }
 0xe64   : > { %v4886_v6 = vpop.permute.xlu1 %4885  ;;  %4235 = vadd.xlane.f32.xlu2 %v4234_v47  ;;  %4875 = vadd.xlane.f32.xlu1 %v4874_v1  ;;  %v4117_v1 = vsel %vm912_vm0, %v9626_v9, 0.0  ;;  %v4762_v9 = vsel %vm912_vm0, %v9856_v20, 0.0  ;;  %v5818_v20 = vld [vmem:[#allocation10 + $0x18] sm:$0xff] }
 0xe65   : > { %4904 = vmatpush.bf16.msra.mxu0 %v4886_v6 }
 0xe6c   : > { %4466 = vadd.xlane.f32.xlu2 %v4465_v27  ;;  %v3867_v27 = vpop.f32.mrf.mxu0 }
 0xe73   : > { %5731 = vmatmul.msk.bf16.vlgmr.msra.gmra.mxu0 %vm912_vm0, %v4883_v39  ;;  %v5822_v39 = vld [vmem:[#allocation10 + $0x38] sm:$0xff] }
 0xe74   : > { %4241 = vadd.xlane.f32.xlu2 %v4240_v17  ;;  %5184 = vmatpush.bf16.msrb.mxu0 %v5822_v39 }
 0xe75   : > { %5840 = vmatpush.bf16.msra.mxu3 %v5822_v39 }
 0xe78   : > { %5185 = vmatpush.bf16.msrb.mxu0 %v5821_v51 }
 0xe79   : > { %5841 = vmatpush.bf16.msra.mxu3 %v5821_v51 }
 0xe7c   : > { %4472 = vadd.xlane.f32.xlu2 %v4471_v44  ;;  %v4971_v33 = vpop.xlane.xlu0 %4970 }
 0xe7d   : > { %v4977_v5 = vsub.f32 %v9763_v2, %v4971_v33  ;;  %v9912_v2 = vpop.f32.mrf.mxu2  ;;  %v5819_v33 = vld [vmem:[#allocation10 + $0x20] sm:$0xff] }
 0xe7e   : > { %v4965_v35 = vpop.xlane.xlu2 %4964 }
 0xe7f   : > { %v4975_v37 = vsub.f32 %v9767_v10, %v4965_v35  ;;  %v4983_v63 = vmul.f32 1.442695, %v4977_v5  ;;  %v5820_v35 = vld [vmem:[#allocation10 + $0x28] sm:$0xff] }
 0xe80   : > { %5186 = vmatpush.bf16.msrb.mxu0 %v5820_v35  ;;  %5842 = vmatpush.bf16.msra.mxu3 %v5820_v35  ;;  %v5816_v5 = vld [vmem:[#allocation10 + $0x8] sm:$0xff]  ;;  %v10567_v35 = vld [vmem:[#allocation74_spill] sm:$0xff] }
 0xe81   : > { %v4979_v18 = vmul.f32 1.442695, %v4975_v37 }
 0xe83   : > { %6587 = vpow2.f32 %v4979_v18  ;;  %v3869_v18 = vpop.f32.mrf.mxu0 }
 0xe84   : > { %3605 = vadd.xlane.f32.xlu2 %v3604_v8  ;;  %v4858_v55 = vpop.xlane.xlu0 %4857  ;;  %6589 = vpow2.f32 %v4983_v63  ;;  %5187 = vmatpush.bf16.msrb.mxu0 %v5819_v33  ;;  %v5815_v63 = vld [vmem:[#allocation10] sm:$0xff] }
 0xe85   : > { %v9923_v44 = vpop.f32.mrf.mxu2  ;;  %5843 = vmatpush.bf16.msra.mxu3 %v5819_v33 }
 0xe86   : > { %v5002_v30 = vpop.permute.xlu2 %5001 }
 0xe87   : > { %5020 = vmatpush.bf16.msrb.mxu2 %v5002_v30 }
 0xe88   : > { %5188 = vmatpush.bf16.msrb.mxu0 %v5818_v20 }
 0xe89   : > { %v6588_v54 = vpop.eup %6587  ;;  %5844 = vmatpush.bf16.msra.mxu3 %v5818_v20 }
 0xe8a   : > { %v4999_v28 = vpack.c.bf16 %v6586_v25, %v6588_v54  ;;  %v4987_v10 = vsel %vm912_vm0, %v6588_v54, 0.0  ;;  %v9914_v24 = vpop.eup %6589  ;;  %v5817_v54 = vld [vmem:[#allocation10 + $0x10] sm:$0xff] }
 0xe8b   : > { %4988 = vadd.xlane.f32.xlu1 %v4987_v10 }
 0xe8c   : > { %5735 = vmatmul.msk.bf16.vlgmr.msrb.gmra.mxu2 %vm912_vm0, %v4999_v28  ;;  %v9930_v28 = vpop.f32.mrf.mxu0  ;;  %5189 = vmatpush.bf16.msrb.mxu0 %v5817_v54 }
 0xe8d   : > { %v9927_v25 = vpop.f32.mrf.mxu2  ;;  %5845 = vmatpush.bf16.msra.mxu3 %v5817_v54 }
 0xe8f   : > { %v4974_v40 = vpop.xlane.xlu1 %4973 }
 0xe90   : > { %v4978_v23 = vsub.f32 %v9786_v7, %v4974_v40  ;;  %v3835_v7 = vpop.xlane.xlu0 %3834  ;;  %5190 = vmatpush.bf16.msrb.mxu0 %v5816_v5  ;;  %v4862_v40 = vsub.f32 %v9774_v61, %v4858_v55 }
 0xe91   : > { %5846 = vmatpush.bf16.msra.mxu3 %v5816_v5  ;;  %v10568_v5 = vld [vmem:[#allocation101_spill] sm:$0xff] }
 0xe92   : > { %v4985_v43 = vmul.f32 1.442695, %v4978_v23 }
 0xe93   : > { %4991 = vadd.xlane.f32.xlu1 %v4990_v36  ;;  %v4869_v36 = vmul.f32 1.442695, %v4862_v40  ;;  %v6004_v40 = vunpack.i.l.bf16 %v10568_v5 }
 0xe94   : > { %6591 = vpow2.f32 %v4985_v43  ;;  %5191 = vmatpush.bf16.msrb.mxu0 %v5815_v63  ;;  %v9935_v43 = vpop.f32.mrf.mxu0 }
 0xe95   : > { %6593 = vrcp.f32 %v3835_v7  ;;  %v3985_v10 = vpop.f32.mrf.mxu2  ;;  %5847 = vmatpush.bf16.msra.mxu3 %v5815_v63  ;;  %v6005_v63 = vunpack.i.h.bf16 %v10568_v5 }
 0xe97   : > { %v3717_v50 = vpop.xlane.xlu1 %3716 }
 0xe98   : > { %v3954_v51 = vpop.xlane.xlu0 %3953 }
 0xe9a   : > { %v9916_v47 = vpop.eup %6591 }
 0xe9b   : > { %4118 = vadd.xlane.f32.xlu1 %v4117_v1  ;;  %v5000_v6 = vpack.c.bf16 %v9916_v47, %v9914_v24  ;;  %v6594_v58 = vpop.eup %6593 }
 0xe9c   : > { %v3878_v13 = vmul.f32 %v6594_v58, %v3867_v27  ;;  %v9940_v39 = vpop.f32.mrf.mxu0 }
 0xe9d   : > { %5736 = vmatmul.msk.bf16.gmra.mxu2 %vm912_vm0, %v5000_v6  ;;  %v9933_v23 = vpop.f32.mrf.mxu2 }
 0xe9f   : > { %v3838_v17 = vpop.xlane.xlu1 %3837 }
 0xea0   : > { %6595 = vrcp.f32 %v3838_v17 }
 0xea1   : > { %6597 = vpow2.f32 %v4869_v36 }
 0xea3   : > { %4763 = vadd.xlane.f32.xlu1 %v4762_v9 }
 0xea4   : > { %v9955_v33 = vpop.f32.mrf.mxu0 }
 0xea5   : > { %v9938_v27 = vpop.f32.mrf.mxu2 }
 0xea6   : > { %v6596_v37 = vpop.eup %6595 }
 0xea7   : > { %v3879_v8 = vmul.f32 %v6596_v37, %v3869_v18  ;;  %v9942_v61 = vpop.eup %6597  ;;  %v4233_v37 = vpop.xlane.xlu1 %4232 }
 0xea9   : > { %v6101_v30 = vpack.i.bf16 %v3879_v8, %v3878_v13 }
 0xeab   : > { %6102 = vrot.lane.b32.xlu0 %v6101_v30, %s6971_s14 }
 0xead   : > { %v9953_v30 = vpop.f32.mrf.mxu2 }
 0xebf   : > { %v4855_v1 = vpop.xlane.xlu2 %4854 }
 0xec0   : > { %v4861_v7 = vsub.f32 %v9827_v0, %v4855_v1  ;;  %v10566_v0 = vld [vmem:[#allocation73_spill] sm:$0xff]  ;;  %v10569_v1 = vld [vmem:[#allocation75_spill] sm:$0xff] }
 0xec2   : > { %v4867_v6 = vmul.f32 1.442695, %v4861_v7 }
 0xec4   : > { %6599 = vpow2.f32 %v4867_v6  ;;  %v10570_v6 = vld [vmem:[#allocation56_spill] sm:$0xff] }
 0xec5   : > { %6601 = vrcp.f32 %v3717_v50 }
 0xec7   : > { %v3720_v17 = vpop.xlane.xlu2 %3719 }
 0xec8   : > { %6603 = vrcp.f32 %v3720_v17  ;;  %v6040_v17 = vunpack.i.h.bf16 %v10570_v6 }
 0xec9   : > { %6605 = vrcp.f32 %v10566_v0 }
 0xeca   : > { %v9944_v55 = vpop.eup %6599  ;;  %6607 = vrcp.f32 %v10567_v35 }
 0xecb   : > { %v4884_v9 = vpack.c.bf16 %v9942_v61, %v9944_v55  ;;  %v6602_v58 = vpop.eup %6601  ;;  %6609 = vrcp.f32 %v3954_v51  ;;  %v10571_v51 = vld [vmem:[#allocation77_spill] sm:$0xff] }
 0xecc   : > { %v3762_v50 = vmul.f32 %v6602_v58, %v9899_v59  ;;  %v6039_v59 = vunpack.i.l.bf16 %v10570_v6  ;;  %v10572_v58 = vld [vmem:[#allocation22_spill] sm:$0xff] }
 0xecd   : > { %5732 = vmatmul.msk.bf16.gmra.mxu0 %vm912_vm0, %v4884_v9  ;;  %v6050_v0 = vunpack.i.h.bf16 %v10572_v58  ;;  %v6049_v35 = vunpack.i.l.bf16 %v10572_v58 }
 0xece   : > { %v6604_v18 = vpop.eup %6603 }
 0xecf   : > { %v3763_v13 = vmul.f32 %v6604_v18, %v9906_v21  ;;  %v3951_v8 = vpop.xlane.xlu2 %3950  ;;  %v6606_v54 = vpop.eup %6605  ;;  %v4759_v18 = vsel %vm912_vm0, %v9859_v52, 0.0 }
 0xed0   : > { %6611 = vrcp.f32 %v3951_v8  ;;  %v6608_v36 = vpop.eup %6607  ;;  %v1011_v7 = vmul.f32 %v6606_v54, %v10569_v1  ;;  %v4351_v54 = vpop.xlane.xlu0 %4350 }
 0xed1   : > { %v6096_v20 = vpack.i.bf16 %v3763_v13, %v3762_v50  ;;  %v6610_v21 = vpop.eup %6609  ;;  %v1012_v9 = vmul.f32 %v6608_v36, %v10571_v51  ;;  %6613 = vrcp.f32 %v4233_v37  ;;  %v4354_v1 = vpop.xlane.xlu1 %4353  ;;  %v10573_v37 = vld [vmem:[#allocation76_spill] sm:$0xff] }
 0xed2   : > { %v1432_v8 = vsel %vm912_vm0, %v1011_v7, %v6004_v40  ;;  %v3995_v36 = vmul.f32 %v6610_v21, %v3985_v10  ;;  %v10574_v7 = vld [vmem:[#allocation80_spill] sm:$0xff] }
 0xed3   : > { %6097 = vrot.lane.b32.xlu2 %v6096_v20, %s6969_s27  ;;  %v1433_v13 = vsel %vm912_vm0, %v1012_v9, %v6005_v63  ;;  %v1437_v5 = vsel %vm1436_vm1, %v1432_v8, %v6039_v59  ;;  %v9975_v9 = vpop.f32.mrf.mxu2 }
 0xed4   : > { %v1438_v20 = vsel %vm1436_vm1, %v1433_v13, %v6040_v17  ;;  %v1442_v52 = vsel %vm1441_vm2, %v1437_v5, %v6049_v35 }
 0xed5   : > { %4760 = vadd.xlane.f32.xlu0 %v4759_v18  ;;  %v1443_v58 = vsel %vm1441_vm2, %v1438_v20, %v6050_v0  ;;  %v4384_v18 = vpop.f32.mrf.mxu0  ;;  %v10575_v20 = vld [vmem:[#allocation103_spill] sm:$0xff] }
 0xed6   : > { %v6612_v50 = vpop.eup %6611  ;;  %v5100_v40 = vpack.c.bf16 %v1443_v58, %v1442_v52  ;;  %v6015_v5 = vunpack.i.h.bf16 %v10575_v20  ;;  %v10577_v52 = vld [vmem:[#allocation58_spill] sm:$0xff] }
 0xed7   : > { %v3994_v6 = vmul.f32 %v6612_v50, %v9927_v25  ;;  %v4236_v51 = vpop.xlane.xlu2 %4235  ;;  %v6614_v10 = vpop.eup %6613 }
 0xed8   : > { %6615 = vrcp.f32 %v4236_v51  ;;  %v4282_v17 = vmul.f32 %v6614_v10, %v9933_v23  ;;  %v4470_v50 = vpop.xlane.xlu0 %4469  ;;  %v10576_v51 = vld [vmem:[#allocation78_spill] sm:$0xff]  ;;  %v6045_v23 = vunpack.i.h.bf16 %v10577_v52  ;;  %v10579_v10 = vld [vmem:[#allocation24_spill] sm:$0xff] }
 0xed9   : > { %v6106_v63 = vpack.i.bf16 %v3995_v36, %v3994_v6  ;;  %6617 = vrcp.f32 %v4354_v1  ;;  %v6014_v36 = vunpack.i.l.bf16 %v10575_v20 }
 0xeda   : > { %6619 = vrcp.f32 %v10573_v37  ;;  %v10578_v37 = vld [vmem:[#allocation79_spill] sm:$0xff] }
 0xedb   : > { %6107 = vrot.lane.b32.xlu2 %v6106_v63, %s6970_s8  ;;  %6621 = vrcp.f32 %v4351_v54  ;;  %v4500_v1 = vpop.f32.mrf.mxu2 }
 0xedc   : > { %6623 = vrcp.f32 %v10574_v7  ;;  %v6055_v7 = vunpack.i.h.bf16 %v10579_v10 }
 0xedd   : > { %5192 = vmatmul.bf16.vlgmr.msrb.gmra.mxu0 %v5100_v40  ;;  %v4386_v54 = vpop.f32.mrf.mxu0 }
 0xede   : > { %v6616_v25 = vpop.eup %6615 }
 0xedf   : > { %v4283_v59 = vmul.f32 %v6616_v25, %v9938_v27  ;;  %v4467_v21 = vpop.xlane.xlu2 %4466  ;;  %v6618_v0 = vpop.eup %6617  ;;  %v6044_v27 = vunpack.i.l.bf16 %v10577_v52  ;;  %v6054_v25 = vunpack.i.l.bf16 %v10579_v10 }
 0xee0   : > { %v6620_v35 = vpop.eup %6619  ;;  %6625 = vrcp.f32 %v4467_v21  ;;  %v4399_v63 = vmul.f32 %v6618_v0, %v4386_v54 }
 0xee1   : > { %v6111_v13 = vpack.i.bf16 %v4283_v59, %v4282_v17  ;;  %v6622_v8 = vpop.eup %6621  ;;  %v1013_v58 = vmul.f32 %v6620_v35, %v10576_v51  ;;  %6627 = vrcp.f32 %v4470_v50 }
 0xee2   : > { %v6624_v6 = vpop.eup %6623  ;;  %v4398_v17 = vmul.f32 %v6622_v8, %v4384_v18 }
 0xee3   : > { %6112 = vrot.lane.b32.xlu1 %v6111_v13, %s6969_s27  ;;  %v1014_v40 = vmul.f32 %v6624_v6, %v10578_v37  ;;  %v1434_v21 = vsel %vm912_vm0, %v1013_v58, %v6014_v36  ;;  %v4502_v18 = vpop.f32.mrf.mxu2  ;;  %v10581_v37 = vld [vmem:[#allocation28_spill] sm:$0xff] }
 0xee4   : > { %v6116_v35 = vpack.i.bf16 %v4399_v63, %v4398_v17  ;;  %v1439_v20 = vsel %vm1436_vm1, %v1434_v21, %v6044_v27  ;;  %v4239_v27 = vpop.xlane.xlu1 %4238  ;;  %v10580_v63 = vld [vmem:[#allocation69_spill] sm:$0xff]  ;;  %v4880_v17 = vsel %vm912_vm0, %v9942_v61, 0.0  ;;  %v4877_v21 = vsel %vm912_vm0, %v9944_v55, 0.0 }
 0xee5   : > { %v1435_v59 = vsel %vm912_vm0, %v1014_v40, %v6015_v5  ;;  %v1444_v13 = vsel %vm1441_vm2, %v1439_v20, %v6054_v25  ;;  %v9998_v36 = vpop.f32.mrf.mxu0  ;;  %v10582_v40 = vpack.c.bf16 %v10580_v63, %v10581_v37  ;;  %v10584_v20 = vld [vmem:[#allocation70_spill] sm:$0xff]  ;;  %v4993_v61 = vsel %vm912_vm0, %v9914_v24, 0.0  ;;  %v10587_v24 = vld [vmem:[#allocation19_spill] sm:$0xff] }
 0xee6   : > { %v1440_v51 = vsel %vm1436_vm1, %v1435_v59, %v6045_v23  ;;  %v6626_v0 = vpop.eup %6625  ;;  %v10014_v59 = vpop.xlane.xlu0 %4356  ;;  %v4996_v37 = vsel %vm912_vm0, %v9916_v47, 0.0 }
 0xee7   : > { %v1445_v54 = vsel %vm1441_vm2, %v1440_v51, %v6055_v7  ;;  %v6628_v6 = vpop.eup %6627  ;;  %v4514_v52 = vmul.f32 %v6626_v0, %v4500_v1  ;;  %v4120_v1 = vsel %vm912_vm0, %v9616_v34, 0.0 }
 0xee8   : > { %v5101_v50 = vpack.c.bf16 %v1445_v54, %v1444_v13  ;;  %v4515_v8 = vmul.f32 %v6628_v6, %v4502_v18  ;;  %v4242_v54 = vpop.xlane.xlu2 %4241  ;;  %v4123_v6 = vsel %vm912_vm0, %v9674_v42, 0.0  ;;  %v10586_v18 = vld [vmem:[#allocation18_spill] sm:$0xff] }
 0xee9   : > { %6117 = vrot.lane.b32.xlu0 %v6116_v35, %s6971_s14  ;;  %v10583_v35 = vld [vmem:[#allocation21_spill] sm:$0xff]  ;;  %v10588_v42 = vld [vmem:[#allocation50_spill] sm:$0xff] }
 0xeea   : > { %v6121_v5 = vpack.i.bf16 %v4515_v8, %v4514_v52  ;;  %v10585_v51 = vpack.c.bf16 %v10583_v35, %v10584_v20  ;;  %v3712_v8 = vsel %vm912_vm0, %v10586_v18, 0.0 }
 0xeeb   : > { %v4505_v23 = vpop.f32.mrf.mxu2 }
 0xeec   : > { %v10010_v25 = vpop.xlane.xlu1 %4359 }
 0xeed   : > { %5197 = vmatmul.bf16.gmra.mxu0 %v5101_v50  ;;  %v10001_v58 = vpop.f32.mrf.mxu0 }
 0xeee   : > { %v4476_v55 = vpop.xlane.xlu0 %4475 }
 0xef0   : > { %v4473_v63 = vpop.xlane.xlu2 %4472 }
 0xef1   : > { %6122 = vrot.lane.b32.xlu0 %v6121_v5, %s6970_s8  ;;  %6629 = vrcp.f32 %v4473_v63  ;;  %v10592_v63 = vld [vmem:[#allocation65_spill] sm:$0xff] }
 0xef2   : > { %6631 = vrcp.f32 %v4476_v55 }
 0xef3   : > { %v4507_v7 = vpop.f32.mrf.mxu2  ;;  %6633 = vrcp.f32 %v4239_v27 }
 0xef4   : > { %v3603_v13 = vpop.xlane.xlu1 %3602  ;;  %6635 = vrcp.f32 %v4242_v54  ;;  %v10593_v54 = vld [vmem:[#allocation38_spill] sm:$0xff] }
 0xef5   : > { %v10008_v10 = vpop.f32.mrf.mxu0  ;;  %6637 = vrcp.f32 %v3603_v13  ;;  %v10595_v13 = vpack.c.bf16 %v10593_v54, %v10594_v46 }
 0xef7   : > { %v6630_v18 = vpop.eup %6629 }
 0xefb   : > { %v10021_v34 = vpop.f32.mrf.mxu2 }
 0xefc   : > { %v4758_v5 = vpop.xlane.xlu1 %4757 }
 0xefd   : > { %5202 = vmatmul.bf16.gmra.mxu0 %v10582_v40  ;;  %v10023_v0 = vpop.f32.mrf.mxu0  ;;  %v3943_v40 = vsel %vm912_vm0, %v10587_v24, 0.0 }
 0xf03   : > { %v4792_v52 = vpop.f32.mrf.mxu2 }
 0xf04   : > { %4121 = vadd.xlane.f32.xlu2 %v4120_v1  ;;  %v10589_v1 = vld [vmem:[#allocation82_spill] sm:$0xff]  ;;  %v4876_v47 = vpop.xlane.xlu1 %4875 }
 0xf05   : > { %v10029_v50 = vpop.f32.mrf.mxu0 }
 0xf0b   : > { %v10040_v35 = vpop.f32.mrf.mxu2 }
 0xf0c   : > { %4881 = vadd.xlane.f32.xlu2 %v4880_v17  ;;  %v10590_v17 = vpack.c.bf16 %v10588_v42, %v10589_v1 }
 0xf0d   : > { %4878 = vadd.xlane.f32.xlu1 %v4877_v21  ;;  %5207 = vmatmul.bf16.gmra.mxu0 %v10585_v51  ;;  %v4755_v21 = vpop.xlane.xlu0 %4754  ;;  %v10042_v20 = vpop.f32.mrf.mxu0  ;;  %v10591_v51 = vld [vmem:[#allocation20_spill] sm:$0xff] }
 0xf13   : > { %v10048_v1 = vpop.f32.mrf.mxu2 }
 0xf14   : > { %4994 = vadd.xlane.f32.xlu2 %v4993_v61  ;;  %v3709_v61 = vsel %vm912_vm0, %v10591_v51, 0.0 }
 0xf15   : > { %4124 = vadd.xlane.f32.xlu1 %v4123_v6  ;;  %v3606_v6 = vpop.xlane.xlu2 %3605  ;;  %v4873_v24 = vpop.xlane.xlu0 %4872 }
 0xf16   : > { %6639 = vrcp.f32 %v3606_v6 }
 0xf17   : > { %6641 = vrcp.f32 %v4758_v5 }
 0xf18   : > { %6643 = vrcp.f32 %v4755_v21 }
 0xf19   : > { %6645 = vrcp.f32 %v4876_v47 }
 0xf1a   : > { %6647 = vrcp.f32 %v4873_v24 }
 0xf1b   : > { %3713 = vadd.xlane.f32.xlu0 %v3712_v8  ;;  %v6632_v8 = vpop.eup %6631 }
 0xf1c   : > { %4997 = vadd.xlane.f32.xlu2 %v4996_v37  ;;  %v4516_v37 = vmul.f32 %v6630_v18, %v4505_v23  ;;  %v4517_v55 = vmul.f32 %v6632_v8, %v4507_v7  ;;  %v6634_v42 = vpop.eup %6633 }
 0xf1d   : > { %3944 = vadd.xlane.f32.xlu1 %v3943_v40  ;;  %5212 = vmatmul.bf16.gmra.mxu0 %v10590_v17  ;;  %v3827_v40 = vsel %vm912_vm0, %v10592_v63, 0.0  ;;  %v4906_v17 = vpop.f32.mrf.mxu0  ;;  %v6636_v51 = vpop.eup %6635 }
 0xf1e   : > { %v6136_v23 = vpack.i.bf16 %v4517_v55, %v4516_v37  ;;  %v6638_v6 = vpop.eup %6637  ;;  %v4285_v18 = vmul.f32 %v6636_v51, %v9975_v9  ;;  %v6103_v54 = vpop.permute.xlu0 %6102  ;;  %v10596_v55 = vld [vmem:[#allocation23_spill] sm:$0xff] }
 0xf1f   : > { %v6640_v5 = vpop.eup %6639  ;;  %v3640_v22 = vmul.f32 %v6638_v6, %v9886_v3  ;;  %v6104_v3 = vunpack.i.l.bf16 %v6103_v54 }
 0xf20   : > { %v6642_v7 = vpop.eup %6641  ;;  %v3641_v46 = vmul.f32 %v6640_v5, %v9895_v62 }
 0xf21   : > { %v4805_v63 = vmul.f32 %v6642_v7, %v4792_v52  ;;  %v6644_v60 = vpop.eup %6643 }
 0xf22   : > { %v4804_v37 = vmul.f32 %v6644_v60, %v10021_v34  ;;  %v6646_v5 = vpop.eup %6645 }
 0xf24   : > { %3710 = vadd.xlane.f32.xlu2 %v3709_v61  ;;  %v4989_v61 = vpop.xlane.xlu1 %4988 }
 0xf2c   : > { %3828 = vadd.xlane.f32.xlu2 %v3827_v40  ;;  %v4284_v40 = vmul.f32 %v6634_v42, %v9953_v30  ;;  %v6141_v30 = vpack.i.bf16 %v4805_v63, %v4804_v37  ;;  %v6105_v42 = vunpack.i.h.bf16 %v6103_v54  ;;  %v4992_v60 = vpop.xlane.xlu1 %4991 }
 0xf2d   : > { %v6098_v27 = vpop.permute.xlu2 %6097  ;;  %5217 = vmatmul.bf16.gmra.mxu0 %v10595_v13  ;;  %v3830_v13 = vsel %vm912_vm0, %v10596_v55, 0.0  ;;  %6649 = vrcp.f32 %v4992_v60 }
 0xf2e   : > { %v6100_v21 = vunpack.i.h.bf16 %v6098_v27  ;;  %v6099_v8 = vunpack.i.l.bf16 %v6098_v27  ;;  %v6126_v51 = vpack.i.bf16 %v4285_v18, %v4284_v40  ;;  %v4908_v27 = vpop.f32.mrf.mxu0  ;;  %v4126_v40 = vsel %vm912_vm0, %v9665_v49, 0.0 }
 0xf2f   : > { %6137 = vrot.lane.b32.xlu0 %v6136_v23, %s6970_s8  ;;  %v5022_v23 = vpop.f32.mrf.mxu2  ;;  %v4921_v18 = vmul.f32 %v6646_v5, %v4908_v27  ;;  %6651 = vrcp.f32 %v4989_v61  ;;  %v4648_v27 = vsel %vm912_vm0, %v9867_v14, 0.0 }
 0xf30   : > { %v4047_v9 = vsel %vm912_vm0, %v3641_v46, %v6100_v21  ;;  %v4046_v52 = vsel %vm912_vm0, %v3640_v22, %v6099_v8  ;;  %v6648_v8 = vpop.eup %6647  ;;  %6653 = vrcp.f32 %v10010_v25 }
 0xf31   : > { %v4050_v34 = vsel %vm1436_vm1, %v4046_v52, %v6104_v3  ;;  %v4051_v24 = vsel %vm1436_vm1, %v4047_v9, %v6105_v42  ;;  %v4920_v63 = vmul.f32 %v6648_v8, %v4906_v17  ;;  %v10597_v17 = vld [vmem:[#allocation71_spill] sm:$0xff]  ;;  %6655 = vrcp.f32 %v10014_v59 }
 0xf32   : > { %v3946_v52 = vsel %vm912_vm0, %v10597_v17, 0.0  ;;  %v4639_v59 = vsel %vm912_vm0, %v9842_v45, 0.0  ;;  %v4645_v45 = vsel %vm912_vm0, %v9869_v29, 0.0 }
 0xf33   : > { %v6146_v46 = vpack.i.bf16 %v4921_v18, %v4920_v63  ;;  %v6650_v37 = vpop.eup %6649 }
 0xf34   : > { %3831 = vadd.xlane.f32.xlu2 %v3830_v13 }
 0xf35   : > { %v6108_v47 = vpop.permute.xlu2 %6107  ;;  %v6652_v13 = vpop.eup %6651 }
 0xf36   : > { %v6110_v62 = vunpack.i.h.bf16 %v6108_v47  ;;  %v6109_v6 = vunpack.i.l.bf16 %v6108_v47  ;;  %6127 = vrot.lane.b32.xlu1 %v6126_v51, %s6969_s27  ;;  %v5036_v9 = vmul.f32 %v6652_v13, %v5022_v23  ;;  %v4119_v47 = vpop.xlane.xlu1 %4118 }
 0xf37   : > { %6142 = vrot.lane.b32.xlu0 %v6141_v30, %s6969_s27  ;;  %v5024_v54 = vpop.f32.mrf.mxu2  ;;  %v10092_v30 = vld [vmem:[%s10273_s5] ss:$0 sm:$0xff] }
 0xf38   : > { %v4054_v22 = vsel %vm1441_vm2, %v4050_v34, %v6109_v6  ;;  %v4055_v7 = vsel %vm1441_vm2, %v4051_v24, %v6110_v62  ;;  %v5037_v55 = vmul.f32 %v6650_v37, %v5024_v54 }
 0xf39   : > { %v5111_v21 = vpack.c.bf16 %v4055_v7, %v4054_v22 }
 0xf3a   : > { %v6151_v49 = vpack.i.bf16 %v5037_v55, %v5036_v9 }
 0xf3b   : > { %5247 = vmatmul.bf16.vlgmr.msra.gmra.mxu3 %v5111_v21 }
 0xf3c   : > { %4127 = vadd.xlane.f32.xlu2 %v4126_v40 }
 0xf3d   : > { %5222 = vmatmul.bf16.gmra.mxu0 %v5106_v38  ;;  %v6654_v38 = vpop.eup %6653 }
 0xf3e   : > { %v4401_v23 = vmul.f32 %v6654_v38, %v10001_v58  ;;  %v6656_v51 = vpop.eup %6655  ;;  %v10599_v58 = vpack.c.bf16 %v9709_v41, %v9706_v57  ;;  %v10600_v57 = vpack.c.bf16 %v9758_v16, %v9755_v53  ;;  %v4764_v41 = vpop.xlane.xlu1 %4763 }
 0xf3f   : > { %6147 = vrot.lane.b32.xlu0 %v6146_v46, %s6971_s14  ;;  %v4400_v42 = vmul.f32 %v6656_v51, %v9998_v36 }
 0xf41   : > { %v6131_v32 = vpack.i.bf16 %v4401_v23, %v4400_v42 }
 0xf44   : > { %3947 = vadd.xlane.f32.xlu2 %v3946_v52 }
 0xf47   : > { %6152 = vrot.lane.b32.xlu0 %v6151_v49, %s6970_s8 }
 0xf48   : > { %v4761_v62 = vpop.xlane.xlu0 %4760 }
 0xf49   : > { %6657 = vrcp.f32 %v4761_v62 }
 0xf4a   : > { %v10078_v61 = vpop.f32.mrf.mxu0  ;;  %6659 = vrcp.f32 %v4764_v41 }
 0xf4b   : > { %6661 = vrcp.f32 %v4119_v47 }
 0xf4d   : > { %5227 = vmatmul.bf16.gmra.mxu0 %v10598_v26 }
 0xf4f   : > { %v6658_v22 = vpop.eup %6657 }
 0xf50   : > { %v6660_v53 = vpop.eup %6659  ;;  %v4806_v21 = vmul.f32 %v6658_v22, %v10040_v35 }
 0xf51   : > { %v6662_v18 = vpop.eup %6661  ;;  %v4807_v63 = vmul.f32 %v6660_v53, %v10048_v1 }
 0xf52   : > { %v10085_v19 = vpop.f32.mrf.mxu0  ;;  %v4160_v54 = vmul.f32 %v6662_v18, %v9930_v28 }
 0xf53   : > { %v6156_v52 = vpack.i.bf16 %v4807_v63, %v4806_v21 }
 0xf55   : > { %v6113_v7 = vpop.permute.xlu1 %6112 }
 0xf56   : > { %v6114_v40 = vunpack.i.l.bf16 %v6113_v7  ;;  %v6115_v55 = vunpack.i.h.bf16 %v6113_v7 }
 0xf58   : > { %v4566_v26 = vsel %vm912_vm0, %v4160_v54, %v6114_v40 }
 0xf5a   : > { %v5193_v15 = vpop.f32.mrf.mxu0 }
 0xf5b   : > { %v5194_v25 = vadd.f32 %v10092_v30, %v5193_v15  ;;  %v6118_v34 = vpop.permute.xlu0 %6117  ;;  %v4642_v15 = vsel %vm912_vm0, %v9840_v48, 0.0 }
 0xf5c   : > { %6132 = vrot.lane.b32.xlu2 %v6131_v32, %s6971_s14  ;;  %v6119_v37 = vunpack.i.l.bf16 %v6118_v34  ;;  %v6120_v49 = vunpack.i.h.bf16 %v6118_v34 }
 0xf5d   : > { %5273 = vst [vmem:[%s10097_s7] sm:$0xff] %v5194_v25  ;;  %5232 = vmatmul.bf16.gmra.mxu0 %v10599_v58 }
 0xf5e   : > { %v4570_v28 = vsel %vm1436_vm1, %v4566_v26, %v6119_v37 }
 0xf60   : > { %4640 = vadd.xlane.f32.xlu1 %v4639_v59 }
 0xf62   : > { %v5195_v36 = vpop.f32.mrf.mxu0 }
 0xf63   : > { %v5196_v3 = vadd.f32 %v10092_v30, %v5195_v36  ;;  %v6123_v8 = vpop.permute.xlu0 %6122 }
 0xf64   : > { %v6124_v13 = vunpack.i.l.bf16 %v6123_v8  ;;  %v6125_v38 = vunpack.i.h.bf16 %v6123_v8 }
 0xf65   : > { %5274 = vst [vmem:[%s10097_s7 + $0x8] sm:$0xff] %v5196_v3 }
 0xf66   : > { %v4574_v42 = vsel %vm1441_vm2, %v4570_v28, %v6124_v13 }
 0xf68   : > { %4649 = vadd.xlane.f32.xlu1 %v4648_v27 }
 0xf6a   : > { %v5198_v6 = vpop.f32.mrf.mxu0 }
 0xf6b   : > { %v5199_v60 = vadd.f32 %v10092_v30, %v5198_v6 }
 0xf6d   : > { %5275 = vst [vmem:[%s10097_s7 + $0x10] sm:$0xff] %v5199_v60  ;;  %5237 = vmatmul.bf16.gmra.mxu0 %v10600_v57  ;;  %v5027_v60 = vpop.f32.mrf.mxu2  ;;  %v10601_v57 = vld [vmem:[#allocation55_spill] sm:$0xff] }
 0xf6e   : > { %v3598_v48 = vsel %vm912_vm0, %v10601_v57, 0.0 }
 0xf71   : > { %4646 = vadd.xlane.f32.xlu0 %v4645_v45 }
 0xf72   : > { %v5200_v24 = vpop.f32.mrf.mxu0 }
 0xf73   : > { %v5201_v14 = vadd.f32 %v10092_v30, %v5200_v24 }
 0xf75   : > { %5276 = vst [vmem:[%s10097_s7 + $0x18] sm:$0xff] %v5201_v14  ;;  %v5029_v14 = vpop.f32.mrf.mxu2 }
 0xf77   : > { %v4122_v5 = vpop.xlane.xlu2 %4121 }
 0xf78   : > { %6663 = vrcp.f32 %v4122_v5 }
 0xf7a   : > { %v5203_v16 = vpop.f32.mrf.mxu0 }
 0xf7b   : > { %v5204_v29 = vadd.f32 %v10092_v30, %v5203_v16 }
 0xf7d   : > { %5277 = vst [vmem:[%s10097_s7 + $0x20] sm:$0xff] %v5204_v29 }
 0xf7e   : > { %v6664_v46 = vpop.eup %6663 }
 0xf7f   : > { %v4161_v9 = vmul.f32 %v6664_v46, %v9935_v43  ;;  %v4882_v17 = vpop.xlane.xlu2 %4881 }
 0xf80   : > { %6665 = vrcp.f32 %v4882_v17  ;;  %v4879_v35 = vpop.xlane.xlu1 %4878 }
 0xf81   : > { %6667 = vrcp.f32 %v4879_v35  ;;  %6157 = vrot.lane.b32.xlu1 %v6156_v52, %s6969_s27  ;;  %v4567_v1 = vsel %vm912_vm0, %v4161_v9, %v6115_v55 }
 0xf82   : > { %v5205_v23 = vpop.f32.mrf.mxu0  ;;  %v4571_v51 = vsel %vm1436_vm1, %v4567_v1, %v6120_v49 }
 0xf83   : > { %v5206_v43 = vadd.f32 %v10092_v30, %v5205_v23  ;;  %v4575_v32 = vsel %vm1441_vm2, %v4571_v51, %v6125_v38 }
 0xf84   : > { %v5112_v25 = vpack.c.bf16 %v4575_v32, %v4574_v42 }
 0xf85   : > { %5278 = vst [vmem:[%s10097_s7 + $0x28] sm:$0xff] %v5206_v43  ;;  %4643 = vadd.xlane.f32.xlu2 %v4642_v15 }
 0xf86   : > { %v6666_v58 = vpop.eup %6665  ;;  %5252 = vmatmul.bf16.gmra.mxu3 %v5112_v25 }
 0xf87   : > { %v6668_v59 = vpop.eup %6667  ;;  %v4923_v36 = vmul.f32 %v6666_v58, %v10085_v19  ;;  %v4995_v3 = vpop.xlane.xlu2 %4994 }
 0xf88   : > { %v4922_v47 = vmul.f32 %v6668_v59, %v10078_v61  ;;  %6669 = vrcp.f32 %v4995_v3  ;;  %v4125_v13 = vpop.xlane.xlu1 %4124 }
 0xf8a   : > { %v5208_v27 = vpop.f32.mrf.mxu0  ;;  %v6161_v62 = vpack.i.bf16 %v4923_v36, %v4922_v47 }
 0xf8b   : > { %v5209_v6 = vadd.f32 %v10092_v30, %v5208_v27 }
 0xf8d   : > { %5279 = vst [vmem:[%s10097_s7 + $0x30] sm:$0xff] %v5209_v6  ;;  %3599 = vadd.xlane.f32.xlu2 %v3598_v48 }
 0xf8e   : > { %v3714_v34 = vpop.xlane.xlu0 %3713  ;;  %v6670_v24 = vpop.eup %6669 }
 0xf8f   : > { %v4998_v41 = vpop.xlane.xlu2 %4997  ;;  %v5038_v5 = vmul.f32 %v6670_v24, %v5027_v60 }
 0xf90   : > { %6671 = vrcp.f32 %v4998_v41  ;;  %v3945_v38 = vpop.xlane.xlu1 %3944 }
 0xf91   : > { %6673 = vrcp.f32 %v3714_v34 }
 0xf92   : > { %v5210_v45 = vpop.f32.mrf.mxu0 }
 0xf93   : > { %v5211_v19 = vadd.f32 %v10092_v30, %v5210_v45 }
 0xf95   : > { %5280 = vst [vmem:[%s10097_s7 + $0x38] sm:$0xff] %v5211_v19 }
 0xf96   : > { %v6672_v61 = vpop.eup %6671 }
 0xf97   : > { %v5039_v22 = vmul.f32 %v6672_v61, %v5029_v14  ;;  %v3711_v7 = vpop.xlane.xlu2 %3710  ;;  %v6674_v21 = vpop.eup %6673 }
 0xf98   : > { %6675 = vrcp.f32 %v3711_v7  ;;  %v3761_v8 = vmul.f32 %v6674_v21, %v9892_v12 }
 0xf99   : > { %v6166_v53 = vpack.i.bf16 %v5039_v22, %v5038_v5 }
 0xf9a   : > { %v5213_v16 = vpop.f32.mrf.mxu0 }
 0xf9b   : > { %v5214_v18 = vadd.f32 %v10092_v30, %v5213_v16  ;;  %6167 = vrot.lane.b32.xlu1 %v6166_v53, %s6970_s8 }
 0xf9d   : > { %5281 = vst [vmem:[%s10097_s7 + $0x40] sm:$0xff] %v5214_v18 }
 0xf9e   : > { %v6676_v29 = vpop.eup %6675 }
 0xf9f   : > { %v3760_v63 = vmul.f32 %v6676_v29, %v9884_v31  ;;  %v3829_v40 = vpop.xlane.xlu2 %3828 }
 0xfa0   : > { %6677 = vrcp.f32 %v3829_v40 }
 0xfa1   : > { %v6171_v46 = vpack.i.bf16 %v3761_v8, %v3760_v63  ;;  %v6138_v15 = vpop.permute.xlu0 %6137 }
 0xfa2   : > { %v5215_v54 = vpop.f32.mrf.mxu0  ;;  %v6140_v57 = vunpack.i.h.bf16 %v6138_v15  ;;  %v6139_v45 = vunpack.i.l.bf16 %v6138_v15 }
 0xfa3   : > { %v5216_v37 = vadd.f32 %v10092_v30, %v5215_v54  ;;  %6172 = vrot.lane.b32.xlu0 %v6171_v46, %s6969_s27  ;;  %s6897_s27 = sshra.s32 %s5321_s17, 4  ;;  %s6898_s27 = int_to_ptr.hbm [resolvable:$true] %s6897_s27 }
 0xfa4   : > { %s6899_s25 = scalar_lea.hbm %s6898_s27, 256  ;;  %p6904_p11 = scmp.lt.s32.totalorder %s6898_s27, %s10274_s6 }
 0xfa5   : > { %5282 = vst [vmem:[%s10097_s7 + $0x48] sm:$0xff] %v5216_v37  ;;  %6162 = vrot.lane.b32.xlu2 %v6161_v62, %s6971_s14  ;;  %p6900_p1 = scmp.ne.s32.totalorder %s6898_s27, %s6899_s25  ;;  %p6905_p9 = scmp.lt.s32.totalorder %s6903_s15, %s6899_s25 }
 0xfa6   : > { %v6678_v17 = vpop.eup %6677 }
 0xfa7   : > { %v3832_v55 = vpop.xlane.xlu2 %3831  ;;  %v3876_v52 = vmul.f32 %v6678_v17, %v9901_v4  ;;  %p6901_p4 = pnand %p6900_p1, %p7099_p5  ;;  %p6906_p2 = por %p6905_p9, %p6904_p11 }
 0xfa8   : > { %6679 = vrcp.f32 %v3832_v55  ;;  %v6128_v43 = vpop.permute.xlu1 %6127 }
 0xfa9   : > { %v6129_v25 = vunpack.i.l.bf16 %v6128_v43  ;;  %v6130_v27 = vunpack.i.h.bf16 %v6128_v43  ;;  %v6143_v46 = vpop.permute.xlu0 %6142  ;;  %p6902_p8 = pneg %p6901_p4 }
 0xfaa   : > { %v5218_v9 = vpop.f32.mrf.mxu0 }
 0xfab   : > { %v5219_v12 = vadd.f32 %v10092_v30, %v5218_v9  ;;  %p6907_p10 = pnand %p6906_p2, %p6902_p8 }
 0xfad   : > { %5283 = vst [vmem:[%s10097_s7 + $0x50] sm:$0xff] %v5219_v12 }
 0xfae   : > { %v6680_v31 = vpop.eup %6679 }
 0xfaf   : > { %v3877_v49 = vmul.f32 %v6680_v31, %v9910_v11  ;;  %v4128_v35 = vpop.xlane.xlu2 %4127 }
 0xfb0   : > { %6681 = vrcp.f32 %v4128_v35  ;;  %v6144_v35 = vunpack.i.l.bf16 %v6143_v46 }
 0xfb1   : > { %v6176_v26 = vpack.i.bf16 %v3877_v49, %v3876_v52  ;;  %6683 = vrcp.f32 %v4125_v13  ;;  %v6148_v13 = vpop.permute.xlu0 %6147 }
 0xfb2   : > { %v5220_v1 = vpop.f32.mrf.mxu0  ;;  %6685 = vrcp.f32 %v3945_v38 }
 0xfb3   : > { %v5221_v28 = vadd.f32 %v10092_v30, %v5220_v1  ;;  %6177 = vrot.lane.b32.xlu2 %v6176_v26, %s6971_s14 }
 0xfb5   : > { %5284 = vst [vmem:[%s10097_s7 + $0x58] sm:$0xff] %v5221_v28  ;;  %v6149_v28 = vunpack.i.l.bf16 %v6148_v13 }
 0xfb6   : > { %v6682_v51 = vpop.eup %6681 }
 0xfb7   : > { %v3948_v23 = vpop.xlane.xlu2 %3947  ;;  %v6684_v42 = vpop.eup %6683  ;;  %v4163_v58 = vmul.f32 %v6682_v51, %v9955_v33 }
 0xfb8   : > { %6687 = vrcp.f32 %v3948_v23  ;;  %v6686_v32 = vpop.eup %6685  ;;  %v4162_v36 = vmul.f32 %v6684_v42, %v9940_v39  ;;  %v6145_v23 = vunpack.i.h.bf16 %v6143_v46 }
 0xfb9   : > { %v3992_v47 = vmul.f32 %v6686_v32, %v9912_v2  ;;  %v4569_v39 = vsel %vm912_vm0, %v4163_v58, %v6130_v27  ;;  %v6153_v52 = vpop.permute.xlu0 %6152 }
 0xfba   : > { %v5223_v4 = vpop.f32.mrf.mxu0  ;;  %v4568_v33 = vsel %vm912_vm0, %v4162_v36, %v6129_v25  ;;  %v6154_v32 = vunpack.i.l.bf16 %v6153_v52 }
 0xfbb   : > { %v5224_v11 = vadd.f32 %v10092_v30, %v5223_v4  ;;  %v6150_v4 = vunpack.i.h.bf16 %v6148_v13 }
 0xfbd   : > { %5285 = vst [vmem:[%s10097_s7 + $0x60] sm:$0xff] %v5224_v11  ;;  %v6155_v11 = vunpack.i.h.bf16 %v6153_v52 }
 0xfbe   : > { %v6688_v59 = vpop.eup %6687  ;;  %v5248_v3 = vpop.f32.mrf.mxu3 }
 0xfbf   : > { %v3993_v62 = vmul.f32 %v6688_v59, %v9923_v44  ;;  %v5249_v6 = vadd.f32 %v10092_v30, %v5248_v3  ;;  %v6133_v60 = vpop.permute.xlu2 %6132 }
 0xfc0   : > { %v6135_v48 = vunpack.i.h.bf16 %v6133_v60  ;;  %v6134_v41 = vunpack.i.l.bf16 %v6133_v60 }
 0xfc1   : > { %5295 = vst [vmem:[%s10097_s7 + $0xb0] sm:$0xff] %v5249_v6  ;;  %v6181_v34 = vpack.i.bf16 %v3993_v62, %v3992_v47 }
 0xfc2   : > { %v4573_v2 = vsel %vm1436_vm1, %v4569_v39, %v6135_v48  ;;  %v4572_v44 = vsel %vm1436_vm1, %v4568_v33, %v6134_v41  ;;  %v5225_v19 = vpop.f32.mrf.mxu0 }
 0xfc3   : > { %v5226_v24 = vadd.f32 %v10092_v30, %v5225_v19  ;;  %6182 = vrot.lane.b32.xlu1 %v6181_v34, %s6970_s8  ;;  %v4576_v61 = vsel %vm1441_vm2, %v4572_v44, %v6139_v45  ;;  %v4577_v14 = vsel %vm1441_vm2, %v4573_v2, %v6140_v57 }
 0xfc4   : > { %v5113_v5 = vpack.c.bf16 %v4577_v14, %v4576_v61 }
 0xfc5   : > { %5286 = vst [vmem:[%s10097_s7 + $0x68] sm:$0xff] %v5226_v24 }
 0xfc6   : > { %v5250_v22 = vpop.f32.mrf.mxu3  ;;  %5257 = vmatmul.bf16.gmra.mxu3 %v5113_v5 }
 0xfc7   : > { %v5251_v7 = vadd.f32 %v10092_v30, %v5250_v22 }
 0xfc9   : > { %5296 = vst [vmem:[%s10097_s7 + $0xb8] sm:$0xff] %v5251_v7 }
 0xfca   : > { %v5228_v53 = vpop.f32.mrf.mxu0 }
 0xfcb   : > { %v5229_v16 = vadd.f32 %v10092_v30, %v5228_v53 }
 0xfcd   : > { %5287 = vst [vmem:[%s10097_s7 + $0x70] sm:$0xff] %v5229_v16 }
 0xfd2   : > { %v5230_v18 = vpop.f32.mrf.mxu0 }
 0xfd3   : > { %v5231_v21 = vadd.f32 %v10092_v30, %v5230_v18  ;;  %v4641_v55 = vpop.xlane.xlu1 %4640 }
 0xfd4   : > { %6689 = vrcp.f32 %v4641_v55 }
 0xfd5   : > { %5288 = vst [vmem:[%s10097_s7 + $0x78] sm:$0xff] %v5231_v21 }
 0xfda   : > { %v5233_v29 = vpop.f32.mrf.mxu0  ;;  %v6690_v17 = vpop.eup %6689 }
 0xfdb   : > { %v5234_v8 = vadd.f32 %v10092_v30, %v5233_v29  ;;  %v4682_v49 = vmul.f32 %v6690_v17, %v10008_v10  ;;  %v4650_v26 = vpop.xlane.xlu1 %4649 }
 0xfdd   : > { %5289 = vst [vmem:[%s10097_s7 + $0x80] sm:$0xff] %v5234_v8  ;;  %v5088_v38 = vsel %vm912_vm0, %v4682_v49, %v6144_v35 }
 0xfde   : > { %v5092_v42 = vsel %vm1436_vm1, %v5088_v38, %v6149_v28 }
 0xfdf   : > { %v5096_v58 = vsel %vm1441_vm2, %v5092_v42, %v6154_v32 }
 0xfe2   : > { %v5235_v63 = vpop.f32.mrf.mxu0 }
 0xfe3   : > { %v5236_v40 = vadd.f32 %v10092_v30, %v5235_v63  ;;  %v10602_v63 = vld [vmem:[#allocation49_spill] sm:$0xff] }
 0xfe4   : > { %v4647_v15 = vpop.xlane.xlu0 %4646 }
 0xfe5   : > { %5290 = vst [vmem:[%s10097_s7 + $0x88] sm:$0xff] %v5236_v40 }
 0xfea   : > { %v5238_v54 = vpop.f32.mrf.mxu0 }
 0xfeb   : > { %v5239_v37 = vadd.f32 %v10092_v30, %v5238_v54 }
 0xfed   : > { %5291 = vst [vmem:[%s10097_s7 + $0x90] sm:$0xff] %v5239_v37 }
 0xff2   : > { %v5240_v9 = vpop.f32.mrf.mxu0 }
 0xff3   : > { %v5241_v12 = vadd.f32 %v10092_v30, %v5240_v9  ;;  %v6158_v36 = vpop.permute.xlu1 %6157 }
 0xff4   : > { %v6160_v60 = vunpack.i.h.bf16 %v6158_v36  ;;  %v6159_v57 = vunpack.i.l.bf16 %v6158_v36 }
 0xff5   : > { %5292 = vst [vmem:[%s10097_s7 + $0x98] sm:$0xff] %v5241_v12 }
 0xff8   : > { %v4644_v31 = vpop.xlane.xlu2 %4643 }
 0xff9   : > { %6691 = vrcp.f32 %v4644_v31 }
 0xffa   : > { %6693 = vrcp.f32 %v4650_v26 }
 0xffb   : > { %6695 = vrcp.f32 %v4647_v15 }
 0xfff   : > { %v6692_v1 = vpop.eup %6691 }
0x1000   : > { %v4683_v51 = vmul.f32 %v6692_v1, %v10023_v0  ;;  %v3600_v43 = vpop.xlane.xlu2 %3599  ;;  %v6694_v47 = vpop.eup %6693 }
0x1001   : > { %v6696_v6 = vpop.eup %6695  ;;  %v4685_v33 = vmul.f32 %v6694_v47, %v10042_v20  ;;  %6697 = vrcp.f32 %v3600_v43 }
0x1002   : > { %v5089_v25 = vsel %vm912_vm0, %v4683_v51, %v6145_v23  ;;  %v4684_v39 = vmul.f32 %v6696_v6, %v10029_v50 }
0x1003   : > { %v5093_v10 = vsel %vm1436_vm1, %v5089_v25, %v6150_v4  ;;  %v5091_v44 = vsel %vm912_vm0, %v4685_v33, %v6160_v60 }
0x1004   : > { %v5097_v59 = vsel %vm1441_vm2, %v5093_v10, %v6155_v11  ;;  %v5090_v19 = vsel %vm912_vm0, %v4684_v39, %v6159_v57 }
0x1005   : > { %v5114_v0 = vpack.c.bf16 %v5097_v59, %v5096_v58 }
0x1007   : > { %5262 = vmatmul.bf16.gmra.mxu3 %v5114_v0  ;;  %v6698_v53 = vpop.eup %6697 }
0x1008   : > { %v6163_v27 = vpop.permute.xlu2 %6162  ;;  %v3639_v21 = vmul.f32 %v6698_v53, %v9879_v56 }
0x1009   : > { %v5253_v3 = vpop.f32.mrf.mxu3  ;;  %v6165_v48 = vunpack.i.h.bf16 %v6163_v27  ;;  %v6164_v41 = vunpack.i.l.bf16 %v6163_v27 }
0x100a   : > { %v5254_v62 = vadd.f32 %v10092_v30, %v5253_v3 }
0x100b   : > { %v5094_v24 = vsel %vm1436_vm1, %v5090_v19, %v6164_v41  ;;  %v5095_v61 = vsel %vm1436_vm1, %v5091_v44, %v6165_v48 }
0x100c   : > { %5297 = vst [vmem:[%s10097_s7 + $0xc0] sm:$0xff] %v5254_v62 }
0x100d   : > { %v6168_v45 = vpop.permute.xlu1 %6167 }
0x100e   : > { %v6170_v34 = vunpack.i.h.bf16 %v6168_v45  ;;  %v6169_v2 = vunpack.i.l.bf16 %v6168_v45 }
0x1010   : > { %v5098_v22 = vsel %vm1441_vm2, %v5094_v24, %v6169_v2  ;;  %v5099_v7 = vsel %vm1441_vm2, %v5095_v61, %v6170_v34  ;;  %v6178_v29 = vpop.permute.xlu2 %6177 }
0x1011   : > { %v5255_v14 = vpop.f32.mrf.mxu3  ;;  %v5115_v20 = vpack.c.bf16 %v5099_v7, %v5098_v22  ;;  %v6180_v46 = vunpack.i.h.bf16 %v6178_v29  ;;  %v6179_v54 = vunpack.i.l.bf16 %v6178_v29 }
0x1012   : > { %v5256_v5 = vadd.f32 %v10092_v30, %v5255_v14 }
0x1014   : > { %5298 = vst [vmem:[%s10097_s7 + $0xc8] sm:$0xff] %v5256_v5 }
0x1015   : > { %v6173_v50 = vpop.permute.xlu0 %6172 }
0x1016   : > { %v6175_v16 = vunpack.i.h.bf16 %v6173_v50  ;;  %v6174_v18 = vunpack.i.l.bf16 %v6173_v50 }
0x1017   : > { %5267 = vmatmul.bf16.gmra.mxu3 %v5115_v20 }
0x1018   : > { %v4045_v8 = vsel %vm912_vm0, %v3639_v21, %v6175_v16  ;;  %v4044_v40 = vsel %vm912_vm0, %v10602_v63, %v6174_v18 }
0x1019   : > { %v4048_v9 = vsel %vm1436_vm1, %v4044_v40, %v6179_v54  ;;  %v4049_v12 = vsel %vm1436_vm1, %v4045_v8, %v6180_v46 }
0x1035   : > { %v6183_v37 = vpop.permute.xlu1 %6182 }
0x1036   : > { %v6185_v55 = vunpack.i.h.bf16 %v6183_v37  ;;  %v6184_v13 = vunpack.i.l.bf16 %v6183_v37 }
0x1038   : > { %v4052_v56 = vsel %vm1441_vm2, %v4048_v9, %v6184_v13  ;;  %v4053_v17 = vsel %vm1441_vm2, %v4049_v12, %v6185_v55 }
0x1039   : > { %v5110_v31 = vpack.c.bf16 %v4053_v17, %v4052_v56 }
0x103b   : > { %5242 = vmatmul.bf16.gmra.mxu0 %v5110_v31 }
0x1049   : > { %v5258_v52 = vpop.f32.mrf.mxu3 }
0x104a   : > { %v5259_v49 = vadd.f32 %v10092_v30, %v5258_v52 }
0x104c   : > { %5299 = vst [vmem:[%s10097_s7 + $0xd0] sm:$0xff] %v5259_v49 }
0x1051   : > { %v5260_v35 = vpop.f32.mrf.mxu3 }
0x1052   : > { %v5261_v26 = vadd.f32 %v10092_v30, %v5260_v35 }
0x1054   : > { %5300 = vst [vmem:[%s10097_s7 + $0xd8] sm:$0xff] %v5261_v26 }
0x108a   : > { %v5263_v38 = vpop.f32.mrf.mxu3 }
0x108b   : > { %v5264_v1 = vadd.f32 %v10092_v30, %v5263_v38 }
0x108d   : > { %5301 = vst [vmem:[%s10097_s7 + $0xe0] sm:$0xff] %v5264_v1 }
0x1092   : > { %v5265_v28 = vpop.f32.mrf.mxu3 }
0x1093   : > { %v5266_v23 = vadd.f32 %v10092_v30, %v5265_v28 }
0x1095   : > { %5302 = vst [vmem:[%s10097_s7 + $0xe8] sm:$0xff] %v5266_v23 }
0x109a   : > { %v5268_v51 = vpop.f32.mrf.mxu3 }
0x109b   : > { %v5269_v43 = vadd.f32 %v10092_v30, %v5268_v51 }
0x109d   : > { %5303 = vst [vmem:[%s10097_s7 + $0xf0] sm:$0xff] %v5269_v43 }
0x10a2   : > { %v5270_v4 = vpop.f32.mrf.mxu3 }
0x10a3   : > { %v5271_v42 = vadd.f32 %v10092_v30, %v5270_v4 }
0x10a5   : > { %5304 = vst [vmem:[%s10097_s7 + $0xf8] sm:$0xff] %v5271_v42 }
0x10b8   : > { %v5243_v11 = vpop.f32.mrf.mxu0 }
0x10b9   : > { %v5244_v32 = vadd.f32 %v10092_v30, %v5243_v11 }
0x10bb   : > { %5293 = vst [vmem:[%s10097_s7 + $0xa0] sm:$0xff] %v5244_v32 }
0x10c0   : > { %v5245_v15 = vpop.f32.mrf.mxu0 }
0x10c1   : > { %v5246_v25 = vadd.f32 %v10092_v30, %v5245_v15 }
0x10c3   : > { %5294 = vst [vmem:[%s10097_s7 + $0xa8] sm:$0xff] %v5246_v25 }
0x10c4   : > { %6910 = shalt.err (!%p6907_p10)
}
0x10c5   : > { %s6972_s9 = smov 128   ;;  %s6973_s7 = smov 8  }
0x10c6   : > { %5866 = dma.vmem_to_hbm [thread:$0]  (%p7099_p5), %s5319_s16, 4096, %s5321_s17, %s5306_s30, %s6972_s9, %s6972_s9, %s6973_s7  }
0x10c7 PF: > { %s5335_s10 = sand.u32 1, %s6945_s21   ;;  %p10603_p12 = scmp.ge.s32.totalorder %s6957_s24, 2 }
0x10c8   : > { %s5336_s12 = scalar_lea.sflag [#allocation4], %s5335_s10 }
0x10c9   : > { %p5886_p13 = pnand %p10603_p12, %p7044_p6 }
0x10cb   : > { %p5887_p0 = pneg %p5886_p13 }
0x10cd   : > { %6940 = dma.done.wait (%p5887_p0), %s5336_s12, 4096  }
0x10ce   : > { %6942 = vsyncadd (%p5887_p0), %s5336_s12, 4294963200  ;;  %p21_p3 = scmp.ge.s32.totalorder %s7086_s18, 4   ;;  %s10604_s21 = smov %s6949_s22 }
0x10cf   : > { %s10605_s22 = smov %s6953_s23  ;;  %s10606_s23 = smov %s7095_s26 }
0x10d0   : > { %s10607_s24 = smov %s7086_s18  ;;  %23 = sbr.rel (!%p21_p3) target bundleno = 7 (0x7), region = 108 }
0x10d5   :  { %5342 = vsyncpa [#allocation3], 1 }
0x10d6   :  { %5344 = vsyncpa [#allocation3 + $0x1], 1 }
0x10d7   :  { %5345 = vsyncpa [#allocation6], 1 }
0x10d8   :  { %5346 = vsyncpa [#allocation9], 1 }
0x10d9   :  { %5347 = vsyncpa [#allocation4], 1 }
0x10da   :  { %5349 = vsyncpa [#allocation4 + $0x1], 1 }

</bundles_post_ra>
